<compile_context>
chip_gen: v6e
topology: v6e:2x2x1
jax: 0.10.0
libtpu: 0.0.40
codegen_flags: <defaults>
</compile_context>

<pallas_src>
import math

import numpy as np
import jax
import jax.numpy as jnp
from jax.experimental import pallas as pl
from jax.experimental.pallas import tpu as pltpu


K = 16  # channel width of the model

# (layer name, dilation) for the 3x3 applications, in forward order.
# NOTE: conv3 is applied twice in the reference forward (shared weights).
_LAYER_SEQ_3X3 = (("conv1", 1), ("conv2", 1), ("conv3", 2), ("conv3", 2),
                  ("conv4", 4), ("conv5", 8), ("conv6", 16), ("conv7", 1))
DILATIONS = tuple(d for _, d in _LAYER_SEQ_3X3)


def _layer_taps(H, W, dilations):
    """Per layer: list of (tap_index, dy, dx) that can touch the interior.

    A tap whose offset magnitude is >= H (or W) only ever reads the zero
    padding (the reference uses padding == dilation), so it contributes
    exactly zero and is dropped at trace time (e.g. all 8 off-centre taps of
    the dilation-16 layer on a 16x16 image)."""
    layers = []
    for d in dilations:
        taps = []
        for t in range(9):
            ky, kx = divmod(t, 3)
            dy, dx = (ky - 1) * d, (kx - 1) * d
            if abs(dy) < H and abs(dx) < W:
                taps.append((t, dy, dx))
        layers.append(taps)
    return layers


def _make_fused_kernel(H, W, C, P, Wp, layer_taps):
    s0 = P * Wp + P                 # flat padded index of interior pixel (0,0)
    span = (H - 1) * Wp + W         # flat slab covering every interior pixel

    def kernel(x_ref, w3_ref, b3_ref, w8_ref, b8_ref, mask_ref,
               o_ref, buf_a, buf_b):
        # Scratch persists across grid steps; halos (and the zero "channels"
        # 1..C-1 that conv1's zero-padded weight columns read) must be zero.
        # With the lane-dense (C, Hp*Wp) layout this is only ~32 vector stores.
        buf_a[...] = jnp.zeros_like(buf_a)
        buf_b[...] = jnp.zeros_like(buf_b)
        buf_a[0:1, :] = x_ref[...]          # spatially pre-padded channel 0

        mask = mask_ref[...]                # (1, span): 1 on interior columns

        bufs = (buf_a, buf_b)
        cur = 0
        for li, taps in enumerate(layer_taps):        # statically unrolled
            src, dst = bufs[cur], bufs[1 - cur]
            w_l = w3_ref[li]                          # (9*C, C): rows t*C+co
            b_l = b3_ref[li]                          # (C, 1)
            acc = None
            for (t, dy, dx) in taps:                  # statically unrolled
                off = s0 + dy * Wp + dx
                tap = src[:, off:off + span]          # (C, span) lane slice
                w_t = w_l[t * C:(t + 1) * C, :]       # (C_out, C_in)
                r = jnp.dot(w_t, tap, preferred_element_type=jnp.float32)
                acc = r if acc is None else acc + r
            # bias + ReLU; the mask zeroes the in-slab halo columns so the
            # next layer's taps still read exact zero padding.
            dst[:, s0:s0 + span] = jnp.maximum(acc + b_l, 0.0) * mask
            cur = 1 - cur

        # Final 1x1 conv + ReLU, real output channel only (w8 row 0 is real,
        # rows 1..7 are zero padding for a clean 8-row MXU dot).
        last = bufs[cur][:, s0:s0 + span]             # (C, span)
        r8 = jnp.dot(w8_ref[...], last, preferred_element_type=jnp.float32)
        r8 = jnp.maximum(r8[0:1, :] + b8_ref[...], 0.0)   # (1, span)
        # Scatter the interior rows (stride Wp inside the flat slab).
        for y in range(H):                            # statically unrolled
            o_ref[y:y + 1, :] = r8[:, y * Wp:y * Wp + W].astype(o_ref.dtype)

    return kernel


def init_params(key, k=K):
    """Deterministic PyTorch-Conv2d-style (uniform +/- 1/sqrt(fan_in)) init.

    Weights stored HWIO: (kh, kw, cin, cout)."""
    specs = {
        "conv1": (1, k, 3), "conv2": (k, k, 3), "conv3": (k, k, 3),
        "conv4": (k, k, 3), "conv5": (k, k, 3), "conv6": (k, k, 3),
        "conv7": (k, k, 3), "conv8": (k, 1, 1),
    }
    params = {}
    for name, (cin, cout, ks) in specs.items():
        key, kw_, kb_ = jax.random.split(key, 3)
        bound = 1.0 / math.sqrt(cin * ks * ks)
        w = jax.random.uniform(kw_, (ks, ks, cin, cout), jnp.float32, -bound, bound)
        b = jax.random.uniform(kb_, (cout,), jnp.float32, -bound, bound)
        params[name] = (w, b)
    return params


def pack_params(params, k=K):
    """Pack weights once, outside the per-call path.

    w3: (n_layers, 9*C, C) where rows [t*C + c_out, c_in] = w[ky, kx, c_in, c_out]
        (conv1's c_in is zero-padded to C, so stale data in channels 1..C-1
        contributes exactly zero).
    b3: (n_layers, C, 1).   w8: (8, C) (row 0 real, rest zero).   b8: (1, 1)."""
    C = k
    w_list, b_list = [], []
    for name, _d in _LAYER_SEQ_3X3:
        w, b = params[name]                            # (3,3,cin,C), (C,)
        cin = w.shape[2]
        if cin < C:
            w = jnp.pad(w, ((0, 0), (0, 0), (0, C - cin), (0, 0)))
        wt = jnp.transpose(w, (0, 1, 3, 2)).reshape(9 * C, C)   # [t*C+co, ci]
        w_list.append(wt)
        b_list.append(b.reshape(C, 1))
    w3 = jnp.stack(w_list, axis=0)                     # (8, 9*C, C)
    b3 = jnp.stack(b_list, axis=0)                     # (8, C, 1)
    w8_raw, b8_raw = params["conv8"]                   # (1,1,C,1), (1,)
    w8 = jnp.pad(w8_raw.reshape(C, 1).T, ((0, 7), (0, 0)))      # (8, C)
    b8 = b8_raw.reshape(1, 1)
    return {"w3": w3, "b3": b3, "w8": w8, "b8": b8}


@jax.jit
def dilated_model_forward(x_nchw, packed):
    """Forward pass mirroring DilatedModel.forward (conv3 applied twice,
    ReLU after every conv including the final 1x1 conv8)."""
    N, cin, H, W = x_nchw.shape
    assert cin == 1
    C = K

    layer_taps = _layer_taps(H, W, DILATIONS)
    P = max(max(max(abs(dy), abs(dx)) for _, dy, dx in taps)
            for taps in layer_taps)                    # halo width actually used
    Hp, Wp = H + 2 * P, W + 2 * P
    s0 = P * Wp + P
    span = (H - 1) * Wp + W

    # Single-channel input, spatially zero-padded and flattened so the kernel
    # init is one contiguous lane-dense copy into channel 0 of the scratch.
    x_pad = jnp.pad(x_nchw[:, 0].astype(jnp.float32),
                    ((0, 0), (P, P), (P, P))).reshape(N, 1, Hp * Wp)

    # Constant interior-column mask for the flat slab (built host-side).
    cols = (np.arange(span) + s0) % Wp
    mask = jnp.asarray(((cols >= P) & (cols < P + W)).astype(np.float32)
                       ).reshape(1, span)

    w3, b3, w8, b8 = packed["w3"], packed["b3"], packed["w8"], packed["b8"]
    kernel = _make_fused_kernel(H, W, C, P, Wp, layer_taps)

    out = pl.pallas_call(
        kernel,
        out_shape=jax.ShapeDtypeStruct((N, H, W), jnp.float32),
        grid_spec=pltpu.PrefetchScalarGridSpec(
            num_scalar_prefetch=0,
            grid=(N,),
            in_specs=[
                pl.BlockSpec((None, 1, Hp * Wp), lambda n: (n, 0, 0)),
                pl.BlockSpec(w3.shape, lambda n: (0, 0, 0)),
                pl.BlockSpec(b3.shape, lambda n: (0, 0, 0)),
                pl.BlockSpec(w8.shape, lambda n: (0, 0)),
                pl.BlockSpec(b8.shape, lambda n: (0, 0)),
                pl.BlockSpec(mask.shape, lambda n: (0, 0)),
            ],
            out_specs=pl.BlockSpec((None, H, W), lambda n: (n, 0, 0)),
            scratch_shapes=[
                pltpu.VMEM((C, Hp * Wp), jnp.float32),   # ping
                pltpu.VMEM((C, Hp * Wp), jnp.float32),   # pong
            ],
        ),
        compiler_params=pltpu.CompilerParams(
            dimension_semantics=("parallel",),
            # ~1.3 MiB used at 16x16; explicit limit as a scaling guardrail.
            # TODO(synk): add a spatial-tile variant once 2*C*Hp*Wp*4 bytes
            # approaches this limit (H=W in the several-hundreds range).
            vmem_limit_bytes=32 * 1024 * 1024,
        ),
    )(x_pad, w3, b3, w8, b8, mask)

    return out[:, None, :, :]                          # (N, 1, H, W)


# ----------------------- plain-XLA reference (for checking) ------------------
def _ref_conv_relu(h, w, b, dilation, pad):
    out = jax.lax.conv_general_dilated(
        h, w, window_strides=(1, 1),
        padding=((pad, pad), (pad, pad)),
        rhs_dilation=(dilation, dilation),
        dimension_numbers=("NHWC", "HWIO", "NHWC"),
        precision=jax.lax.Precision.HIGHEST)
    return jnp.maximum(out + b, 0.0)


@jax.jit
def reference_forward(x_nchw, params):
    h = jnp.transpose(x_nchw, (0, 2, 3, 1))
    for name, d in _LAYER_SEQ_3X3:
        w, b = params[name]
        h = _ref_conv_relu(h, w, b, d, d)
    w, b = params["conv8"]
    h = _ref_conv_relu(h, w, b, 1, 0)
    return jnp.transpose(h, (0, 3, 1, 2))


if __name__ == "__main__":
    root = jax.random.PRNGKey(0)
    root, kp, kx = jax.random.split(root, 3)

    params = init_params(kp, k=K)
    packed = pack_params(params, k=K)
    x = jax.random.normal(kx, (2, 1, 16, 16), dtype=jnp.float32)

    out = jax.block_until_ready(dilated_model_forward(x, packed))

    assert out.shape == x.shape, (out.shape, x.shape)
    assert bool(jnp.all(out >= 0.0))            # reference applies a final ReLU
    assert bool(jnp.all(jnp.isfinite(out)))

    # Numerical check against the plain-XLA implementation of the same forward.
    ref = jax.block_until_ready(reference_forward(x, params))
    max_err = float(jnp.max(jnp.abs(out - ref)))
    assert max_err < 5e-3, max_err

    print("KERNEL_OK")
</pallas_src>

<mosaic_0001>
module attributes {stable_mosaic.version = 11 : i64} {
  func.func @kernel(%arg0: i32, %arg1: memref<1x1x1024xf32, #tpu.memory_space<vmem>>, %arg2: memref<8x144x16xf32, #tpu.memory_space<vmem>>, %arg3: memref<8x16x1xf32, #tpu.memory_space<vmem>>, %arg4: memref<8x16xf32, #tpu.memory_space<vmem>>, %arg5: memref<1x1xf32, #tpu.memory_space<vmem>>, %arg6: memref<1x496xf32, #tpu.memory_space<vmem>>, %arg7: memref<1x16x16xf32, #tpu.memory_space<vmem>>, %arg8: memref<16x1024xf32, #tpu.memory_space<vmem>>, %arg9: memref<16x1024xf32, #tpu.memory_space<vmem>>) attributes {dimension_semantics = [#tpu.dimension_semantics<parallel>], iteration_bounds = array<i64: 2>, scalar_prefetch = 0 : i64, scratch_operands = 2 : i64, tpu.core_type = #tpu.core_type<tc>, window_params = [{transform_indices = @transform_0, window_bounds = array<i64: 1, 1, 1024>}, {pipeline_mode = #tpu.pipeline_mode<synchronous>, transform_indices = @transform_1, window_bounds = array<i64: 8, 144, 16>}, {pipeline_mode = #tpu.pipeline_mode<synchronous>, transform_indices = @transform_2, window_bounds = array<i64: 8, 16, 1>}, {pipeline_mode = #tpu.pipeline_mode<synchronous>, transform_indices = @transform_3, window_bounds = array<i64: 8, 16>}, {pipeline_mode = #tpu.pipeline_mode<synchronous>, transform_indices = @transform_4, window_bounds = array<i64: 1, 1>}, {pipeline_mode = #tpu.pipeline_mode<synchronous>, transform_indices = @transform_5, window_bounds = array<i64: 1, 496>}, {transform_indices = @transform_6, window_bounds = array<i64: 1, 16, 16>}]} {
    %cst = arith.constant 0.000000e+00 : f32
    %0 = vector.broadcast %cst : f32 to vector<16x1024xf32>
    %c0 = arith.constant 0 : index
    %c0_0 = arith.constant 0 : index
    %1 = vector.load %arg8[%c0, %c0_0] : memref<16x1024xf32, #tpu.memory_space<vmem>>, vector<16x1024xf32>
    tpu.vector_store %arg8[%c0, %c0_0], %0 {strides = array<i32>} : memref<16x1024xf32, #tpu.memory_space<vmem>>, vector<16x1024xf32>,
    %cst_1 = arith.constant 0.000000e+00 : f32
    %2 = vector.broadcast %cst_1 : f32 to vector<16x1024xf32>
    %c0_2 = arith.constant 0 : index
    %c0_3 = arith.constant 0 : index
    %3 = vector.load %arg9[%c0_2, %c0_3] : memref<16x1024xf32, #tpu.memory_space<vmem>>, vector<16x1024xf32>
    tpu.vector_store %arg9[%c0_2, %c0_3], %2 {strides = array<i32>} : memref<16x1024xf32, #tpu.memory_space<vmem>>, vector<16x1024xf32>,
    %c0_4 = arith.constant 0 : index
    %c0_5 = arith.constant 0 : index
    %c0_6 = arith.constant 0 : index
    %4 = vector.load %arg1[%c0_4, %c0_5, %c0_6] : memref<1x1x1024xf32, #tpu.memory_space<vmem>>, vector<1x1x1024xf32>
    %5 = vector.shape_cast %4 : vector<1x1x1024xf32> to vector<1x1024xf32>
    %c0_7 = arith.constant 0 : index
    %c0_8 = arith.constant 0 : index
    %6 = vector.load %arg8[%c0_7, %c0_8] : memref<16x1024xf32, #tpu.memory_space<vmem>>, vector<1x1024xf32>
    tpu.vector_store %arg8[%c0_7, %c0_8], %5 {strides = array<i32>} : memref<16x1024xf32, #tpu.memory_space<vmem>>, vector<1x1024xf32>,
    %c0_9 = arith.constant 0 : index
    %c0_10 = arith.constant 0 : index
    %7 = vector.load %arg6[%c0_9, %c0_10] : memref<1x496xf32, #tpu.memory_space<vmem>>, vector<1x496xf32>
    %c0_11 = arith.constant 0 : index
    %c0_12 = arith.constant 0 : index
    %c0_13 = arith.constant 0 : index
    %8 = vector.load %arg2[%c0_11, %c0_12, %c0_13] : memref<8x144x16xf32, #tpu.memory_space<vmem>>, vector<1x144x16xf32>
    %9 = vector.shape_cast %8 : vector<1x144x16xf32> to vector<144x16xf32>
    %c0_14 = arith.constant 0 : index
    %c0_15 = arith.constant 0 : index
    %c0_16 = arith.constant 0 : index
    %10 = vector.load %arg3[%c0_14, %c0_15, %c0_16] : memref<8x16x1xf32, #tpu.memory_space<vmem>>, vector<1x16x1xf32>
    %11 = vector.shape_cast %10 : vector<1x16x1xf32> to vector<16x1xf32>
    %c0_17 = arith.constant 0 : index
    %c231 = arith.constant 231 : index
    %12 = vector.load %arg8[%c0_17, %c231] : memref<16x1024xf32, #tpu.memory_space<vmem>>, vector<16x496xf32>
    %13 = vector.extract_strided_slice %9 {offsets = [0, 0], sizes = [16, 16], strides = [1, 1]} : vector<144x16xf32> to vector<16x16xf32>
    %cst_18 = arith.constant dense<0.000000e+00> : vector<16x496xf32>
    %14 = tpu.matmul %13, %12, %cst_18 {dimension_numbers = #tpu.dot_dimension_numbers<[1], [0], [0], [1], [0, 0, 1, 1], [], []>} : vector<16x16xf32>, vector<16x496xf32>, vector<16x496xf32> -> vector<16x496xf32>
    %c0_19 = arith.constant 0 : index
    %c232 = arith.constant 232 : index
    %15 = vector.load %arg8[%c0_19, %c232] : memref<16x1024xf32, #tpu.memory_space<vmem>>, vector<16x496xf32>
    %16 = vector.extract_strided_slice %9 {offsets = [16, 0], sizes = [16, 16], strides = [1, 1]} : vector<144x16xf32> to vector<16x16xf32>
    %cst_20 = arith.constant dense<0.000000e+00> : vector<16x496xf32>
    %17 = tpu.matmul %16, %15, %cst_20 {dimension_numbers = #tpu.dot_dimension_numbers<[1], [0], [0], [1], [0, 0, 1, 1], [], []>} : vector<16x16xf32>, vector<16x496xf32>, vector<16x496xf32> -> vector<16x496xf32>
    %18 = arith.addf %14, %17 : vector<16x496xf32>
    %c0_21 = arith.constant 0 : index
    %c233 = arith.constant 233 : index
    %19 = vector.load %arg8[%c0_21, %c233] : memref<16x1024xf32, #tpu.memory_space<vmem>>, vector<16x496xf32>
    %20 = vector.extract_strided_slice %9 {offsets = [32, 0], sizes = [16, 16], strides = [1, 1]} : vector<144x16xf32> to vector<16x16xf32>
    %cst_22 = arith.constant dense<0.000000e+00> : vector<16x496xf32>
    %21 = tpu.matmul %20, %19, %cst_22 {dimension_numbers = #tpu.dot_dimension_numbers<[1], [0], [0], [1], [0, 0, 1, 1], [], []>} : vector<16x16xf32>, vector<16x496xf32>, vector<16x496xf32> -> vector<16x496xf32>
    %22 = arith.addf %18, %21 : vector<16x496xf32>
    %c0_23 = arith.constant 0 : index
    %c263 = arith.constant 263 : index
    %23 = vector.load %arg8[%c0_23, %c263] : memref<16x1024xf32, #tpu.memory_space<vmem>>, vector<16x496xf32>
    %24 = vector.extract_strided_slice %9 {offsets = [48, 0], sizes = [16, 16], strides = [1, 1]} : vector<144x16xf32> to vector<16x16xf32>
    %cst_24 = arith.constant dense<0.000000e+00> : vector<16x496xf32>
    %25 = tpu.matmul %24, %23, %cst_24 {dimension_numbers = #tpu.dot_dimension_numbers<[1], [0], [0], [1], [0, 0, 1, 1], [], []>} : vector<16x16xf32>, vector<16x496xf32>, vector<16x496xf32> -> vector<16x496xf32>
    %26 = arith.addf %22, %25 : vector<16x496xf32>
    %c0_25 = arith.constant 0 : index
    %c264 = arith.constant 264 : index
    %27 = vector.load %arg8[%c0_25, %c264] : memref<16x1024xf32, #tpu.memory_space<vmem>>, vector<16x496xf32>
    %28 = vector.extract_strided_slice %9 {offsets = [64, 0], sizes = [16, 16], strides = [1, 1]} : vector<144x16xf32> to vector<16x16xf32>
    %cst_26 = arith.constant dense<0.000000e+00> : vector<16x496xf32>
    %29 = tpu.matmul %28, %27, %cst_26 {dimension_numbers = #tpu.dot_dimension_numbers<[1], [0], [0], [1], [0, 0, 1, 1], [], []>} : vector<16x16xf32>, vector<16x496xf32>, vector<16x496xf32> -> vector<16x496xf32>
    %30 = arith.addf %26, %29 : vector<16x496xf32>
    %c0_27 = arith.constant 0 : index
    %c265 = arith.constant 265 : index
    %31 = vector.load %arg8[%c0_27, %c265] : memref<16x1024xf32, #tpu.memory_space<vmem>>, vector<16x496xf32>
    %32 = vector.extract_strided_slice %9 {offsets = [80, 0], sizes = [16, 16], strides = [1, 1]} : vector<144x16xf32> to vector<16x16xf32>
    %cst_28 = arith.constant dense<0.000000e+00> : vector<16x496xf32>
    %33 = tpu.matmul %32, %31, %cst_28 {dimension_numbers = #tpu.dot_dimension_numbers<[1], [0], [0], [1], [0, 0, 1, 1], [], []>} : vector<16x16xf32>, vector<16x496xf32>, vector<16x496xf32> -> vector<16x496xf32>
    %34 = arith.addf %30, %33 : vector<16x496xf32>
    %c0_29 = arith.constant 0 : index
    %c295 = arith.constant 295 : index
    %35 = vector.load %arg8[%c0_29, %c295] : memref<16x1024xf32, #tpu.memory_space<vmem>>, vector<16x496xf32>
    %36 = vector.extract_strided_slice %9 {offsets = [96, 0], sizes = [16, 16], strides = [1, 1]} : vector<144x16xf32> to vector<16x16xf32>
    %cst_30 = arith.constant dense<0.000000e+00> : vector<16x496xf32>
    %37 = tpu.matmul %36, %35, %cst_30 {dimension_numbers = #tpu.dot_dimension_numbers<[1], [0], [0], [1], [0, 0, 1, 1], [], []>} : vector<16x16xf32>, vector<16x496xf32>, vector<16x496xf32> -> vector<16x496xf32>
    %38 = arith.addf %34, %37 : vector<16x496xf32>
    %c0_31 = arith.constant 0 : index
    %c296 = arith.constant 296 : index
    %39 = vector.load %arg8[%c0_31, %c296] : memref<16x1024xf32, #tpu.memory_space<vmem>>, vector<16x496xf32>
    %40 = vector.extract_strided_slice %9 {offsets = [112, 0], sizes = [16, 16], strides = [1, 1]} : vector<144x16xf32> to vector<16x16xf32>
    %cst_32 = arith.constant dense<0.000000e+00> : vector<16x496xf32>
    %41 = tpu.matmul %40, %39, %cst_32 {dimension_numbers = #tpu.dot_dimension_numbers<[1], [0], [0], [1], [0, 0, 1, 1], [], []>} : vector<16x16xf32>, vector<16x496xf32>, vector<16x496xf32> -> vector<16x496xf32>
    %42 = arith.addf %38, %41 : vector<16x496xf32>
    %c0_33 = arith.constant 0 : index
    %c297 = arith.constant 297 : index
    %43 = vector.load %arg8[%c0_33, %c297] : memref<16x1024xf32, #tpu.memory_space<vmem>>, vector<16x496xf32>
    %44 = vector.extract_strided_slice %9 {offsets = [128, 0], sizes = [16, 16], strides = [1, 1]} : vector<144x16xf32> to vector<16x16xf32>
    %cst_34 = arith.constant dense<0.000000e+00> : vector<16x496xf32>
    %45 = tpu.matmul %44, %43, %cst_34 {dimension_numbers = #tpu.dot_dimension_numbers<[1], [0], [0], [1], [0, 0, 1, 1], [], []>} : vector<16x16xf32>, vector<16x496xf32>, vector<16x496xf32> -> vector<16x496xf32>
    %46 = arith.addf %42, %45 : vector<16x496xf32>
    %47 = vector.broadcast %11 : vector<16x1xf32> to vector<16x496xf32>
    %48 = arith.addf %46, %47 : vector<16x496xf32>
    %cst_35 = arith.constant 0.000000e+00 : f32
    %49 = vector.broadcast %cst_35 : f32 to vector<16x496xf32>
    %50 = arith.maximumf %48, %49 : vector<16x496xf32>
    %51 = vector.broadcast %7 : vector<1x496xf32> to vector<16x496xf32>
    %52 = arith.mulf %50, %51 : vector<16x496xf32>
    %c0_36 = arith.constant 0 : index
    %c264_37 = arith.constant 264 : index
    %53 = vector.load %arg9[%c0_36, %c264_37] : memref<16x1024xf32, #tpu.memory_space<vmem>>, vector<16x496xf32>
    tpu.vector_store %arg9[%c0_36, %c264_37], %52 {strides = array<i32>} : memref<16x1024xf32, #tpu.memory_space<vmem>>, vector<16x496xf32>,
    %c1 = arith.constant 1 : index
    %c0_38 = arith.constant 0 : index
    %c0_39 = arith.constant 0 : index
    %54 = vector.load %arg2[%c1, %c0_38, %c0_39] : memref<8x144x16xf32, #tpu.memory_space<vmem>>, vector<1x144x16xf32>
    %55 = vector.shape_cast %54 : vector<1x144x16xf32> to vector<144x16xf32>
    %c1_40 = arith.constant 1 : index
    %c0_41 = arith.constant 0 : index
    %c0_42 = arith.constant 0 : index
    %56 = vector.load %arg3[%c1_40, %c0_41, %c0_42] : memref<8x16x1xf32, #tpu.memory_space<vmem>>, vector<1x16x1xf32>
    %57 = vector.shape_cast %56 : vector<1x16x1xf32> to vector<16x1xf32>
    %c0_43 = arith.constant 0 : index
    %c231_44 = arith.constant 231 : index
    %58 = vector.load %arg9[%c0_43, %c231_44] : memref<16x1024xf32, #tpu.memory_space<vmem>>, vector<16x496xf32>
    %59 = vector.extract_strided_slice %55 {offsets = [0, 0], sizes = [16, 16], strides = [1, 1]} : vector<144x16xf32> to vector<16x16xf32>
    %cst_45 = arith.constant dense<0.000000e+00> : vector<16x496xf32>
    %60 = tpu.matmul %59, %58, %cst_45 {dimension_numbers = #tpu.dot_dimension_numbers<[1], [0], [0], [1], [0, 0, 1, 1], [], []>} : vector<16x16xf32>, vector<16x496xf32>, vector<16x496xf32> -> vector<16x496xf32>
    %c0_46 = arith.constant 0 : index
    %c232_47 = arith.constant 232 : index
    %61 = vector.load %arg9[%c0_46, %c232_47] : memref<16x1024xf32, #tpu.memory_space<vmem>>, vector<16x496xf32>
    %62 = vector.extract_strided_slice %55 {offsets = [16, 0], sizes = [16, 16], strides = [1, 1]} : vector<144x16xf32> to vector<16x16xf32>
    %cst_48 = arith.constant dense<0.000000e+00> : vector<16x496xf32>
    %63 = tpu.matmul %62, %61, %cst_48 {dimension_numbers = #tpu.dot_dimension_numbers<[1], [0], [0], [1], [0, 0, 1, 1], [], []>} : vector<16x16xf32>, vector<16x496xf32>, vector<16x496xf32> -> vector<16x496xf32>
    %64 = arith.addf %60, %63 : vector<16x496xf32>
    %c0_49 = arith.constant 0 : index
    %c233_50 = arith.constant 233 : index
    %65 = vector.load %arg9[%c0_49, %c233_50] : memref<16x1024xf32, #tpu.memory_space<vmem>>, vector<16x496xf32>
    %66 = vector.extract_strided_slice %55 {offsets = [32, 0], sizes = [16, 16], strides = [1, 1]} : vector<144x16xf32> to vector<16x16xf32>
    %cst_51 = arith.constant dense<0.000000e+00> : vector<16x496xf32>
    %67 = tpu.matmul %66, %65, %cst_51 {dimension_numbers = #tpu.dot_dimension_numbers<[1], [0], [0], [1], [0, 0, 1, 1], [], []>} : vector<16x16xf32>, vector<16x496xf32>, vector<16x496xf32> -> vector<16x496xf32>
    %68 = arith.addf %64, %67 : vector<16x496xf32>
    %c0_52 = arith.constant 0 : index
    %c263_53 = arith.constant 263 : index
    %69 = vector.load %arg9[%c0_52, %c263_53] : memref<16x1024xf32, #tpu.memory_space<vmem>>, vector<16x496xf32>
    %70 = vector.extract_strided_slice %55 {offsets = [48, 0], sizes = [16, 16], strides = [1, 1]} : vector<144x16xf32> to vector<16x16xf32>
    %cst_54 = arith.constant dense<0.000000e+00> : vector<16x496xf32>
    %71 = tpu.matmul %70, %69, %cst_54 {dimension_numbers = #tpu.dot_dimension_numbers<[1], [0], [0], [1], [0, 0, 1, 1], [], []>} : vector<16x16xf32>, vector<16x496xf32>, vector<16x496xf32> -> vector<16x496xf32>
    %72 = arith.addf %68, %71 : vector<16x496xf32>
    %c0_55 = arith.constant 0 : index
    %c264_56 = arith.constant 264 : index
    %73 = vector.load %arg9[%c0_55, %c264_56] : memref<16x1024xf32, #tpu.memory_space<vmem>>, vector<16x496xf32>
    %74 = vector.extract_strided_slice %55 {offsets = [64, 0], sizes = [16, 16], strides = [1, 1]} : vector<144x16xf32> to vector<16x16xf32>
    %cst_57 = arith.constant dense<0.000000e+00> : vector<16x496xf32>
    %75 = tpu.matmul %74, %73, %cst_57 {dimension_numbers = #tpu.dot_dimension_numbers<[1], [0], [0], [1], [0, 0, 1, 1], [], []>} : vector<16x16xf32>, vector<16x496xf32>, vector<16x496xf32> -> vector<16x496xf32>
    %76 = arith.addf %72, %75 : vector<16x496xf32>
    %c0_58 = arith.constant 0 : index
    %c265_59 = arith.constant 265 : index
    %77 = vector.load %arg9[%c0_58, %c265_59] : memref<16x1024xf32, #tpu.memory_space<vmem>>, vector<16x496xf32>
    %78 = vector.extract_strided_slice %55 {offsets = [80, 0], sizes = [16, 16], strides = [1, 1]} : vector<144x16xf32> to vector<16x16xf32>
    %cst_60 = arith.constant dense<0.000000e+00> : vector<16x496xf32>
    %79 = tpu.matmul %78, %77, %cst_60 {dimension_numbers = #tpu.dot_dimension_numbers<[1], [0], [0], [1], [0, 0, 1, 1], [], []>} : vector<16x16xf32>, vector<16x496xf32>, vector<16x496xf32> -> vector<16x496xf32>
    %80 = arith.addf %76, %79 : vector<16x496xf32>
    %c0_61 = arith.constant 0 : index
    %c295_62 = arith.constant 295 : index
    %81 = vector.load %arg9[%c0_61, %c295_62] : memref<16x1024xf32, #tpu.memory_space<vmem>>, vector<16x496xf32>
    %82 = vector.extract_strided_slice %55 {offsets = [96, 0], sizes = [16, 16], strides = [1, 1]} : vector<144x16xf32> to vector<16x16xf32>
    %cst_63 = arith.constant dense<0.000000e+00> : vector<16x496xf32>
    %83 = tpu.matmul %82, %81, %cst_63 {dimension_numbers = #tpu.dot_dimension_numbers<[1], [0], [0], [1], [0, 0, 1, 1], [], []>} : vector<16x16xf32>, vector<16x496xf32>, vector<16x496xf32> -> vector<16x496xf32>
    %84 = arith.addf %80, %83 : vector<16x496xf32>
    %c0_64 = arith.constant 0 : index
    %c296_65 = arith.constant 296 : index
    %85 = vector.load %arg9[%c0_64, %c296_65] : memref<16x1024xf32, #tpu.memory_space<vmem>>, vector<16x496xf32>
    %86 = vector.extract_strided_slice %55 {offsets = [112, 0], sizes = [16, 16], strides = [1, 1]} : vector<144x16xf32> to vector<16x16xf32>
    %cst_66 = arith.constant dense<0.000000e+00> : vector<16x496xf32>
    %87 = tpu.matmul %86, %85, %cst_66 {dimension_numbers = #tpu.dot_dimension_numbers<[1], [0], [0], [1], [0, 0, 1, 1], [], []>} : vector<16x16xf32>, vector<16x496xf32>, vector<16x496xf32> -> vector<16x496xf32>
    %88 = arith.addf %84, %87 : vector<16x496xf32>
    %c0_67 = arith.constant 0 : index
    %c297_68 = arith.constant 297 : index
    %89 = vector.load %arg9[%c0_67, %c297_68] : memref<16x1024xf32, #tpu.memory_space<vmem>>, vector<16x496xf32>
    %90 = vector.extract_strided_slice %55 {offsets = [128, 0], sizes = [16, 16], strides = [1, 1]} : vector<144x16xf32> to vector<16x16xf32>
    %cst_69 = arith.constant dense<0.000000e+00> : vector<16x496xf32>
    %91 = tpu.matmul %90, %89, %cst_69 {dimension_numbers = #tpu.dot_dimension_numbers<[1], [0], [0], [1], [0, 0, 1, 1], [], []>} : vector<16x16xf32>, vector<16x496xf32>, vector<16x496xf32> -> vector<16x496xf32>
    %92 = arith.addf %88, %91 : vector<16x496xf32>
    %93 = vector.broadcast %57 : vector<16x1xf32> to vector<16x496xf32>
    %94 = arith.addf %92, %93 : vector<16x496xf32>
    %cst_70 = arith.constant 0.000000e+00 : f32
    %95 = vector.broadcast %cst_70 : f32 to vector<16x496xf32>
    %96 = arith.maximumf %94, %95 : vector<16x496xf32>
    %97 = vector.broadcast %7 : vector<1x496xf32> to vector<16x496xf32>
    %98 = arith.mulf %96, %97 : vector<16x496xf32>
    %c0_71 = arith.constant 0 : index
    %c264_72 = arith.constant 264 : index
    %99 = vector.load %arg8[%c0_71, %c264_72] : memref<16x1024xf32, #tpu.memory_space<vmem>>, vector<16x496xf32>
    tpu.vector_store %arg8[%c0_71, %c264_72], %98 {strides = array<i32>} : memref<16x1024xf32, #tpu.memory_space<vmem>>, vector<16x496xf32>,
    %c2 = arith.constant 2 : index
    %c0_73 = arith.constant 0 : index
    %c0_74 = arith.constant 0 : index
    %100 = vector.load %arg2[%c2, %c0_73, %c0_74] : memref<8x144x16xf32, #tpu.memory_space<vmem>>, vector<1x144x16xf32>
    %101 = vector.shape_cast %100 : vector<1x144x16xf32> to vector<144x16xf32>
    %c2_75 = arith.constant 2 : index
    %c0_76 = arith.constant 0 : index
    %c0_77 = arith.constant 0 : index
    %102 = vector.load %arg3[%c2_75, %c0_76, %c0_77] : memref<8x16x1xf32, #tpu.memory_space<vmem>>, vector<1x16x1xf32>
    %103 = vector.shape_cast %102 : vector<1x16x1xf32> to vector<16x1xf32>
    %c0_78 = arith.constant 0 : index
    %c198 = arith.constant 198 : index
    %104 = vector.load %arg8[%c0_78, %c198] : memref<16x1024xf32, #tpu.memory_space<vmem>>, vector<16x496xf32>
    %105 = vector.extract_strided_slice %101 {offsets = [0, 0], sizes = [16, 16], strides = [1, 1]} : vector<144x16xf32> to vector<16x16xf32>
    %cst_79 = arith.constant dense<0.000000e+00> : vector<16x496xf32>
    %106 = tpu.matmul %105, %104, %cst_79 {dimension_numbers = #tpu.dot_dimension_numbers<[1], [0], [0], [1], [0, 0, 1, 1], [], []>} : vector<16x16xf32>, vector<16x496xf32>, vector<16x496xf32> -> vector<16x496xf32>
    %c0_80 = arith.constant 0 : index
    %c200 = arith.constant 200 : index
    %107 = vector.load %arg8[%c0_80, %c200] : memref<16x1024xf32, #tpu.memory_space<vmem>>, vector<16x496xf32>
    %108 = vector.extract_strided_slice %101 {offsets = [16, 0], sizes = [16, 16], strides = [1, 1]} : vector<144x16xf32> to vector<16x16xf32>
    %cst_81 = arith.constant dense<0.000000e+00> : vector<16x496xf32>
    %109 = tpu.matmul %108, %107, %cst_81 {dimension_numbers = #tpu.dot_dimension_numbers<[1], [0], [0], [1], [0, 0, 1, 1], [], []>} : vector<16x16xf32>, vector<16x496xf32>, vector<16x496xf32> -> vector<16x496xf32>
    %110 = arith.addf %106, %109 : vector<16x496xf32>
    %c0_82 = arith.constant 0 : index
    %c202 = arith.constant 202 : index
    %111 = vector.load %arg8[%c0_82, %c202] : memref<16x1024xf32, #tpu.memory_space<vmem>>, vector<16x496xf32>
    %112 = vector.extract_strided_slice %101 {offsets = [32, 0], sizes = [16, 16], strides = [1, 1]} : vector<144x16xf32> to vector<16x16xf32>
    %cst_83 = arith.constant dense<0.000000e+00> : vector<16x496xf32>
    %113 = tpu.matmul %112, %111, %cst_83 {dimension_numbers = #tpu.dot_dimension_numbers<[1], [0], [0], [1], [0, 0, 1, 1], [], []>} : vector<16x16xf32>, vector<16x496xf32>, vector<16x496xf32> -> vector<16x496xf32>
    %114 = arith.addf %110, %113 : vector<16x496xf32>
    %c0_84 = arith.constant 0 : index
    %c262 = arith.constant 262 : index
    %115 = vector.load %arg8[%c0_84, %c262] : memref<16x1024xf32, #tpu.memory_space<vmem>>, vector<16x496xf32>
    %116 = vector.extract_strided_slice %101 {offsets = [48, 0], sizes = [16, 16], strides = [1, 1]} : vector<144x16xf32> to vector<16x16xf32>
    %cst_85 = arith.constant dense<0.000000e+00> : vector<16x496xf32>
    %117 = tpu.matmul %116, %115, %cst_85 {dimension_numbers = #tpu.dot_dimension_numbers<[1], [0], [0], [1], [0, 0, 1, 1], [], []>} : vector<16x16xf32>, vector<16x496xf32>, vector<16x496xf32> -> vector<16x496xf32>
    %118 = arith.addf %114, %117 : vector<16x496xf32>
    %c0_86 = arith.constant 0 : index
    %c264_87 = arith.constant 264 : index
    %119 = vector.load %arg8[%c0_86, %c264_87] : memref<16x1024xf32, #tpu.memory_space<vmem>>, vector<16x496xf32>
    %120 = vector.extract_strided_slice %101 {offsets = [64, 0], sizes = [16, 16], strides = [1, 1]} : vector<144x16xf32> to vector<16x16xf32>
    %cst_88 = arith.constant dense<0.000000e+00> : vector<16x496xf32>
    %121 = tpu.matmul %120, %119, %cst_88 {dimension_numbers = #tpu.dot_dimension_numbers<[1], [0], [0], [1], [0, 0, 1, 1], [], []>} : vector<16x16xf32>, vector<16x496xf32>, vector<16x496xf32> -> vector<16x496xf32>
    %122 = arith.addf %118, %121 : vector<16x496xf32>
    %c0_89 = arith.constant 0 : index
    %c266 = arith.constant 266 : index
    %123 = vector.load %arg8[%c0_89, %c266] : memref<16x1024xf32, #tpu.memory_space<vmem>>, vector<16x496xf32>
    %124 = vector.extract_strided_slice %101 {offsets = [80, 0], sizes = [16, 16], strides = [1, 1]} : vector<144x16xf32> to vector<16x16xf32>
    %cst_90 = arith.constant dense<0.000000e+00> : vector<16x496xf32>
    %125 = tpu.matmul %124, %123, %cst_90 {dimension_numbers = #tpu.dot_dimension_numbers<[1], [0], [0], [1], [0, 0, 1, 1], [], []>} : vector<16x16xf32>, vector<16x496xf32>, vector<16x496xf32> -> vector<16x496xf32>
    %126 = arith.addf %122, %125 : vector<16x496xf32>
    %c0_91 = arith.constant 0 : index
    %c326 = arith.constant 326 : index
    %127 = vector.load %arg8[%c0_91, %c326] : memref<16x1024xf32, #tpu.memory_space<vmem>>, vector<16x496xf32>
    %128 = vector.extract_strided_slice %101 {offsets = [96, 0], sizes = [16, 16], strides = [1, 1]} : vector<144x16xf32> to vector<16x16xf32>
    %cst_92 = arith.constant dense<0.000000e+00> : vector<16x496xf32>
    %129 = tpu.matmul %128, %127, %cst_92 {dimension_numbers = #tpu.dot_dimension_numbers<[1], [0], [0], [1], [0, 0, 1, 1], [], []>} : vector<16x16xf32>, vector<16x496xf32>, vector<16x496xf32> -> vector<16x496xf32>
    %130 = arith.addf %126, %129 : vector<16x496xf32>
    %c0_93 = arith.constant 0 : index
    %c328 = arith.constant 328 : index
    %131 = vector.load %arg8[%c0_93, %c328] : memref<16x1024xf32, #tpu.memory_space<vmem>>, vector<16x496xf32>
    %132 = vector.extract_strided_slice %101 {offsets = [112, 0], sizes = [16, 16], strides = [1, 1]} : vector<144x16xf32> to vector<16x16xf32>
    %cst_94 = arith.constant dense<0.000000e+00> : vector<16x496xf32>
    %133 = tpu.matmul %132, %131, %cst_94 {dimension_numbers = #tpu.dot_dimension_numbers<[1], [0], [0], [1], [0, 0, 1, 1], [], []>} : vector<16x16xf32>, vector<16x496xf32>, vector<16x496xf32> -> vector<16x496xf32>
    %134 = arith.addf %130, %133 : vector<16x496xf32>
    %c0_95 = arith.constant 0 : index
    %c330 = arith.constant 330 : index
    %135 = vector.load %arg8[%c0_95, %c330] : memref<16x1024xf32, #tpu.memory_space<vmem>>, vector<16x496xf32>
    %136 = vector.extract_strided_slice %101 {offsets = [128, 0], sizes = [16, 16], strides = [1, 1]} : vector<144x16xf32> to vector<16x16xf32>
    %cst_96 = arith.constant dense<0.000000e+00> : vector<16x496xf32>
    %137 = tpu.matmul %136, %135, %cst_96 {dimension_numbers = #tpu.dot_dimension_numbers<[1], [0], [0], [1], [0, 0, 1, 1], [], []>} : vector<16x16xf32>, vector<16x496xf32>, vector<16x496xf32> -> vector<16x496xf32>
    %138 = arith.addf %134, %137 : vector<16x496xf32>
    %139 = vector.broadcast %103 : vector<16x1xf32> to vector<16x496xf32>
    %140 = arith.addf %138, %139 : vector<16x496xf32>
    %cst_97 = arith.constant 0.000000e+00 : f32
    %141 = vector.broadcast %cst_97 : f32 to vector<16x496xf32>
    %142 = arith.maximumf %140, %141 : vector<16x496xf32>
    %143 = vector.broadcast %7 : vector<1x496xf32> to vector<16x496xf32>
    %144 = arith.mulf %142, %143 : vector<16x496xf32>
    %c0_98 = arith.constant 0 : index
    %c264_99 = arith.constant 264 : index
    %145 = vector.load %arg9[%c0_98, %c264_99] : memref<16x1024xf32, #tpu.memory_space<vmem>>, vector<16x496xf32>
    tpu.vector_store %arg9[%c0_98, %c264_99], %144 {strides = array<i32>} : memref<16x1024xf32, #tpu.memory_space<vmem>>, vector<16x496xf32>,
    %c3 = arith.constant 3 : index
    %c0_100 = arith.constant 0 : index
    %c0_101 = arith.constant 0 : index
    %146 = vector.load %arg2[%c3, %c0_100, %c0_101] : memref<8x144x16xf32, #tpu.memory_space<vmem>>, vector<1x144x16xf32>
    %147 = vector.shape_cast %146 : vector<1x144x16xf32> to vector<144x16xf32>
    %c3_102 = arith.constant 3 : index
    %c0_103 = arith.constant 0 : index
    %c0_104 = arith.constant 0 : index
    %148 = vector.load %arg3[%c3_102, %c0_103, %c0_104] : memref<8x16x1xf32, #tpu.memory_space<vmem>>, vector<1x16x1xf32>
    %149 = vector.shape_cast %148 : vector<1x16x1xf32> to vector<16x1xf32>
    %c0_105 = arith.constant 0 : index
    %c198_106 = arith.constant 198 : index
    %150 = vector.load %arg9[%c0_105, %c198_106] : memref<16x1024xf32, #tpu.memory_space<vmem>>, vector<16x496xf32>
    %151 = vector.extract_strided_slice %147 {offsets = [0, 0], sizes = [16, 16], strides = [1, 1]} : vector<144x16xf32> to vector<16x16xf32>
    %cst_107 = arith.constant dense<0.000000e+00> : vector<16x496xf32>
    %152 = tpu.matmul %151, %150, %cst_107 {dimension_numbers = #tpu.dot_dimension_numbers<[1], [0], [0], [1], [0, 0, 1, 1], [], []>} : vector<16x16xf32>, vector<16x496xf32>, vector<16x496xf32> -> vector<16x496xf32>
    %c0_108 = arith.constant 0 : index
    %c200_109 = arith.constant 200 : index
    %153 = vector.load %arg9[%c0_108, %c200_109] : memref<16x1024xf32, #tpu.memory_space<vmem>>, vector<16x496xf32>
    %154 = vector.extract_strided_slice %147 {offsets = [16, 0], sizes = [16, 16], strides = [1, 1]} : vector<144x16xf32> to vector<16x16xf32>
    %cst_110 = arith.constant dense<0.000000e+00> : vector<16x496xf32>
    %155 = tpu.matmul %154, %153, %cst_110 {dimension_numbers = #tpu.dot_dimension_numbers<[1], [0], [0], [1], [0, 0, 1, 1], [], []>} : vector<16x16xf32>, vector<16x496xf32>, vector<16x496xf32> -> vector<16x496xf32>
    %156 = arith.addf %152, %155 : vector<16x496xf32>
    %c0_111 = arith.constant 0 : index
    %c202_112 = arith.constant 202 : index
    %157 = vector.load %arg9[%c0_111, %c202_112] : memref<16x1024xf32, #tpu.memory_space<vmem>>, vector<16x496xf32>
    %158 = vector.extract_strided_slice %147 {offsets = [32, 0], sizes = [16, 16], strides = [1, 1]} : vector<144x16xf32> to vector<16x16xf32>
    %cst_113 = arith.constant dense<0.000000e+00> : vector<16x496xf32>
    %159 = tpu.matmul %158, %157, %cst_113 {dimension_numbers = #tpu.dot_dimension_numbers<[1], [0], [0], [1], [0, 0, 1, 1], [], []>} : vector<16x16xf32>, vector<16x496xf32>, vector<16x496xf32> -> vector<16x496xf32>
    %160 = arith.addf %156, %159 : vector<16x496xf32>
    %c0_114 = arith.constant 0 : index
    %c262_115 = arith.constant 262 : index
    %161 = vector.load %arg9[%c0_114, %c262_115] : memref<16x1024xf32, #tpu.memory_space<vmem>>, vector<16x496xf32>
    %162 = vector.extract_strided_slice %147 {offsets = [48, 0], sizes = [16, 16], strides = [1, 1]} : vector<144x16xf32> to vector<16x16xf32>
    %cst_116 = arith.constant dense<0.000000e+00> : vector<16x496xf32>
    %163 = tpu.matmul %162, %161, %cst_116 {dimension_numbers = #tpu.dot_dimension_numbers<[1], [0], [0], [1], [0, 0, 1, 1], [], []>} : vector<16x16xf32>, vector<16x496xf32>, vector<16x496xf32> -> vector<16x496xf32>
    %164 = arith.addf %160, %163 : vector<16x496xf32>
    %c0_117 = arith.constant 0 : index
    %c264_118 = arith.constant 264 : index
    %165 = vector.load %arg9[%c0_117, %c264_118] : memref<16x1024xf32, #tpu.memory_space<vmem>>, vector<16x496xf32>
    %166 = vector.extract_strided_slice %147 {offsets = [64, 0], sizes = [16, 16], strides = [1, 1]} : vector<144x16xf32> to vector<16x16xf32>
    %cst_119 = arith.constant dense<0.000000e+00> : vector<16x496xf32>
    %167 = tpu.matmul %166, %165, %cst_119 {dimension_numbers = #tpu.dot_dimension_numbers<[1], [0], [0], [1], [0, 0, 1, 1], [], []>} : vector<16x16xf32>, vector<16x496xf32>, vector<16x496xf32> -> vector<16x496xf32>
    %168 = arith.addf %164, %167 : vector<16x496xf32>
    %c0_120 = arith.constant 0 : index
    %c266_121 = arith.constant 266 : index
    %169 = vector.load %arg9[%c0_120, %c266_121] : memref<16x1024xf32, #tpu.memory_space<vmem>>, vector<16x496xf32>
    %170 = vector.extract_strided_slice %147 {offsets = [80, 0], sizes = [16, 16], strides = [1, 1]} : vector<144x16xf32> to vector<16x16xf32>
    %cst_122 = arith.constant dense<0.000000e+00> : vector<16x496xf32>
    %171 = tpu.matmul %170, %169, %cst_122 {dimension_numbers = #tpu.dot_dimension_numbers<[1], [0], [0], [1], [0, 0, 1, 1], [], []>} : vector<16x16xf32>, vector<16x496xf32>, vector<16x496xf32> -> vector<16x496xf32>
    %172 = arith.addf %168, %171 : vector<16x496xf32>
    %c0_123 = arith.constant 0 : index
    %c326_124 = arith.constant 326 : index
    %173 = vector.load %arg9[%c0_123, %c326_124] : memref<16x1024xf32, #tpu.memory_space<vmem>>, vector<16x496xf32>
    %174 = vector.extract_strided_slice %147 {offsets = [96, 0], sizes = [16, 16], strides = [1, 1]} : vector<144x16xf32> to vector<16x16xf32>
    %cst_125 = arith.constant dense<0.000000e+00> : vector<16x496xf32>
    %175 = tpu.matmul %174, %173, %cst_125 {dimension_numbers = #tpu.dot_dimension_numbers<[1], [0], [0], [1], [0, 0, 1, 1], [], []>} : vector<16x16xf32>, vector<16x496xf32>, vector<16x496xf32> -> vector<16x496xf32>
    %176 = arith.addf %172, %175 : vector<16x496xf32>
    %c0_126 = arith.constant 0 : index
    %c328_127 = arith.constant 328 : index
    %177 = vector.load %arg9[%c0_126, %c328_127] : memref<16x1024xf32, #tpu.memory_space<vmem>>, vector<16x496xf32>
    %178 = vector.extract_strided_slice %147 {offsets = [112, 0], sizes = [16, 16], strides = [1, 1]} : vector<144x16xf32> to vector<16x16xf32>
    %cst_128 = arith.constant dense<0.000000e+00> : vector<16x496xf32>
    %179 = tpu.matmul %178, %177, %cst_128 {dimension_numbers = #tpu.dot_dimension_numbers<[1], [0], [0], [1], [0, 0, 1, 1], [], []>} : vector<16x16xf32>, vector<16x496xf32>, vector<16x496xf32> -> vector<16x496xf32>
    %180 = arith.addf %176, %179 : vector<16x496xf32>
    %c0_129 = arith.constant 0 : index
    %c330_130 = arith.constant 330 : index
    %181 = vector.load %arg9[%c0_129, %c330_130] : memref<16x1024xf32, #tpu.memory_space<vmem>>, vector<16x496xf32>
    %182 = vector.extract_strided_slice %147 {offsets = [128, 0], sizes = [16, 16], strides = [1, 1]} : vector<144x16xf32> to vector<16x16xf32>
    %cst_131 = arith.constant dense<0.000000e+00> : vector<16x496xf32>
    %183 = tpu.matmul %182, %181, %cst_131 {dimension_numbers = #tpu.dot_dimension_numbers<[1], [0], [0], [1], [0, 0, 1, 1], [], []>} : vector<16x16xf32>, vector<16x496xf32>, vector<16x496xf32> -> vector<16x496xf32>
    %184 = arith.addf %180, %183 : vector<16x496xf32>
    %185 = vector.broadcast %149 : vector<16x1xf32> to vector<16x496xf32>
    %186 = arith.addf %184, %185 : vector<16x496xf32>
    %cst_132 = arith.constant 0.000000e+00 : f32
    %187 = vector.broadcast %cst_132 : f32 to vector<16x496xf32>
    %188 = arith.maximumf %186, %187 : vector<16x496xf32>
    %189 = vector.broadcast %7 : vector<1x496xf32> to vector<16x496xf32>
    %190 = arith.mulf %188, %189 : vector<16x496xf32>
    %c0_133 = arith.constant 0 : index
    %c264_134 = arith.constant 264 : index
    %191 = vector.load %arg8[%c0_133, %c264_134] : memref<16x1024xf32, #tpu.memory_space<vmem>>, vector<16x496xf32>
    tpu.vector_store %arg8[%c0_133, %c264_134], %190 {strides = array<i32>} : memref<16x1024xf32, #tpu.memory_space<vmem>>, vector<16x496xf32>,
    %c4 = arith.constant 4 : index
    %c0_135 = arith.constant 0 : index
    %c0_136 = arith.constant 0 : index
    %192 = vector.load %arg2[%c4, %c0_135, %c0_136] : memref<8x144x16xf32, #tpu.memory_space<vmem>>, vector<1x144x16xf32>
    %193 = vector.shape_cast %192 : vector<1x144x16xf32> to vector<144x16xf32>
    %c4_137 = arith.constant 4 : index
    %c0_138 = arith.constant 0 : index
    %c0_139 = arith.constant 0 : index
    %194 = vector.load %arg3[%c4_137, %c0_138, %c0_139] : memref<8x16x1xf32, #tpu.memory_space<vmem>>, vector<1x16x1xf32>
    %195 = vector.shape_cast %194 : vector<1x16x1xf32> to vector<16x1xf32>
    %c0_140 = arith.constant 0 : index
    %c132 = arith.constant 132 : index
    %196 = vector.load %arg8[%c0_140, %c132] : memref<16x1024xf32, #tpu.memory_space<vmem>>, vector<16x496xf32>
    %197 = vector.extract_strided_slice %193 {offsets = [0, 0], sizes = [16, 16], strides = [1, 1]} : vector<144x16xf32> to vector<16x16xf32>
    %cst_141 = arith.constant dense<0.000000e+00> : vector<16x496xf32>
    %198 = tpu.matmul %197, %196, %cst_141 {dimension_numbers = #tpu.dot_dimension_numbers<[1], [0], [0], [1], [0, 0, 1, 1], [], []>} : vector<16x16xf32>, vector<16x496xf32>, vector<16x496xf32> -> vector<16x496xf32>
    %c0_142 = arith.constant 0 : index
    %c136 = arith.constant 136 : index
    %199 = vector.load %arg8[%c0_142, %c136] : memref<16x1024xf32, #tpu.memory_space<vmem>>, vector<16x496xf32>
    %200 = vector.extract_strided_slice %193 {offsets = [16, 0], sizes = [16, 16], strides = [1, 1]} : vector<144x16xf32> to vector<16x16xf32>
    %cst_143 = arith.constant dense<0.000000e+00> : vector<16x496xf32>
    %201 = tpu.matmul %200, %199, %cst_143 {dimension_numbers = #tpu.dot_dimension_numbers<[1], [0], [0], [1], [0, 0, 1, 1], [], []>} : vector<16x16xf32>, vector<16x496xf32>, vector<16x496xf32> -> vector<16x496xf32>
    %202 = arith.addf %198, %201 : vector<16x496xf32>
    %c0_144 = arith.constant 0 : index
    %c140 = arith.constant 140 : index
    %203 = vector.load %arg8[%c0_144, %c140] : memref<16x1024xf32, #tpu.memory_space<vmem>>, vector<16x496xf32>
    %204 = vector.extract_strided_slice %193 {offsets = [32, 0], sizes = [16, 16], strides = [1, 1]} : vector<144x16xf32> to vector<16x16xf32>
    %cst_145 = arith.constant dense<0.000000e+00> : vector<16x496xf32>
    %205 = tpu.matmul %204, %203, %cst_145 {dimension_numbers = #tpu.dot_dimension_numbers<[1], [0], [0], [1], [0, 0, 1, 1], [], []>} : vector<16x16xf32>, vector<16x496xf32>, vector<16x496xf32> -> vector<16x496xf32>
    %206 = arith.addf %202, %205 : vector<16x496xf32>
    %c0_146 = arith.constant 0 : index
    %c260 = arith.constant 260 : index
    %207 = vector.load %arg8[%c0_146, %c260] : memref<16x1024xf32, #tpu.memory_space<vmem>>, vector<16x496xf32>
    %208 = vector.extract_strided_slice %193 {offsets = [48, 0], sizes = [16, 16], strides = [1, 1]} : vector<144x16xf32> to vector<16x16xf32>
    %cst_147 = arith.constant dense<0.000000e+00> : vector<16x496xf32>
    %209 = tpu.matmul %208, %207, %cst_147 {dimension_numbers = #tpu.dot_dimension_numbers<[1], [0], [0], [1], [0, 0, 1, 1], [], []>} : vector<16x16xf32>, vector<16x496xf32>, vector<16x496xf32> -> vector<16x496xf32>
    %210 = arith.addf %206, %209 : vector<16x496xf32>
    %c0_148 = arith.constant 0 : index
    %c264_149 = arith.constant 264 : index
    %211 = vector.load %arg8[%c0_148, %c264_149] : memref<16x1024xf32, #tpu.memory_space<vmem>>, vector<16x496xf32>
    %212 = vector.extract_strided_slice %193 {offsets = [64, 0], sizes = [16, 16], strides = [1, 1]} : vector<144x16xf32> to vector<16x16xf32>
    %cst_150 = arith.constant dense<0.000000e+00> : vector<16x496xf32>
    %213 = tpu.matmul %212, %211, %cst_150 {dimension_numbers = #tpu.dot_dimension_numbers<[1], [0], [0], [1], [0, 0, 1, 1], [], []>} : vector<16x16xf32>, vector<16x496xf32>, vector<16x496xf32> -> vector<16x496xf32>
    %214 = arith.addf %210, %213 : vector<16x496xf32>
    %c0_151 = arith.constant 0 : index
    %c268 = arith.constant 268 : index
    %215 = vector.load %arg8[%c0_151, %c268] : memref<16x1024xf32, #tpu.memory_space<vmem>>, vector<16x496xf32>
    %216 = vector.extract_strided_slice %193 {offsets = [80, 0], sizes = [16, 16], strides = [1, 1]} : vector<144x16xf32> to vector<16x16xf32>
    %cst_152 = arith.constant dense<0.000000e+00> : vector<16x496xf32>
    %217 = tpu.matmul %216, %215, %cst_152 {dimension_numbers = #tpu.dot_dimension_numbers<[1], [0], [0], [1], [0, 0, 1, 1], [], []>} : vector<16x16xf32>, vector<16x496xf32>, vector<16x496xf32> -> vector<16x496xf32>
    %218 = arith.addf %214, %217 : vector<16x496xf32>
    %c0_153 = arith.constant 0 : index
    %c388 = arith.constant 388 : index
    %219 = vector.load %arg8[%c0_153, %c388] : memref<16x1024xf32, #tpu.memory_space<vmem>>, vector<16x496xf32>
    %220 = vector.extract_strided_slice %193 {offsets = [96, 0], sizes = [16, 16], strides = [1, 1]} : vector<144x16xf32> to vector<16x16xf32>
    %cst_154 = arith.constant dense<0.000000e+00> : vector<16x496xf32>
    %221 = tpu.matmul %220, %219, %cst_154 {dimension_numbers = #tpu.dot_dimension_numbers<[1], [0], [0], [1], [0, 0, 1, 1], [], []>} : vector<16x16xf32>, vector<16x496xf32>, vector<16x496xf32> -> vector<16x496xf32>
    %222 = arith.addf %218, %221 : vector<16x496xf32>
    %c0_155 = arith.constant 0 : index
    %c392 = arith.constant 392 : index
    %223 = vector.load %arg8[%c0_155, %c392] : memref<16x1024xf32, #tpu.memory_space<vmem>>, vector<16x496xf32>
    %224 = vector.extract_strided_slice %193 {offsets = [112, 0], sizes = [16, 16], strides = [1, 1]} : vector<144x16xf32> to vector<16x16xf32>
    %cst_156 = arith.constant dense<0.000000e+00> : vector<16x496xf32>
    %225 = tpu.matmul %224, %223, %cst_156 {dimension_numbers = #tpu.dot_dimension_numbers<[1], [0], [0], [1], [0, 0, 1, 1], [], []>} : vector<16x16xf32>, vector<16x496xf32>, vector<16x496xf32> -> vector<16x496xf32>
    %226 = arith.addf %222, %225 : vector<16x496xf32>
    %c0_157 = arith.constant 0 : index
    %c396 = arith.constant 396 : index
    %227 = vector.load %arg8[%c0_157, %c396] : memref<16x1024xf32, #tpu.memory_space<vmem>>, vector<16x496xf32>
    %228 = vector.extract_strided_slice %193 {offsets = [128, 0], sizes = [16, 16], strides = [1, 1]} : vector<144x16xf32> to vector<16x16xf32>
    %cst_158 = arith.constant dense<0.000000e+00> : vector<16x496xf32>
    %229 = tpu.matmul %228, %227, %cst_158 {dimension_numbers = #tpu.dot_dimension_numbers<[1], [0], [0], [1], [0, 0, 1, 1], [], []>} : vector<16x16xf32>, vector<16x496xf32>, vector<16x496xf32> -> vector<16x496xf32>
    %230 = arith.addf %226, %229 : vector<16x496xf32>
    %231 = vector.broadcast %195 : vector<16x1xf32> to vector<16x496xf32>
    %232 = arith.addf %230, %231 : vector<16x496xf32>
    %cst_159 = arith.constant 0.000000e+00 : f32
    %233 = vector.broadcast %cst_159 : f32 to vector<16x496xf32>
    %234 = arith.maximumf %232, %233 : vector<16x496xf32>
    %235 = vector.broadcast %7 : vector<1x496xf32> to vector<16x496xf32>
    %236 = arith.mulf %234, %235 : vector<16x496xf32>
    %c0_160 = arith.constant 0 : index
    %c264_161 = arith.constant 264 : index
    %237 = vector.load %arg9[%c0_160, %c264_161] : memref<16x1024xf32, #tpu.memory_space<vmem>>, vector<16x496xf32>
    tpu.vector_store %arg9[%c0_160, %c264_161], %236 {strides = array<i32>} : memref<16x1024xf32, #tpu.memory_space<vmem>>, vector<16x496xf32>,
    %c5 = arith.constant 5 : index
    %c0_162 = arith.constant 0 : index
    %c0_163 = arith.constant 0 : index
    %238 = vector.load %arg2[%c5, %c0_162, %c0_163] : memref<8x144x16xf32, #tpu.memory_space<vmem>>, vector<1x144x16xf32>
    %239 = vector.shape_cast %238 : vector<1x144x16xf32> to vector<144x16xf32>
    %c5_164 = arith.constant 5 : index
    %c0_165 = arith.constant 0 : index
    %c0_166 = arith.constant 0 : index
    %240 = vector.load %arg3[%c5_164, %c0_165, %c0_166] : memref<8x16x1xf32, #tpu.memory_space<vmem>>, vector<1x16x1xf32>
    %241 = vector.shape_cast %240 : vector<1x16x1xf32> to vector<16x1xf32>
    %c0_167 = arith.constant 0 : index
    %c0_168 = arith.constant 0 : index
    %242 = vector.load %arg9[%c0_167, %c0_168] : memref<16x1024xf32, #tpu.memory_space<vmem>>, vector<16x496xf32>
    %243 = vector.extract_strided_slice %239 {offsets = [0, 0], sizes = [16, 16], strides = [1, 1]} : vector<144x16xf32> to vector<16x16xf32>
    %cst_169 = arith.constant dense<0.000000e+00> : vector<16x496xf32>
    %244 = tpu.matmul %243, %242, %cst_169 {dimension_numbers = #tpu.dot_dimension_numbers<[1], [0], [0], [1], [0, 0, 1, 1], [], []>} : vector<16x16xf32>, vector<16x496xf32>, vector<16x496xf32> -> vector<16x496xf32>
    %c0_170 = arith.constant 0 : index
    %c8 = arith.constant 8 : index
    %245 = vector.load %arg9[%c0_170, %c8] : memref<16x1024xf32, #tpu.memory_space<vmem>>, vector<16x496xf32>
    %246 = vector.extract_strided_slice %239 {offsets = [16, 0], sizes = [16, 16], strides = [1, 1]} : vector<144x16xf32> to vector<16x16xf32>
    %cst_171 = arith.constant dense<0.000000e+00> : vector<16x496xf32>
    %247 = tpu.matmul %246, %245, %cst_171 {dimension_numbers = #tpu.dot_dimension_numbers<[1], [0], [0], [1], [0, 0, 1, 1], [], []>} : vector<16x16xf32>, vector<16x496xf32>, vector<16x496xf32> -> vector<16x496xf32>
    %248 = arith.addf %244, %247 : vector<16x496xf32>
    %c0_172 = arith.constant 0 : index
    %c16 = arith.constant 16 : index
    %249 = vector.load %arg9[%c0_172, %c16] : memref<16x1024xf32, #tpu.memory_space<vmem>>, vector<16x496xf32>
    %250 = vector.extract_strided_slice %239 {offsets = [32, 0], sizes = [16, 16], strides = [1, 1]} : vector<144x16xf32> to vector<16x16xf32>
    %cst_173 = arith.constant dense<0.000000e+00> : vector<16x496xf32>
    %251 = tpu.matmul %250, %249, %cst_173 {dimension_numbers = #tpu.dot_dimension_numbers<[1], [0], [0], [1], [0, 0, 1, 1], [], []>} : vector<16x16xf32>, vector<16x496xf32>, vector<16x496xf32> -> vector<16x496xf32>
    %252 = arith.addf %248, %251 : vector<16x496xf32>
    %c0_174 = arith.constant 0 : index
    %c256 = arith.constant 256 : index
    %253 = vector.load %arg9[%c0_174, %c256] : memref<16x1024xf32, #tpu.memory_space<vmem>>, vector<16x496xf32>
    %254 = vector.extract_strided_slice %239 {offsets = [48, 0], sizes = [16, 16], strides = [1, 1]} : vector<144x16xf32> to vector<16x16xf32>
    %cst_175 = arith.constant dense<0.000000e+00> : vector<16x496xf32>
    %255 = tpu.matmul %254, %253, %cst_175 {dimension_numbers = #tpu.dot_dimension_numbers<[1], [0], [0], [1], [0, 0, 1, 1], [], []>} : vector<16x16xf32>, vector<16x496xf32>, vector<16x496xf32> -> vector<16x496xf32>
    %256 = arith.addf %252, %255 : vector<16x496xf32>
    %c0_176 = arith.constant 0 : index
    %c264_177 = arith.constant 264 : index
    %257 = vector.load %arg9[%c0_176, %c264_177] : memref<16x1024xf32, #tpu.memory_space<vmem>>, vector<16x496xf32>
    %258 = vector.extract_strided_slice %239 {offsets = [64, 0], sizes = [16, 16], strides = [1, 1]} : vector<144x16xf32> to vector<16x16xf32>
    %cst_178 = arith.constant dense<0.000000e+00> : vector<16x496xf32>
    %259 = tpu.matmul %258, %257, %cst_178 {dimension_numbers = #tpu.dot_dimension_numbers<[1], [0], [0], [1], [0, 0, 1, 1], [], []>} : vector<16x16xf32>, vector<16x496xf32>, vector<16x496xf32> -> vector<16x496xf32>
    %260 = arith.addf %256, %259 : vector<16x496xf32>
    %c0_179 = arith.constant 0 : index
    %c272 = arith.constant 272 : index
    %261 = vector.load %arg9[%c0_179, %c272] : memref<16x1024xf32, #tpu.memory_space<vmem>>, vector<16x496xf32>
    %262 = vector.extract_strided_slice %239 {offsets = [80, 0], sizes = [16, 16], strides = [1, 1]} : vector<144x16xf32> to vector<16x16xf32>
    %cst_180 = arith.constant dense<0.000000e+00> : vector<16x496xf32>
    %263 = tpu.matmul %262, %261, %cst_180 {dimension_numbers = #tpu.dot_dimension_numbers<[1], [0], [0], [1], [0, 0, 1, 1], [], []>} : vector<16x16xf32>, vector<16x496xf32>, vector<16x496xf32> -> vector<16x496xf32>
    %264 = arith.addf %260, %263 : vector<16x496xf32>
    %c0_181 = arith.constant 0 : index
    %c512 = arith.constant 512 : index
    %265 = vector.load %arg9[%c0_181, %c512] : memref<16x1024xf32, #tpu.memory_space<vmem>>, vector<16x496xf32>
    %266 = vector.extract_strided_slice %239 {offsets = [96, 0], sizes = [16, 16], strides = [1, 1]} : vector<144x16xf32> to vector<16x16xf32>
    %cst_182 = arith.constant dense<0.000000e+00> : vector<16x496xf32>
    %267 = tpu.matmul %266, %265, %cst_182 {dimension_numbers = #tpu.dot_dimension_numbers<[1], [0], [0], [1], [0, 0, 1, 1], [], []>} : vector<16x16xf32>, vector<16x496xf32>, vector<16x496xf32> -> vector<16x496xf32>
    %268 = arith.addf %264, %267 : vector<16x496xf32>
    %c0_183 = arith.constant 0 : index
    %c520 = arith.constant 520 : index
    %269 = vector.load %arg9[%c0_183, %c520] : memref<16x1024xf32, #tpu.memory_space<vmem>>, vector<16x496xf32>
    %270 = vector.extract_strided_slice %239 {offsets = [112, 0], sizes = [16, 16], strides = [1, 1]} : vector<144x16xf32> to vector<16x16xf32>
    %cst_184 = arith.constant dense<0.000000e+00> : vector<16x496xf32>
    %271 = tpu.matmul %270, %269, %cst_184 {dimension_numbers = #tpu.dot_dimension_numbers<[1], [0], [0], [1], [0, 0, 1, 1], [], []>} : vector<16x16xf32>, vector<16x496xf32>, vector<16x496xf32> -> vector<16x496xf32>
    %272 = arith.addf %268, %271 : vector<16x496xf32>
    %c0_185 = arith.constant 0 : index
    %c528 = arith.constant 528 : index
    %273 = vector.load %arg9[%c0_185, %c528] : memref<16x1024xf32, #tpu.memory_space<vmem>>, vector<16x496xf32>
    %274 = vector.extract_strided_slice %239 {offsets = [128, 0], sizes = [16, 16], strides = [1, 1]} : vector<144x16xf32> to vector<16x16xf32>
    %cst_186 = arith.constant dense<0.000000e+00> : vector<16x496xf32>
    %275 = tpu.matmul %274, %273, %cst_186 {dimension_numbers = #tpu.dot_dimension_numbers<[1], [0], [0], [1], [0, 0, 1, 1], [], []>} : vector<16x16xf32>, vector<16x496xf32>, vector<16x496xf32> -> vector<16x496xf32>
    %276 = arith.addf %272, %275 : vector<16x496xf32>
    %277 = vector.broadcast %241 : vector<16x1xf32> to vector<16x496xf32>
    %278 = arith.addf %276, %277 : vector<16x496xf32>
    %cst_187 = arith.constant 0.000000e+00 : f32
    %279 = vector.broadcast %cst_187 : f32 to vector<16x496xf32>
    %280 = arith.maximumf %278, %279 : vector<16x496xf32>
    %281 = vector.broadcast %7 : vector<1x496xf32> to vector<16x496xf32>
    %282 = arith.mulf %280, %281 : vector<16x496xf32>
    %c0_188 = arith.constant 0 : index
    %c264_189 = arith.constant 264 : index
    %283 = vector.load %arg8[%c0_188, %c264_189] : memref<16x1024xf32, #tpu.memory_space<vmem>>, vector<16x496xf32>
    tpu.vector_store %arg8[%c0_188, %c264_189], %282 {strides = array<i32>} : memref<16x1024xf32, #tpu.memory_space<vmem>>, vector<16x496xf32>,
    %c6 = arith.constant 6 : index
    %c0_190 = arith.constant 0 : index
    %c0_191 = arith.constant 0 : index
    %284 = vector.load %arg2[%c6, %c0_190, %c0_191] : memref<8x144x16xf32, #tpu.memory_space<vmem>>, vector<1x144x16xf32>
    %285 = vector.shape_cast %284 : vector<1x144x16xf32> to vector<144x16xf32>
    %c6_192 = arith.constant 6 : index
    %c0_193 = arith.constant 0 : index
    %c0_194 = arith.constant 0 : index
    %286 = vector.load %arg3[%c6_192, %c0_193, %c0_194] : memref<8x16x1xf32, #tpu.memory_space<vmem>>, vector<1x16x1xf32>
    %287 = vector.shape_cast %286 : vector<1x16x1xf32> to vector<16x1xf32>
    %c0_195 = arith.constant 0 : index
    %c264_196 = arith.constant 264 : index
    %288 = vector.load %arg8[%c0_195, %c264_196] : memref<16x1024xf32, #tpu.memory_space<vmem>>, vector<16x496xf32>
    %289 = vector.extract_strided_slice %285 {offsets = [64, 0], sizes = [16, 16], strides = [1, 1]} : vector<144x16xf32> to vector<16x16xf32>
    %cst_197 = arith.constant dense<0.000000e+00> : vector<16x496xf32>
    %290 = tpu.matmul %289, %288, %cst_197 {dimension_numbers = #tpu.dot_dimension_numbers<[1], [0], [0], [1], [0, 0, 1, 1], [], []>} : vector<16x16xf32>, vector<16x496xf32>, vector<16x496xf32> -> vector<16x496xf32>
    %291 = vector.broadcast %287 : vector<16x1xf32> to vector<16x496xf32>
    %292 = arith.addf %290, %291 : vector<16x496xf32>
    %cst_198 = arith.constant 0.000000e+00 : f32
    %293 = vector.broadcast %cst_198 : f32 to vector<16x496xf32>
    %294 = arith.maximumf %292, %293 : vector<16x496xf32>
    %295 = vector.broadcast %7 : vector<1x496xf32> to vector<16x496xf32>
    %296 = arith.mulf %294, %295 : vector<16x496xf32>
    %c0_199 = arith.constant 0 : index
    %c264_200 = arith.constant 264 : index
    %297 = vector.load %arg9[%c0_199, %c264_200] : memref<16x1024xf32, #tpu.memory_space<vmem>>, vector<16x496xf32>
    tpu.vector_store %arg9[%c0_199, %c264_200], %296 {strides = array<i32>} : memref<16x1024xf32, #tpu.memory_space<vmem>>, vector<16x496xf32>,
    %c7 = arith.constant 7 : index
    %c0_201 = arith.constant 0 : index
    %c0_202 = arith.constant 0 : index
    %298 = vector.load %arg2[%c7, %c0_201, %c0_202] : memref<8x144x16xf32, #tpu.memory_space<vmem>>, vector<1x144x16xf32>
    %299 = vector.shape_cast %298 : vector<1x144x16xf32> to vector<144x16xf32>
    %c7_203 = arith.constant 7 : index
    %c0_204 = arith.constant 0 : index
    %c0_205 = arith.constant 0 : index
    %300 = vector.load %arg3[%c7_203, %c0_204, %c0_205] : memref<8x16x1xf32, #tpu.memory_space<vmem>>, vector<1x16x1xf32>
    %301 = vector.shape_cast %300 : vector<1x16x1xf32> to vector<16x1xf32>
    %c0_206 = arith.constant 0 : index
    %c231_207 = arith.constant 231 : index
    %302 = vector.load %arg9[%c0_206, %c231_207] : memref<16x1024xf32, #tpu.memory_space<vmem>>, vector<16x496xf32>
    %303 = vector.extract_strided_slice %299 {offsets = [0, 0], sizes = [16, 16], strides = [1, 1]} : vector<144x16xf32> to vector<16x16xf32>
    %cst_208 = arith.constant dense<0.000000e+00> : vector<16x496xf32>
    %304 = tpu.matmul %303, %302, %cst_208 {dimension_numbers = #tpu.dot_dimension_numbers<[1], [0], [0], [1], [0, 0, 1, 1], [], []>} : vector<16x16xf32>, vector<16x496xf32>, vector<16x496xf32> -> vector<16x496xf32>
    %c0_209 = arith.constant 0 : index
    %c232_210 = arith.constant 232 : index
    %305 = vector.load %arg9[%c0_209, %c232_210] : memref<16x1024xf32, #tpu.memory_space<vmem>>, vector<16x496xf32>
    %306 = vector.extract_strided_slice %299 {offsets = [16, 0], sizes = [16, 16], strides = [1, 1]} : vector<144x16xf32> to vector<16x16xf32>
    %cst_211 = arith.constant dense<0.000000e+00> : vector<16x496xf32>
    %307 = tpu.matmul %306, %305, %cst_211 {dimension_numbers = #tpu.dot_dimension_numbers<[1], [0], [0], [1], [0, 0, 1, 1], [], []>} : vector<16x16xf32>, vector<16x496xf32>, vector<16x496xf32> -> vector<16x496xf32>
    %308 = arith.addf %304, %307 : vector<16x496xf32>
    %c0_212 = arith.constant 0 : index
    %c233_213 = arith.constant 233 : index
    %309 = vector.load %arg9[%c0_212, %c233_213] : memref<16x1024xf32, #tpu.memory_space<vmem>>, vector<16x496xf32>
    %310 = vector.extract_strided_slice %299 {offsets = [32, 0], sizes = [16, 16], strides = [1, 1]} : vector<144x16xf32> to vector<16x16xf32>
    %cst_214 = arith.constant dense<0.000000e+00> : vector<16x496xf32>
    %311 = tpu.matmul %310, %309, %cst_214 {dimension_numbers = #tpu.dot_dimension_numbers<[1], [0], [0], [1], [0, 0, 1, 1], [], []>} : vector<16x16xf32>, vector<16x496xf32>, vector<16x496xf32> -> vector<16x496xf32>
    %312 = arith.addf %308, %311 : vector<16x496xf32>
    %c0_215 = arith.constant 0 : index
    %c263_216 = arith.constant 263 : index
    %313 = vector.load %arg9[%c0_215, %c263_216] : memref<16x1024xf32, #tpu.memory_space<vmem>>, vector<16x496xf32>
    %314 = vector.extract_strided_slice %299 {offsets = [48, 0], sizes = [16, 16], strides = [1, 1]} : vector<144x16xf32> to vector<16x16xf32>
    %cst_217 = arith.constant dense<0.000000e+00> : vector<16x496xf32>
    %315 = tpu.matmul %314, %313, %cst_217 {dimension_numbers = #tpu.dot_dimension_numbers<[1], [0], [0], [1], [0, 0, 1, 1], [], []>} : vector<16x16xf32>, vector<16x496xf32>, vector<16x496xf32> -> vector<16x496xf32>
    %316 = arith.addf %312, %315 : vector<16x496xf32>
    %c0_218 = arith.constant 0 : index
    %c264_219 = arith.constant 264 : index
    %317 = vector.load %arg9[%c0_218, %c264_219] : memref<16x1024xf32, #tpu.memory_space<vmem>>, vector<16x496xf32>
    %318 = vector.extract_strided_slice %299 {offsets = [64, 0], sizes = [16, 16], strides = [1, 1]} : vector<144x16xf32> to vector<16x16xf32>
    %cst_220 = arith.constant dense<0.000000e+00> : vector<16x496xf32>
    %319 = tpu.matmul %318, %317, %cst_220 {dimension_numbers = #tpu.dot_dimension_numbers<[1], [0], [0], [1], [0, 0, 1, 1], [], []>} : vector<16x16xf32>, vector<16x496xf32>, vector<16x496xf32> -> vector<16x496xf32>
    %320 = arith.addf %316, %319 : vector<16x496xf32>
    %c0_221 = arith.constant 0 : index
    %c265_222 = arith.constant 265 : index
    %321 = vector.load %arg9[%c0_221, %c265_222] : memref<16x1024xf32, #tpu.memory_space<vmem>>, vector<16x496xf32>
    %322 = vector.extract_strided_slice %299 {offsets = [80, 0], sizes = [16, 16], strides = [1, 1]} : vector<144x16xf32> to vector<16x16xf32>
    %cst_223 = arith.constant dense<0.000000e+00> : vector<16x496xf32>
    %323 = tpu.matmul %322, %321, %cst_223 {dimension_numbers = #tpu.dot_dimension_numbers<[1], [0], [0], [1], [0, 0, 1, 1], [], []>} : vector<16x16xf32>, vector<16x496xf32>, vector<16x496xf32> -> vector<16x496xf32>
    %324 = arith.addf %320, %323 : vector<16x496xf32>
    %c0_224 = arith.constant 0 : index
    %c295_225 = arith.constant 295 : index
    %325 = vector.load %arg9[%c0_224, %c295_225] : memref<16x1024xf32, #tpu.memory_space<vmem>>, vector<16x496xf32>
    %326 = vector.extract_strided_slice %299 {offsets = [96, 0], sizes = [16, 16], strides = [1, 1]} : vector<144x16xf32> to vector<16x16xf32>
    %cst_226 = arith.constant dense<0.000000e+00> : vector<16x496xf32>
    %327 = tpu.matmul %326, %325, %cst_226 {dimension_numbers = #tpu.dot_dimension_numbers<[1], [0], [0], [1], [0, 0, 1, 1], [], []>} : vector<16x16xf32>, vector<16x496xf32>, vector<16x496xf32> -> vector<16x496xf32>
    %328 = arith.addf %324, %327 : vector<16x496xf32>
    %c0_227 = arith.constant 0 : index
    %c296_228 = arith.constant 296 : index
    %329 = vector.load %arg9[%c0_227, %c296_228] : memref<16x1024xf32, #tpu.memory_space<vmem>>, vector<16x496xf32>
    %330 = vector.extract_strided_slice %299 {offsets = [112, 0], sizes = [16, 16], strides = [1, 1]} : vector<144x16xf32> to vector<16x16xf32>
    %cst_229 = arith.constant dense<0.000000e+00> : vector<16x496xf32>
    %331 = tpu.matmul %330, %329, %cst_229 {dimension_numbers = #tpu.dot_dimension_numbers<[1], [0], [0], [1], [0, 0, 1, 1], [], []>} : vector<16x16xf32>, vector<16x496xf32>, vector<16x496xf32> -> vector<16x496xf32>
    %332 = arith.addf %328, %331 : vector<16x496xf32>
    %c0_230 = arith.constant 0 : index
    %c297_231 = arith.constant 297 : index
    %333 = vector.load %arg9[%c0_230, %c297_231] : memref<16x1024xf32, #tpu.memory_space<vmem>>, vector<16x496xf32>
    %334 = vector.extract_strided_slice %299 {offsets = [128, 0], sizes = [16, 16], strides = [1, 1]} : vector<144x16xf32> to vector<16x16xf32>
    %cst_232 = arith.constant dense<0.000000e+00> : vector<16x496xf32>
    %335 = tpu.matmul %334, %333, %cst_232 {dimension_numbers = #tpu.dot_dimension_numbers<[1], [0], [0], [1], [0, 0, 1, 1], [], []>} : vector<16x16xf32>, vector<16x496xf32>, vector<16x496xf32> -> vector<16x496xf32>
    %336 = arith.addf %332, %335 : vector<16x496xf32>
    %337 = vector.broadcast %301 : vector<16x1xf32> to vector<16x496xf32>
    %338 = arith.addf %336, %337 : vector<16x496xf32>
    %cst_233 = arith.constant 0.000000e+00 : f32
    %339 = vector.broadcast %cst_233 : f32 to vector<16x496xf32>
    %340 = arith.maximumf %338, %339 : vector<16x496xf32>
    %341 = vector.broadcast %7 : vector<1x496xf32> to vector<16x496xf32>
    %342 = arith.mulf %340, %341 : vector<16x496xf32>
    %c0_234 = arith.constant 0 : index
    %c264_235 = arith.constant 264 : index
    %343 = vector.load %arg8[%c0_234, %c264_235] : memref<16x1024xf32, #tpu.memory_space<vmem>>, vector<16x496xf32>
    tpu.vector_store %arg8[%c0_234, %c264_235], %342 {strides = array<i32>} : memref<16x1024xf32, #tpu.memory_space<vmem>>, vector<16x496xf32>,
    %c0_236 = arith.constant 0 : index
    %c264_237 = arith.constant 264 : index
    %344 = vector.load %arg8[%c0_236, %c264_237] : memref<16x1024xf32, #tpu.memory_space<vmem>>, vector<16x496xf32>
    %c0_238 = arith.constant 0 : index
    %c0_239 = arith.constant 0 : index
    %345 = vector.load %arg4[%c0_238, %c0_239] : memref<8x16xf32, #tpu.memory_space<vmem>>, vector<8x16xf32>
    %cst_240 = arith.constant dense<0.000000e+00> : vector<8x496xf32>
    %346 = tpu.matmul %345, %344, %cst_240 {dimension_numbers = #tpu.dot_dimension_numbers<[1], [0], [0], [1], [0, 0, 1, 1], [], []>} : vector<8x16xf32>, vector<16x496xf32>, vector<8x496xf32> -> vector<8x496xf32>
    %347 = vector.extract_strided_slice %346 {offsets = [0, 0], sizes = [1, 496], strides = [1, 1]} : vector<8x496xf32> to vector<1x496xf32>
    %c0_241 = arith.constant 0 : index
    %c0_242 = arith.constant 0 : index
    %348 = vector.load %arg5[%c0_241, %c0_242] : memref<1x1xf32, #tpu.memory_space<vmem>>, vector<1x1xf32>
    %349 = vector.broadcast %348 : vector<1x1xf32> to vector<1x496xf32>
    %350 = arith.addf %347, %349 : vector<1x496xf32>
    %cst_243 = arith.constant 0.000000e+00 : f32
    %351 = vector.broadcast %cst_243 : f32 to vector<1x496xf32>
    %352 = arith.maximumf %350, %351 : vector<1x496xf32>
    %353 = vector.extract_strided_slice %352 {offsets = [0, 0], sizes = [1, 16], strides = [1, 1]} : vector<1x496xf32> to vector<1x16xf32>
    %c0_244 = arith.constant 0 : index
    %c0_245 = arith.constant 0 : index
    %c0_246 = arith.constant 0 : index
    %354 = vector.load %arg7[%c0_244, %c0_245, %c0_246] : memref<1x16x16xf32, #tpu.memory_space<vmem>>, vector<1x1x16xf32>
    %355 = vector.shape_cast %354 : vector<1x1x16xf32> to vector<1x16xf32>
    %356 = vector.shape_cast %353 : vector<1x16xf32> to vector<1x1x16xf32>
    tpu.vector_store %arg7[%c0_244, %c0_245, %c0_246], %356 {strides = array<i32>} : memref<1x16x16xf32, #tpu.memory_space<vmem>>, vector<1x1x16xf32>,
    %357 = vector.extract_strided_slice %352 {offsets = [0, 32], sizes = [1, 16], strides = [1, 1]} : vector<1x496xf32> to vector<1x16xf32>
    %c0_247 = arith.constant 0 : index
    %c1_248 = arith.constant 1 : index
    %c0_249 = arith.constant 0 : index
    %358 = vector.load %arg7[%c0_247, %c1_248, %c0_249] : memref<1x16x16xf32, #tpu.memory_space<vmem>>, vector<1x1x16xf32>
    %359 = vector.shape_cast %358 : vector<1x1x16xf32> to vector<1x16xf32>
    %360 = vector.shape_cast %357 : vector<1x16xf32> to vector<1x1x16xf32>
    tpu.vector_store %arg7[%c0_247, %c1_248, %c0_249], %360 {strides = array<i32>} : memref<1x16x16xf32, #tpu.memory_space<vmem>>, vector<1x1x16xf32>,
    %361 = vector.extract_strided_slice %352 {offsets = [0, 64], sizes = [1, 16], strides = [1, 1]} : vector<1x496xf32> to vector<1x16xf32>
    %c0_250 = arith.constant 0 : index
    %c2_251 = arith.constant 2 : index
    %c0_252 = arith.constant 0 : index
    %362 = vector.load %arg7[%c0_250, %c2_251, %c0_252] : memref<1x16x16xf32, #tpu.memory_space<vmem>>, vector<1x1x16xf32>
    %363 = vector.shape_cast %362 : vector<1x1x16xf32> to vector<1x16xf32>
    %364 = vector.shape_cast %361 : vector<1x16xf32> to vector<1x1x16xf32>
    tpu.vector_store %arg7[%c0_250, %c2_251, %c0_252], %364 {strides = array<i32>} : memref<1x16x16xf32, #tpu.memory_space<vmem>>, vector<1x1x16xf32>,
    %365 = vector.extract_strided_slice %352 {offsets = [0, 96], sizes = [1, 16], strides = [1, 1]} : vector<1x496xf32> to vector<1x16xf32>
    %c0_253 = arith.constant 0 : index
    %c3_254 = arith.constant 3 : index
    %c0_255 = arith.constant 0 : index
    %366 = vector.load %arg7[%c0_253, %c3_254, %c0_255] : memref<1x16x16xf32, #tpu.memory_space<vmem>>, vector<1x1x16xf32>
    %367 = vector.shape_cast %366 : vector<1x1x16xf32> to vector<1x16xf32>
    %368 = vector.shape_cast %365 : vector<1x16xf32> to vector<1x1x16xf32>
    tpu.vector_store %arg7[%c0_253, %c3_254, %c0_255], %368 {strides = array<i32>} : memref<1x16x16xf32, #tpu.memory_space<vmem>>, vector<1x1x16xf32>,
    %369 = vector.extract_strided_slice %352 {offsets = [0, 128], sizes = [1, 16], strides = [1, 1]} : vector<1x496xf32> to vector<1x16xf32>
    %c0_256 = arith.constant 0 : index
    %c4_257 = arith.constant 4 : index
    %c0_258 = arith.constant 0 : index
    %370 = vector.load %arg7[%c0_256, %c4_257, %c0_258] : memref<1x16x16xf32, #tpu.memory_space<vmem>>, vector<1x1x16xf32>
    %371 = vector.shape_cast %370 : vector<1x1x16xf32> to vector<1x16xf32>
    %372 = vector.shape_cast %369 : vector<1x16xf32> to vector<1x1x16xf32>
    tpu.vector_store %arg7[%c0_256, %c4_257, %c0_258], %372 {strides = array<i32>} : memref<1x16x16xf32, #tpu.memory_space<vmem>>, vector<1x1x16xf32>,
    %373 = vector.extract_strided_slice %352 {offsets = [0, 160], sizes = [1, 16], strides = [1, 1]} : vector<1x496xf32> to vector<1x16xf32>
    %c0_259 = arith.constant 0 : index
    %c5_260 = arith.constant 5 : index
    %c0_261 = arith.constant 0 : index
    %374 = vector.load %arg7[%c0_259, %c5_260, %c0_261] : memref<1x16x16xf32, #tpu.memory_space<vmem>>, vector<1x1x16xf32>
    %375 = vector.shape_cast %374 : vector<1x1x16xf32> to vector<1x16xf32>
    %376 = vector.shape_cast %373 : vector<1x16xf32> to vector<1x1x16xf32>
    tpu.vector_store %arg7[%c0_259, %c5_260, %c0_261], %376 {strides = array<i32>} : memref<1x16x16xf32, #tpu.memory_space<vmem>>, vector<1x1x16xf32>,
    %377 = vector.extract_strided_slice %352 {offsets = [0, 192], sizes = [1, 16], strides = [1, 1]} : vector<1x496xf32> to vector<1x16xf32>
    %c0_262 = arith.constant 0 : index
    %c6_263 = arith.constant 6 : index
    %c0_264 = arith.constant 0 : index
    %378 = vector.load %arg7[%c0_262, %c6_263, %c0_264] : memref<1x16x16xf32, #tpu.memory_space<vmem>>, vector<1x1x16xf32>
    %379 = vector.shape_cast %378 : vector<1x1x16xf32> to vector<1x16xf32>
    %380 = vector.shape_cast %377 : vector<1x16xf32> to vector<1x1x16xf32>
    tpu.vector_store %arg7[%c0_262, %c6_263, %c0_264], %380 {strides = array<i32>} : memref<1x16x16xf32, #tpu.memory_space<vmem>>, vector<1x1x16xf32>,
    %381 = vector.extract_strided_slice %352 {offsets = [0, 224], sizes = [1, 16], strides = [1, 1]} : vector<1x496xf32> to vector<1x16xf32>
    %c0_265 = arith.constant 0 : index
    %c7_266 = arith.constant 7 : index
    %c0_267 = arith.constant 0 : index
    %382 = vector.load %arg7[%c0_265, %c7_266, %c0_267] : memref<1x16x16xf32, #tpu.memory_space<vmem>>, vector<1x1x16xf32>
    %383 = vector.shape_cast %382 : vector<1x1x16xf32> to vector<1x16xf32>
    %384 = vector.shape_cast %381 : vector<1x16xf32> to vector<1x1x16xf32>
    tpu.vector_store %arg7[%c0_265, %c7_266, %c0_267], %384 {strides = array<i32>} : memref<1x16x16xf32, #tpu.memory_space<vmem>>, vector<1x1x16xf32>,
    %385 = vector.extract_strided_slice %352 {offsets = [0, 256], sizes = [1, 16], strides = [1, 1]} : vector<1x496xf32> to vector<1x16xf32>
    %c0_268 = arith.constant 0 : index
    %c8_269 = arith.constant 8 : index
    %c0_270 = arith.constant 0 : index
    %386 = vector.load %arg7[%c0_268, %c8_269, %c0_270] : memref<1x16x16xf32, #tpu.memory_space<vmem>>, vector<1x1x16xf32>
    %387 = vector.shape_cast %386 : vector<1x1x16xf32> to vector<1x16xf32>
    %388 = vector.shape_cast %385 : vector<1x16xf32> to vector<1x1x16xf32>
    tpu.vector_store %arg7[%c0_268, %c8_269, %c0_270], %388 {strides = array<i32>} : memref<1x16x16xf32, #tpu.memory_space<vmem>>, vector<1x1x16xf32>,
    %389 = vector.extract_strided_slice %352 {offsets = [0, 288], sizes = [1, 16], strides = [1, 1]} : vector<1x496xf32> to vector<1x16xf32>
    %c0_271 = arith.constant 0 : index
    %c9 = arith.constant 9 : index
    %c0_272 = arith.constant 0 : index
    %390 = vector.load %arg7[%c0_271, %c9, %c0_272] : memref<1x16x16xf32, #tpu.memory_space<vmem>>, vector<1x1x16xf32>
    %391 = vector.shape_cast %390 : vector<1x1x16xf32> to vector<1x16xf32>
    %392 = vector.shape_cast %389 : vector<1x16xf32> to vector<1x1x16xf32>
    tpu.vector_store %arg7[%c0_271, %c9, %c0_272], %392 {strides = array<i32>} : memref<1x16x16xf32, #tpu.memory_space<vmem>>, vector<1x1x16xf32>,
    %393 = vector.extract_strided_slice %352 {offsets = [0, 320], sizes = [1, 16], strides = [1, 1]} : vector<1x496xf32> to vector<1x16xf32>
    %c0_273 = arith.constant 0 : index
    %c10 = arith.constant 10 : index
    %c0_274 = arith.constant 0 : index
    %394 = vector.load %arg7[%c0_273, %c10, %c0_274] : memref<1x16x16xf32, #tpu.memory_space<vmem>>, vector<1x1x16xf32>
    %395 = vector.shape_cast %394 : vector<1x1x16xf32> to vector<1x16xf32>
    %396 = vector.shape_cast %393 : vector<1x16xf32> to vector<1x1x16xf32>
    tpu.vector_store %arg7[%c0_273, %c10, %c0_274], %396 {strides = array<i32>} : memref<1x16x16xf32, #tpu.memory_space<vmem>>, vector<1x1x16xf32>,
    %397 = vector.extract_strided_slice %352 {offsets = [0, 352], sizes = [1, 16], strides = [1, 1]} : vector<1x496xf32> to vector<1x16xf32>
    %c0_275 = arith.constant 0 : index
    %c11 = arith.constant 11 : index
    %c0_276 = arith.constant 0 : index
    %398 = vector.load %arg7[%c0_275, %c11, %c0_276] : memref<1x16x16xf32, #tpu.memory_space<vmem>>, vector<1x1x16xf32>
    %399 = vector.shape_cast %398 : vector<1x1x16xf32> to vector<1x16xf32>
    %400 = vector.shape_cast %397 : vector<1x16xf32> to vector<1x1x16xf32>
    tpu.vector_store %arg7[%c0_275, %c11, %c0_276], %400 {strides = array<i32>} : memref<1x16x16xf32, #tpu.memory_space<vmem>>, vector<1x1x16xf32>,
    %401 = vector.extract_strided_slice %352 {offsets = [0, 384], sizes = [1, 16], strides = [1, 1]} : vector<1x496xf32> to vector<1x16xf32>
    %c0_277 = arith.constant 0 : index
    %c12 = arith.constant 12 : index
    %c0_278 = arith.constant 0 : index
    %402 = vector.load %arg7[%c0_277, %c12, %c0_278] : memref<1x16x16xf32, #tpu.memory_space<vmem>>, vector<1x1x16xf32>
    %403 = vector.shape_cast %402 : vector<1x1x16xf32> to vector<1x16xf32>
    %404 = vector.shape_cast %401 : vector<1x16xf32> to vector<1x1x16xf32>
    tpu.vector_store %arg7[%c0_277, %c12, %c0_278], %404 {strides = array<i32>} : memref<1x16x16xf32, #tpu.memory_space<vmem>>, vector<1x1x16xf32>,
    %405 = vector.extract_strided_slice %352 {offsets = [0, 416], sizes = [1, 16], strides = [1, 1]} : vector<1x496xf32> to vector<1x16xf32>
    %c0_279 = arith.constant 0 : index
    %c13 = arith.constant 13 : index
    %c0_280 = arith.constant 0 : index
    %406 = vector.load %arg7[%c0_279, %c13, %c0_280] : memref<1x16x16xf32, #tpu.memory_space<vmem>>, vector<1x1x16xf32>
    %407 = vector.shape_cast %406 : vector<1x1x16xf32> to vector<1x16xf32>
    %408 = vector.shape_cast %405 : vector<1x16xf32> to vector<1x1x16xf32>
    tpu.vector_store %arg7[%c0_279, %c13, %c0_280], %408 {strides = array<i32>} : memref<1x16x16xf32, #tpu.memory_space<vmem>>, vector<1x1x16xf32>,
    %409 = vector.extract_strided_slice %352 {offsets = [0, 448], sizes = [1, 16], strides = [1, 1]} : vector<1x496xf32> to vector<1x16xf32>
    %c0_281 = arith.constant 0 : index
    %c14 = arith.constant 14 : index
    %c0_282 = arith.constant 0 : index
    %410 = vector.load %arg7[%c0_281, %c14, %c0_282] : memref<1x16x16xf32, #tpu.memory_space<vmem>>, vector<1x1x16xf32>
    %411 = vector.shape_cast %410 : vector<1x1x16xf32> to vector<1x16xf32>
    %412 = vector.shape_cast %409 : vector<1x16xf32> to vector<1x1x16xf32>
    tpu.vector_store %arg7[%c0_281, %c14, %c0_282], %412 {strides = array<i32>} : memref<1x16x16xf32, #tpu.memory_space<vmem>>, vector<1x1x16xf32>,
    %413 = vector.extract_strided_slice %352 {offsets = [0, 480], sizes = [1, 16], strides = [1, 1]} : vector<1x496xf32> to vector<1x16xf32>
    %c0_283 = arith.constant 0 : index
    %c15 = arith.constant 15 : index
    %c0_284 = arith.constant 0 : index
    %414 = vector.load %arg7[%c0_283, %c15, %c0_284] : memref<1x16x16xf32, #tpu.memory_space<vmem>>, vector<1x1x16xf32>
    %415 = vector.shape_cast %414 : vector<1x1x16xf32> to vector<1x16xf32>
    %416 = vector.shape_cast %413 : vector<1x16xf32> to vector<1x1x16xf32>
    tpu.vector_store %arg7[%c0_283, %c15, %c0_284], %416 {strides = array<i32>} : memref<1x16x16xf32, #tpu.memory_space<vmem>>, vector<1x1x16xf32>,
    return
  }
  func.func @transform_0(%arg0: i32) -> (i32, i32, i32) {
    %c0_i32 = arith.constant 0 : i32
    %c0_i32_0 = arith.constant 0 : i32
    %c0_i32_1 = arith.constant 0 : i32
    return %arg0, %c0_i32, %c0_i32_0 : i32, i32, i32
  }
  func.func @transform_1(%arg0: i32) -> (i32, i32, i32) {
    %c0_i32 = arith.constant 0 : i32
    %c0_i32_0 = arith.constant 0 : i32
    %c0_i32_1 = arith.constant 0 : i32
    %c0_i32_2 = arith.constant 0 : i32
    return %c0_i32, %c0_i32_0, %c0_i32_1 : i32, i32, i32
  }
  func.func @transform_2(%arg0: i32) -> (i32, i32, i32) {
    %c0_i32 = arith.constant 0 : i32
    %c0_i32_0 = arith.constant 0 : i32
    %c0_i32_1 = arith.constant 0 : i32
    %c0_i32_2 = arith.constant 0 : i32
    return %c0_i32, %c0_i32_0, %c0_i32_1 : i32, i32, i32
  }
  func.func @transform_3(%arg0: i32) -> (i32, i32) {
    %c0_i32 = arith.constant 0 : i32
    %c0_i32_0 = arith.constant 0 : i32
    %c0_i32_1 = arith.constant 0 : i32
    return %c0_i32, %c0_i32_0 : i32, i32
  }
  func.func @transform_4(%arg0: i32) -> (i32, i32) {
    %c0_i32 = arith.constant 0 : i32
    %c0_i32_0 = arith.constant 0 : i32
    %c0_i32_1 = arith.constant 0 : i32
    return %c0_i32, %c0_i32_0 : i32, i32
  }
  func.func @transform_5(%arg0: i32) -> (i32, i32) {
    %c0_i32 = arith.constant 0 : i32
    %c0_i32_0 = arith.constant 0 : i32
    %c0_i32_1 = arith.constant 0 : i32
    return %c0_i32, %c0_i32_0 : i32, i32
  }
  func.func @transform_6(%arg0: i32) -> (i32, i32, i32) {
    %c0_i32 = arith.constant 0 : i32
    %c0_i32_0 = arith.constant 0 : i32
    %c0_i32_1 = arith.constant 0 : i32
    return %arg0, %c0_i32, %c0_i32_0 : i32, i32, i32
  }
}

</mosaic_0001>

<bundles_post_ra>
// kernel: dilated_model_forward.1
= control target key start
LH: loop header
LB: loop body
LE: loop exit
PB: predicated region body
PF: predicated region fallthrough
CT: control target
= control target key end

     0   :  { %s19690_s0 = inlined_call_operand.vmem [shape: f32[2,1,1024], index: 0, kind: input, shape index: {}]   ;;  %s19691_s1 = inlined_call_operand.vmem [shape: f32[8,144,16], index: 1, kind: input, shape index: {}]   ;;  %s19692_s2 = inlined_call_operand.vmem [shape: f32[8,16,1], index: 2, kind: input, shape index: {}]   ;;  %s19693_s3 = inlined_call_operand.vmem [shape: f32[8,16], index: 3, kind: input, shape index: {}]   ;;  %s19694_s4 = inlined_call_operand.<no memory space> [shape: f32[1,1], index: 4, kind: input, shape index: {}]   ;;  %s19695_s5 = inlined_call_operand.vmem [shape: f32[1,496], index: 5, kind: input, shape index: {}]   ;;  %s19696_s6 = inlined_call_operand.hbm [shape: f32[2,16,16], index: 6, kind: output, shape index: {}]  }
   0x1   :  { %v11_v0 = vstv %s19694_s4 }
   0x2   :  { %12 = vst [vmem:[#allocation4] sm:$0x1] %v11_v0 }
   0x3   :  { %13 = vsyncpa [#allocation6], 0 }
   0x4   :  { %15 = vsyncpa [#allocation6 + $0x1], 0  ;;  %s15168_s23 = smov 0   ;;  %s15170_s24 = smov 0  }
   0x5   :  { %s15172_s25 = smov 0   ;;  %s15174_s26 = smov 0  }
   0x6 LB: > { %s15189_s4 = sadd.s32 4294967295, %s15103_s26   ;;  %s14413_s27 = sadd.s32 4294967294, %s15103_s26   ;;  %s15103_s26 = sphi %s15174_s26, %s19779_s26   ;;  %s15099_s25 = sphi %s15172_s25, %s19778_s25   ;;  %s15095_s24 = sphi %s15170_s24, %s19777_s24   ;;  %s15091_s23 = sphi %s15168_s23, %s19776_s23  }
   0x7   : > { %s15193_s28 = sadd.s32 1, %s15103_s26   ;;  %s159_s29 = sadd.s32 1, %s15099_s25 }
   0x8   : > { %s156_s30 = ssub.s32 %s15103_s26, %s15193_s28  ;;  %p169_p0 = scmp.ne.s32.totalorder %s15099_s25, %s15095_s24 }
   0x9   : > { %p157_p1 = scmp.eq.s32.totalorder %s156_s30, 0  ;;  %p170_p2 = scmp.eq.s32.totalorder %s15189_s4, 1 }
   0xa   : > { %p175_p3 = scmp.ne.s32.totalorder %s15095_s24, %s15091_s23  ;;  %p176_p4 = scmp.eq.s32.totalorder %s14413_s27, 1 }
   0xb   : > { %s15204_s7 = scalar_select %p157_p1, %s15099_s25, %s159_s29  }
   0xc   : > { %p15206_p5 = por %p170_p2, %p169_p0  ;;  %p15210_p6 = por %p176_p4, %p175_p3 }
   0xd   : > { %p14416_p7 = scmp.ge.s32.totalorder %s15103_s26, 1  ;;  %p216_p8 = scmp.lt.s32.totalorder %s15103_s26, 3 }
   0xf   : > { %p217_p9 = pnand %p14416_p7, %p216_p8 }
  0x11   : > { %220 = sbr.rel (%p217_p9) target bundleno = 4944 (0x1350), region = 44 }
  0x16   : > { %v15105_v1 = vmov 0.0   ;;  %p245_p10 = scmp.lt.s32.totalorder %s15189_s4, 1  ;;  %s15106_s10 = smov 25   ;;  %vm345_vm0 = vcmask 195584   ;;  %vm543_vm1 = vcmask 203776   ;;  %v15384_v26 = vld [vmem:[%s19691_s1 + $0x10] sm:$0xff] }
  0x17   : > { %259 = vst [vmem:[#allocation2 + $0x50] sm:$0xff] %v15105_v1  ;;  %250 = vst [vmem:[#allocation2 + $0x8] sm:$0xff] %v15105_v1  ;;  %433 = vmatprep.mubr.f32.mxu0 %v15105_v1  ;;  %510 = vmatprep.mubr.f32.mxu1 %v15105_v1  ;;  %s15107_s11 = smov 24   ;;  %s15108_s17 = smov 23   ;;  %vm362_vm2 = vcmask 130048   ;;  %v15407_v35 = vld [vmem:[%s19691_s1 + $0x18] sm:$0xff] }
  0x18   : > { %251 = vst [vmem:[#allocation2 + $0x10] sm:$0xff] %v15105_v1  ;;  %252 = vst [vmem:[#allocation2 + $0x18] sm:$0xff] %v15105_v1  ;;  %14881 = vrot.lane.b32.xlu1 %v15105_v1, %s15106_s10  ;;  %14871 = vrot.lane.b32.xlu0 %v15105_v1, %s15107_s11  ;;  %s246_s12 = scalar_select %p245_p10, %s15189_s4, 1  ;;  %vm740_vm3 = vcmask 187392   ;;  %v15421_v40 = vld [vmem:[%s19691_s1] sm:$0xff]  ;;  %v304_v44 = vld [vmem:[%s19692_s2 + $0x8] sm:$0xff] }
  0x19   : > { %253 = vst [vmem:[#allocation2 + $0x20] sm:$0xff] %v15105_v1  ;;  %254 = vst [vmem:[#allocation2 + $0x28] sm:$0xff] %v15105_v1  ;;  %s15109_s18 = smov 121   ;;  %s15110_s19 = smov 120   ;;  %v303_v43 = vld [vmem:[%s19692_s2] sm:$0xff]  ;;  %v15115_v46 = vmov 0  }
  0x1a   : > { %255 = vst [vmem:[#allocation2 + $0x30] sm:$0xff] %v15105_v1  ;;  %257 = vst [vmem:[#allocation2 + $0x40] sm:$0xff] %v15105_v1  ;;  %s14418_s13 = sshll.u32 %s246_s12, 3  ;;  %s15111_s20 = smov 119   ;;  %14946 = vset.pattern.permute.xlu0 %v15115_v46  ;;  %v15440_v47 = vld [vmem:[%s19691_s1 + $0x8] sm:$0xff]  ;;  %14945 = vset.pattern.permute.xlu1 %v15115_v46  ;;  %v15454_v53 = vld [vmem:[%s19691_s1 + $0x20] sm:$0xff] }
  0x1b   : > { %262 = vst [vmem:[#allocation2 + $0x68] sm:$0xff] %v15105_v1  ;;  %267 = vst [vmem:[#allocation3 + $0x10] sm:$0xff] %v15105_v1  ;;  %s248_s16 = scalar_lea.vmem %s19690_s0, %s14418_s13  ;;  %s19703_s21 = smov 89   ;;  %vm941_vm4 = vcmask 990208   ;;  %v15471_v61 = vld [vmem:[%s19691_s1 + $0x28] sm:$0xff]  ;;  %vm1140_vm5 = vcmask 982016  }
  0x1c   : > { %270 = vst [vmem:[#allocation3 + $0x28] sm:$0xff] %v15105_v1  ;;  %275 = vst [vmem:[#allocation3 + $0x50] sm:$0xff] %v15105_v1  ;;  %14876 = vrot.lane.b32.xlu0 %v15105_v1, %s15107_s11  ;;  %v281_v2 = vld [vmem:[%s248_s16] sm:$0xff]  ;;  %s19701_s22 = smov 88   ;;  %s19699_s27 = smov 87   ;;  %vm1339_vm6 = vcmask 973824  }
  0x1d   : > { %278 = vst [vmem:[#allocation3 + $0x68] sm:$0xff] %v15105_v1  ;;  %282 = vst [vmem:[#allocation2] ss:$8 sm:$0xf] %v281_v2  ;;  %vm1562_vm7 = vcmask 728064   ;;  %vm1767_vm8 = vcmask 719872  }
  0x1e   : > { %283 = vst [vmem:[#allocation2] ss:$8 sm:$0xf0] %v281_v2  ;;  %vm19705_vm9 = vcmask 711680   ;;  %s15116_s29 = smov 8   ;;  %vm2251_vm10 = vcmask 1047616  }
  0x1f   : > { %vm2236_vm11 = vcmask 64512   ;;  %s15117_s15 = smov 56   ;;  %s15118_s16 = smov 58   ;;  %vm4266_vm12 = vcmask 457728   ;;  %vm4463_vm13 = vcmask 474112   ;;  %vm4660_vm14 = vcmask 441344  }
  0x20   : > { %14886 = vrot.lane.b32.xlu0 %v15105_v1, %s15106_s10  ;;  %s15119_s30 = smov 54   ;;  %s15120_s12 = smov 122   ;;  %vm4861_vm15 = vcmask 998400  }
  0x21   : > { %s15121_s13 = smov 118   ;;  %s15126_s14 = smov 96  }
  0x24   : > { %v15244_v3 = vld [vmem:[#allocation2 + $0x10] sm:$0xff]  ;;  %v305_v4 = vld [vmem:[#allocation2 + $0x8] sm:$0xff]  ;;  %v15249_v5 = vld [vmem:[#allocation2 + $0x18] sm:$0xff] }
  0x25   : > { %327 = vrot.lane.b32.xlu1 %v15244_v3, %s15107_s11  ;;  %325 = vrot.lane.b32.xlu0 %v305_v4, %s15107_s11  ;;  %v308_v6 = vld [vmem:[#allocation2 + $0x20] sm:$0xff]  ;;  %v15277_v7 = vld [vmem:[#allocation2 + $0x28] sm:$0xff]  ;;  %v1526_v17 = vld [vmem:[#allocation2 + $0x30] sm:$0xff] }
  0x29   : > { %329 = vrot.lane.b32.xlu1 %v15249_v5, %s15107_s11  ;;  %527 = vrot.lane.b32.xlu0 %v15249_v5, %s15106_s10 }
  0x2d   : > { %525 = vrot.lane.b32.xlu1 %v15244_v3, %s15106_s10  ;;  %14891 = vrot.lane.b32.xlu0 %v15105_v1, %s15108_s17 }
  0x31   : > { %523 = vrot.lane.b32.xlu1 %v305_v4, %s15106_s10  ;;  %722 = vrot.lane.b32.xlu0 %v15244_v3, %s15108_s17 }
  0x35   : > { %14896 = vrot.lane.b32.xlu1 %v15105_v1, %s15108_s17  ;;  %720 = vrot.lane.b32.xlu0 %v305_v4, %s15108_s17 }
  0x39   : > { %724 = vrot.lane.b32.xlu1 %v15249_v5, %s15108_s17  ;;  %933 = vrot.lane.b32.xlu0 %v15105_v1, %s15109_s18 }
  0x3d   : > { %14901 = vrot.lane.b32.xlu1 %v15105_v1, %s15109_s18  ;;  %927 = vrot.lane.b32.xlu0 %v15249_v5, %s15109_s18 }
  0x41   : > { %343 = vrot.lane.b32.xlu1 %v15105_v1, %s15107_s11  ;;  %925 = vrot.lane.b32.xlu0 %v15244_v3, %s15109_s18 }
  0x45   : > { %929 = vrot.lane.b32.xlu1 %v308_v6, %s15109_s18  ;;  %333 = vrot.lane.b32.xlu0 %v15277_v7, %s15107_s11 }
  0x49   : > { %331 = vrot.lane.b32.xlu1 %v308_v6, %s15107_s11  ;;  %1132 = vrot.lane.b32.xlu0 %v15105_v1, %s15110_s19 }
  0x4d   : > { %14906 = vrot.lane.b32.xlu1 %v15105_v1, %s15110_s19  ;;  %1126 = vrot.lane.b32.xlu0 %v15249_v5, %s15110_s19 }
  0x51   : > { %541 = vrot.lane.b32.xlu1 %v15105_v1, %s15106_s10  ;;  %1124 = vrot.lane.b32.xlu0 %v15244_v3, %s15110_s19 }
  0x55   : > { %1128 = vrot.lane.b32.xlu1 %v308_v6, %s15110_s19  ;;  %531 = vrot.lane.b32.xlu0 %v15277_v7, %s15106_s10 }
  0x59   : > { %529 = vrot.lane.b32.xlu1 %v308_v6, %s15106_s10  ;;  %1331 = vrot.lane.b32.xlu0 %v15105_v1, %s15111_s20 }
  0x5d   : > { %14911 = vrot.lane.b32.xlu1 %v15105_v1, %s15111_s20  ;;  %1325 = vrot.lane.b32.xlu0 %v15249_v5, %s15111_s20 }
  0x61   : > { %738 = vrot.lane.b32.xlu1 %v15105_v1, %s15108_s17  ;;  %1323 = vrot.lane.b32.xlu0 %v15244_v3, %s15111_s20 }
  0x65   : > { %1327 = vrot.lane.b32.xlu1 %v308_v6, %s15111_s20  ;;  %728 = vrot.lane.b32.xlu0 %v15277_v7, %s15108_s17 }
  0x69   : > { %726 = vrot.lane.b32.xlu1 %v308_v6, %s15108_s17  ;;  %1552 = vrot.lane.b32.xlu0 %v15105_v1, %s19703_s21 }
  0x6d   : > { %14916 = vrot.lane.b32.xlu1 %v15105_v1, %s19703_s21  ;;  %1546 = vrot.lane.b32.xlu0 %v308_v6, %s19703_s21 }
  0x71   : > { %1544 = vrot.lane.b32.xlu1 %v15249_v5, %s19703_s21  ;;  %1542 = vrot.lane.b32.xlu0 %v15244_v3, %s19703_s21 }
  0x75   : > { %939 = vrot.lane.b32.xlu1 %v15105_v1, %s15109_s18  ;;  %14921 = vrot.lane.b32.xlu0 %v15105_v1, %s19701_s22 }
  0x79   : > { %931 = vrot.lane.b32.xlu1 %v15277_v7, %s15109_s18  ;;  %1749 = vrot.lane.b32.xlu0 %v15249_v5, %s19701_s22 }
  0x7d   : > { %1757 = vrot.lane.b32.xlu1 %v15105_v1, %s19701_s22  ;;  %1138 = vrot.lane.b32.xlu0 %v15105_v1, %s15110_s19 }
  0x81   : > { %1751 = vrot.lane.b32.xlu1 %v308_v6, %s19701_s22  ;;  %1130 = vrot.lane.b32.xlu0 %v15277_v7, %s15110_s19 }
  0x85   : > { %1747 = vrot.lane.b32.xlu1 %v15244_v3, %s19701_s22  ;;  %1962 = vrot.lane.b32.xlu0 %v15105_v1, %s19699_s27 }
  0x89   : > { %14926 = vrot.lane.b32.xlu1 %v15105_v1, %s19699_s27  ;;  %1956 = vrot.lane.b32.xlu0 %v308_v6, %s19699_s27  ;;  %v15487_v6 = vld [vmem:[%s19691_s1 + $0x30] sm:$0xff] }
  0x8a   : > { %v15342_v8 = vpop.permute.xlu0 %14871  ;;  %v15358_v14 = vpop.permute.xlu1 %14881 }
  0x8b   : > { %v14874_v9 = vunpack.i.h.bf16 %v15342_v8  ;;  %v14873_v10 = vunpack.i.l.bf16 %v15342_v8  ;;  %v14884_v20 = vunpack.i.h.bf16 %v15358_v14  ;;  %v14883_v21 = vunpack.i.l.bf16 %v15358_v14 }
  0x8d   : > { %1954 = vrot.lane.b32.xlu1 %v15249_v5, %s19699_s27  ;;  %1952 = vrot.lane.b32.xlu0 %v15244_v3, %s19699_s27  ;;  %v351_v11 = vsel %vm345_vm0, %v14873_v10, %v14874_v9  ;;  %v549_v28 = vsel %vm543_vm1, %v14883_v21, %v14884_v20 }
  0x8e   : > { %397 = vmatprep.subr.mxu0 %v351_v11  ;;  %v15353_v12 = vpop.permute.xlu0 %14876 }
  0x8f   : > { %v14878_v13 = vunpack.i.l.bf16 %v15353_v12  ;;  %v14879_v58 = vunpack.i.h.bf16 %v15353_v12  ;;  %v15499_v12 = vld [vmem:[%s19691_s1 + $0x38] sm:$0xff] }
  0x91   : > { %1337 = vrot.lane.b32.xlu1 %v15105_v1, %s15111_s20  ;;  %14931 = vrot.lane.b32.xlu0 %v15105_v1, %s19703_s21  ;;  %v350_v15 = vsel %vm345_vm0, %v14878_v13, %v14873_v10  ;;  %v352_v2 = vsel %vm345_vm0, %v14874_v9, %v14879_v58 }
  0x92   : > { %v15363_v16 = vpop.permute.xlu0 %14886  ;;  %398 = vmatpush1.msra.mxu0 %v350_v15 }
  0x93   : > { %v14888_v22 = vunpack.i.l.bf16 %v15363_v16 }
  0x95   : > { %1329 = vrot.lane.b32.xlu1 %v15277_v7, %s15111_s20  ;;  %1550 = vrot.lane.b32.xlu0 %v1526_v17, %s19703_s21  ;;  %v548_v30 = vsel %vm543_vm1, %v14888_v22, %v14883_v21 }
  0x97   : > { %v328_v18 = vpop.permute.xlu1 %327  ;;  %v326_v19 = vpop.permute.xlu0 %325 }
  0x98   : > { %v346_v27 = vsel %vm345_vm0, %v326_v19, %v328_v18  ;;  %v14889_v19 = vunpack.i.h.bf16 %v15363_v16 }
  0x99   : > { %1548 = vrot.lane.b32.xlu1 %v15277_v7, %s19703_s21  ;;  %1753 = vrot.lane.b32.xlu0 %v15277_v7, %s19701_s22 }
  0x9a   : > { %v550_v16 = vsel %vm543_vm1, %v14884_v20, %v14889_v19 }
  0x9b   : > { %v15375_v23 = vpop.permute.xlu1 %329  ;;  %v15377_v24 = vpop.permute.xlu0 %527 }
  0x9c   : > { %v347_v25 = vsel %vm345_vm0, %v328_v18, %v15375_v23 }
  0x9d   : > { %399 = vmatprep.subr.mxu0 %v347_v25  ;;  %14936 = vrot.lane.b32.xlu1 %v15105_v1, %s19701_s22 }
  0x9e   : > { %400 = vmatpush1.msra.mxu0 %v346_v27  ;;  %14941 = vrot.lane.b32.xlu0 %v15105_v1, %s19699_s27 }
  0x9f   : > { %v526_v29 = vpop.permute.xlu1 %525  ;;  %594 = vmatprep.subr.mxu0 %v549_v28  ;;  %14419 = vmatmul.mubr.msk.f32.vlgmr.msra.gmra.mxu0 %vm362_vm2, %v15384_v26  ;;  %v15397_v31 = vpop.permute.xlu0 %14891 }
  0xa0   : > { %595 = vmatpush1.msra.mxu0 %v548_v30  ;;  %v545_v32 = vsel %vm543_vm1, %v526_v29, %v15377_v24  ;;  %439 = vmatprep.mubr.f32.mxu0 %v15105_v1  ;;  %v14894_v33 = vunpack.i.h.bf16 %v15397_v31  ;;  %v14893_v34 = vunpack.i.l.bf16 %v15397_v31  ;;  %v15530_v30 = vld [vmem:[%s19691_s1 + $0x40] sm:$0xff] }
  0xa1   : > { %1755 = vrot.lane.b32.xlu1 %v1526_v17, %s19701_s22  ;;  %596 = vmatprep.subr.mxu0 %v545_v32 }
  0xa2   : > { %1960 = vrot.lane.b32.xlu0 %v1526_v17, %s19699_s27  ;;  %v746_v38 = vsel %vm740_vm3, %v14893_v34, %v14894_v33 }
  0xa3   : > { %v524_v36 = vpop.permute.xlu1 %523  ;;  %14420 = vmatmul.mubr.msk.f32.gmra.mxu0 %vm362_vm2, %v15407_v35  ;;  %v723_v37 = vpop.permute.xlu0 %722 }
  0xa4   : > { %v544_v39 = vsel %vm543_vm1, %v524_v36, %v526_v29  ;;  %630 = vmatprep.mubr.f32.mxu0 %v15105_v1  ;;  %v15542_v36 = vld [vmem:[%s19691_s1 + $0x48] sm:$0xff] }
  0xa5   : > { %1958 = vrot.lane.b32.xlu1 %v15277_v7, %s19699_s27  ;;  %597 = vmatpush1.msra.mxu0 %v544_v39 }
  0xa6   : > { %791 = vmatprep.subr.mxu0 %v746_v38  ;;  %2159 = vperm.xlu0 %14946, %v303_v43  }
  0xa7   : > { %v15425_v41 = vpop.permute.xlu1 %14896  ;;  %14423 = vmatmul.mubr.msk.f32.vlgmr.msra.gmra.mxu0 %vm362_vm2, %v15421_v40  ;;  %v721_v42 = vpop.permute.xlu0 %720 }
  0xa8   : > { %v14898_v45 = vunpack.i.l.bf16 %v15425_v41  ;;  %636 = vmatprep.mubr.f32.mxu0 %v15105_v1  ;;  %v741_v52 = vsel %vm740_vm3, %v721_v42, %v723_v37  ;;  %v14899_v42 = vunpack.i.h.bf16 %v15425_v41 }
  0xa9   : > { %2164 = vperm.xlu1 %14945, %v304_v44  }
  0xaa   : > { %v745_v48 = vsel %vm740_vm3, %v14898_v45, %v14893_v34  ;;  %v747_v41 = vsel %vm740_vm3, %v14894_v33, %v14899_v42  ;;  %14948 = vrot.lane.b32.xlu0 %v15105_v1, %s15107_s11 }
  0xab   : > { %v15443_v49 = vpop.permute.xlu1 %724  ;;  %792 = vmatpush1.msra.mxu0 %v745_v48  ;;  %v934_v50 = vpop.permute.xlu0 %933 }
  0xac   : > { %v742_v51 = vsel %vm740_vm3, %v723_v37, %v15443_v49  ;;  %14424 = vmatmul.mubr.msk.f32.gmra.mxu0 %vm362_vm2, %v15440_v47 }
  0xad   : > { %793 = vmatprep.subr.mxu0 %v742_v51  ;;  %827 = vmatprep.mubr.f32.mxu0 %v15105_v1 }
  0xae   : > { %794 = vmatpush1.msra.mxu0 %v741_v52 }
  0xaf   : > { %v15456_v54 = vpop.permute.xlu1 %14901  ;;  %v928_v55 = vpop.permute.xlu0 %927 }
  0xb0   : > { %v14904_v56 = vunpack.i.h.bf16 %v15456_v54  ;;  %v14903_v57 = vunpack.i.l.bf16 %v15456_v54  ;;  %14427 = vmatmul.mubr.msk.f32.vlgmr.msra.gmra.mxu0 %vm362_vm2, %v15454_v53 }
  0xb1   : > { %833 = vmatprep.mubr.f32.mxu0 %v15105_v1 }
  0xb2   : > { %v945_v59 = vsel %vm941_vm4, %v934_v50, %v14903_v57  ;;  %v946_v60 = vsel %vm941_vm4, %v14903_v57, %v14904_v56 }
  0xb3   : > { %v344_v62 = vpop.permute.xlu1 %343  ;;  %990 = vmatprep.subr.mxu0 %v946_v60  ;;  %v926_v63 = vpop.permute.xlu0 %925 }
  0xb4   : > { %v353_v0 = vsel %vm345_vm0, %v14879_v58, %v344_v62  ;;  %991 = vmatpush1.msra.mxu0 %v945_v59  ;;  %v942_v7 = vsel %vm941_vm4, %v926_v63, %v928_v55  ;;  %v15585_v58 = vld [vmem:[%s19691_s1 + $0x58] sm:$0xff] }
  0xb5   : > { %474 = vmatprep.subr.mxu1 %v353_v0  ;;  %14428 = vmatmul.mubr.msk.f32.gmra.mxu0 %vm362_vm2, %v15471_v61 }
  0xb6   : > { %475 = vmatpush1.msra.mxu1 %v352_v2  ;;  %1026 = vmatprep.mubr.f32.mxu0 %v15105_v1 }
  0xb7   : > { %v15480_v3 = vpop.permute.xlu1 %929  ;;  %v334_v4 = vpop.permute.xlu0 %333 }
  0xb8   : > { %v943_v5 = vsel %vm941_vm4, %v928_v55, %v15480_v3 }
  0xb9   : > { %992 = vmatprep.subr.mxu0 %v943_v5 }
  0xba   : > { %993 = vmatpush1.msra.mxu0 %v942_v7  ;;  %v15612_v7 = vld [vmem:[%s19691_s1 + $0x60] sm:$0xff] }
  0xbb   : > { %v332_v8 = vpop.permute.xlu1 %331  ;;  %v1133_v9 = vpop.permute.xlu0 %1132  ;;  %14431 = vmatmul.mubr.msk.f32.vlgmr.msra.gmra.mxu0 %vm362_vm2, %v15487_v6 }
  0xbc   : > { %v349_v10 = vsel %vm345_vm0, %v332_v8, %v334_v4  ;;  %v348_v11 = vsel %vm345_vm0, %v15375_v23, %v332_v8  ;;  %1032 = vmatprep.mubr.f32.mxu0 %v15105_v1 }
  0xbd   : > { %476 = vmatprep.subr.mxu1 %v349_v10 }
  0xbe   : > { %477 = vmatpush1.msra.mxu1 %v348_v11 }
  0xbf   : > { %v15501_v13 = vpop.permute.xlu1 %14906  ;;  %14421 = vmatmul.mubr.msk.f32.vlgmr.msra.gmra.mxu1 %vm362_vm2, %v15384_v26  ;;  %v1127_v15 = vpop.permute.xlu0 %1126  ;;  %14432 = vmatmul.mubr.msk.f32.gmra.mxu0 %vm362_vm2, %v15499_v12 }
  0xc0   : > { %v14909_v17 = vunpack.i.h.bf16 %v15501_v13  ;;  %v14908_v18 = vunpack.i.l.bf16 %v15501_v13  ;;  %516 = vmatprep.mubr.f32.mxu1 %v15105_v1  ;;  %1225 = vmatprep.mubr.f32.mxu0 %v15105_v1 }
  0xc2   : > { %v1144_v21 = vsel %vm1140_vm5, %v1133_v9, %v14908_v18  ;;  %v1145_v22 = vsel %vm1140_vm5, %v14908_v18, %v14909_v17 }
  0xc3   : > { %v542_v23 = vpop.permute.xlu1 %541  ;;  %1189 = vmatprep.subr.mxu0 %v1145_v22  ;;  %v1125_v25 = vpop.permute.xlu0 %1124  ;;  %14422 = vmatmul.mubr.msk.f32.gmra.mxu1 %vm362_vm2, %v15407_v35 }
  0xc4   : > { %v551_v26 = vsel %vm543_vm1, %v14889_v19, %v542_v23  ;;  %1190 = vmatpush1.msra.mxu0 %v1144_v21  ;;  %707 = vmatprep.mubr.f32.mxu1 %v15105_v1  ;;  %v1141_v32 = vsel %vm1140_vm5, %v1125_v25, %v1127_v15 }
  0xc5   : > { %671 = vmatprep.subr.mxu1 %v551_v26 }
  0xc6   : > { %672 = vmatpush1.msra.mxu1 %v550_v16 }
  0xc7   : > { %v15523_v27 = vpop.permute.xlu1 %1128  ;;  %v532_v28 = vpop.permute.xlu0 %531 }
  0xc8   : > { %v1142_v29 = vsel %vm1140_vm5, %v1127_v15, %v15523_v27  ;;  %v15627_v15 = vld [vmem:[%s19691_s1 + $0x68] sm:$0xff] }
  0xc9   : > { %1191 = vmatprep.subr.mxu0 %v1142_v29  ;;  %v15672_v29 = vld [vmem:[%s19691_s1 + $0x78] sm:$0xff] }
  0xca   : > { %1192 = vmatpush1.msra.mxu0 %v1141_v32 }
  0xcb   : > { %v530_v34 = vpop.permute.xlu1 %529  ;;  %v1332_v14 = vpop.permute.xlu0 %1331  ;;  %14435 = vmatmul.mubr.msk.f32.vlgmr.msra.gmra.mxu0 %vm362_vm2, %v15530_v30 }
  0xcc   : > { %v547_v20 = vsel %vm543_vm1, %v530_v34, %v532_v28  ;;  %v546_v35 = vsel %vm543_vm1, %v15377_v24, %v530_v34  ;;  %1231 = vmatprep.mubr.f32.mxu0 %v15105_v1 }
  0xcd   : > { %673 = vmatprep.subr.mxu1 %v547_v20 }
  0xce   : > { %674 = vmatpush1.msra.mxu1 %v546_v35 }
  0xcf   : > { %v15544_v37 = vpop.permute.xlu1 %14911  ;;  %14425 = vmatmul.mubr.msk.f32.vlgmr.msra.gmra.mxu1 %vm362_vm2, %v15421_v40  ;;  %v1326_v38 = vpop.permute.xlu0 %1325  ;;  %14436 = vmatmul.mubr.msk.f32.gmra.mxu0 %vm362_vm2, %v15542_v36 }
  0xd0   : > { %v14914_v24 = vunpack.i.h.bf16 %v15544_v37  ;;  %v14913_v39 = vunpack.i.l.bf16 %v15544_v37  ;;  %713 = vmatprep.mubr.f32.mxu1 %v15105_v1  ;;  %1424 = vmatprep.mubr.f32.mxu0 %v15105_v1 }
  0xd2   : > { %v1343_v43 = vsel %vm1339_vm6, %v1332_v14, %v14913_v39  ;;  %v1344_v40 = vsel %vm1339_vm6, %v14913_v39, %v14914_v24 }
  0xd3   : > { %v739_v44 = vpop.permute.xlu1 %738  ;;  %1388 = vmatprep.subr.mxu0 %v1344_v40  ;;  %v1324_v45 = vpop.permute.xlu0 %1323  ;;  %14426 = vmatmul.mubr.msk.f32.gmra.mxu1 %vm362_vm2, %v15440_v47  ;;  %v15573_v47 = vld [vmem:[%s19691_s1 + $0x50] sm:$0xff] }
  0xd4   : > { %v748_v46 = vsel %vm740_vm3, %v14899_v42, %v739_v44  ;;  %1389 = vmatpush1.msra.mxu0 %v1343_v43  ;;  %904 = vmatprep.mubr.f32.mxu1 %v15105_v1  ;;  %v1340_v52 = vsel %vm1339_vm6, %v1324_v45, %v1326_v38  ;;  %v15692_v42 = vld [vmem:[%s19691_s1 + $0x80] sm:$0xff] }
  0xd5   : > { %868 = vmatprep.subr.mxu1 %v748_v46  ;;  %v302_v46 = vld [vmem:[%s19691_s1 + $0x88] sm:$0xff] }
  0xd6   : > { %869 = vmatpush1.msra.mxu1 %v747_v41 }
  0xd7   : > { %v15566_v48 = vpop.permute.xlu1 %1327  ;;  %v729_v50 = vpop.permute.xlu0 %728 }
  0xd8   : > { %v1341_v51 = vsel %vm1339_vm6, %v1326_v38, %v15566_v48 }
  0xd9   : > { %1390 = vmatprep.subr.mxu0 %v1341_v51 }
  0xda   : > { %1391 = vmatpush1.msra.mxu0 %v1340_v52 }
  0xdb   : > { %v727_v55 = vpop.permute.xlu1 %726  ;;  %v1553_v31 = vpop.permute.xlu0 %1552  ;;  %14439 = vmatmul.mubr.msk.f32.vlgmr.msra.gmra.mxu0 %vm362_vm2, %v15573_v47 }
  0xdc   : > { %v744_v33 = vsel %vm740_vm3, %v727_v55, %v729_v50  ;;  %v743_v57 = vsel %vm740_vm3, %v15443_v49, %v727_v55  ;;  %1430 = vmatprep.mubr.f32.mxu0 %v15105_v1 }
  0xdd   : > { %870 = vmatprep.subr.mxu1 %v744_v33 }
  0xde   : > { %871 = vmatpush1.msra.mxu1 %v743_v57 }
  0xdf   : > { %v15587_v59 = vpop.permute.xlu1 %14916  ;;  %14429 = vmatmul.mubr.msk.f32.vlgmr.msra.gmra.mxu1 %vm362_vm2, %v15454_v53  ;;  %v15591_v60 = vpop.permute.xlu0 %1546  ;;  %14440 = vmatmul.mubr.msk.f32.gmra.mxu0 %vm362_vm2, %v15585_v58 }
  0xe0   : > { %v14919_v49 = vunpack.i.h.bf16 %v15587_v59  ;;  %v14918_v62 = vunpack.i.l.bf16 %v15587_v59  ;;  %910 = vmatprep.mubr.f32.mxu1 %v15105_v1  ;;  %1649 = vmatprep.mubr.f32.mxu0 %v15105_v1 }
  0xe2   : > { %v1567_v63 = vsel %vm1562_vm7, %v1553_v31, %v14918_v62  ;;  %v1568_v0 = vsel %vm1562_vm7, %v14918_v62, %v14919_v49 }
  0xe3   : > { %v1545_v53 = vpop.permute.xlu1 %1544  ;;  %1613 = vmatprep.subr.mxu0 %v1568_v0  ;;  %14430 = vmatmul.mubr.msk.f32.gmra.mxu1 %vm362_vm2, %v15471_v61  ;;  %v1543_v2 = vpop.permute.xlu0 %1542 }
  0xe4   : > { %1614 = vmatpush1.msra.mxu0 %v1567_v63  ;;  %v1564_v4 = vsel %vm1562_vm7, %v1545_v53, %v15591_v60  ;;  %v1563_v5 = vsel %vm1562_vm7, %v1543_v2, %v1545_v53  ;;  %1103 = vmatprep.mubr.f32.mxu1 %v15105_v1 }
  0xe5   : > { %1615 = vmatprep.subr.mxu0 %v1564_v4 }
  0xe6   : > { %1616 = vmatpush1.msra.mxu0 %v1563_v5 }
  0xe7   : > { %v940_v8 = vpop.permute.xlu1 %939  ;;  %14443 = vmatmul.mubr.msk.f32.vlgmr.msra.gmra.mxu0 %vm362_vm2, %v15612_v7  ;;  %v15616_v61 = vpop.permute.xlu0 %14921 }
  0xe8   : > { %1067 = vmatprep.subr.mxu1 %v940_v8  ;;  %v947_v9 = vsel %vm941_vm4, %v14904_v56, %v940_v8  ;;  %v14924_v10 = vunpack.i.h.bf16 %v15616_v61  ;;  %v14923_v11 = vunpack.i.l.bf16 %v15616_v61  ;;  %1655 = vmatprep.mubr.f32.mxu0 %v15105_v1 }
  0xe9   : > { %1068 = vmatpush1.msra.mxu1 %v947_v9 }
  0xea   : > { %v1773_v18 = vsel %vm1767_vm8, %v14923_v11, %v14924_v10 }
  0xeb   : > { %v932_v19 = vpop.permute.xlu1 %931  ;;  %14444 = vmatmul.mubr.msk.f32.gmra.mxu0 %vm362_vm2, %v15627_v15  ;;  %v1750_v54 = vpop.permute.xlu0 %1749  ;;  %1818 = vmatprep.subr.mxu0 %v1773_v18 }
  0xec   : > { %1069 = vmatprep.subr.mxu1 %v932_v19  ;;  %v944_v56 = vsel %vm941_vm4, %v15480_v3, %v932_v19  ;;  %1854 = vmatprep.mubr.f32.mxu0 %v15105_v1 }
  0xed   : > { %1070 = vmatpush1.msra.mxu1 %v944_v56 }
  0xee   : > { %14433 = vmatmul.mubr.msk.f32.vlgmr.msra.gmra.mxu1 %vm362_vm2, %v15487_v6 }
  0xef   : > { %v1758_v21 = vpop.permute.xlu1 %1757  ;;  %1109 = vmatprep.mubr.f32.mxu1 %v15105_v1  ;;  %v1139_v22 = vpop.permute.xlu0 %1138 }
  0xf0   : > { %v1772_v23 = vsel %vm1767_vm8, %v1758_v21, %v14923_v11  ;;  %1266 = vmatprep.subr.mxu1 %v1139_v22  ;;  %v1146_v25 = vsel %vm1140_vm5, %v14909_v17, %v1139_v22 }
  0xf1   : > { %1819 = vmatpush1.msra.mxu0 %v1772_v23  ;;  %1267 = vmatpush1.msra.mxu1 %v1146_v25 }
  0xf2   : > { %14434 = vmatmul.mubr.msk.f32.gmra.mxu1 %vm362_vm2, %v15499_v12  ;;  %v15658_v12 = vld [vmem:[%s19691_s1 + $0x70] sm:$0xff] }
  0xf3   : > { %v15646_v3 = vpop.permute.xlu1 %1751  ;;  %v1131_v26 = vpop.permute.xlu0 %1130  ;;  %1302 = vmatprep.mubr.f32.mxu1 %v15105_v1 }
  0xf4   : > { %v1769_v6 = vsel %vm1767_vm8, %v1750_v54, %v15646_v3  ;;  %1268 = vmatprep.subr.mxu1 %v1131_v26  ;;  %v1143_v16 = vsel %vm1140_vm5, %v15523_v27, %v1131_v26 }
  0xf5   : > { %1820 = vmatprep.subr.mxu0 %v1769_v6  ;;  %1269 = vmatpush1.msra.mxu1 %v1143_v16 }
  0xf6   : > { %14437 = vmatmul.mubr.msk.f32.vlgmr.msra.gmra.mxu1 %vm362_vm2, %v15530_v30 }
  0xf7   : > { %v1748_v13 = vpop.permute.xlu1 %1747  ;;  %v1963_v17 = vpop.permute.xlu0 %1962  ;;  %1308 = vmatprep.mubr.f32.mxu1 %v15105_v1 }
  0xf8   : > { %v1768_v28 = vsel %vm1767_vm8, %v1748_v13, %v1750_v54 }
  0xf9   : > { %1821 = vmatpush1.msra.mxu0 %v1768_v28 }
  0xfa   : > { %14447 = vmatmul.mubr.msk.f32.vlgmr.msra.gmra.mxu0 %vm362_vm2, %v15658_v12  ;;  %14438 = vmatmul.mubr.msk.f32.gmra.mxu1 %vm362_vm2, %v15542_v36 }
  0xfb   : > { %v15666_v27 = vpop.permute.xlu1 %14926  ;;  %1860 = vmatprep.mubr.f32.mxu0 %v15105_v1  ;;  %v15674_v30 = vpop.permute.xlu0 %1956  ;;  %1501 = vmatprep.mubr.f32.mxu1 %v15105_v1 }
  0xfc   : > { %v14929_v32 = vunpack.i.h.bf16 %v15666_v27  ;;  %v14928_v34 = vunpack.i.l.bf16 %v15666_v27 }
  0xfe   : > { %14448 = vmatmul.mubr.msk.f32.gmra.mxu0 %vm362_vm2, %v15672_v29  ;;  %v1977_v14 = vsel %vm19705_vm9, %v1963_v17, %v14928_v34  ;;  %v1978_v20 = vsel %vm19705_vm9, %v14928_v34, %v14929_v32 }
  0xff   : > { %v1955_v35 = vpop.permute.xlu1 %1954  ;;  %2023 = vmatprep.subr.mxu0 %v1978_v20  ;;  %v1953_v36 = vpop.permute.xlu0 %1952  ;;  %2059 = vmatprep.mubr.f32.mxu0 %v15105_v1 }
 0x100   : > { %2024 = vmatpush1.msra.mxu0 %v1977_v14  ;;  %v1974_v38 = vsel %vm19705_vm9, %v1955_v35, %v15674_v30  ;;  %v1973_v39 = vsel %vm19705_vm9, %v1953_v36, %v1955_v35 }
 0x101   : > { %2025 = vmatprep.subr.mxu0 %v1974_v38 }
 0x102   : > { %2026 = vmatpush1.msra.mxu0 %v1973_v39 }
 0x103   : > { %v1338_v43 = vpop.permute.xlu1 %1337  ;;  %14451 = vmatmul.mubr.msk.f32.vlgmr.msra.gmra.mxu0 %vm362_vm2, %v15692_v42  ;;  %v14932_v40 = vpop.permute.xlu0 %14931 }
 0x104   : > { %1465 = vmatprep.subr.mxu1 %v1338_v43  ;;  %v1345_v44 = vsel %vm1339_vm6, %v14914_v24, %v1338_v43  ;;  %v14934_v45 = vunpack.i.h.bf16 %v14932_v40  ;;  %2065 = vmatprep.mubr.f32.mxu0 %v15105_v1  ;;  %v14933_v41 = vunpack.i.l.bf16 %v14932_v40 }
 0x105   : > { %1466 = vmatpush1.msra.mxu1 %v1345_v44 }
 0x106   : > { %v1570_v52 = vsel %vm1562_vm7, %v14933_v41, %v14934_v45  ;;  %v1569_v24 = vsel %vm1562_vm7, %v14919_v49, %v14933_v41 }
 0x107   : > { %v1330_v50 = vpop.permute.xlu1 %1329  ;;  %14452 = vmatmul.mubr.msk.f32.gmra.mxu0 %vm362_vm2, %v302_v46  ;;  %v1551_v51 = vpop.permute.xlu0 %1550 }
 0x108   : > { %1467 = vmatprep.subr.mxu1 %v1330_v50  ;;  %v1342_v37 = vsel %vm1339_vm6, %v15566_v48, %v1330_v50  ;;  %2408 = vmatprep.mubr.f32.mxu0 %v15105_v1 }
 0x109   : > { %1468 = vmatpush1.msra.mxu1 %v1342_v37 }
 0x10a   : > { %14441 = vmatmul.mubr.msk.f32.vlgmr.msra.gmra.mxu1 %vm362_vm2, %v15573_v47  ;;  %1690 = vmatprep.subr.mxu1 %v1570_v52 }
 0x10b   : > { %v1549_v55 = vpop.permute.xlu1 %1548  ;;  %1507 = vmatprep.mubr.f32.mxu1 %v15105_v1  ;;  %1691 = vmatpush1.msra.mxu1 %v1569_v24  ;;  %v1754_v31 = vpop.permute.xlu0 %1753 }
 0x10c   : > { %v1566_v33 = vsel %vm1562_vm7, %v1549_v55, %v1551_v51  ;;  %v1565_v48 = vsel %vm1562_vm7, %v15591_v60, %v1549_v55  ;;  %v1770_v4 = vsel %vm1767_vm8, %v15646_v3, %v1754_v31 }
 0x10d   : > { %1692 = vmatprep.subr.mxu1 %v1566_v33 }
 0x10e   : > { %14442 = vmatmul.mubr.msk.f32.gmra.mxu1 %vm362_vm2, %v15585_v58 }
 0x10f   : > { %v14937_v47 = vpop.permute.xlu1 %14936  ;;  %1693 = vmatpush1.msra.mxu1 %v1565_v48  ;;  %1726 = vmatprep.mubr.f32.mxu1 %v15105_v1 }
 0x110   : > { %v14939_v57 = vunpack.i.h.bf16 %v14937_v47  ;;  %v14938_v59 = vunpack.i.l.bf16 %v14937_v47  ;;  %v14942_v49 = vpop.permute.xlu0 %14941 }
 0x111   : > { %v14944_v62 = vunpack.i.h.bf16 %v14942_v49  ;;  %v14943_v0 = vunpack.i.l.bf16 %v14942_v49 }
 0x112   : > { %14445 = vmatmul.mubr.msk.f32.vlgmr.msra.gmra.mxu1 %vm362_vm2, %v15612_v7  ;;  %v1775_v63 = vsel %vm1767_vm8, %v14938_v59, %v14939_v57  ;;  %v1774_v60 = vsel %vm1767_vm8, %v14924_v10, %v14938_v59 }
 0x113   : > { %v1756_v53 = vpop.permute.xlu1 %1755  ;;  %1895 = vmatprep.subr.mxu1 %v1775_v63  ;;  %1732 = vmatprep.mubr.f32.mxu1 %v15105_v1  ;;  %v1980_v2 = vsel %vm19705_vm9, %v14943_v0, %v14944_v62  ;;  %v1979_v61 = vsel %vm19705_vm9, %v14929_v32, %v14943_v0  ;;  %v2184_v0 = vlaneseq }
 0x114   : > { %1896 = vmatpush1.msra.mxu1 %v1774_v60  ;;  %v1771_v58 = vsel %vm1767_vm8, %v1754_v31, %v1756_v53  ;;  %v1961_v5 = vpop.permute.xlu0 %1960 }
 0x115   : > { %1897 = vmatprep.subr.mxu1 %v1771_v58 }
 0x116   : > { %1898 = vmatpush1.msra.mxu1 %v1770_v4 }
 0x117   : > { %14446 = vmatmul.mubr.msk.f32.gmra.mxu1 %vm362_vm2, %v15627_v15  ;;  %2100 = vmatprep.subr.mxu1 %v1980_v2  ;;  %v1959_v7 = vpop.permute.xlu1 %1958 }
 0x118   : > { %1931 = vmatprep.mubr.f32.mxu1 %v15105_v1  ;;  %v1976_v8 = vsel %vm19705_vm9, %v1959_v7, %v1961_v5  ;;  %v1975_v9 = vsel %vm19705_vm9, %v15674_v30, %v1959_v7  ;;  %v15799_v5 = vshrl.u32 %v2184_v0, 7 }
 0x11a   : > { %19722 = vst [vmem:[#allocation8_spill] sm:$0xff] %v15799_v5 }
 0x11b   : > { %14449 = vmatmul.mubr.msk.f32.vlgmr.msra.gmra.mxu1 %vm362_vm2, %v15658_v12 }
 0x11c   : > { %2101 = vmatpush1.msra.mxu1 %v1979_v61  ;;  %1937 = vmatprep.mubr.f32.mxu1 %v15105_v1 }
 0x11d   : > { %2102 = vmatprep.subr.mxu1 %v1976_v8 }
 0x11e   : > { %2103 = vmatpush1.msra.mxu1 %v1975_v9 }
 0x11f   : > { %14450 = vmatmul.mubr.msk.f32.gmra.mxu1 %vm362_vm2, %v15672_v29 }
 0x120   : > { %2136 = vmatprep.mubr.f32.mxu1 %v15105_v1 }
 0x123   : > { %14453 = vmatmul.mubr.msk.f32.vlgmr.msra.gmra.mxu1 %vm362_vm2, %v15692_v42 }
 0x124   : > { %2142 = vmatprep.mubr.f32.mxu1 %v15105_v1 }
 0x127   : > { %14454 = vmatmul.mubr.msk.f32.gmra.mxu1 %vm362_vm2, %v302_v46 }
 0x128   : > { %2485 = vmatprep.mubr.f32.mxu1 %v15105_v1 }
 0x15f   : > { %v435_v10 = vpop.f32.mrf.mxu0 }
 0x161   : > { %v15753_v11 = vpop.f32.mrf.mxu0 }
 0x163   : > { %v441_v15 = vpop.f32.mrf.mxu0 }
 0x165   : > { %v15755_v18 = vpop.f32.mrf.mxu0 }
 0x167   : > { %v632_v19 = vpop.f32.mrf.mxu0 }
 0x168   : > { %v633_v24 = vadd.f32 %v632_v19, %v435_v10  ;;  %v19697_v10 = vsub.s32 0, %v15799_v5  ;;  %v15804_v19 = vpop.permute.xlu0 %2159 }
 0x169   : > { %v15757_v54 = vpop.f32.mrf.mxu0 }
 0x16c   : > { %v638_v56 = vpop.f32.mrf.mxu0 }
 0x16d   : > { %v639_v21 = vadd.f32 %v638_v56, %v441_v15  ;;  %v15809_v56 = vld [vmem:[%s19695_s5] sm:$0xf] }
 0x16e   : > { %v15759_v22 = vpop.f32.mrf.mxu0 }
 0x170   : > { %v829_v23 = vpop.f32.mrf.mxu0 }
 0x171   : > { %v917_v48 = vadd.f32 %v829_v23, %v633_v24 }
 0x172   : > { %v15761_v25 = vpop.f32.mrf.mxu0 }
 0x175   : > { %v835_v3 = vpop.f32.mrf.mxu0 }
 0x176   : > { %v921_v26 = vadd.f32 %v835_v3, %v639_v21 }
 0x177   : > { %v15763_v6 = vpop.f32.mrf.mxu0 }
 0x17b   : > { %v1028_v16 = vpop.f32.mrf.mxu0 }
 0x17c   : > { %v1116_v59 = vadd.f32 %v1028_v16, %v917_v48 }
 0x17d   : > { %v15765_v13 = vpop.f32.mrf.mxu0 }
 0x17f   : > { %v1034_v12 = vpop.f32.mrf.mxu0  ;;  %v15767_v17 = vpop.f32.mrf.mxu1 }
 0x180   : > { %v1120_v28 = vadd.f32 %v1034_v12, %v921_v26  ;;  %v15815_v26 = vrot.slane %v15809_v56, %v19697_v10 }
 0x181   : > { %v15769_v27 = vpop.f32.mrf.mxu1  ;;  %v15771_v29 = vpop.f32.mrf.mxu0 }
 0x182   : > { %19723 = vst [vmem:[#allocation9_spill] sm:$0xff] %v15815_v26 }
 0x183   : > { %v15773_v30 = vpop.f32.mrf.mxu1 }
 0x185   : > { %v15775_v34 = vpop.f32.mrf.mxu1 }
 0x18b   : > { %v1227_v32 = vpop.f32.mrf.mxu0 }
 0x18c   : > { %v1315_v63 = vadd.f32 %v1227_v32, %v1116_v59 }
 0x18d   : > { %v15777_v14 = vpop.f32.mrf.mxu0 }
 0x18f   : > { %v1233_v20 = vpop.f32.mrf.mxu0  ;;  %v709_v35 = vpop.f32.mrf.mxu1 }
 0x190   : > { %v15779_v36 = vadd.f32 %v1233_v20, %v1120_v28  ;;  %v635_v20 = vadd.f32 %v15757_v54, %v15753_v11 }
 0x191   : > { %v711_v38 = vpop.f32.mrf.mxu1  ;;  %v15781_v42 = vpop.f32.mrf.mxu0 }
 0x192   : > { %v918_v24 = vadd.f32 %v15761_v25, %v635_v20 }
 0x193   : > { %v715_v39 = vpop.f32.mrf.mxu1 }
 0x195   : > { %v717_v43 = vpop.f32.mrf.mxu1 }
 0x196   : > { %v718_v25 = vadd.f32 %v717_v43, %v15775_v34 }
 0x19b   : > { %v1426_v40 = vpop.f32.mrf.mxu0 }
 0x19c   : > { %v1514_v2 = vadd.f32 %v1426_v40, %v1315_v63  ;;  %v1117_v63 = vadd.f32 %v15765_v13, %v918_v24 }
 0x19d   : > { %v15783_v45 = vpop.f32.mrf.mxu0 }
 0x19e   : > { %v1316_v11 = vadd.f32 %v15777_v14, %v1117_v63 }
 0x19f   : > { %v906_v44 = vpop.f32.mrf.mxu1  ;;  %v15785_v41 = vpop.f32.mrf.mxu0 }
 0x1a1   : > { %v908_v46 = vpop.f32.mrf.mxu1  ;;  %v15787_v51 = vpop.f32.mrf.mxu0 }
 0x1a3   : > { %v912_v50 = vpop.f32.mrf.mxu1 }
 0x1a5   : > { %v15789_v52 = vpop.f32.mrf.mxu1 }
 0x1a6   : > { %v924_v14 = vadd.f32 %v15789_v52, %v718_v25 }
 0x1a7   : > { %v1651_v37 = vpop.f32.mrf.mxu0 }
 0x1a8   : > { %v1739_v7 = vadd.f32 %v1651_v37, %v1514_v2  ;;  %v712_v2 = vadd.f32 %v711_v38, %v15769_v27 }
 0x1a9   : > { %v1653_v33 = vpop.f32.mrf.mxu0 }
 0x1ab   : > { %v15791_v57 = vpop.f32.mrf.mxu0 }
 0x1ad   : > { %v15795_v62 = vpop.f32.mrf.mxu0 }
 0x1ae   : > { %v1105_v55 = vpop.f32.mrf.mxu1 }
 0x1b0   : > { %v1107_v31 = vpop.f32.mrf.mxu1 }
 0x1b2   : > { %v1111_v47 = vpop.f32.mrf.mxu1 }
 0x1b4   : > { %v15793_v49 = vpop.f32.mrf.mxu1 }
 0x1b6   : > { %v1304_v58 = vpop.f32.mrf.mxu1 }
 0x1b8   : > { %v1306_v8 = vpop.f32.mrf.mxu1 }
 0x1ba   : > { %v1856_v60 = vpop.f32.mrf.mxu0  ;;  %v1310_v21 = vpop.f32.mrf.mxu1 }
 0x1bb   : > { %v1944_v9 = vadd.f32 %v1856_v60, %v1739_v7  ;;  %v710_v60 = vadd.f32 %v709_v35, %v15767_v17  ;;  %v641_v7 = vadd.f32 %v15759_v22, %v15755_v18  ;;  %v1515_v17 = vadd.f32 %v15783_v45, %v1316_v11 }
 0x1bc   : > { %v1858_v53 = vpop.f32.mrf.mxu0  ;;  %v1312_v16 = vpop.f32.mrf.mxu1 }
 0x1bd   : > { %v922_v13 = vadd.f32 %v15763_v6, %v641_v7  ;;  %v1740_v18 = vadd.f32 %v1653_v33, %v1515_v17  ;;  %v1123_v6 = vadd.f32 %v15793_v49, %v924_v14  ;;  %v2194_v33 = vsub.s32 2, %v15799_v5 }
 0x1be   : > { %v15797_v4 = vpop.f32.mrf.mxu0 }
 0x1bf   : > { %v1121_v34 = vadd.f32 %v15771_v29, %v922_v13  ;;  %v1945_v43 = vadd.f32 %v1858_v53, %v1740_v18  ;;  %v1518_v29 = vadd.f32 %v15785_v41, %v15779_v36 }
 0x1c0   : > { %v15801_v61 = vpop.f32.mrf.mxu0 }
 0x1c3   : > { %v2061_v15 = vpop.f32.mrf.mxu0 }
 0x1c4   : > { %v2149_v23 = vadd.f32 %v2061_v15, %v1944_v9  ;;  %v716_v9 = vadd.f32 %v715_v39, %v15773_v30  ;;  %v919_v15 = vadd.f32 %v906_v44, %v710_v60  ;;  %v1743_v60 = vadd.f32 %v15791_v57, %v1518_v29 }
 0x1c5   : > { %v2063_v44 = vpop.f32.mrf.mxu0 }
 0x1c6   : > { %v2167_v3 = vadd.f32 %v15804_v19, %v2149_v23  ;;  %v923_v27 = vadd.f32 %v912_v50, %v716_v9  ;;  %v2150_v50 = vadd.f32 %v2063_v44, %v1945_v43 }
 0x1c8   : > { %v2175_v12 = vmax.f32 %v2167_v3, 0.0  ;;  %v920_v3 = vadd.f32 %v908_v46, %v712_v2  ;;  %v1122_v20 = vadd.f32 %v1111_v47, %v923_v27  ;;  %v2168_v2 = vadd.f32 %v15804_v19, %v2150_v50 }
 0x1ca   : > { %v1503_v28 = vpop.f32.mrf.mxu1  ;;  %v2204_v32 = vmul.f32 %v15815_v26, %v2175_v12  ;;  %v1118_v12 = vadd.f32 %v1105_v55, %v919_v15  ;;  %v1119_v38 = vadd.f32 %v1107_v31, %v920_v3  ;;  %v1321_v55 = vadd.f32 %v1310_v21, %v1122_v20 }
 0x1cc   : > { %v1505_v40 = vpop.f32.mrf.mxu1  ;;  %2220 = vrot.lane.b32.xlu0 %v2204_v32, %s15116_s29  ;;  %v1317_v32 = vadd.f32 %v1304_v58, %v1118_v12  ;;  %v1318_v30 = vadd.f32 %v1306_v8, %v1119_v38  ;;  %v1322_v58 = vadd.f32 %v1312_v16, %v1123_v6  ;;  %v1320_v8 = vadd.f32 %v15781_v42, %v1121_v34 }
 0x1cd   : > { %v2176_v12 = vmax.f32 %v2168_v2, 0.0 }
 0x1ce   : > { %v1509_v37 = vpop.f32.mrf.mxu1  ;;  %v1516_v39 = vadd.f32 %v1503_v28, %v1317_v32  ;;  %v1517_v45 = vadd.f32 %v1505_v40, %v1318_v30  ;;  %v2190_v28 = vsub.s32 1, %v15799_v5  ;;  %v1519_v11 = vadd.f32 %v15787_v51, %v1320_v8 }
 0x1cf   : > { %v1520_v63 = vadd.f32 %v1509_v37, %v1321_v55  ;;  %v15843_v37 = vrot.slane %v15809_v56, %v2194_v33 }
 0x1d0   : > { %v1511_v48 = vpop.f32.mrf.mxu1  ;;  %v15849_v25 = vrot.slane %v15809_v56, %v2190_v28  ;;  %v1744_v3 = vadd.f32 %v15795_v62, %v1519_v11 }
 0x1d1   : > { %v1521_v49 = vadd.f32 %v1511_v48, %v1322_v58  ;;  %19724 = vst [vmem:[#allocation10_spill] sm:$0xff] %v15843_v37  ;;  %v1948_v48 = vadd.f32 %v15797_v4, %v1743_v60 }
 0x1d2   : > { %v1728_v59 = vpop.f32.mrf.mxu1  ;;  %19725 = vst [vmem:[#allocation11_spill] sm:$0xff] %v15849_v25  ;;  %v1949_v18 = vadd.f32 %v15801_v61, %v1744_v3 }
 0x1d3   : > { %v1741_v24 = vadd.f32 %v1728_v59, %v1516_v39 }
 0x1d4   : > { %v1730_v0 = vpop.f32.mrf.mxu1 }
 0x1d5   : > { %v1742_v52 = vadd.f32 %v1730_v0, %v1517_v45  ;;  %v2067_v0 = vpop.f32.mrf.mxu0 }
 0x1d6   : > { %v2153_v13 = vadd.f32 %v2067_v0, %v1948_v48 }
 0x1d7   : > { %v1734_v54 = vpop.f32.mrf.mxu1  ;;  %v2069_v27 = vpop.f32.mrf.mxu0 }
 0x1d8   : > { %v1745_v21 = vadd.f32 %v1734_v54, %v1520_v63  ;;  %v2154_v14 = vadd.f32 %v2069_v27, %v1949_v18 }
 0x1d9   : > { %v1736_v23 = vpop.f32.mrf.mxu1 }
 0x1da   : > { %v1746_v42 = vadd.f32 %v1736_v23, %v1521_v49  ;;  %v2165_v23 = vpop.permute.xlu1 %2164 }
 0x1db   : > { %v1933_v35 = vpop.f32.mrf.mxu1  ;;  %v2171_v20 = vadd.f32 %v2165_v23, %v2153_v13  ;;  %v2172_v34 = vadd.f32 %v2165_v23, %v2154_v14 }
 0x1dc   : > { %v1946_v47 = vadd.f32 %v1933_v35, %v1741_v24  ;;  %v2198_v35 = vsub.s32 3, %v15799_v5  ;;  %v15876_v24 = vpop.permute.xlu0 %14948 }
 0x1dd   : > { %v1935_v22 = vpop.f32.mrf.mxu1 }
 0x1de   : > { %v1947_v40 = vadd.f32 %v1935_v22, %v1742_v52  ;;  %v15858_v62 = vrot.slane %v15809_v56, %v2198_v35  ;;  %v2180_v56 = vmax.f32 %v2172_v34, 0.0 }
 0x1df   : > { %v1939_v46 = vpop.f32.mrf.mxu1 }
 0x1e0   : > { %v1950_v7 = vadd.f32 %v1939_v46, %v1745_v21  ;;  %19726 = vst [vmem:[#allocation12_spill] sm:$0xff] %v15858_v62  ;;  %v2179_v46 = vmax.f32 %v2171_v20, 0.0  ;;  %v2209_v45 = vmul.f32 %v15849_v25, %v2180_v56  ;;  %v14474_v20 = vld [vmem:[%s19692_s2 + $0x18] sm:$0xff] }
 0x1e1   : > { %v1941_v31 = vpop.f32.mrf.mxu1 }
 0x1e2   : > { %v1951_v9 = vadd.f32 %v1941_v31, %v1746_v42  ;;  %v2208_v55 = vmul.f32 %v15815_v26, %v2179_v46 }
 0x1e3   : > { %v2138_v53 = vpop.f32.mrf.mxu1 }
 0x1e4   : > { %v2151_v59 = vadd.f32 %v2138_v53, %v1946_v47 }
 0x1e5   : > { %v2140_v16 = vpop.f32.mrf.mxu1 }
 0x1e6   : > { %v2169_v36 = vadd.f32 %v15804_v19, %v2151_v59  ;;  %v2152_v41 = vadd.f32 %v2140_v16, %v1947_v40 }
 0x1e7   : > { %v2144_v54 = vpop.f32.mrf.mxu1 }
 0x1e8   : > { %v2177_v15 = vmax.f32 %v2169_v36, 0.0  ;;  %v2155_v57 = vadd.f32 %v2144_v54, %v1950_v7  ;;  %v2170_v51 = vadd.f32 %v15804_v19, %v2152_v41  ;;  %v2205_v19 = vmul.f32 %v15849_v25, %v2176_v12 }
 0x1e9   : > { %v2146_v17 = vpop.f32.mrf.mxu1 }
 0x1ea   : > { %v2173_v38 = vadd.f32 %v2165_v23, %v2155_v57  ;;  %v2156_v4 = vadd.f32 %v2146_v17, %v1951_v9  ;;  %v2206_v32 = vmul.f32 %v15843_v37, %v2177_v15  ;;  %v2178_v30 = vmax.f32 %v2170_v51, 0.0  ;;  %v16001_v15 = vld [vmem:[#allocation2 + $0x50] sm:$0xff] }
 0x1ec   : > { %v2181_v22 = vmax.f32 %v2173_v38, 0.0  ;;  %2224 = vrot.lane.b32.xlu1 %v2206_v32, %s15116_s29  ;;  %v2174_v39 = vadd.f32 %v2165_v23, %v2156_v4  ;;  %v2207_v43 = vmul.f32 %v15858_v62, %v2178_v30  ;;  %v14473_v4 = vld [vmem:[%s19692_s2 + $0x10] sm:$0xff] }
 0x1ee   : > { %v2210_v44 = vmul.f32 %v15843_v37, %v2181_v22  ;;  %v2182_v61 = vmax.f32 %v2174_v39, 0.0 }
 0x1f0   : > { %2232 = vrot.lane.b32.xlu0 %v2210_v44, %s15116_s29  ;;  %2222 = vrot.lane.b32.xlu1 %v2205_v19, %s15116_s29  ;;  %v2211_v6 = vmul.f32 %v15858_v62, %v2182_v61 }
 0x1f4   : > { %14958 = vrot.lane.b32.xlu0 %v15105_v1, %s15108_s17  ;;  %2226 = vrot.lane.b32.xlu1 %v2207_v43, %s15116_s29 }
 0x1f8   : > { %2234 = vrot.lane.b32.xlu0 %v2211_v6, %s15116_s29  ;;  %2228 = vrot.lane.b32.xlu1 %v2208_v55, %s15116_s29  ;;  %v14950_v55 = vunpack.i.l.bf16 %v15876_v24 }
 0x1fc   : > { %2230 = vrot.lane.b32.xlu1 %v2209_v45, %s15116_s29 }
 0x200   : > { %14953 = vrot.lane.b32.xlu1 %v15105_v1, %s15106_s10 }
 0x23e   : > { %v2221_v50 = vpop.permute.xlu0 %2220 }
 0x23f   : > { %2252 = vst.msk [vmem:[#allocation3 + $0x10] sm:$0xff] %vm2251_vm10, %v2221_v50 }
 0x246   : > { %v15879_v31 = vld [vmem:[#allocation3 + $0x10] sm:$0xff] }
 0x247   : > { %2500 = vrot.lane.b32.xlu0 %v15879_v31, %s15106_s10  ;;  %2304 = vrot.lane.b32.xlu1 %v15879_v31, %s15107_s11 }
 0x24b   : > { %2898 = vrot.lane.b32.xlu0 %v15879_v31, %s15109_s18  ;;  %2696 = vrot.lane.b32.xlu1 %v15879_v31, %s15108_s17 }
 0x24f   : > { %3096 = vrot.lane.b32.xlu0 %v15879_v31, %s15110_s19 }
 0x253   : > { %3294 = vrot.lane.b32.xlu0 %v15879_v31, %s15111_s20 }
 0x25e   : > { %v2225_v1 = vpop.permute.xlu1 %2224 }
 0x262   : > { %v2233_v33 = vpop.permute.xlu0 %2232  ;;  %v2223_v58 = vpop.permute.xlu1 %2222 }
 0x263   : > { %v2237_v63 = vsel %vm2236_vm11, %v2221_v50, %v2223_v58  ;;  %v15899_v8 = vsel %vm2236_vm11, %v2223_v58, %v2225_v1 }
 0x264   : > { %2306 = vrot.lane.b32.xlu0 %v2237_v63, %s15107_s11  ;;  %2502 = vrot.lane.b32.xlu1 %v2237_v63, %s15106_s10 }
 0x266   : > { %v15896_v52 = vpop.permute.xlu0 %14958  ;;  %v2227_v47 = vpop.permute.xlu1 %2226 }
 0x267   : > { %v2239_v29 = vsel %vm2236_vm11, %v2225_v1, %v2227_v47  ;;  %v14951_v1 = vunpack.i.h.bf16 %v15876_v24 }
 0x268   : > { %2255 = vst.msk [vmem:[#allocation3 + $0x28] sm:$0xff] %vm1140_vm5, %v2239_v29  ;;  %2698 = vrot.lane.b32.xlu0 %v2237_v63, %s15108_s17  ;;  %2902 = vrot.lane.b32.xlu1 %v15899_v8, %s15109_s18 }
 0x26a   : > { %v2235_v53 = vpop.permute.xlu0 %2234  ;;  %v2229_v28 = vpop.permute.xlu1 %2228 }
 0x26b   : > { %v2242_v49 = vsel %vm2236_vm11, %v2233_v33, %v2235_v53  ;;  %2256 = vst.msk [vmem:[#allocation3 + $0x50] sm:$0xff] %vm2251_vm10, %v2229_v28 }
 0x26c   : > { %2259 = vst.msk [vmem:[#allocation3 + $0x68] sm:$0xff] %vm1140_vm5, %v2242_v49  ;;  %2900 = vrot.lane.b32.xlu0 %v2237_v63, %s15109_s18  ;;  %2308 = vrot.lane.b32.xlu1 %v15899_v8, %s15107_s11 }
 0x26e   : > { %v2231_v59 = vpop.permute.xlu1 %2230 }
 0x26f   : > { %v15912_v21 = vld [vmem:[#allocation3 + $0x28] sm:$0xff]  ;;  %v2240_v60 = vsel %vm2236_vm11, %v2229_v28, %v2231_v59  ;;  %v2241_v2 = vsel %vm2236_vm11, %v2231_v59, %v2233_v33 }
 0x270   : > { %2310 = vrot.lane.b32.xlu0 %v15912_v21, %s15107_s11  ;;  %3100 = vrot.lane.b32.xlu1 %v15899_v8, %s15110_s19 }
 0x272   : > { %v2288_v40 = vld [vmem:[#allocation3 + $0x50] sm:$0xff]  ;;  %v15975_v42 = vpop.permute.xlu1 %14953 }
 0x273   : > { %v2291_v16 = vld [vmem:[#allocation3 + $0x68] sm:$0xff]  ;;  %v14956_v47 = vunpack.i.h.bf16 %v15975_v42 }
 0x274   : > { %3098 = vrot.lane.b32.xlu0 %v2237_v63, %s15110_s19  ;;  %2504 = vrot.lane.b32.xlu1 %v15899_v8, %s15106_s10 }
 0x278   : > { %2506 = vrot.lane.b32.xlu0 %v15912_v21, %s15106_s10  ;;  %3298 = vrot.lane.b32.xlu1 %v15899_v8, %s15111_s20 }
 0x27c   : > { %3296 = vrot.lane.b32.xlu0 %v2237_v63, %s15111_s20  ;;  %2700 = vrot.lane.b32.xlu1 %v15899_v8, %s15108_s17 }
 0x280   : > { %2702 = vrot.lane.b32.xlu0 %v15912_v21, %s15108_s17  ;;  %3516 = vrot.lane.b32.xlu1 %v15899_v8, %s19703_s21 }
 0x284   : > { %3514 = vrot.lane.b32.xlu0 %v2237_v63, %s19703_s21  ;;  %2510 = vrot.lane.b32.xlu1 %v2288_v40, %s15106_s10 }
 0x288   : > { %2314 = vrot.lane.b32.xlu0 %v2288_v40, %s15107_s11  ;;  %2906 = vrot.lane.b32.xlu1 %v2288_v40, %s15109_s18 }
 0x28c   : > { %2706 = vrot.lane.b32.xlu0 %v2288_v40, %s15108_s17  ;;  %3104 = vrot.lane.b32.xlu1 %v2288_v40, %s15110_s19 }
 0x290   : > { %2904 = vrot.lane.b32.xlu0 %v15912_v21, %s15109_s18  ;;  %3302 = vrot.lane.b32.xlu1 %v2288_v40, %s15111_s20 }
 0x294   : > { %3718 = vrot.lane.b32.xlu0 %v2237_v63, %s19701_s22  ;;  %3522 = vrot.lane.b32.xlu1 %v2288_v40, %s19703_s21 }
 0x298   : > { %2512 = vrot.lane.b32.xlu0 %v2240_v60, %s15106_s10  ;;  %2316 = vrot.lane.b32.xlu1 %v2240_v60, %s15107_s11 }
 0x29c   : > { %2910 = vrot.lane.b32.xlu0 %v2241_v2, %s15109_s18  ;;  %3512 = vrot.lane.b32.xlu1 %v15879_v31, %s19703_s21 }
 0x2a0   : > { %2318 = vrot.lane.b32.xlu0 %v2241_v2, %s15107_s11  ;;  %3726 = vrot.lane.b32.xlu1 %v2288_v40, %s19701_s22 }
 0x2a4   : > { %3108 = vrot.lane.b32.xlu0 %v2241_v2, %s15110_s19  ;;  %3720 = vrot.lane.b32.xlu1 %v15899_v8, %s19701_s22 }
 0x2a8   : > { %2514 = vrot.lane.b32.xlu0 %v2241_v2, %s15106_s10  ;;  %2708 = vrot.lane.b32.xlu1 %v2240_v60, %s15108_s17 }
 0x2ac   : > { %3306 = vrot.lane.b32.xlu0 %v2241_v2, %s15111_s20  ;;  %2908 = vrot.lane.b32.xlu1 %v2240_v60, %s15109_s18 }
 0x2b0   : > { %2710 = vrot.lane.b32.xlu0 %v2241_v2, %s15108_s17  ;;  %2320 = vrot.lane.b32.xlu1 %v2291_v16, %s15107_s11 }
 0x2b4   : > { %3102 = vrot.lane.b32.xlu0 %v15912_v21, %s15110_s19  ;;  %3106 = vrot.lane.b32.xlu1 %v2240_v60, %s15110_s19 }
 0x2b8   : > { %3922 = vrot.lane.b32.xlu0 %v2237_v63, %s19699_s27  ;;  %2516 = vrot.lane.b32.xlu1 %v2291_v16, %s15106_s10  ;;  %v16090_v63 = vld [vmem:[%s19691_s1 + $0xa0] sm:$0xff] }
 0x2b9   : > { %v15968_v0 = vpop.permute.xlu0 %2500  ;;  %v15981_v36 = vpop.permute.xlu1 %2304 }
 0x2ba   : > { %v2322_v53 = vsel %vm345_vm0, %v14951_v1, %v15981_v36 }
 0x2bc   : > { %3526 = vrot.lane.b32.xlu0 %v2241_v2, %s19703_s21  ;;  %3304 = vrot.lane.b32.xlu1 %v2240_v60, %s15111_s20 }
 0x2bd   : > { %v15977_v7 = vpop.permute.xlu0 %2898  ;;  %v15989_v11 = vpop.permute.xlu1 %2696 }
 0x2c0   : > { %2912 = vrot.lane.b32.xlu0 %v2291_v16, %s15109_s18  ;;  %2712 = vrot.lane.b32.xlu1 %v2291_v16, %s15108_s17 }
 0x2c1   : > { %v15983_v41 = vpop.permute.xlu0 %3096 }
 0x2c4   : > { %3730 = vrot.lane.b32.xlu0 %v2241_v2, %s19701_s22  ;;  %3716 = vrot.lane.b32.xlu1 %v15879_v31, %s19701_s22 }
 0x2c5   : > { %v15991_v48 = vpop.permute.xlu0 %3294 }
 0x2c8   : > { %3110 = vrot.lane.b32.xlu0 %v2291_v16, %s15110_s19  ;;  %3524 = vrot.lane.b32.xlu1 %v2240_v60, %s19703_s21 }
 0x2cc   : > { %3934 = vrot.lane.b32.xlu0 %v2241_v2, %s19699_s27  ;;  %3930 = vrot.lane.b32.xlu1 %v2288_v40, %s19699_s27  ;;  %v16112_v40 = vld [vmem:[%s19691_s1 + $0xa8] sm:$0xff]  ;;  %v2518_v2 = vsel %vm543_vm1, %v14956_v47, %v15968_v0 }
 0x2d0   : > { %3308 = vrot.lane.b32.xlu0 %v2291_v16, %s15111_s20  ;;  %3728 = vrot.lane.b32.xlu1 %v2240_v60, %s19701_s22 }
 0x2d4   : > { %3300 = vrot.lane.b32.xlu0 %v15912_v21, %s15111_s20  ;;  %3924 = vrot.lane.b32.xlu1 %v15899_v8, %s19699_s27  ;;  %v14955_v8 = vunpack.i.l.bf16 %v15975_v42 }
 0x2d6   : > { %v15997_v54 = vpop.permute.xlu0 %2306  ;;  %v15999_v9 = vpop.permute.xlu1 %2502 }
 0x2d7   : > { %v2323_v58 = vsel %vm345_vm0, %v15981_v36, %v15997_v54 }
 0x2d8   : > { %3530 = vrot.lane.b32.xlu0 %v16001_v15, %s19703_s21  ;;  %3932 = vrot.lane.b32.xlu1 %v2240_v60, %s19699_s27 }
 0x2da   : > { %v16006_v57 = vpop.permute.xlu0 %2698  ;;  %v16008_v3 = vpop.permute.xlu1 %2902 }
 0x2db   : > { %v2715_v1 = vsel %vm740_vm3, %v15989_v11, %v16006_v57 }
 0x2dc   : > { %3520 = vrot.lane.b32.xlu0 %v16001_v15, %s19703_s21  ;;  %3920 = vrot.lane.b32.xlu1 %v15879_v31, %s19699_s27 }
 0x2de   : > { %v16014_v12 = vpop.permute.xlu0 %2900  ;;  %v16016_v13 = vpop.permute.xlu1 %2308 }
 0x2e0   : > { %3734 = vrot.lane.b32.xlu0 %v16001_v15, %s19701_s22  ;;  %3528 = vrot.lane.b32.xlu1 %v2291_v16, %s19703_s21 }
 0x2e2   : > { %v16021_v23 = vpop.permute.xlu0 %2310  ;;  %v16023_v17 = vpop.permute.xlu1 %3100 }
 0x2e4   : > { %3724 = vrot.lane.b32.xlu0 %v16001_v15, %s19701_s22  ;;  %3518 = vrot.lane.b32.xlu1 %v15912_v21, %s19703_s21  ;;  %s15123_s21 = smov 116  }
 0x2e6   : > { %v16029_v35 = vpop.permute.xlu0 %3098  ;;  %v16031_v27 = vpop.permute.xlu1 %2504 }
 0x2e8   : > { %3938 = vrot.lane.b32.xlu0 %v16001_v15, %s19699_s27  ;;  %3732 = vrot.lane.b32.xlu1 %v2291_v16, %s19701_s22 }
 0x2ea   : > { %v16036_v51 = vpop.permute.xlu0 %2506  ;;  %v16038_v38 = vpop.permute.xlu1 %3298 }
 0x2ec   : > { %3928 = vrot.lane.b32.xlu0 %v16001_v15, %s19699_s27  ;;  %3722 = vrot.lane.b32.xlu1 %v15912_v21, %s19701_s22  ;;  %s15127_s22 = smov 32  }
 0x2ee   : > { %v16047_v32 = vpop.permute.xlu0 %3296  ;;  %v16049_v18 = vpop.permute.xlu1 %2700 }
 0x2f0   : > { %4126 = vperm.xlu0 %14946, %v14473_v4   ;;  %3936 = vrot.lane.b32.xlu1 %v2291_v16, %s19699_s27  ;;  %v16124_v16 = vld [vmem:[%s19691_s1 + $0x90] sm:$0xff]  ;;  %v14960_v4 = vunpack.i.l.bf16 %v15896_v52 }
 0x2f2   : > { %v16052_v22 = vpop.permute.xlu0 %2702  ;;  %v16054_v14 = vpop.permute.xlu1 %3516 }
 0x2f4   : > { %3926 = vrot.lane.b32.xlu1 %v15912_v21, %s19699_s27  ;;  %v2519_v21 = vsel %vm543_vm1, %v15968_v0, %v15999_v9  ;;  %v16136_v0 = vld [vmem:[%s19691_s1 + $0x98] sm:$0xff]  ;;  %s14806_s27 = sshll.u32 %s15189_s4, 8 }
 0x2f6   : > { %v16061_v30 = vpop.permute.xlu0 %3514  ;;  %v2511_v39 = vpop.permute.xlu1 %2510 }
 0x2f7   : > { %v2522_v49 = vsel %vm543_vm1, %v14955_v8, %v2511_v39 }
 0x2f8   : > { %4131 = vperm.xlu1 %14945, %v14474_v20  }
 0x2fa   : > { %v2315_v44 = vpop.permute.xlu0 %2314  ;;  %v16063_v19 = vpop.permute.xlu1 %2906 }
 0x2fb   : > { %v2326_v33 = vsel %vm345_vm0, %v14950_v55, %v2315_v44  ;;  %v14961_v55 = vunpack.i.h.bf16 %v15896_v52 }
 0x2fc   : > { %4256 = vrot.lane.b32.xlu1 %v16001_v15, %s15117_s15 }
 0x2fd   : > { %v2714_v47 = vsel %vm740_vm3, %v14961_v55, %v15989_v11  ;;  %v16173_v11 = vld [vmem:[%s19691_s1 + $0xb8] sm:$0xff] }
 0x2fe   : > { %v2707_v34 = vpop.permute.xlu0 %2706  ;;  %v16065_v61 = vpop.permute.xlu1 %3104 }
 0x300   : > { %4453 = vrot.lane.b32.xlu1 %v16001_v15, %s15118_s16 }
 0x302   : > { %v16067_v43 = vpop.permute.xlu0 %2904  ;;  %v16069_v46 = vpop.permute.xlu1 %3302 }
 0x304   : > { %4650 = vrot.lane.b32.xlu1 %v16001_v15, %s15119_s30 }
 0x306   : > { %v16071_v56 = vpop.permute.xlu0 %3718  ;;  %v16073_v6 = vpop.permute.xlu1 %3522 }
 0x30a   : > { %v16076_v45 = vpop.permute.xlu0 %2512  ;;  %v16078_v50 = vpop.permute.xlu1 %2316 }
 0x30b   : > { %v2327_v31 = vsel %vm345_vm0, %v2315_v44, %v16078_v50  ;;  %v2523_v28 = vsel %vm543_vm1, %v2511_v39, %v16076_v45 }
 0x30c   : > { %2372 = vmatprep.subr.mxu0 %v2327_v31  ;;  %v2718_v31 = vsel %vm740_vm3, %v14960_v4, %v2707_v34  ;;  %v2325_v4 = vsel %vm345_vm0, %v16016_v13, %v16021_v23 }
 0x30d   : > { %2373 = vmatpush1.msra.mxu0 %v2326_v33  ;;  %v16154_v33 = vld [vmem:[%s19691_s1 + $0xb0] sm:$0xff] }
 0x30e   : > { %v16094_v29 = vpop.permute.xlu0 %2910  ;;  %2374 = vmatprep.subr.mxu0 %v2323_v58  ;;  %v16096_v24 = vpop.permute.xlu1 %3512 }
 0x30f   : > { %2375 = vmatpush1.msra.mxu0 %v2322_v53  ;;  %v2915_v53 = vsel %vm941_vm4, %v16014_v12, %v16008_v3 }
 0x310   : > { %14475 = vmatmul.mubr.msk.f32.vlgmr.msra.gmra.mxu0 %vm362_vm2, %v16090_v63  ;;  %2568 = vmatprep.subr.mxu0 %v2523_v28 }
 0x311   : > { %2569 = vmatpush1.msra.mxu0 %v2522_v49  ;;  %2414 = vmatprep.mubr.f32.mxu0 %v16001_v15 }
 0x312   : > { %v2319_v59 = vpop.permute.xlu0 %2318  ;;  %v16114_v60 = vpop.permute.xlu1 %3726  ;;  %2570 = vmatprep.subr.mxu0 %v2519_v21 }
 0x313   : > { %2571 = vmatpush1.msra.mxu0 %v2518_v2  ;;  %v2328_v2 = vsel %vm345_vm0, %v16078_v50, %v2319_v59  ;;  %v2324_v50 = vsel %vm345_vm0, %v15997_v54, %v16016_v13  ;;  %v3113_v13 = vsel %vm1140_vm5, %v16029_v35, %v16023_v17 }
 0x314   : > { %14476 = vmatmul.mubr.msk.f32.gmra.mxu0 %vm362_vm2, %v16112_v40 }
 0x315   : > { %2604 = vmatprep.mubr.f32.mxu0 %v16001_v15 }
 0x316   : > { %v16126_v42 = vpop.permute.xlu0 %3108  ;;  %v16128_v36 = vpop.permute.xlu1 %3720 }
 0x318   : > { %14479 = vmatmul.mubr.msk.f32.vlgmr.msra.gmra.mxu0 %vm362_vm2, %v16124_v16 }
 0x319   : > { %2610 = vmatprep.mubr.f32.mxu0 %v16001_v15 }
 0x31a   : > { %v2515_v20 = vpop.permute.xlu0 %2514  ;;  %v16139_v39 = vpop.permute.xlu1 %2708 }
 0x31b   : > { %v2719_v44 = vsel %vm740_vm3, %v2707_v34, %v16139_v39 }
 0x31c   : > { %14480 = vmatmul.mubr.msk.f32.gmra.mxu0 %vm362_vm2, %v16136_v0  ;;  %2764 = vmatprep.subr.mxu0 %v2719_v44 }
 0x31d   : > { %2765 = vmatpush1.msra.mxu0 %v2718_v31  ;;  %2800 = vmatprep.mubr.f32.mxu0 %v16001_v15 }
 0x31e   : > { %v16156_v58 = vpop.permute.xlu0 %3306  ;;  %v2909_v52 = vpop.permute.xlu1 %2908  ;;  %2766 = vmatprep.subr.mxu0 %v2715_v1  ;;  %v2524_v1 = vsel %vm543_vm1, %v16076_v45, %v2515_v20  ;;  %v2520_v45 = vsel %vm543_vm1, %v15999_v9, %v16031_v27  ;;  %v3311_v9 = vsel %vm1339_vm6, %v16047_v32, %v16038_v38 }
 0x31f   : > { %2767 = vmatpush1.msra.mxu0 %v2714_v47  ;;  %v2918_v34 = vsel %vm941_vm4, %v2909_v52, %v16094_v29  ;;  %v2917_v8 = vsel %vm941_vm4, %v16063_v19, %v2909_v52  ;;  %v2914_v19 = vsel %vm941_vm4, %v15977_v7, %v16014_v12  ;;  %v16192_v7 = vld [vmem:[%s19691_s1 + $0xc0] sm:$0xff] }
 0x320   : > { %14483 = vmatmul.mubr.msk.f32.vlgmr.msra.gmra.mxu0 %vm362_vm2, %v16154_v33  ;;  %2962 = vmatprep.subr.mxu0 %v2918_v34 }
 0x321   : > { %2963 = vmatpush1.msra.mxu0 %v2917_v8  ;;  %2806 = vmatprep.mubr.f32.mxu0 %v16001_v15 }
 0x322   : > { %v16175_v28 = vpop.permute.xlu0 %2710  ;;  %v2321_v49 = vpop.permute.xlu1 %2320  ;;  %2964 = vmatprep.subr.mxu0 %v2915_v53 }
 0x323   : > { %2965 = vmatpush1.msra.mxu0 %v2914_v19  ;;  %v2329_v21 = vsel %vm345_vm0, %v2319_v59, %v2321_v49  ;;  %v2720_v8 = vsel %vm740_vm3, %v16139_v39, %v16175_v28  ;;  %v16287_v39 = vld [vmem:[%s19691_s1 + $0xe0] sm:$0xff]  ;;  %v3533_v19 = vsel %vm1562_vm7, %v16061_v30, %v16054_v14 }
 0x324   : > { %2449 = vmatprep.subr.mxu1 %v2329_v21  ;;  %14484 = vmatmul.mubr.msk.f32.gmra.mxu0 %vm362_vm2, %v16173_v11 }
 0x325   : > { %2450 = vmatpush1.msra.mxu1 %v2328_v2  ;;  %2998 = vmatprep.mubr.f32.mxu0 %v16001_v15 }
 0x326   : > { %v16194_v12 = vpop.permute.xlu0 %3102  ;;  %2451 = vmatprep.subr.mxu1 %v2325_v4  ;;  %v3107_v44 = vpop.permute.xlu1 %3106 }
 0x327   : > { %2452 = vmatpush1.msra.mxu1 %v2324_v50  ;;  %v3116_v59 = vsel %vm1140_vm5, %v3107_v44, %v16126_v42  ;;  %v3115_v23 = vsel %vm1140_vm5, %v16065_v61, %v3107_v44  ;;  %v16217_v61 = vld [vmem:[%s19691_s1 + $0xc8] sm:$0xff]  ;;  %v3737_v44 = vsel %vm1767_vm8, %v16071_v56, %v16128_v36 }
 0x328   : > { %14477 = vmatmul.mubr.msk.f32.vlgmr.msra.gmra.mxu1 %vm362_vm2, %v16090_v63  ;;  %14487 = vmatmul.mubr.msk.f32.vlgmr.msra.gmra.mxu0 %vm362_vm2, %v16192_v7  ;;  %v3112_v63 = vsel %vm1140_vm5, %v15983_v41, %v16029_v35  ;;  %v2521_v41 = vsel %vm543_vm1, %v16031_v27, %v16036_v51  ;;  %v16259_v27 = vld [vmem:[%s19691_s1 + $0xd8] sm:$0xff] }
 0x329   : > { %3160 = vmatprep.subr.mxu0 %v3116_v59  ;;  %2491 = vmatprep.mubr.f32.mxu1 %v16001_v15 }
 0x32a   : > { %3161 = vmatpush1.msra.mxu0 %v3115_v23  ;;  %v16208_v55 = vpop.permute.xlu0 %3922  ;;  %v2517_v54 = vpop.permute.xlu1 %2516  ;;  %3004 = vmatprep.mubr.f32.mxu0 %v16001_v15 }
 0x32b   : > { %3162 = vmatprep.subr.mxu0 %v3113_v13  ;;  %v2525_v31 = vsel %vm543_vm1, %v2515_v20, %v2517_v54  ;;  %v14470_v13 = vld [vmem:[%s19691_s1 + $0x108] sm:$0xff] }
 0x32c   : > { %3163 = vmatpush1.msra.mxu0 %v3112_v63  ;;  %14478 = vmatmul.mubr.msk.f32.gmra.mxu1 %vm362_vm2, %v16112_v40  ;;  %v16238_v40 = vld [vmem:[%s19691_s1 + $0xd0] sm:$0xff] }
 0x32d   : > { %2645 = vmatprep.subr.mxu1 %v2525_v31  ;;  %14488 = vmatmul.mubr.msk.f32.gmra.mxu0 %vm362_vm2, %v16217_v61 }
 0x32e   : > { %2646 = vmatpush1.msra.mxu1 %v2524_v1  ;;  %v16229_v52 = vpop.permute.xlu0 %3526  ;;  %v3305_v35 = vpop.permute.xlu1 %3304  ;;  %2681 = vmatprep.mubr.f32.mxu1 %v16001_v15 }
 0x32f   : > { %2647 = vmatprep.subr.mxu1 %v2521_v41  ;;  %3196 = vmatprep.mubr.f32.mxu0 %v16001_v15  ;;  %v3314_v20 = vsel %vm1339_vm6, %v3305_v35, %v16156_v58  ;;  %v3313_v51 = vsel %vm1339_vm6, %v16069_v46, %v3305_v35  ;;  %v3310_v46 = vsel %vm1339_vm6, %v15991_v48, %v16047_v32  ;;  %v14471_v41 = vld [vmem:[%s19691_s1 + $0x110] sm:$0xff] }
 0x330   : > { %2648 = vmatpush1.msra.mxu1 %v2520_v45  ;;  %3358 = vmatprep.subr.mxu0 %v3314_v20  ;;  %v2717_v48 = vsel %vm740_vm3, %v16049_v18, %v16052_v22  ;;  %v14472_v20 = vld [vmem:[%s19691_s1 + $0x118] sm:$0xff] }
 0x331   : > { %14481 = vmatmul.mubr.msk.f32.vlgmr.msra.gmra.mxu1 %vm362_vm2, %v16124_v16  ;;  %14491 = vmatmul.mubr.msk.f32.vlgmr.msra.gmra.mxu0 %vm362_vm2, %v16238_v40 }
 0x332   : > { %3359 = vmatpush1.msra.mxu0 %v3313_v51  ;;  %v2913_v47 = vpop.permute.xlu0 %2912  ;;  %v2713_v34 = vpop.permute.xlu1 %2712  ;;  %2687 = vmatprep.mubr.f32.mxu1 %v16001_v15 }
 0x333   : > { %3360 = vmatprep.subr.mxu0 %v3311_v9  ;;  %3202 = vmatprep.mubr.f32.mxu0 %v16001_v15  ;;  %v2721_v16 = vsel %vm740_vm3, %v16175_v28, %v2713_v34  ;;  %v2919_v22 = vsel %vm941_vm4, %v16094_v29, %v2913_v47  ;;  %v2916_v28 = vsel %vm941_vm4, %v16008_v3, %v16067_v43 }
 0x334   : > { %3361 = vmatpush1.msra.mxu0 %v3310_v46  ;;  %2841 = vmatprep.subr.mxu1 %v2721_v16 }
 0x335   : > { %14482 = vmatmul.mubr.msk.f32.gmra.mxu1 %vm362_vm2, %v16136_v0  ;;  %14492 = vmatmul.mubr.msk.f32.gmra.mxu0 %vm362_vm2, %v16259_v27  ;;  %v2716_v0 = vsel %vm740_vm3, %v16006_v57, %v16049_v18 }
 0x336   : > { %2842 = vmatpush1.msra.mxu1 %v2720_v8  ;;  %v16274_v53 = vpop.permute.xlu0 %3730  ;;  %v3717_v32 = vpop.permute.xlu1 %3716  ;;  %2877 = vmatprep.mubr.f32.mxu1 %v16001_v15 }
 0x337   : > { %2843 = vmatprep.subr.mxu1 %v2717_v48  ;;  %3394 = vmatprep.mubr.f32.mxu0 %v16001_v15  ;;  %v3736_v50 = vsel %vm1767_vm8, %v3717_v32, %v16071_v56 }
 0x338   : > { %2844 = vmatpush1.msra.mxu1 %v2716_v0 }
 0x339   : > { %14485 = vmatmul.mubr.msk.f32.vlgmr.msra.gmra.mxu1 %vm362_vm2, %v16154_v33  ;;  %3039 = vmatprep.subr.mxu1 %v2913_v47  ;;  %v16303_v33 = vld [vmem:[%s19691_s1 + $0xe8] sm:$0xff] }
 0x33a   : > { %14495 = vmatmul.mubr.msk.f32.vlgmr.msra.gmra.mxu0 %vm362_vm2, %v16287_v39  ;;  %3040 = vmatpush1.msra.mxu1 %v2919_v22  ;;  %v3111_v57 = vpop.permute.xlu0 %3110  ;;  %v3525_v18 = vpop.permute.xlu1 %3524 }
 0x33b   : > { %3041 = vmatprep.subr.mxu1 %v16067_v43  ;;  %2883 = vmatprep.mubr.f32.mxu1 %v16001_v15  ;;  %v3537_v29 = vsel %vm1562_vm7, %v3525_v18, %v16229_v52  ;;  %v3536_v49 = vsel %vm1562_vm7, %v16073_v6, %v3525_v18  ;;  %v16323_v6 = vld [vmem:[%s19691_s1 + $0xf0] sm:$0xff]  ;;  %v3117_v21 = vsel %vm1140_vm5, %v16126_v42, %v3111_v57  ;;  %v16449_v18 = vld [vmem:[#allocation2 + $0x8] sm:$0xff] }
 0x33c   : > { %3042 = vmatpush1.msra.mxu1 %v2916_v28  ;;  %3400 = vmatprep.mubr.f32.mxu0 %v16001_v15 }
 0x33d   : > { %14486 = vmatmul.mubr.msk.f32.gmra.mxu1 %vm362_vm2, %v16173_v11  ;;  %3237 = vmatprep.subr.mxu1 %v3111_v57  ;;  %v3532_v11 = vsel %vm1562_vm7, %v16096_v24, %v16061_v30  ;;  %v3114_v30 = vsel %vm1140_vm5, %v16023_v17, %v16194_v12  ;;  %v16343_v24 = vld [vmem:[%s19691_s1 + $0xf8] sm:$0xff] }
 0x33e   : > { %14496 = vmatmul.mubr.msk.f32.gmra.mxu0 %vm362_vm2, %v16303_v33  ;;  %3582 = vmatprep.subr.mxu0 %v3537_v29  ;;  %v16314_v3 = vpop.permute.xlu0 %3934  ;;  %v3931_v43 = vpop.permute.xlu1 %3930 }
 0x33f   : > { %3583 = vmatpush1.msra.mxu0 %v3536_v49  ;;  %3075 = vmatprep.mubr.f32.mxu1 %v16001_v15 }
 0x340   : > { %3584 = vmatprep.subr.mxu0 %v3533_v19  ;;  %3618 = vmatprep.mubr.f32.mxu0 %v16001_v15 }
 0x341   : > { %3585 = vmatpush1.msra.mxu0 %v3532_v11  ;;  %14489 = vmatmul.mubr.msk.f32.vlgmr.msra.gmra.mxu1 %vm362_vm2, %v16192_v7 }
 0x342   : > { %3238 = vmatpush1.msra.mxu1 %v3117_v21  ;;  %14499 = vmatmul.mubr.msk.f32.vlgmr.msra.gmra.mxu0 %vm362_vm2, %v16323_v6  ;;  %v3309_v2 = vpop.permute.xlu0 %3308  ;;  %v3729_v4 = vpop.permute.xlu1 %3728 }
 0x343   : > { %3239 = vmatprep.subr.mxu1 %v16194_v12  ;;  %3081 = vmatprep.mubr.f32.mxu1 %v16001_v15  ;;  %v3741_v42 = vsel %vm1767_vm8, %v3729_v4, %v16274_v53  ;;  %v3740_v7 = vsel %vm1767_vm8, %v16114_v60, %v3729_v4  ;;  %v16363_v60 = vld [vmem:[%s19691_s1 + $0x100] sm:$0xff]  ;;  %v3315_v59 = vsel %vm1339_vm6, %v16156_v58, %v3309_v2 }
 0x344   : > { %3240 = vmatpush1.msra.mxu1 %v3114_v30  ;;  %3624 = vmatprep.mubr.f32.mxu0 %v16001_v15 }
 0x345   : > { %3435 = vmatprep.subr.mxu1 %v3309_v2  ;;  %14490 = vmatmul.mubr.msk.f32.gmra.mxu1 %vm362_vm2, %v16217_v61 }
 0x346   : > { %14500 = vmatmul.mubr.msk.f32.gmra.mxu0 %vm362_vm2, %v16343_v24  ;;  %3786 = vmatprep.subr.mxu0 %v3741_v42  ;;  %v3301_v17 = vpop.permute.xlu0 %3300  ;;  %v16354_v12 = vpop.permute.xlu1 %3924 }
 0x347   : > { %3787 = vmatpush1.msra.mxu0 %v3740_v7  ;;  %3273 = vmatprep.mubr.f32.mxu1 %v16001_v15  ;;  %v3312_v56 = vsel %vm1339_vm6, %v16038_v38, %v3301_v17  ;;  %v3941_v1 = vsel %vm19705_vm9, %v16208_v55, %v16354_v12 }
 0x348   : > { %3788 = vmatprep.subr.mxu0 %v3737_v44  ;;  %3822 = vmatprep.mubr.f32.mxu0 %v16001_v15 }
 0x349   : > { %3789 = vmatpush1.msra.mxu0 %v3736_v50  ;;  %14493 = vmatmul.mubr.msk.f32.vlgmr.msra.gmra.mxu1 %vm362_vm2, %v16238_v40 }
 0x34a   : > { %3436 = vmatpush1.msra.mxu1 %v3315_v59  ;;  %14503 = vmatmul.mubr.msk.f32.vlgmr.msra.gmra.mxu0 %vm362_vm2, %v16363_v60  ;;  %v3933_v23 = vpop.permute.xlu1 %3932  ;;  %v3531_v54 = vpop.permute.xlu0 %3530 }
 0x34b   : > { %3437 = vmatprep.subr.mxu1 %v3301_v17  ;;  %3279 = vmatprep.mubr.f32.mxu1 %v16001_v15  ;;  %v3945_v61 = vsel %vm19705_vm9, %v3933_v23, %v16314_v3  ;;  %v3944_v58 = vsel %vm19705_vm9, %v3931_v43, %v3933_v23 }
 0x34c   : > { %3438 = vmatpush1.msra.mxu1 %v3312_v56  ;;  %3828 = vmatprep.mubr.f32.mxu0 %v16001_v15 }
 0x34d   : > { %14494 = vmatmul.mubr.msk.f32.gmra.mxu1 %vm362_vm2, %v16259_v27  ;;  %3990 = vmatprep.subr.mxu0 %v3945_v61 }
 0x34e   : > { %14504 = vmatmul.mubr.msk.f32.gmra.mxu0 %vm362_vm2, %v14470_v13  ;;  %v3921_v38 = vpop.permute.xlu1 %3920  ;;  %3471 = vmatprep.mubr.f32.mxu1 %v16001_v15  ;;  %v3521_v63 = vpop.permute.xlu0 %3520 }
 0x34f   : > { %3991 = vmatpush1.msra.mxu0 %v3944_v58  ;;  %v3940_v31 = vsel %vm19705_vm9, %v3921_v38, %v16208_v55  ;;  %4026 = vmatprep.mubr.f32.mxu0 %v16001_v15 }
 0x350   : > { %3992 = vmatprep.subr.mxu0 %v3941_v1  ;;  %4246 = vrot.lane.b32.xlu0 %v16449_v18, %s15117_s15 }
 0x351   : > { %14497 = vmatmul.mubr.msk.f32.vlgmr.msra.gmra.mxu1 %vm362_vm2, %v16287_v39  ;;  %3993 = vmatpush1.msra.mxu0 %v3940_v31 }
 0x352   : > { %14507 = vmatmul.mubr.msk.f32.vlgmr.msra.gmra.mxu0 %vm362_vm2, %v14471_v41  ;;  %v3529_v35 = vpop.permute.xlu1 %3528  ;;  %3477 = vmatprep.mubr.f32.mxu1 %v16001_v15  ;;  %v3735_v40 = vpop.permute.xlu0 %3734 }
 0x353   : > { %v3539_v45 = vsel %vm1562_vm7, %v3529_v35, %v3531_v54  ;;  %4032 = vmatprep.mubr.f32.mxu0 %v16001_v15  ;;  %v3538_v55 = vsel %vm1562_vm7, %v16229_v52, %v3529_v35 }
 0x354   : > { %3659 = vmatprep.subr.mxu1 %v3539_v45  ;;  %4443 = vrot.lane.b32.xlu0 %v16449_v18, %s15118_s16 }
 0x355   : > { %14498 = vmatmul.mubr.msk.f32.gmra.mxu1 %vm362_vm2, %v16303_v33 }
 0x356   : > { %3660 = vmatpush1.msra.mxu1 %v3538_v55  ;;  %14508 = vmatmul.mubr.msk.f32.gmra.mxu0 %vm362_vm2, %v14472_v20  ;;  %v3519_v51 = vpop.permute.xlu1 %3518  ;;  %v3725_v52 = vpop.permute.xlu0 %3724 }
 0x357   : > { %v3535_v47 = vsel %vm1562_vm7, %v3519_v51, %v3521_v63  ;;  %v3534_v34 = vsel %vm1562_vm7, %v16054_v14, %v3519_v51  ;;  %3695 = vmatprep.mubr.f32.mxu1 %v16001_v15  ;;  %4353 = vmatprep.mubr.f32.mxu0 %v16001_v15 }
 0x358   : > { %3661 = vmatprep.subr.mxu1 %v3535_v47 }
 0x359   : > { %3662 = vmatpush1.msra.mxu1 %v3534_v34 }
 0x35a   : > { %14501 = vmatmul.mubr.msk.f32.vlgmr.msra.gmra.mxu1 %vm362_vm2, %v16323_v6  ;;  %v3733_v9 = vpop.permute.xlu1 %3732  ;;  %v3939_v16 = vpop.permute.xlu0 %3938 }
 0x35b   : > { %v3743_v27 = vsel %vm1767_vm8, %v3733_v9, %v3735_v40  ;;  %3701 = vmatprep.mubr.f32.mxu1 %v16001_v15  ;;  %v3742_v46 = vsel %vm1767_vm8, %v16274_v53, %v3733_v9 }
 0x35c   : > { %3863 = vmatprep.subr.mxu1 %v3743_v27 }
 0x35d   : > { %3864 = vmatpush1.msra.mxu1 %v3742_v46 }
 0x35e   : > { %14502 = vmatmul.mubr.msk.f32.gmra.mxu1 %vm362_vm2, %v16343_v24  ;;  %v3723_v14 = vpop.permute.xlu1 %3722  ;;  %v3929_v39 = vpop.permute.xlu0 %3928 }
 0x35f   : > { %v3739_v8 = vsel %vm1767_vm8, %v3723_v14, %v3725_v52  ;;  %v3738_v48 = vsel %vm1767_vm8, %v16128_v36, %v3723_v14  ;;  %3899 = vmatprep.mubr.f32.mxu1 %v16001_v15 }
 0x360   : > { %3865 = vmatprep.subr.mxu1 %v3739_v8 }
 0x361   : > { %3866 = vmatpush1.msra.mxu1 %v3738_v48 }
 0x362   : > { %14505 = vmatmul.mubr.msk.f32.vlgmr.msra.gmra.mxu1 %vm362_vm2, %v16363_v60  ;;  %v3937_v53 = vpop.permute.xlu1 %3936 }
 0x363   : > { %v3947_v32 = vsel %vm19705_vm9, %v3937_v53, %v3939_v16  ;;  %3905 = vmatprep.mubr.f32.mxu1 %v16001_v15  ;;  %v3946_v0 = vsel %vm19705_vm9, %v16314_v3, %v3937_v53 }
 0x364   : > { %4067 = vmatprep.subr.mxu1 %v3947_v32 }
 0x365   : > { %4068 = vmatpush1.msra.mxu1 %v3946_v0 }
 0x366   : > { %14506 = vmatmul.mubr.msk.f32.gmra.mxu1 %vm362_vm2, %v14470_v13  ;;  %v3927_v36 = vpop.permute.xlu1 %3926 }
 0x367   : > { %v3943_v22 = vsel %vm19705_vm9, %v3927_v36, %v3929_v39  ;;  %v3942_v57 = vsel %vm19705_vm9, %v16354_v12, %v3927_v36  ;;  %4103 = vmatprep.mubr.f32.mxu1 %v16001_v15  ;;  %vm5258_vm9 = vcmask 965632  }
 0x368   : > { %4069 = vmatprep.subr.mxu1 %v3943_v22 }
 0x369   : > { %4070 = vmatpush1.msra.mxu1 %v3942_v57 }
 0x36a   : > { %14509 = vmatmul.mubr.msk.f32.vlgmr.msra.gmra.mxu1 %vm362_vm2, %v14471_v41 }
 0x36b   : > { %4109 = vmatprep.mubr.f32.mxu1 %v16001_v15 }
 0x36e   : > { %14510 = vmatmul.mubr.msk.f32.gmra.mxu1 %vm362_vm2, %v14472_v20 }
 0x36f   : > { %4430 = vmatprep.mubr.f32.mxu1 %v16001_v15 }
 0x3d0   : > { %v2410_v28 = vpop.f32.mrf.mxu0 }
 0x3d2   : > { %v16455_v33 = vpop.f32.mrf.mxu0 }
 0x3d4   : > { %v2416_v29 = vpop.f32.mrf.mxu0 }
 0x3d6   : > { %v16457_v49 = vpop.f32.mrf.mxu0 }
 0x3d8   : > { %v2606_v3 = vpop.f32.mrf.mxu0 }
 0x3d9   : > { %v2607_v45 = vadd.f32 %v2606_v3, %v2410_v28 }
 0x3da   : > { %v16459_v43 = vpop.f32.mrf.mxu0 }
 0x3dc   : > { %v2612_v19 = vpop.f32.mrf.mxu0 }
 0x3dd   : > { %v2613_v34 = vadd.f32 %v2612_v19, %v2416_v29 }
 0x3de   : > { %v16461_v6 = vpop.f32.mrf.mxu0 }
 0x3e0   : > { %v2802_v15 = vpop.f32.mrf.mxu0 }
 0x3e1   : > { %v2890_v52 = vadd.f32 %v2802_v15, %v2607_v45 }
 0x3e2   : > { %v16463_v11 = vpop.f32.mrf.mxu0 }
 0x3e4   : > { %v2808_v21 = vpop.f32.mrf.mxu0 }
 0x3e5   : > { %v2894_v16 = vadd.f32 %v2808_v21, %v2613_v34 }
 0x3e6   : > { %v16465_v2 = vpop.f32.mrf.mxu0 }
 0x3e8   : > { %v16467_v4 = vpop.f32.mrf.mxu1  ;;  %v3000_v30 = vpop.f32.mrf.mxu0 }
 0x3e9   : > { %v3088_v8 = vadd.f32 %v3000_v30, %v2890_v52 }
 0x3ea   : > { %v16469_v24 = vpop.f32.mrf.mxu1  ;;  %v16471_v42 = vpop.f32.mrf.mxu0 }
 0x3ec   : > { %v16473_v7 = vpop.f32.mrf.mxu1 }
 0x3ed   : > { %v3006_v17 = vpop.f32.mrf.mxu0 }
 0x3ee   : > { %v16475_v12 = vpop.f32.mrf.mxu1  ;;  %v3092_v36 = vadd.f32 %v3006_v17, %v2894_v16 }
 0x3ef   : > { %v16477_v44 = vpop.f32.mrf.mxu0 }
 0x3f1   : > { %v16479_v60 = vpop.f32.mrf.mxu1  ;;  %v3198_v50 = vpop.f32.mrf.mxu0 }
 0x3f2   : > { %v3286_v32 = vadd.f32 %v3198_v50, %v3088_v8  ;;  %v16517_v50 = vpop.permute.xlu0 %4126 }
 0x3f3   : > { %v16481_v59 = vpop.f32.mrf.mxu1  ;;  %v16483_v23 = vpop.f32.mrf.mxu0 }
 0x3f5   : > { %v16485_v54 = vpop.f32.mrf.mxu1  ;;  %v3204_v56 = vpop.f32.mrf.mxu0 }
 0x3f6   : > { %v3290_v29 = vadd.f32 %v3204_v56, %v3092_v36  ;;  %v16520_v36 = vpop.permute.xlu1 %4131 }
 0x3f7   : > { %v16487_v13 = vpop.f32.mrf.mxu1  ;;  %v16489_v61 = vpop.f32.mrf.mxu0 }
 0x3f9   : > { %v16491_v58 = vpop.f32.mrf.mxu1 }
 0x3fa   : > { %v3396_v38 = vpop.f32.mrf.mxu0 }
 0x3fb   : > { %v16493_v63 = vpop.f32.mrf.mxu1  ;;  %v3484_v22 = vadd.f32 %v3396_v38, %v3286_v32 }
 0x3fc   : > { %v16495_v31 = vpop.f32.mrf.mxu0 }
 0x3fd   : > { %v16497_v1 = vpop.f32.mrf.mxu1 }
 0x3fe   : > { %v3402_v41 = vpop.f32.mrf.mxu0 }
 0x3ff   : > { %v16499_v35 = vpop.f32.mrf.mxu1  ;;  %v3488_v45 = vadd.f32 %v3402_v41, %v3290_v29  ;;  %v2609_v41 = vadd.f32 %v16459_v43, %v16455_v33  ;;  %v2686_v43 = vadd.f32 %v16481_v59, %v16469_v24  ;;  %v2692_v24 = vadd.f32 %v16487_v13, %v16475_v12 }
 0x400   : > { %v16501_v40 = vpop.f32.mrf.mxu0 }
 0x401   : > { %v3077_v55 = vpop.f32.mrf.mxu1 }
 0x402   : > { %v3620_v20 = vpop.f32.mrf.mxu0 }
 0x403   : > { %v16503_v51 = vpop.f32.mrf.mxu1  ;;  %v3708_v3 = vadd.f32 %v3620_v20, %v3484_v22 }
 0x404   : > { %v16505_v47 = vpop.f32.mrf.mxu0 }
 0x405   : > { %v16507_v9 = vpop.f32.mrf.mxu1 }
 0x406   : > { %v3626_v27 = vpop.f32.mrf.mxu0 }
 0x407   : > { %v16509_v46 = vpop.f32.mrf.mxu1  ;;  %v3712_v30 = vadd.f32 %v3626_v27, %v3488_v45  ;;  %v2684_v45 = vadd.f32 %v16479_v60, %v16467_v4  ;;  %v2690_v4 = vadd.f32 %v16485_v54, %v16473_v7  ;;  %v2893_v60 = vadd.f32 %v16493_v63, %v2686_v43 }
 0x408   : > { %v16511_v14 = vpop.f32.mrf.mxu0  ;;  %v2897_v7 = vadd.f32 %v16499_v35, %v2692_v24 }
 0x409   : > { %v3275_v48 = vpop.f32.mrf.mxu1  ;;  %v2896_v59 = vadd.f32 %v16497_v1, %v2690_v4 }
 0x40a   : > { %v3824_v53 = vpop.f32.mrf.mxu0  ;;  %v3095_v13 = vadd.f32 %v16509_v46, %v2897_v7 }
 0x40b   : > { %v3277_v0 = vpop.f32.mrf.mxu1  ;;  %v3912_v10 = vadd.f32 %v3824_v53, %v3708_v3  ;;  %v3094_v54 = vadd.f32 %v16507_v9, %v2896_v59 }
 0x40c   : > { %v3826_v39 = vpop.f32.mrf.mxu0 }
 0x40d   : > { %v3281_v57 = vpop.f32.mrf.mxu1 }
 0x40e   : > { %v3830_v28 = vpop.f32.mrf.mxu0  ;;  %v3292_v1 = vadd.f32 %v3281_v57, %v3094_v54 }
 0x40f   : > { %v16513_v19 = vpop.f32.mrf.mxu1  ;;  %v3916_v17 = vadd.f32 %v3830_v28, %v3712_v30  ;;  %v2891_v28 = vadd.f32 %v16463_v11, %v2609_v41 }
 0x410   : > { %v16515_v15 = vpop.f32.mrf.mxu0 }
 0x411   : > { %v3473_v5 = vpop.f32.mrf.mxu1  ;;  %v3089_v30 = vadd.f32 %v16471_v42, %v2891_v28 }
 0x412   : > { %v4028_v21 = vpop.f32.mrf.mxu0 }
 0x413   : > { %v4116_v34 = vadd.f32 %v4028_v21, %v3912_v10  ;;  %v3475_v52 = vpop.f32.mrf.mxu1  ;;  %v3287_v11 = vadd.f32 %v16483_v23, %v3089_v30 }
 0x414   : > { %v4030_v8 = vpop.f32.mrf.mxu0 }
 0x415   : > { %v4134_v38 = vadd.f32 %v16517_v50, %v4116_v34  ;;  %v3479_v16 = vpop.f32.mrf.mxu1  ;;  %v2892_v34 = vadd.f32 %v16491_v58, %v2684_v45  ;;  %v3091_v58 = vadd.f32 %v16503_v51, %v2893_v60 }
 0x416   : > { %v4034_v56 = vpop.f32.mrf.mxu0  ;;  %v3490_v35 = vadd.f32 %v3479_v16, %v3292_v1 }
 0x417   : > { %v4142_v20 = vmax.f32 %v4134_v38, 0.0  ;;  %v4120_v32 = vadd.f32 %v4034_v56, %v3916_v17  ;;  %v3481_v53 = vpop.f32.mrf.mxu1  ;;  %v2615_v17 = vadd.f32 %v16461_v6, %v16457_v49  ;;  %v3090_v42 = vadd.f32 %v3077_v55, %v2892_v34 }
 0x418   : > { %v3485_v56 = vadd.f32 %v16495_v31, %v3287_v11  ;;  %v3289_v63 = vadd.f32 %v3277_v0, %v3091_v58 }
 0x419   : > { %v4150_v27 = vmul.f32 %v4142_v20, %v15815_v26  ;;  %v4138_v10 = vadd.f32 %v16520_v36, %v4120_v32  ;;  %v3288_v49 = vadd.f32 %v3275_v48, %v3090_v42  ;;  %v2895_v6 = vadd.f32 %v16465_v2, %v2615_v17 }
 0x41a   : > { %v3697_v22 = vpop.f32.mrf.mxu1  ;;  %v3709_v23 = vadd.f32 %v16505_v47, %v3485_v56  ;;  %v3487_v51 = vadd.f32 %v3475_v52, %v3289_v63 }
 0x41b   : > { %v4146_v29 = vmax.f32 %v4138_v10, 0.0  ;;  %4166 = vrot.lane.b32.xlu1 %v4150_v27, %s15116_s29  ;;  %v3486_v31 = vadd.f32 %v3473_v5, %v3288_v49  ;;  %v3093_v55 = vadd.f32 %v16477_v44, %v2895_v6  ;;  %v3293_v10 = vadd.f32 %v16513_v19, %v3095_v13 }
 0x41c   : > { %v3699_v3 = vpop.f32.mrf.mxu1  ;;  %v3913_v41 = vadd.f32 %v3826_v39, %v3709_v23 }
 0x41d   : > { %v4154_v21 = vmul.f32 %v4146_v29, %v15815_v26  ;;  %v3710_v48 = vadd.f32 %v3697_v22, %v3486_v31  ;;  %v3291_v2 = vadd.f32 %v16489_v61, %v3093_v55  ;;  %v3711_v29 = vadd.f32 %v3699_v3, %v3487_v51  ;;  %v4036_v61 = vpop.f32.mrf.mxu0 }
 0x41e   : > { %v3703_v33 = vpop.f32.mrf.mxu1  ;;  %v4117_v27 = vadd.f32 %v4030_v8, %v3913_v41  ;;  %v3491_v44 = vadd.f32 %v3481_v53, %v3293_v10 }
 0x41f   : > { %4174 = vrot.lane.b32.xlu1 %v4154_v21, %s15116_s29  ;;  %v3489_v5 = vadd.f32 %v16501_v40, %v3291_v2  ;;  %v3714_v39 = vadd.f32 %v3703_v33, %v3490_v35 }
 0x420   : > { %v3705_v38 = vpop.f32.mrf.mxu1  ;;  %v4135_v57 = vadd.f32 %v16517_v50, %v4117_v27 }
 0x421   : > { %v3713_v46 = vadd.f32 %v16511_v14, %v3489_v5  ;;  %v3715_v8 = vadd.f32 %v3705_v38, %v3491_v44 }
 0x422   : > { %v3901_v20 = vpop.f32.mrf.mxu1  ;;  %v4143_v33 = vmax.f32 %v4135_v57, 0.0 }
 0x423   : > { %v3914_v9 = vadd.f32 %v3901_v20, %v3710_v48  ;;  %v3917_v3 = vadd.f32 %v16515_v15, %v3713_v46 }
 0x424   : > { %v3903_v32 = vpop.f32.mrf.mxu1  ;;  %v4151_v15 = vmul.f32 %v4143_v33, %v15849_v25 }
 0x425   : > { %v3915_v28 = vadd.f32 %v3903_v32, %v3711_v29  ;;  %v4121_v43 = vadd.f32 %v4036_v61, %v3917_v3  ;;  %v16707_v61 = vld [vmem:[#allocation2 + $0x40] sm:$0xff] }
 0x426   : > { %v3907_v12 = vpop.f32.mrf.mxu1 }
 0x427   : > { %v3918_v22 = vadd.f32 %v3907_v12, %v3714_v39  ;;  %v4139_v42 = vadd.f32 %v16520_v36, %v4121_v43  ;;  %v14529_v43 = vld [vmem:[%s19692_s2 + $0x20] sm:$0xff] }
 0x428   : > { %v3909_v47 = vpop.f32.mrf.mxu1 }
 0x429   : > { %v3919_v40 = vadd.f32 %v3909_v47, %v3715_v8  ;;  %v5445_v8 = vld [vmem:[#allocation2 + $0x30] sm:$0xff] }
 0x42a   : > { %v4105_v0 = vpop.f32.mrf.mxu1 }
 0x42b   : > { %v4118_v45 = vadd.f32 %v4105_v0, %v3914_v9 }
 0x42c   : > { %v4107_v52 = vpop.f32.mrf.mxu1 }
 0x42d   : > { %v4136_v19 = vadd.f32 %v16517_v50, %v4118_v45  ;;  %v4119_v16 = vadd.f32 %v4107_v52, %v3915_v28 }
 0x42e   : > { %v4111_v21 = vpop.f32.mrf.mxu1 }
 0x42f   : > { %v4144_v30 = vmax.f32 %v4136_v19, 0.0  ;;  %v4122_v53 = vadd.f32 %v4111_v21, %v3918_v22  ;;  %v4137_v17 = vadd.f32 %v16517_v50, %v4119_v16  ;;  %v4147_v50 = vmax.f32 %v4139_v42, 0.0 }
 0x430   : > { %v4113_v34 = vpop.f32.mrf.mxu1 }
 0x431   : > { %v4152_v14 = vmul.f32 %v4144_v30, %v15843_v37  ;;  %v4140_v11 = vadd.f32 %v16520_v36, %v4122_v53  ;;  %v4123_v38 = vadd.f32 %v4113_v34, %v3919_v40  ;;  %v4145_v56 = vmax.f32 %v4137_v17, 0.0 }
 0x432   : > { %v4155_v49 = vmul.f32 %v4147_v50, %v15849_v25 }
 0x433   : > { %v4148_v4 = vmax.f32 %v4140_v11, 0.0  ;;  %v4141_v60 = vadd.f32 %v16520_v36, %v4123_v38  ;;  %4170 = vrot.lane.b32.xlu0 %v4152_v14, %s15116_s29  ;;  %v4153_v59 = vmul.f32 %v4145_v56, %v15858_v62  ;;  %v16578_v36 = vpop.permute.xlu1 %4256 }
 0x435   : > { %v4156_v20 = vmul.f32 %v4148_v4, %v15843_v37  ;;  %v4149_v24 = vmax.f32 %v4141_v60, 0.0  ;;  %v14530_v60 = vld [vmem:[%s19692_s2 + $0x28] sm:$0xff] }
 0x437   : > { %4168 = vrot.lane.b32.xlu0 %v4151_v15, %s15116_s29  ;;  %4178 = vrot.lane.b32.xlu1 %v4156_v20, %s15116_s29  ;;  %v4157_v58 = vmul.f32 %v4149_v24, %v15858_v62  ;;  %v16580_v6 = vpop.permute.xlu1 %4453 }
 0x43b   : > { %4172 = vrot.lane.b32.xlu0 %v4153_v59, %s15116_s29  ;;  %4180 = vrot.lane.b32.xlu1 %v4157_v58, %s15116_s29  ;;  %v16582_v23 = vpop.permute.xlu1 %4650 }
 0x43f   : > { %4176 = vrot.lane.b32.xlu0 %v4155_v49, %s15116_s29 }
 0x443   : > { %4640 = vrot.lane.b32.xlu0 %v16449_v18, %s15119_s30  ;;  %v16592_v18 = vpop.permute.xlu0 %4246 }
 0x447   : > { %v16598_v63 = vpop.permute.xlu0 %4443 }
 0x48d   : > { %v4167_v32 = vpop.permute.xlu1 %4166 }
 0x48e   : > { %4196 = vst.msk [vmem:[#allocation2 + $0x10] sm:$0xff] %vm2251_vm10, %v4167_v32 }
 0x491   : > { %v4175_v7 = vpop.permute.xlu1 %4174 }
 0x492   : > { %4200 = vst.msk [vmem:[#allocation2 + $0x50] sm:$0xff] %vm2251_vm10, %v4175_v7 }
 0x495   : > { %v16586_v54 = vld [vmem:[#allocation2 + $0x10] sm:$0xff] }
 0x496   : > { %5461 = vrot.lane.b32.xlu1 %v16586_v54, %s15118_s16  ;;  %4248 = vrot.lane.b32.xlu0 %v16586_v54, %s15117_s15 }
 0x499   : > { %v4232_v35 = vld [vmem:[#allocation2 + $0x50] sm:$0xff] }
 0x49a   : > { %4445 = vrot.lane.b32.xlu0 %v16586_v54, %s15118_s16 }
 0x49e   : > { %4642 = vrot.lane.b32.xlu0 %v16586_v54, %s15119_s30 }
 0x4a2   : > { %4845 = vrot.lane.b32.xlu0 %v16586_v54, %s15120_s12 }
 0x4a5   : > { %v4171_v31 = vpop.permute.xlu0 %4170 }
 0x4a6   : > { %5044 = vrot.lane.b32.xlu0 %v16586_v54, %s15110_s19 }
 0x4a9   : > { %v4169_v55 = vpop.permute.xlu0 %4168  ;;  %v4179_v41 = vpop.permute.xlu1 %4178 }
 0x4aa   : > { %v4182_v12 = vsel %vm2236_vm11, %v4167_v32, %v4169_v55  ;;  %5242 = vrot.lane.b32.xlu0 %v16586_v54, %s15121_s13  ;;  %v16616_v2 = vsel %vm2236_vm11, %v4169_v55, %v4171_v31  ;;  %v16788_v32 = vld [vmem:[%s19691_s1 + $0x130] sm:$0xff] }
 0x4ab   : > { %4250 = vrot.lane.b32.xlu1 %v4182_v12, %s15117_s15 }
 0x4ad   : > { %v4173_v13 = vpop.permute.xlu0 %4172  ;;  %v4181_v1 = vpop.permute.xlu1 %4180 }
 0x4ae   : > { %v4184_v51 = vsel %vm2236_vm11, %v4171_v31, %v4173_v13  ;;  %v4187_v48 = vsel %vm2236_vm11, %v4179_v41, %v4181_v1  ;;  %4847 = vrot.lane.b32.xlu0 %v4182_v12, %s15120_s12 }
 0x4af   : > { %4199 = vst.msk [vmem:[#allocation2 + $0x28] sm:$0xff] %vm1140_vm5, %v4184_v51  ;;  %4203 = vst.msk [vmem:[#allocation2 + $0x68] sm:$0xff] %vm1140_vm5, %v4187_v48  ;;  %4447 = vrot.lane.b32.xlu1 %v4182_v12, %s15118_s16  ;;  %v16823_v51 = vld [vmem:[%s19691_s1 + $0x120] sm:$0xff] }
 0x4b1   : > { %v4177_v47 = vpop.permute.xlu0 %4176 }
 0x4b2   : > { %v4185_v10 = vsel %vm2236_vm11, %v4175_v7, %v4177_v47  ;;  %v4186_v29 = vsel %vm2236_vm11, %v4177_v47, %v4179_v41  ;;  %v16838_v47 = vld [vmem:[%s19691_s1 + $0x128] sm:$0xff] }
 0x4b3   : > { %4644 = vrot.lane.b32.xlu1 %v4182_v12, %s15119_s30 }
 0x4b5   : > { %v16673_v5 = vpop.permute.xlu0 %4640 }
 0x4b6   : > { %v16618_v27 = vld [vmem:[#allocation2 + $0x28] sm:$0xff] }
 0x4b7   : > { %4254 = vrot.lane.b32.xlu0 %v16618_v27, %s15117_s15  ;;  %4849 = vrot.lane.b32.xlu1 %v16616_v2, %s15120_s12  ;;  %v4235_v9 = vld [vmem:[#allocation2 + $0x68] sm:$0xff] }
 0x4bb   : > { %5046 = vrot.lane.b32.xlu0 %v4182_v12, %s15110_s19  ;;  %4252 = vrot.lane.b32.xlu1 %v16616_v2, %s15117_s15 }
 0x4bf   : > { %4451 = vrot.lane.b32.xlu0 %v16618_v27, %s15118_s16  ;;  %5048 = vrot.lane.b32.xlu1 %v16616_v2, %s15110_s19 }
 0x4c3   : > { %5244 = vrot.lane.b32.xlu0 %v4182_v12, %s15121_s13  ;;  %4449 = vrot.lane.b32.xlu1 %v16616_v2, %s15118_s16 }
 0x4c7   : > { %4648 = vrot.lane.b32.xlu0 %v16618_v27, %s15119_s30  ;;  %5246 = vrot.lane.b32.xlu1 %v16616_v2, %s15121_s13 }
 0x4cb   : > { %5463 = vrot.lane.b32.xlu0 %v4182_v12, %s15118_s16  ;;  %4646 = vrot.lane.b32.xlu1 %v16616_v2, %s15119_s30 }
 0x4cf   : > { %4851 = vrot.lane.b32.xlu0 %v16618_v27, %s15120_s12  ;;  %5465 = vrot.lane.b32.xlu1 %v16616_v2, %s15118_s16 }
 0x4d3   : > { %5667 = vrot.lane.b32.xlu0 %v4182_v12, %s15117_s15  ;;  %5669 = vrot.lane.b32.xlu1 %v16616_v2, %s15117_s15 }
 0x4d7   : > { %4260 = vrot.lane.b32.xlu0 %v4185_v10, %s15117_s15  ;;  %4258 = vrot.lane.b32.xlu1 %v4232_v35, %s15117_s15 }
 0x4db   : > { %4457 = vrot.lane.b32.xlu0 %v4185_v10, %s15118_s16  ;;  %4455 = vrot.lane.b32.xlu1 %v4232_v35, %s15118_s16 }
 0x4df   : > { %4654 = vrot.lane.b32.xlu0 %v4185_v10, %s15119_s30  ;;  %4652 = vrot.lane.b32.xlu1 %v4232_v35, %s15119_s30 }
 0x4e3   : > { %4857 = vrot.lane.b32.xlu0 %v4186_v29, %s15120_s12  ;;  %4853 = vrot.lane.b32.xlu1 %v4232_v35, %s15120_s12 }
 0x4e7   : > { %4262 = vrot.lane.b32.xlu0 %v4186_v29, %s15117_s15  ;;  %5052 = vrot.lane.b32.xlu1 %v4232_v35, %s15110_s19 }
 0x4eb   : > { %5056 = vrot.lane.b32.xlu0 %v4186_v29, %s15110_s19  ;;  %5250 = vrot.lane.b32.xlu1 %v4232_v35, %s15121_s13 }
 0x4ef   : > { %4459 = vrot.lane.b32.xlu0 %v4186_v29, %s15118_s16  ;;  %5471 = vrot.lane.b32.xlu1 %v4232_v35, %s15118_s16 }
 0x4f3   : > { %5254 = vrot.lane.b32.xlu0 %v4186_v29, %s15121_s13  ;;  %5675 = vrot.lane.b32.xlu1 %v4232_v35, %s15117_s15 }
 0x4f7   : > { %4656 = vrot.lane.b32.xlu0 %v4186_v29, %s15119_s30  ;;  %4855 = vrot.lane.b32.xlu1 %v4185_v10, %s15120_s12 }
 0x4fb   : > { %5050 = vrot.lane.b32.xlu0 %v16618_v27, %s15110_s19  ;;  %4264 = vrot.lane.b32.xlu1 %v4235_v9, %s15117_s15 }
 0x4ff   : > { %5871 = vrot.lane.b32.xlu0 %v4182_v12, %s15119_s30  ;;  %5054 = vrot.lane.b32.xlu1 %v4185_v10, %s15110_s19 }
 0x503   : > { %5475 = vrot.lane.b32.xlu0 %v4186_v29, %s15118_s16  ;;  %4461 = vrot.lane.b32.xlu1 %v4235_v9, %s15118_s16 }
 0x507   : > { %4859 = vrot.lane.b32.xlu0 %v4235_v9, %s15120_s12  ;;  %5252 = vrot.lane.b32.xlu1 %v4185_v10, %s15121_s13 }
 0x508   : > { %v16679_v0 = vpop.permute.xlu0 %4248  ;;  %v16696_v45 = vpop.permute.xlu1 %5461 }
 0x509   : > { %v4267_v31 = vsel %vm4266_vm12, %v16592_v18, %v16679_v0  ;;  %v16808_v18 = vld [vmem:[%s19691_s1 + $0x138] sm:$0xff] }
 0x50b   : > { %5679 = vrot.lane.b32.xlu0 %v4186_v29, %s15117_s15  ;;  %4658 = vrot.lane.b32.xlu1 %v4235_v9, %s15119_s30 }
 0x50c   : > { %v16683_v44 = vpop.permute.xlu0 %4445 }
 0x50d   : > { %v4464_v13 = vsel %vm4463_vm13, %v16598_v63, %v16683_v44 }
 0x50f   : > { %5058 = vrot.lane.b32.xlu0 %v4235_v9, %s15110_s19  ;;  %5665 = vrot.lane.b32.xlu1 %v16586_v54, %s15117_s15 }
 0x510   : > { %v16688_v39 = vpop.permute.xlu0 %4642 }
 0x513   : > { %5883 = vrot.lane.b32.xlu0 %v4186_v29, %s15119_s30  ;;  %5473 = vrot.lane.b32.xlu1 %v4185_v10, %s15118_s16 }
 0x514   : > { %v16692_v28 = vpop.permute.xlu0 %4845 }
 0x517   : > { %5256 = vrot.lane.b32.xlu0 %v4235_v9, %s15121_s13  ;;  %5879 = vrot.lane.b32.xlu1 %v4232_v35, %s15119_s30  ;;  %v4661_v35 = vsel %vm4660_vm14, %v16673_v5, %v16688_v39  ;;  %v16861_v5 = vld [vmem:[%s19691_s1 + $0x148] sm:$0xff] }
 0x518   : > { %v16698_v46 = vpop.permute.xlu0 %5044 }
 0x51b   : > { %5248 = vrot.lane.b32.xlu0 %v16618_v27, %s15121_s13  ;;  %5677 = vrot.lane.b32.xlu1 %v4185_v10, %s15117_s15 }
 0x51c   : > { %v16705_v52 = vpop.permute.xlu0 %5242 }
 0x51d   : > { %v16703_v57 = vpop.permute.xlu1 %4250 }
 0x51e   : > { %v4268_v49 = vsel %vm4266_vm12, %v16679_v0, %v16703_v57 }
 0x51f   : > { %5479 = vrot.lane.b32.xlu0 %v16707_v61, %s15118_s16  ;;  %5873 = vrot.lane.b32.xlu1 %v16616_v2, %s15119_s30 }
 0x520   : > { %v16717_v19 = vpop.permute.xlu0 %4847 }
 0x521   : > { %v16713_v22 = vpop.permute.xlu1 %4447 }
 0x522   : > { %v4465_v41 = vsel %vm4463_vm13, %v16683_v44, %v16713_v22 }
 0x523   : > { %5469 = vrot.lane.b32.xlu0 %v5445_v8, %s15118_s16  ;;  %5881 = vrot.lane.b32.xlu1 %v4185_v10, %s15119_s30 }
 0x525   : > { %v16719_v16 = vpop.permute.xlu1 %4644 }
 0x527   : > { %5683 = vrot.lane.b32.xlu0 %v16707_v61, %s15117_s15  ;;  %5869 = vrot.lane.b32.xlu1 %v16586_v54, %s15119_s30 }
 0x529   : > { %v16725_v3 = vpop.permute.xlu0 %4254  ;;  %v16727_v21 = vpop.permute.xlu1 %4849 }
 0x52b   : > { %5673 = vrot.lane.b32.xlu0 %v5445_v8, %s15117_s15  ;;  %5477 = vrot.lane.b32.xlu1 %v4235_v9, %s15118_s16 }
 0x52d   : > { %v16731_v40 = vpop.permute.xlu0 %5046  ;;  %v16733_v30 = vpop.permute.xlu1 %4252 }
 0x52f   : > { %5887 = vrot.lane.b32.xlu0 %v16707_v61, %s15119_s30  ;;  %5467 = vrot.lane.b32.xlu1 %v16618_v27, %s15118_s16 }
 0x531   : > { %v16739_v53 = vpop.permute.xlu0 %4451  ;;  %v16741_v33 = vpop.permute.xlu1 %5048 }
 0x533   : > { %5877 = vrot.lane.b32.xlu0 %v5445_v8, %s15119_s30  ;;  %5681 = vrot.lane.b32.xlu1 %v4235_v9, %s15117_s15 }
 0x535   : > { %v16748_v34 = vpop.permute.xlu0 %5244  ;;  %v16750_v14 = vpop.permute.xlu1 %4449 }
 0x537   : > { %6075 = vperm.xlu0 %14946, %v14529_v43   ;;  %5671 = vrot.lane.b32.xlu1 %v16618_v27, %s15117_s15 }
 0x539   : > { %v16754_v17 = vpop.permute.xlu0 %4648  ;;  %v16756_v11 = vpop.permute.xlu1 %5246 }
 0x53b   : > { %5885 = vrot.lane.b32.xlu1 %v4235_v9, %s15119_s30 }
 0x53d   : > { %v16759_v38 = vpop.permute.xlu0 %5463  ;;  %v16761_v4 = vpop.permute.xlu1 %4646 }
 0x53f   : > { %5875 = vrot.lane.b32.xlu1 %v16618_v27, %s15119_s30  ;;  %v4662_v27 = vsel %vm4660_vm14, %v16688_v39, %v16719_v16 }
 0x541   : > { %v16768_v15 = vpop.permute.xlu0 %4851  ;;  %v16770_v42 = vpop.permute.xlu1 %5465 }
 0x543   : > { %6080 = vperm.xlu1 %14945, %v14530_v60  }
 0x545   : > { %v16772_v56 = vpop.permute.xlu0 %5667  ;;  %v16774_v20 = vpop.permute.xlu1 %5669 }
 0x549   : > { %v16776_v24 = vpop.permute.xlu0 %4260  ;;  %v4259_v50 = vpop.permute.xlu1 %4258 }
 0x54a   : > { %v4272_v59 = vsel %vm4266_vm12, %v4259_v50, %v16776_v24  ;;  %v4271_v58 = vsel %vm4266_vm12, %v16578_v36, %v4259_v50 }
 0x54b   : > { %4317 = vmatprep.subr.mxu0 %v4272_v59 }
 0x54c   : > { %4318 = vmatpush1.msra.mxu0 %v4271_v58 }
 0x54d   : > { %v16790_v7 = vpop.permute.xlu0 %4457  ;;  %4319 = vmatprep.subr.mxu0 %v4268_v49  ;;  %v4456_v54 = vpop.permute.xlu1 %4455  ;;  %v4863_v49 = vsel %vm4861_vm15, %v16717_v19, %v16727_v21 }
 0x54e   : > { %4320 = vmatpush1.msra.mxu0 %v4267_v31  ;;  %v4469_v36 = vsel %vm4463_vm13, %v4456_v54, %v16790_v7  ;;  %v4468_v55 = vsel %vm4463_vm13, %v16580_v6, %v4456_v54  ;;  %v16883_v54 = vld [vmem:[%s19691_s1 + $0x150] sm:$0xff] }
 0x54f   : > { %14531 = vmatmul.mubr.msk.f32.vlgmr.msra.gmra.mxu0 %vm362_vm2, %v16788_v32  ;;  %4514 = vmatprep.subr.mxu0 %v4469_v36 }
 0x550   : > { %4515 = vmatpush1.msra.mxu0 %v4468_v55  ;;  %4359 = vmatprep.mubr.f32.mxu0 %v16707_v61  ;;  %v4862_v55 = vsel %vm4861_vm15, %v16692_v28, %v16717_v19  ;;  %v16902_v28 = vld [vmem:[%s19691_s1 + $0x158] sm:$0xff] }
 0x551   : > { %v16810_v12 = vpop.permute.xlu0 %4654  ;;  %4516 = vmatprep.subr.mxu0 %v4465_v41  ;;  %v4653_v6 = vpop.permute.xlu1 %4652 }
 0x552   : > { %4517 = vmatpush1.msra.mxu0 %v4464_v13  ;;  %v4666_v1 = vsel %vm4660_vm14, %v4653_v6, %v16810_v12  ;;  %v4665_v63 = vsel %vm4660_vm14, %v16582_v23, %v4653_v6  ;;  %v16849_v23 = vld [vmem:[%s19691_s1 + $0x140] sm:$0xff]  ;;  %v4270_v13 = vsel %vm4266_vm12, %v16733_v30, %v16725_v3 }
 0x553   : > { %14532 = vmatmul.mubr.msk.f32.gmra.mxu0 %vm362_vm2, %v16808_v18  ;;  %4711 = vmatprep.subr.mxu0 %v4666_v1 }
 0x554   : > { %4550 = vmatprep.mubr.f32.mxu0 %v16707_v61 }
 0x555   : > { %v16825_v48 = vpop.permute.xlu0 %4857  ;;  %v4854_v2 = vpop.permute.xlu1 %4853 }
 0x557   : > { %14535 = vmatmul.mubr.msk.f32.vlgmr.msra.gmra.mxu0 %vm362_vm2, %v16823_v51 }
 0x558   : > { %4712 = vmatpush1.msra.mxu0 %v4665_v63  ;;  %4556 = vmatprep.mubr.f32.mxu0 %v16707_v61 }
 0x559   : > { %v4263_v10 = vpop.permute.xlu0 %4262  ;;  %4713 = vmatprep.subr.mxu0 %v4662_v27  ;;  %v5053_v29 = vpop.permute.xlu1 %5052  ;;  %v5060_v27 = vsel %vm1140_vm5, %v16698_v46, %v16731_v40 }
 0x55a   : > { %4714 = vmatpush1.msra.mxu0 %v4661_v35  ;;  %v4273_v6 = vsel %vm4266_vm12, %v16776_v24, %v4263_v10  ;;  %v4269_v24 = vsel %vm4266_vm12, %v16703_v57, %v16733_v30  ;;  %v5061_v57 = vsel %vm1140_vm5, %v16731_v40, %v16741_v33  ;;  %v16945_v40 = vld [vmem:[%s19691_s1 + $0x168] sm:$0xff] }
 0x55b   : > { %14536 = vmatmul.mubr.msk.f32.gmra.mxu0 %vm362_vm2, %v16838_v47 }
 0x55c   : > { %4747 = vmatprep.mubr.f32.mxu0 %v16707_v61 }
 0x55d   : > { %v16851_v9 = vpop.permute.xlu0 %5056  ;;  %v16853_v0 = vpop.permute.xlu1 %5250 }
 0x55f   : > { %14539 = vmatmul.mubr.msk.f32.vlgmr.msra.gmra.mxu0 %vm362_vm2, %v16849_v23 }
 0x560   : > { %4753 = vmatprep.mubr.f32.mxu0 %v16707_v61 }
 0x561   : > { %v4460_v44 = vpop.permute.xlu0 %4459  ;;  %v16863_v39 = vpop.permute.xlu1 %5471 }
 0x562   : > { %v4470_v35 = vsel %vm4463_vm13, %v16790_v7, %v4460_v44  ;;  %v4466_v7 = vsel %vm4463_vm13, %v16713_v22, %v16750_v14  ;;  %v5260_v22 = vsel %vm5258_vm9, %v16748_v34, %v16756_v11 }
 0x563   : > { %14540 = vmatmul.mubr.msk.f32.gmra.mxu0 %vm362_vm2, %v16861_v5 }
 0x564   : > { %4946 = vmatprep.mubr.f32.mxu0 %v16707_v61 }
 0x565   : > { %v16868_v8 = vpop.permute.xlu0 %5254  ;;  %v16870_v43 = vpop.permute.xlu1 %5675 }
 0x569   : > { %v16872_v60 = vpop.permute.xlu0 %4656  ;;  %v4856_v50 = vpop.permute.xlu1 %4855 }
 0x56a   : > { %v4866_v59 = vsel %vm4861_vm15, %v4856_v50, %v16825_v48  ;;  %v4865_v58 = vsel %vm4861_vm15, %v4854_v2, %v4856_v50  ;;  %v4467_v50 = vsel %vm4463_vm13, %v16750_v14, %v16739_v53 }
 0x56b   : > { %4910 = vmatprep.subr.mxu0 %v4866_v59 }
 0x56c   : > { %4911 = vmatpush1.msra.mxu0 %v4865_v58  ;;  %v4667_v58 = vsel %vm4660_vm14, %v16810_v12, %v16872_v60  ;;  %v16994_v12 = vld [vmem:[%s19691_s1 + $0x178] sm:$0xff] }
 0x56d   : > { %v16885_v31 = vpop.permute.xlu0 %5050  ;;  %4912 = vmatprep.subr.mxu0 %v4863_v49  ;;  %v4265_v36 = vpop.permute.xlu1 %4264 }
 0x56e   : > { %4913 = vmatpush1.msra.mxu0 %v4862_v55  ;;  %v4274_v41 = vsel %vm4266_vm12, %v4263_v10, %v4265_v36  ;;  %v5482_v55 = vsel %vm4463_vm13, %v16759_v38, %v16770_v42 }
 0x56f   : > { %4394 = vmatprep.subr.mxu1 %v4274_v41  ;;  %14543 = vmatmul.mubr.msk.f32.vlgmr.msra.gmra.mxu0 %vm362_vm2, %v16883_v54 }
 0x570   : > { %4395 = vmatpush1.msra.mxu1 %v4273_v6  ;;  %4952 = vmatprep.mubr.f32.mxu0 %v16707_v61 }
 0x571   : > { %v16904_v19 = vpop.permute.xlu0 %5871  ;;  %4396 = vmatprep.subr.mxu1 %v4270_v13  ;;  %v5055_v1 = vpop.permute.xlu1 %5054 }
 0x572   : > { %4397 = vmatpush1.msra.mxu1 %v4269_v24  ;;  %v5064_v2 = vsel %vm1140_vm5, %v5055_v1, %v16851_v9  ;;  %v5063_v3 = vsel %vm1140_vm5, %v5053_v29, %v5055_v1 }
 0x573   : > { %14533 = vmatmul.mubr.msk.f32.vlgmr.msra.gmra.mxu1 %vm362_vm2, %v16788_v32  ;;  %14544 = vmatmul.mubr.msk.f32.gmra.mxu0 %vm362_vm2, %v16902_v28  ;;  %v16926_v32 = vld [vmem:[%s19691_s1 + $0x160] sm:$0xff] }
 0x574   : > { %5108 = vmatprep.subr.mxu0 %v5064_v2  ;;  %4436 = vmatprep.mubr.f32.mxu1 %v16707_v61 }
 0x575   : > { %v16917_v63 = vpop.permute.xlu0 %5475  ;;  %5109 = vmatpush1.msra.mxu0 %v5063_v3  ;;  %v4462_v30 = vpop.permute.xlu1 %4461  ;;  %5144 = vmatprep.mubr.f32.mxu0 %v16707_v61 }
 0x576   : > { %5110 = vmatprep.subr.mxu0 %v5061_v57  ;;  %v4471_v10 = vsel %vm4463_vm13, %v4460_v44, %v4462_v30 }
 0x577   : > { %5111 = vmatpush1.msra.mxu0 %v5060_v27  ;;  %14534 = vmatmul.mubr.msk.f32.gmra.mxu1 %vm362_vm2, %v16808_v18  ;;  %v14527_v27 = vld [vmem:[%s19691_s1 + $0x1a0] sm:$0xff] }
 0x578   : > { %4591 = vmatprep.subr.mxu1 %v4471_v10  ;;  %14547 = vmatmul.mubr.msk.f32.vlgmr.msra.gmra.mxu0 %vm362_vm2, %v16926_v32 }
 0x579   : > { %v4860_v29 = vpop.permute.xlu0 %4859  ;;  %4592 = vmatpush1.msra.mxu1 %v4470_v35  ;;  %v5253_v46 = vpop.permute.xlu1 %5252  ;;  %4627 = vmatprep.mubr.f32.mxu1 %v16707_v61 }
 0x57a   : > { %4593 = vmatprep.subr.mxu1 %v4467_v50  ;;  %5150 = vmatprep.mubr.f32.mxu0 %v16707_v61  ;;  %v5263_v18 = vsel %vm5258_vm9, %v5253_v46, %v16868_v8  ;;  %v5262_v53 = vsel %vm5258_vm9, %v16853_v0, %v5253_v46  ;;  %v16968_v0 = vld [vmem:[%s19691_s1 + $0x170] sm:$0xff] }
 0x57b   : > { %4594 = vmatpush1.msra.mxu1 %v4466_v7  ;;  %5307 = vmatprep.subr.mxu0 %v5263_v18 }
 0x57c   : > { %14537 = vmatmul.mubr.msk.f32.vlgmr.msra.gmra.mxu1 %vm362_vm2, %v16823_v51  ;;  %14548 = vmatmul.mubr.msk.f32.gmra.mxu0 %vm362_vm2, %v16945_v40  ;;  %v5259_v51 = vsel %vm5258_vm9, %v16705_v52, %v16748_v34  ;;  %v4664_v52 = vsel %vm4660_vm14, %v16761_v4, %v16754_v17  ;;  %v4867_v17 = vsel %vm4861_vm15, %v16825_v48, %v4860_v29 }
 0x57d   : > { %v16959_v44 = vpop.permute.xlu0 %5679  ;;  %5308 = vmatpush1.msra.mxu0 %v5262_v53  ;;  %v4659_v14 = vpop.permute.xlu1 %4658  ;;  %4633 = vmatprep.mubr.f32.mxu1 %v16707_v61 }
 0x57e   : > { %5309 = vmatprep.subr.mxu0 %v5260_v22  ;;  %5343 = vmatprep.mubr.f32.mxu0 %v16707_v61  ;;  %v4668_v59 = vsel %vm4660_vm14, %v16872_v60, %v4659_v14 }
 0x57f   : > { %5310 = vmatpush1.msra.mxu0 %v5259_v51  ;;  %4788 = vmatprep.subr.mxu1 %v4668_v59 }
 0x580   : > { %14538 = vmatmul.mubr.msk.f32.gmra.mxu1 %vm362_vm2, %v16838_v47  ;;  %14551 = vmatmul.mubr.msk.f32.vlgmr.msra.gmra.mxu0 %vm362_vm2, %v16968_v0  ;;  %v4663_v47 = vsel %vm4660_vm14, %v16719_v16, %v16761_v4  ;;  %v4864_v4 = vsel %vm4861_vm15, %v16727_v21, %v16768_v15  ;;  %v17022_v21 = vld [vmem:[%s19691_s1 + $0x180] sm:$0xff] }
 0x581   : > { %v5059_v49 = vpop.permute.xlu0 %5058  ;;  %4789 = vmatpush1.msra.mxu1 %v4667_v58  ;;  %v5666_v34 = vpop.permute.xlu1 %5665  ;;  %4824 = vmatprep.mubr.f32.mxu1 %v16707_v61 }
 0x582   : > { %4790 = vmatprep.subr.mxu1 %v4664_v52  ;;  %5349 = vmatprep.mubr.f32.mxu0 %v16707_v61  ;;  %v5685_v13 = vsel %vm4266_vm12, %v5666_v34, %v16772_v56 }
 0x583   : > { %4791 = vmatpush1.msra.mxu1 %v4663_v47  ;;  %v17144_v47 = vpack.i.bf16 %v16707_v61, %v16707_v61 }
 0x584   : > { %14541 = vmatmul.mubr.msk.f32.vlgmr.msra.gmra.mxu1 %vm362_vm2, %v16849_v23  ;;  %4987 = vmatprep.subr.mxu1 %v4860_v29  ;;  %v14528_v29 = vld [vmem:[%s19691_s1 + $0x1a8] sm:$0xff] }
 0x585   : > { %v17000_v60 = vpop.permute.xlu0 %5883  ;;  %14552 = vmatmul.mubr.msk.f32.gmra.mxu0 %vm362_vm2, %v16994_v12  ;;  %4988 = vmatpush1.msra.mxu1 %v4867_v17  ;;  %v5474_v16 = vpop.permute.xlu1 %5473 }
 0x586   : > { %4989 = vmatprep.subr.mxu1 %v16768_v15  ;;  %4830 = vmatprep.mubr.f32.mxu1 %v16707_v61  ;;  %v5486_v23 = vsel %vm4463_vm13, %v5474_v16, %v16917_v63  ;;  %v5485_v48 = vsel %vm4463_vm13, %v16863_v39, %v5474_v16  ;;  %v5481_v15 = vsel %vm4463_vm13, %v16696_v45, %v16759_v38  ;;  %v17043_v38 = vld [vmem:[%s19691_s1 + $0x188] sm:$0xff] }
 0x587   : > { %4990 = vmatpush1.msra.mxu1 %v4864_v4  ;;  %5531 = vmatprep.subr.mxu0 %v5486_v23  ;;  %v5062_v45 = vsel %vm1140_vm5, %v16741_v33, %v16885_v31 }
 0x588   : > { %14542 = vmatmul.mubr.msk.f32.gmra.mxu1 %vm362_vm2, %v16861_v5  ;;  %5185 = vmatprep.subr.mxu1 %v5059_v49  ;;  %v5065_v5 = vsel %vm1140_vm5, %v16851_v9, %v5059_v49 }
 0x589   : > { %v5257_v36 = vpop.permute.xlu0 %5256  ;;  %5532 = vmatpush1.msra.mxu0 %v5485_v48  ;;  %v5880_v41 = vpop.permute.xlu1 %5879  ;;  %5023 = vmatprep.mubr.f32.mxu1 %v16707_v61 }
 0x58a   : > { %5533 = vmatprep.subr.mxu0 %v5482_v55  ;;  %5567 = vmatprep.mubr.f32.mxu0 %v16707_v61  ;;  %v5264_v1 = vsel %vm5258_vm9, %v16868_v8, %v5257_v36 }
 0x58b   : > { %5534 = vmatpush1.msra.mxu0 %v5481_v15  ;;  %14963 = vrot.lane.b32.xlu1 %v17144_v47, %s15117_s15 }
 0x58c   : > { %14545 = vmatmul.mubr.msk.f32.vlgmr.msra.gmra.mxu1 %vm362_vm2, %v16883_v54  ;;  %14555 = vmatmul.mubr.msk.f32.vlgmr.msra.gmra.mxu0 %vm362_vm2, %v17022_v21 }
 0x58d   : > { %5186 = vmatpush1.msra.mxu1 %v5065_v5  ;;  %v5678_v39 = vpop.permute.xlu1 %5677  ;;  %5029 = vmatprep.mubr.f32.mxu1 %v16707_v61  ;;  %v5249_v54 = vpop.permute.xlu0 %5248 }
 0x58e   : > { %5187 = vmatprep.subr.mxu1 %v16885_v31  ;;  %5573 = vmatprep.mubr.f32.mxu0 %v16707_v61  ;;  %v5690_v9 = vsel %vm4266_vm12, %v5678_v39, %v16959_v44  ;;  %v5689_v6 = vsel %vm4266_vm12, %v16870_v43, %v5678_v39  ;;  %v5686_v31 = vsel %vm4266_vm12, %v16772_v56, %v16774_v20  ;;  %v17063_v43 = vld [vmem:[%s19691_s1 + $0x190] sm:$0xff]  ;;  %v14526_v56 = vld [vmem:[%s19691_s1 + $0x198] sm:$0xff] }
 0x58f   : > { %5188 = vmatpush1.msra.mxu1 %v5062_v45  ;;  %5735 = vmatprep.subr.mxu0 %v5690_v9  ;;  %v5261_v2 = vsel %vm5258_vm9, %v16756_v11, %v5249_v54 }
 0x590   : > { %5384 = vmatprep.subr.mxu1 %v5257_v36  ;;  %14546 = vmatmul.mubr.msk.f32.gmra.mxu1 %vm362_vm2, %v16902_v28 }
 0x591   : > { %14556 = vmatmul.mubr.msk.f32.gmra.mxu0 %vm362_vm2, %v17043_v38  ;;  %v17053_v33 = vpop.permute.xlu1 %5873  ;;  %5221 = vmatprep.mubr.f32.mxu1 %v16707_v61  ;;  %v5480_v28 = vpop.permute.xlu0 %5479 }
 0x592   : > { %5736 = vmatpush1.msra.mxu0 %v5689_v6  ;;  %5771 = vmatprep.mubr.f32.mxu0 %v16707_v61  ;;  %v5890_v30 = vsel %vm4660_vm14, %v16904_v19, %v17053_v33 }
 0x593   : > { %5737 = vmatprep.subr.mxu0 %v5686_v31 }
 0x594   : > { %5738 = vmatpush1.msra.mxu0 %v5685_v13  ;;  %14549 = vmatmul.mubr.msk.f32.vlgmr.msra.gmra.mxu1 %vm362_vm2, %v16926_v32 }
 0x595   : > { %5385 = vmatpush1.msra.mxu1 %v5264_v1  ;;  %14559 = vmatmul.mubr.msk.f32.vlgmr.msra.gmra.mxu0 %vm362_vm2, %v17063_v43  ;;  %v5882_v24 = vpop.permute.xlu1 %5881  ;;  %v5470_v57 = vpop.permute.xlu0 %5469 }
 0x596   : > { %5386 = vmatprep.subr.mxu1 %v5249_v54  ;;  %5227 = vmatprep.mubr.f32.mxu1 %v16707_v61  ;;  %v5894_v3 = vsel %vm4660_vm14, %v5882_v24, %v17000_v60  ;;  %v5893_v8 = vsel %vm4660_vm14, %v5880_v41, %v5882_v24 }
 0x597   : > { %5387 = vmatpush1.msra.mxu1 %v5261_v2  ;;  %5777 = vmatprep.mubr.f32.mxu0 %v16707_v61 }
 0x598   : > { %14550 = vmatmul.mubr.msk.f32.gmra.mxu1 %vm362_vm2, %v16945_v40  ;;  %5939 = vmatprep.subr.mxu0 %v5894_v3 }
 0x599   : > { %14560 = vmatmul.mubr.msk.f32.gmra.mxu0 %vm362_vm2, %v14526_v56  ;;  %v5870_v11 = vpop.permute.xlu1 %5869  ;;  %5420 = vmatprep.mubr.f32.mxu1 %v16707_v61  ;;  %v5684_v50 = vpop.permute.xlu0 %5683 }
 0x59a   : > { %5940 = vmatpush1.msra.mxu0 %v5893_v8  ;;  %v5889_v32 = vsel %vm4660_vm14, %v5870_v11, %v16904_v19  ;;  %5975 = vmatprep.mubr.f32.mxu0 %v16707_v61 }
 0x59b   : > { %5941 = vmatprep.subr.mxu0 %v5890_v30 }
 0x59c   : > { %14553 = vmatmul.mubr.msk.f32.vlgmr.msra.gmra.mxu1 %vm362_vm2, %v16968_v0  ;;  %5942 = vmatpush1.msra.mxu0 %v5889_v32 }
 0x59d   : > { %14563 = vmatmul.mubr.msk.f32.vlgmr.msra.gmra.mxu0 %vm362_vm2, %v14527_v27  ;;  %v5478_v10 = vpop.permute.xlu1 %5477  ;;  %5426 = vmatprep.mubr.f32.mxu1 %v16707_v61 }
 0x59e   : > { %v5488_v35 = vsel %vm4463_vm13, %v5478_v10, %v5480_v28  ;;  %5981 = vmatprep.mubr.f32.mxu0 %v16707_v61  ;;  %v5487_v19 = vsel %vm4463_vm13, %v16917_v63, %v5478_v10  ;;  %v5674_v63 = vpop.permute.xlu0 %5673 }
 0x59f   : > { %5608 = vmatprep.subr.mxu1 %v5488_v35 }
 0x5a0   : > { %14554 = vmatmul.mubr.msk.f32.gmra.mxu1 %vm362_vm2, %v16994_v12 }
 0x5a1   : > { %5609 = vmatpush1.msra.mxu1 %v5487_v19  ;;  %14564 = vmatmul.mubr.msk.f32.gmra.mxu0 %vm362_vm2, %v14528_v29  ;;  %v5468_v46 = vpop.permute.xlu1 %5467 }
 0x5a2   : > { %v5484_v40 = vsel %vm4463_vm13, %v5468_v46, %v5470_v57  ;;  %v5483_v7 = vsel %vm4463_vm13, %v16770_v42, %v5468_v46  ;;  %5644 = vmatprep.mubr.f32.mxu1 %v16707_v61  ;;  %6301 = vmatprep.mubr.f32.mxu0 %v16707_v61  ;;  %v5888_v51 = vpop.permute.xlu0 %5887 }
 0x5a3   : > { %5610 = vmatprep.subr.mxu1 %v5484_v40 }
 0x5a4   : > { %5611 = vmatpush1.msra.mxu1 %v5483_v7 }
 0x5a5   : > { %14557 = vmatmul.mubr.msk.f32.vlgmr.msra.gmra.mxu1 %vm362_vm2, %v17022_v21  ;;  %v5682_v18 = vpop.permute.xlu1 %5681 }
 0x5a6   : > { %v5692_v53 = vsel %vm4266_vm12, %v5682_v18, %v5684_v50  ;;  %5650 = vmatprep.mubr.f32.mxu1 %v16707_v61  ;;  %v5691_v22 = vsel %vm4266_vm12, %v16959_v44, %v5682_v18  ;;  %v5878_v49 = vpop.permute.xlu0 %5877 }
 0x5a7   : > { %5812 = vmatprep.subr.mxu1 %v5692_v53 }
 0x5a8   : > { %5813 = vmatpush1.msra.mxu1 %v5691_v22 }
 0x5a9   : > { %14558 = vmatmul.mubr.msk.f32.gmra.mxu1 %vm362_vm2, %v17043_v38  ;;  %v5672_v42 = vpop.permute.xlu1 %5671 }
 0x5aa   : > { %v5688_v14 = vsel %vm4266_vm12, %v5672_v42, %v5674_v63  ;;  %v5687_v0 = vsel %vm4266_vm12, %v16774_v20, %v5672_v42  ;;  %5848 = vmatprep.mubr.f32.mxu1 %v16707_v61 }
 0x5ab   : > { %5814 = vmatprep.subr.mxu1 %v5688_v14 }
 0x5ac   : > { %5815 = vmatpush1.msra.mxu1 %v5687_v0 }
 0x5ad   : > { %14561 = vmatmul.mubr.msk.f32.vlgmr.msra.gmra.mxu1 %vm362_vm2, %v17063_v43  ;;  %v5886_v44 = vpop.permute.xlu1 %5885 }
 0x5ae   : > { %v5896_v59 = vsel %vm4660_vm14, %v5886_v44, %v5888_v51  ;;  %5854 = vmatprep.mubr.f32.mxu1 %v16707_v61  ;;  %v5895_v58 = vsel %vm4660_vm14, %v17000_v60, %v5886_v44 }
 0x5af   : > { %6016 = vmatprep.subr.mxu1 %v5896_v59 }
 0x5b0   : > { %6017 = vmatpush1.msra.mxu1 %v5895_v58 }
 0x5b1   : > { %14562 = vmatmul.mubr.msk.f32.gmra.mxu1 %vm362_vm2, %v14526_v56  ;;  %v5876_v20 = vpop.permute.xlu1 %5875 }
 0x5b2   : > { %v5892_v52 = vsel %vm4660_vm14, %v5876_v20, %v5878_v49  ;;  %v5891_v34 = vsel %vm4660_vm14, %v17053_v33, %v5876_v20  ;;  %6052 = vmatprep.mubr.f32.mxu1 %v16707_v61 }
 0x5b3   : > { %6018 = vmatprep.subr.mxu1 %v5892_v52 }
 0x5b4   : > { %6019 = vmatpush1.msra.mxu1 %v5891_v34 }
 0x5b5   : > { %14565 = vmatmul.mubr.msk.f32.vlgmr.msra.gmra.mxu1 %vm362_vm2, %v14527_v27 }
 0x5b6   : > { %6058 = vmatprep.mubr.f32.mxu1 %v16707_v61 }
 0x5b9   : > { %14566 = vmatmul.mubr.msk.f32.gmra.mxu1 %vm362_vm2, %v14528_v29 }
 0x5ba   : > { %6378 = vmatprep.mubr.f32.mxu1 %v16707_v61 }
 0x60f   : > { %v4355_v12 = vpop.f32.mrf.mxu0 }
 0x611   : > { %v17148_v17 = vpop.f32.mrf.mxu0 }
 0x613   : > { %v4361_v60 = vpop.f32.mrf.mxu0 }
 0x615   : > { %v17150_v16 = vpop.f32.mrf.mxu0 }
 0x617   : > { %v4552_v4 = vpop.f32.mrf.mxu0 }
 0x618   : > { %v4553_v10 = vadd.f32 %v4552_v4, %v4355_v12 }
 0x619   : > { %v17152_v23 = vpop.f32.mrf.mxu0 }
 0x61b   : > { %v4558_v48 = vpop.f32.mrf.mxu0 }
 0x61c   : > { %v4559_v46 = vadd.f32 %v4558_v48, %v4361_v60 }
 0x61d   : > { %v17154_v36 = vpop.f32.mrf.mxu0 }
 0x61f   : > { %v4749_v55 = vpop.f32.mrf.mxu0 }
 0x620   : > { %v4837_v40 = vadd.f32 %v4749_v55, %v4553_v10 }
 0x621   : > { %v17156_v41 = vpop.f32.mrf.mxu0 }
 0x623   : > { %v4755_v61 = vpop.f32.mrf.mxu0 }
 0x624   : > { %v4841_v22 = vadd.f32 %v4755_v61, %v4559_v46 }
 0x625   : > { %v17158_v21 = vpop.f32.mrf.mxu0 }
 0x62f   : > { %v4948_v15 = vpop.f32.mrf.mxu0 }
 0x630   : > { %v5036_v42 = vadd.f32 %v4948_v15, %v4837_v40 }
 0x631   : > { %v17160_v5 = vpop.f32.mrf.mxu0 }
 0x633   : > { %v17162_v39 = vpop.f32.mrf.mxu1  ;;  %v4954_v45 = vpop.f32.mrf.mxu0 }
 0x634   : > { %v5040_v58 = vadd.f32 %v4954_v45, %v4841_v22 }
 0x635   : > { %v17164_v38 = vpop.f32.mrf.mxu1  ;;  %v17166_v9 = vpop.f32.mrf.mxu0 }
 0x637   : > { %v17168_v54 = vpop.f32.mrf.mxu1 }
 0x638   : > { %v5146_v6 = vpop.f32.mrf.mxu0 }
 0x639   : > { %v17170_v33 = vpop.f32.mrf.mxu1  ;;  %v5234_v51 = vadd.f32 %v5146_v6, %v5036_v42  ;;  %v17208_v6 = vpop.permute.xlu0 %6075 }
 0x63a   : > { %v17172_v31 = vpop.f32.mrf.mxu0 }
 0x63c   : > { %v17174_v43 = vpop.f32.mrf.mxu1  ;;  %v5152_v13 = vpop.f32.mrf.mxu0 }
 0x63d   : > { %v5238_v34 = vadd.f32 %v5152_v13, %v5040_v58  ;;  %v17211_v58 = vpop.permute.xlu1 %6080 }
 0x63e   : > { %v17176_v28 = vpop.f32.mrf.mxu1  ;;  %v17178_v1 = vpop.f32.mrf.mxu0 }
 0x640   : > { %v17180_v24 = vpop.f32.mrf.mxu1  ;;  %v5345_v2 = vpop.f32.mrf.mxu0 }
 0x641   : > { %v5433_v49 = vadd.f32 %v5345_v2, %v5234_v51 }
 0x642   : > { %v17182_v56 = vpop.f32.mrf.mxu1  ;;  %v17184_v3 = vpop.f32.mrf.mxu0 }
 0x644   : > { %v4826_v8 = vpop.f32.mrf.mxu1 }
 0x645   : > { %v5351_v57 = vpop.f32.mrf.mxu0 }
 0x646   : > { %v17186_v11 = vpop.f32.mrf.mxu1  ;;  %v5437_v48 = vadd.f32 %v5351_v57, %v5238_v34  ;;  %v4555_v57 = vadd.f32 %v17152_v23, %v17148_v17  ;;  %v4632_v23 = vadd.f32 %v17176_v28, %v17164_v38  ;;  %v4638_v38 = vadd.f32 %v17182_v56, %v17170_v33 }
 0x647   : > { %v17190_v32 = vpop.f32.mrf.mxu0 }
 0x648   : > { %v17188_v30 = vpop.f32.mrf.mxu1 }
 0x64a   : > { %v17192_v27 = vpop.f32.mrf.mxu1 }
 0x64c   : > { %v5025_v35 = vpop.f32.mrf.mxu1  ;;  %v5569_v19 = vpop.f32.mrf.mxu0 }
 0x64d   : > { %v5657_v12 = vadd.f32 %v5569_v19, %v5433_v49 }
 0x64e   : > { %v17194_v29 = vpop.f32.mrf.mxu1  ;;  %v17196_v50 = vpop.f32.mrf.mxu0 }
 0x650   : > { %v17198_v7 = vpop.f32.mrf.mxu1 }
 0x651   : > { %v5575_v63 = vpop.f32.mrf.mxu0 }
 0x652   : > { %v17200_v18 = vpop.f32.mrf.mxu1  ;;  %v5661_v15 = vadd.f32 %v5575_v63, %v5437_v48 }
 0x653   : > { %v17202_v53 = vpop.f32.mrf.mxu0 }
 0x654   : > { %v5223_v14 = vpop.f32.mrf.mxu1 }
 0x655   : > { %v5773_v0 = vpop.f32.mrf.mxu0 }
 0x656   : > { %v5225_v44 = vpop.f32.mrf.mxu1  ;;  %v5861_v55 = vadd.f32 %v5773_v0, %v5657_v12 }
 0x657   : > { %v5775_v59 = vpop.f32.mrf.mxu0 }
 0x658   : > { %v5229_v20 = vpop.f32.mrf.mxu1 }
 0x659   : > { %v5779_v52 = vpop.f32.mrf.mxu0 }
 0x65a   : > { %v17204_v60 = vpop.f32.mrf.mxu1  ;;  %v5865_v45 = vadd.f32 %v5779_v52, %v5661_v15  ;;  %v4838_v52 = vadd.f32 %v17156_v41, %v4555_v57 }
 0x65b   : > { %v17206_v4 = vpop.f32.mrf.mxu0 }
 0x65c   : > { %v5422_v10 = vpop.f32.mrf.mxu1  ;;  %v5037_v15 = vadd.f32 %v17160_v5, %v4838_v52 }
 0x65d   : > { %v5977_v61 = vpop.f32.mrf.mxu0 }
 0x65e   : > { %v6065_v46 = vadd.f32 %v5977_v61, %v5861_v55  ;;  %v5424_v40 = vpop.f32.mrf.mxu1  ;;  %v4630_v55 = vadd.f32 %v17174_v43, %v17162_v39  ;;  %v5235_v41 = vadd.f32 %v17172_v31, %v5037_v15  ;;  %v4636_v39 = vadd.f32 %v17180_v24, %v17168_v54 }
 0x65f   : > { %v5979_v42 = vpop.f32.mrf.mxu0  ;;  %v4840_v43 = vadd.f32 %v17186_v11, %v4632_v23  ;;  %v4844_v54 = vadd.f32 %v17192_v27, %v4638_v38 }
 0x660   : > { %v6083_v2 = vadd.f32 %v17208_v6, %v6065_v46  ;;  %v5428_v22 = vpop.f32.mrf.mxu1  ;;  %v4839_v46 = vadd.f32 %v4826_v8, %v4630_v55  ;;  %v5434_v5 = vadd.f32 %v17184_v3, %v5235_v41  ;;  %v4843_v28 = vadd.f32 %v17188_v30, %v4636_v39 }
 0x661   : > { %v5983_v13 = vpop.f32.mrf.mxu0  ;;  %v5039_v8 = vadd.f32 %v17194_v29, %v4840_v43  ;;  %v5043_v56 = vadd.f32 %v17200_v18, %v4844_v54 }
 0x662   : > { %v6091_v19 = vmax.f32 %v6083_v2, 0.0  ;;  %v6069_v51 = vadd.f32 %v5983_v13, %v5865_v45  ;;  %v5430_v0 = vpop.f32.mrf.mxu1  ;;  %v4561_v45 = vadd.f32 %v17154_v36, %v17150_v16  ;;  %v5038_v13 = vadd.f32 %v5025_v35, %v4839_v46 }
 0x663   : > { %v5658_v31 = vadd.f32 %v17196_v50, %v5434_v5  ;;  %v5042_v24 = vadd.f32 %v17198_v7, %v4843_v28  ;;  %v5237_v11 = vadd.f32 %v5225_v44, %v5039_v8 }
 0x664   : > { %v6099_v63 = vmul.f32 %v6091_v19, %v15815_v26  ;;  %v6087_v49 = vadd.f32 %v17211_v58, %v6069_v51  ;;  %v5236_v16 = vadd.f32 %v5223_v14, %v5038_v13  ;;  %v4842_v36 = vadd.f32 %v17158_v21, %v4561_v45 }
 0x665   : > { %v5646_v34 = vpop.f32.mrf.mxu1  ;;  %v5862_v57 = vadd.f32 %v5775_v59, %v5658_v31  ;;  %v5240_v30 = vadd.f32 %v5229_v20, %v5042_v24  ;;  %v5436_v29 = vadd.f32 %v5424_v40, %v5237_v11 }
 0x666   : > { %v6095_v12 = vmax.f32 %v6087_v49, 0.0  ;;  %6115 = vrot.lane.b32.xlu1 %v6099_v63, %s15116_s29  ;;  %v5435_v3 = vadd.f32 %v5422_v10, %v5236_v16  ;;  %v5041_v35 = vadd.f32 %v17166_v9, %v4842_v36  ;;  %v5241_v49 = vadd.f32 %v17204_v60, %v5043_v56 }
 0x667   : > { %v5648_v48 = vpop.f32.mrf.mxu1  ;;  %v6066_v63 = vadd.f32 %v5979_v42, %v5862_v57  ;;  %v5439_v27 = vadd.f32 %v5428_v22, %v5240_v30 }
 0x668   : > { %v6103_v61 = vmul.f32 %v6095_v12, %v15815_v26  ;;  %v5659_v14 = vadd.f32 %v5646_v34, %v5435_v3  ;;  %v5239_v21 = vadd.f32 %v17178_v1, %v5041_v35  ;;  %v5660_v12 = vadd.f32 %v5648_v48, %v5436_v29  ;;  %v5985_v1 = vpop.f32.mrf.mxu0 }
 0x669   : > { %v5652_v17 = vpop.f32.mrf.mxu1  ;;  %v5440_v9 = vadd.f32 %v5430_v0, %v5241_v49  ;;  %v6084_v20 = vadd.f32 %v17208_v6, %v6066_v63 }
 0x66a   : > { %6123 = vrot.lane.b32.xlu1 %v6103_v61, %s15116_s29  ;;  %v5438_v44 = vadd.f32 %v17190_v32, %v5239_v21  ;;  %v5663_v59 = vadd.f32 %v5652_v17, %v5439_v27 }
 0x66b   : > { %v5654_v2 = vpop.f32.mrf.mxu1  ;;  %v6092_v17 = vmax.f32 %v6084_v20, 0.0 }
 0x66c   : > { %v5662_v18 = vadd.f32 %v17202_v53, %v5438_v44  ;;  %v5664_v42 = vadd.f32 %v5654_v2, %v5440_v9 }
 0x66d   : > { %v5850_v19 = vpop.f32.mrf.mxu1  ;;  %v6100_v43 = vmul.f32 %v6092_v17, %v15849_v25 }
 0x66e   : > { %v5863_v7 = vadd.f32 %v5850_v19, %v5659_v14  ;;  %v5866_v48 = vadd.f32 %v17206_v4, %v5662_v18  ;;  %v17395_v18 = vld [vmem:[#allocation2 + $0x40] sm:$0xff] }
 0x66f   : > { %v5852_v51 = vpop.f32.mrf.mxu1 }
 0x670   : > { %v5864_v52 = vadd.f32 %v5852_v51, %v5660_v12  ;;  %v6070_v23 = vadd.f32 %v5985_v1, %v5866_v48 }
 0x671   : > { %v5856_v33 = vpop.f32.mrf.mxu1 }
 0x672   : > { %v5867_v34 = vadd.f32 %v5856_v33, %v5663_v59  ;;  %v6088_v4 = vadd.f32 %v17211_v58, %v6070_v23 }
 0x673   : > { %v5858_v50 = vpop.f32.mrf.mxu1 }
 0x674   : > { %v5868_v32 = vadd.f32 %v5858_v50, %v5664_v42 }
 0x675   : > { %v6054_v10 = vpop.f32.mrf.mxu1 }
 0x676   : > { %v6067_v55 = vadd.f32 %v6054_v10, %v5863_v7 }
 0x677   : > { %v6056_v40 = vpop.f32.mrf.mxu1 }
 0x678   : > { %v6085_v60 = vadd.f32 %v17208_v6, %v6067_v55  ;;  %v6068_v22 = vadd.f32 %v6056_v40, %v5864_v52 }
 0x679   : > { %v6060_v61 = vpop.f32.mrf.mxu1 }
 0x67a   : > { %v6093_v15 = vmax.f32 %v6085_v60, 0.0  ;;  %v6071_v0 = vadd.f32 %v6060_v61, %v5867_v34  ;;  %v6086_v45 = vadd.f32 %v17208_v6, %v6068_v22  ;;  %v6096_v6 = vmax.f32 %v6088_v4, 0.0 }
 0x67b   : > { %v6062_v46 = vpop.f32.mrf.mxu1 }
 0x67c   : > { %v6101_v53 = vmul.f32 %v6093_v15, %v15843_v37  ;;  %v6089_v41 = vadd.f32 %v17211_v58, %v6071_v0  ;;  %v6072_v2 = vadd.f32 %v6062_v46, %v5868_v32  ;;  %v6094_v13 = vmax.f32 %v6086_v45, 0.0  ;;  %v14585_v15 = vld [vmem:[%s19692_s2 + $0x30] sm:$0xff] }
 0x67d   : > { %v6104_v8 = vmul.f32 %v6096_v6, %v15849_v25 }
 0x67e   : > { %v6097_v39 = vmax.f32 %v6089_v41, 0.0  ;;  %6119 = vrot.lane.b32.xlu0 %v6101_v53, %s15116_s29  ;;  %v6090_v19 = vadd.f32 %v17211_v58, %v6072_v2  ;;  %v6102_v38 = vmul.f32 %v6094_v13, %v15858_v62  ;;  %v17270_v58 = vpop.permute.xlu1 %14963  ;;  %v14586_v53 = vld [vmem:[%s19692_s2 + $0x38] sm:$0xff] }
 0x680   : > { %v6105_v5 = vmul.f32 %v6097_v39, %v15843_v37  ;;  %v6098_v28 = vmax.f32 %v6090_v19, 0.0 }
 0x682   : > { %6117 = vrot.lane.b32.xlu0 %v6100_v43, %s15116_s29  ;;  %6127 = vrot.lane.b32.xlu1 %v6105_v5, %s15116_s29  ;;  %v6106_v16 = vmul.f32 %v6098_v28, %v15858_v62 }
 0x686   : > { %6121 = vrot.lane.b32.xlu0 %v6102_v38, %s15116_s29  ;;  %14973 = vrot.lane.b32.xlu1 %v17144_v47, %s15119_s30  ;;  %v14965_v38 = vunpack.i.l.bf16 %v17270_v58 }
 0x68a   : > { %6125 = vrot.lane.b32.xlu0 %v6104_v8, %s15116_s29  ;;  %6129 = vrot.lane.b32.xlu1 %v6106_v16, %s15116_s29 }
 0x68e   : > { %14968 = vrot.lane.b32.xlu0 %v17144_v47, %s15118_s16 }
 0x6d8   : > { %v6116_v36 = vpop.permute.xlu1 %6115 }
 0x6d9   : > { %6145 = vst.msk [vmem:[#allocation3 + $0x10] sm:$0xff] %vm2251_vm10, %v6116_v36 }
 0x6dc   : > { %v6124_v31 = vpop.permute.xlu1 %6123 }
 0x6dd   : > { %6149 = vst.msk [vmem:[#allocation3 + $0x50] sm:$0xff] %vm2251_vm10, %v6124_v31 }
 0x6e0   : > { %v17274_v51 = vld [vmem:[#allocation3 + $0x10] sm:$0xff] }
 0x6e1   : > { %6393 = vrot.lane.b32.xlu1 %v17274_v51, %s15118_s16  ;;  %6197 = vrot.lane.b32.xlu0 %v17274_v51, %s15117_s15 }
 0x6e4   : > { %v6181_v14 = vld [vmem:[#allocation3 + $0x50] sm:$0xff] }
 0x6e5   : > { %6791 = vrot.lane.b32.xlu1 %v17274_v51, %s15120_s12  ;;  %6589 = vrot.lane.b32.xlu0 %v17274_v51, %s15119_s30 }
 0x6e9   : > { %6989 = vrot.lane.b32.xlu1 %v17274_v51, %s15110_s19 }
 0x6ed   : > { %7187 = vrot.lane.b32.xlu1 %v17274_v51, %s15121_s13 }
 0x6f0   : > { %v6120_v47 = vpop.permute.xlu0 %6119 }
 0x6f4   : > { %v6118_v54 = vpop.permute.xlu0 %6117  ;;  %v6128_v24 = vpop.permute.xlu1 %6127 }
 0x6f5   : > { %v6131_v11 = vsel %vm2236_vm11, %v6116_v36, %v6118_v54  ;;  %v17294_v57 = vsel %vm2236_vm11, %v6118_v54, %v6120_v47  ;;  %v14966_v36 = vunpack.i.h.bf16 %v17270_v58 }
 0x6f6   : > { %6395 = vrot.lane.b32.xlu0 %v6131_v11, %s15118_s16  ;;  %6199 = vrot.lane.b32.xlu1 %v6131_v11, %s15117_s15 }
 0x6f8   : > { %v6122_v3 = vpop.permute.xlu0 %6121  ;;  %v17291_v35 = vpop.permute.xlu1 %14973 }
 0x6f9   : > { %v6133_v33 = vsel %vm2236_vm11, %v6120_v47, %v6122_v3  ;;  %v17484_v47 = vld [vmem:[%s19691_s1 + $0x1c0] sm:$0xff] }
 0x6fa   : > { %6148 = vst.msk [vmem:[#allocation3 + $0x28] sm:$0xff] %vm1140_vm5, %v6133_v33  ;;  %6795 = vrot.lane.b32.xlu0 %v17294_v57, %s15120_s12  ;;  %6591 = vrot.lane.b32.xlu1 %v6131_v11, %s15119_s30 }
 0x6fc   : > { %v6130_v56 = vpop.permute.xlu1 %6129  ;;  %v6126_v21 = vpop.permute.xlu0 %6125 }
 0x6fd   : > { %v6136_v30 = vsel %vm2236_vm11, %v6128_v24, %v6130_v56  ;;  %v6134_v63 = vsel %vm2236_vm11, %v6124_v31, %v6126_v21  ;;  %v6135_v50 = vsel %vm2236_vm11, %v6126_v21, %v6128_v24 }
 0x6fe   : > { %6152 = vst.msk [vmem:[#allocation3 + $0x68] sm:$0xff] %vm1140_vm5, %v6136_v30  ;;  %6201 = vrot.lane.b32.xlu0 %v17294_v57, %s15117_s15  ;;  %6793 = vrot.lane.b32.xlu1 %v6131_v11, %s15120_s12  ;;  %v17506_v30 = vld [vmem:[%s19691_s1 + $0x1c8] sm:$0xff] }
 0x700   : > { %v17369_v12 = vpop.permute.xlu0 %14968 }
 0x701   : > { %v17306_v29 = vld [vmem:[#allocation3 + $0x28] sm:$0xff]  ;;  %v14971_v54 = vunpack.i.h.bf16 %v17369_v12  ;;  %v14970_v24 = vunpack.i.l.bf16 %v17369_v12  ;;  %v14975_v12 = vunpack.i.l.bf16 %v17291_v35 }
 0x702   : > { %6993 = vrot.lane.b32.xlu0 %v17294_v57, %s15110_s19  ;;  %6203 = vrot.lane.b32.xlu1 %v17306_v29, %s15117_s15 }
 0x705   : > { %v6184_v49 = vld [vmem:[#allocation3 + $0x68] sm:$0xff] }
 0x706   : > { %6397 = vrot.lane.b32.xlu0 %v17294_v57, %s15118_s16  ;;  %6991 = vrot.lane.b32.xlu1 %v6131_v11, %s15110_s19 }
 0x70a   : > { %7191 = vrot.lane.b32.xlu0 %v17294_v57, %s15121_s13  ;;  %6399 = vrot.lane.b32.xlu1 %v17306_v29, %s15118_s16 }
 0x70e   : > { %6593 = vrot.lane.b32.xlu0 %v17294_v57, %s15119_s30  ;;  %7189 = vrot.lane.b32.xlu1 %v6131_v11, %s15121_s13 }
 0x712   : > { %7409 = vrot.lane.b32.xlu0 %v17294_v57, %s15118_s16  ;;  %6595 = vrot.lane.b32.xlu1 %v17306_v29, %s15119_s30 }
 0x716   : > { %7407 = vrot.lane.b32.xlu1 %v6131_v11, %s15118_s16  ;;  %6403 = vrot.lane.b32.xlu0 %v6181_v14, %s15118_s16 }
 0x71a   : > { %6799 = vrot.lane.b32.xlu0 %v6181_v14, %s15120_s12  ;;  %6207 = vrot.lane.b32.xlu1 %v6181_v14, %s15117_s15 }
 0x71e   : > { %6997 = vrot.lane.b32.xlu0 %v6181_v14, %s15110_s19  ;;  %6599 = vrot.lane.b32.xlu1 %v6181_v14, %s15119_s30 }
 0x722   : > { %7195 = vrot.lane.b32.xlu0 %v6181_v14, %s15121_s13  ;;  %6797 = vrot.lane.b32.xlu1 %v17306_v29, %s15120_s12 }
 0x726   : > { %7415 = vrot.lane.b32.xlu0 %v6181_v14, %s15118_s16  ;;  %7611 = vrot.lane.b32.xlu1 %v6131_v11, %s15117_s15 }
 0x72a   : > { %6405 = vrot.lane.b32.xlu1 %v6134_v63, %s15118_s16  ;;  %6209 = vrot.lane.b32.xlu0 %v6134_v63, %s15117_s15 }
 0x72e   : > { %7405 = vrot.lane.b32.xlu0 %v17274_v51, %s15118_s16  ;;  %6803 = vrot.lane.b32.xlu1 %v6135_v50, %s15120_s12 }
 0x732   : > { %7619 = vrot.lane.b32.xlu0 %v6181_v14, %s15117_s15  ;;  %6211 = vrot.lane.b32.xlu1 %v6135_v50, %s15117_s15 }
 0x736   : > { %7613 = vrot.lane.b32.xlu0 %v17294_v57, %s15117_s15  ;;  %7001 = vrot.lane.b32.xlu1 %v6135_v50, %s15110_s19 }
 0x73a   : > { %6601 = vrot.lane.b32.xlu0 %v6134_v63, %s15119_s30  ;;  %6407 = vrot.lane.b32.xlu1 %v6135_v50, %s15118_s16 }
 0x73e   : > { %6801 = vrot.lane.b32.xlu0 %v6134_v63, %s15120_s12  ;;  %7199 = vrot.lane.b32.xlu1 %v6135_v50, %s15121_s13 }
 0x742   : > { %6603 = vrot.lane.b32.xlu1 %v6135_v50, %s15119_s30  ;;  %6213 = vrot.lane.b32.xlu0 %v6184_v49, %s15117_s15 }
 0x746   : > { %6995 = vrot.lane.b32.xlu1 %v17306_v29, %s15110_s19  ;;  %6999 = vrot.lane.b32.xlu0 %v6134_v63, %s15110_s19 }
 0x74a   : > { %7815 = vrot.lane.b32.xlu1 %v6131_v11, %s15119_s30  ;;  %6409 = vrot.lane.b32.xlu0 %v6184_v49, %s15118_s16 }
 0x74e   : > { %7419 = vrot.lane.b32.xlu1 %v6135_v50, %s15118_s16  ;;  %7197 = vrot.lane.b32.xlu0 %v6134_v63, %s15121_s13 }
 0x752   : > { %6805 = vrot.lane.b32.xlu1 %v6184_v49, %s15120_s12  ;;  %6605 = vrot.lane.b32.xlu0 %v6184_v49, %s15119_s30  ;;  %s15124_s12 = smov 112  }
 0x753   : > { %v17364_v27 = vpop.permute.xlu1 %6393  ;;  %v17375_v44 = vpop.permute.xlu0 %6197 }
 0x754   : > { %v6215_v3 = vsel %vm4266_vm12, %v14966_v36, %v17375_v44  ;;  %v6411_v21 = vsel %vm4463_vm13, %v14971_v54, %v17364_v27 }
 0x756   : > { %7623 = vrot.lane.b32.xlu1 %v6135_v50, %s15117_s15  ;;  %7609 = vrot.lane.b32.xlu0 %v17274_v51, %s15117_s15 }
 0x757   : > { %v17371_v7 = vpop.permute.xlu1 %6791  ;;  %v17383_v9 = vpop.permute.xlu0 %6589 }
 0x75a   : > { %7003 = vrot.lane.b32.xlu1 %v6184_v49, %s15110_s19  ;;  %7417 = vrot.lane.b32.xlu0 %v6134_v63, %s15118_s16 }
 0x75b   : > { %v17377_v10 = vpop.permute.xlu1 %6989 }
 0x75e   : > { %7827 = vrot.lane.b32.xlu1 %v6135_v50, %s15119_s30  ;;  %7823 = vrot.lane.b32.xlu0 %v6181_v14, %s15119_s30 }
 0x75f   : > { %v17385_v59 = vpop.permute.xlu1 %7187 }
 0x762   : > { %7201 = vrot.lane.b32.xlu1 %v6184_v49, %s15121_s13  ;;  %7621 = vrot.lane.b32.xlu0 %v6134_v63, %s15117_s15 }
 0x766   : > { %7193 = vrot.lane.b32.xlu1 %v17306_v29, %s15121_s13  ;;  %7817 = vrot.lane.b32.xlu0 %v17294_v57, %s15119_s30 }
 0x768   : > { %v17391_v52 = vpop.permute.xlu0 %6395  ;;  %v17393_v55 = vpop.permute.xlu1 %6199 }
 0x769   : > { %v6412_v56 = vsel %vm4463_vm13, %v17364_v27, %v17391_v52  ;;  %v17530_v27 = vld [vmem:[%s19691_s1 + $0x1b8] sm:$0xff] }
 0x76a   : > { %7423 = vrot.lane.b32.xlu1 %v17395_v18, %s15118_s16  ;;  %7825 = vrot.lane.b32.xlu0 %v6134_v63, %s15119_s30  ;;  %v17518_v63 = vld [vmem:[%s19691_s1 + $0x1b0] sm:$0xff] }
 0x76c   : > { %v17400_v20 = vpop.permute.xlu0 %6795  ;;  %v17402_v40 = vpop.permute.xlu1 %6591 }
 0x76e   : > { %7413 = vrot.lane.b32.xlu1 %v17395_v18, %s15118_s16  ;;  %7813 = vrot.lane.b32.xlu0 %v17274_v51, %s15119_s30  ;;  %v6216_v51 = vsel %vm4266_vm12, %v17375_v44, %v17393_v55 }
 0x770   : > { %v17408_v1 = vpop.permute.xlu0 %6201  ;;  %v17410_v42 = vpop.permute.xlu1 %6793 }
 0x771   : > { %v6808_v54 = vsel %vm4861_vm15, %v17410_v42, %v17400_v20 }
 0x772   : > { %7627 = vrot.lane.b32.xlu1 %v17395_v18, %s15117_s15  ;;  %7421 = vrot.lane.b32.xlu0 %v6184_v49, %s15118_s16 }
 0x774   : > { %v17415_v34 = vpop.permute.xlu0 %6993  ;;  %v17417_v60 = vpop.permute.xlu1 %6203 }
 0x776   : > { %7617 = vrot.lane.b32.xlu1 %v17395_v18, %s15117_s15  ;;  %7411 = vrot.lane.b32.xlu0 %v17306_v29, %s15118_s16 }
 0x778   : > { %v17423_v22 = vpop.permute.xlu0 %6397  ;;  %v17425_v48 = vpop.permute.xlu1 %6991 }
 0x77a   : > { %7831 = vrot.lane.b32.xlu1 %v17395_v18, %s15119_s30  ;;  %7625 = vrot.lane.b32.xlu0 %v6184_v49, %s15117_s15 }
 0x77c   : > { %v17430_v61 = vpop.permute.xlu0 %7191  ;;  %v17432_v32 = vpop.permute.xlu1 %6399 }
 0x77e   : > { %7821 = vrot.lane.b32.xlu1 %v17395_v18, %s15119_s30  ;;  %7615 = vrot.lane.b32.xlu0 %v17306_v29, %s15117_s15  ;;  %s19639_s15 = scalar_lea.hbm %s19696_s6, %s14806_s27 }
 0x780   : > { %v17441_v0 = vpop.permute.xlu0 %6593  ;;  %v17443_v17 = vpop.permute.xlu1 %7189 }
 0x782   : > { %8019 = vperm.xlu1 %14945, %v14585_v15   ;;  %7829 = vrot.lane.b32.xlu0 %v6184_v49, %s15119_s30 }
 0x784   : > { %v17446_v23 = vpop.permute.xlu0 %7409  ;;  %v17448_v46 = vpop.permute.xlu1 %6595 }
 0x786   : > { %7819 = vrot.lane.b32.xlu0 %v17306_v29, %s15119_s30  ;;  %s15122_s30 = smov 124  }
 0x788   : > { %v6404_v45 = vpop.permute.xlu0 %6403  ;;  %v17455_v41 = vpop.permute.xlu1 %7407 }
 0x789   : > { %v6415_v33 = vsel %vm4463_vm13, %v14970_v24, %v6404_v45 }
 0x78a   : > { %8024 = vperm.xlu0 %14946, %v14586_v53  }
 0x78c   : > { %v17457_v2 = vpop.permute.xlu0 %6799  ;;  %v6208_v39 = vpop.permute.xlu1 %6207 }
 0x78d   : > { %v6219_v31 = vsel %vm4266_vm12, %v14965_v38, %v6208_v39  ;;  %v6608_v38 = vsel %vm4660_vm14, %v17383_v9, %v17402_v40 }
 0x790   : > { %v17459_v43 = vpop.permute.xlu0 %6997  ;;  %v6600_v4 = vpop.permute.xlu1 %6599 }
 0x794   : > { %v17461_v13 = vpop.permute.xlu0 %7195  ;;  %v17463_v5 = vpop.permute.xlu1 %6797 }
 0x798   : > { %v17465_v19 = vpop.permute.xlu0 %7415  ;;  %v17467_v6 = vpop.permute.xlu1 %7611 }
 0x79c   : > { %v17470_v28 = vpop.permute.xlu0 %6209  ;;  %v17472_v8 = vpop.permute.xlu1 %6405 }
 0x79d   : > { %v6220_v16 = vsel %vm4266_vm12, %v6208_v39, %v17470_v28  ;;  %v6416_v57 = vsel %vm4463_vm13, %v6404_v45, %v17472_v8  ;;  %v14976_v45 = vunpack.i.h.bf16 %v17291_v35  ;;  %v6611_v39 = vsel %vm4660_vm14, %v14975_v12, %v6600_v4 }
 0x79e   : > { %6265 = vmatprep.subr.mxu0 %v6220_v16  ;;  %v17548_v16 = vld [vmem:[%s19691_s1 + $0x1d0] sm:$0xff] }
 0x79f   : > { %6266 = vmatpush1.msra.mxu0 %v6219_v31  ;;  %v6607_v31 = vsel %vm4660_vm14, %v14976_v45, %v17383_v9  ;;  %v17567_v9 = vld [vmem:[%s19691_s1 + $0x1d8] sm:$0xff] }
 0x7a0   : > { %v17488_v11 = vpop.permute.xlu0 %7405  ;;  %v17490_v58 = vpop.permute.xlu1 %6803  ;;  %6267 = vmatprep.subr.mxu0 %v6216_v51 }
 0x7a1   : > { %6268 = vmatpush1.msra.mxu0 %v6215_v3 }
 0x7a2   : > { %14587 = vmatmul.mubr.msk.f32.vlgmr.msra.gmra.mxu0 %vm362_vm2, %v17484_v47  ;;  %6461 = vmatprep.subr.mxu0 %v6416_v57 }
 0x7a3   : > { %6462 = vmatpush1.msra.mxu0 %v6415_v33  ;;  %6307 = vmatprep.mubr.f32.mxu0 %v17395_v18 }
 0x7a4   : > { %v17508_v29 = vpop.permute.xlu0 %7619  ;;  %v6212_v14 = vpop.permute.xlu1 %6211  ;;  %6463 = vmatprep.subr.mxu0 %v6412_v56  ;;  %v6218_v56 = vsel %vm4266_vm12, %v17408_v1, %v17417_v60 }
 0x7a5   : > { %6464 = vmatpush1.msra.mxu0 %v6411_v21  ;;  %v6221_v33 = vsel %vm4266_vm12, %v17470_v28, %v6212_v14  ;;  %v6217_v28 = vsel %vm4266_vm12, %v17393_v55, %v17408_v1  ;;  %v7006_v55 = vsel %vm1140_vm5, %v17425_v48, %v17415_v34  ;;  %v17611_v1 = vld [vmem:[%s19691_s1 + $0x1e8] sm:$0xff] }
 0x7a6   : > { %14588 = vmatmul.mubr.msk.f32.gmra.mxu0 %vm362_vm2, %v17506_v30 }
 0x7a7   : > { %6497 = vmatprep.mubr.f32.mxu0 %v17395_v18 }
 0x7a8   : > { %v17520_v50 = vpop.permute.xlu0 %7613  ;;  %v17522_v49 = vpop.permute.xlu1 %7001 }
 0x7aa   : > { %14591 = vmatmul.mubr.msk.f32.vlgmr.msra.gmra.mxu0 %vm362_vm2, %v17518_v63 }
 0x7ab   : > { %6503 = vmatprep.mubr.f32.mxu0 %v17395_v18 }
 0x7ac   : > { %v17533_v44 = vpop.permute.xlu0 %6601  ;;  %v6408_v15 = vpop.permute.xlu1 %6407 }
 0x7ad   : > { %v6612_v53 = vsel %vm4660_vm14, %v6600_v4, %v17533_v44  ;;  %v6417_v45 = vsel %vm4463_vm13, %v17472_v8, %v6408_v15  ;;  %v6413_v8 = vsel %vm4463_vm13, %v17391_v52, %v17423_v22  ;;  %v7204_v52 = vsel %vm5258_vm9, %v17443_v17, %v17430_v61 }
 0x7ae   : > { %14592 = vmatmul.mubr.msk.f32.gmra.mxu0 %vm362_vm2, %v17530_v27  ;;  %6657 = vmatprep.subr.mxu0 %v6612_v53 }
 0x7af   : > { %6658 = vmatpush1.msra.mxu0 %v6611_v39  ;;  %6693 = vmatprep.mubr.f32.mxu0 %v17395_v18 }
 0x7b0   : > { %v6802_v36 = vpop.permute.xlu0 %6801  ;;  %v17550_v35 = vpop.permute.xlu1 %7199  ;;  %6659 = vmatprep.subr.mxu0 %v6608_v38  ;;  %v6414_v38 = vsel %vm4463_vm13, %v17423_v22, %v17432_v32  ;;  %v17653_v22 = vld [vmem:[%s19691_s1 + $0x1f8] sm:$0xff] }
 0x7b1   : > { %6660 = vmatpush1.msra.mxu0 %v6607_v31  ;;  %v6811_v4 = vsel %vm4861_vm15, %v6802_v36, %v17490_v58  ;;  %v6810_v51 = vsel %vm4861_vm15, %v17457_v2, %v6802_v36  ;;  %v6807_v2 = vsel %vm4861_vm15, %v17371_v7, %v17410_v42  ;;  %v17586_v7 = vld [vmem:[%s19691_s1 + $0x1e0] sm:$0xff] }
 0x7b2   : > { %14595 = vmatmul.mubr.msk.f32.vlgmr.msra.gmra.mxu0 %vm362_vm2, %v17548_v16  ;;  %6855 = vmatprep.subr.mxu0 %v6811_v4 }
 0x7b3   : > { %6856 = vmatpush1.msra.mxu0 %v6810_v51  ;;  %6699 = vmatprep.mubr.f32.mxu0 %v17395_v18  ;;  %v6809_v51 = vsel %vm4861_vm15, %v17400_v20, %v17463_v5 }
 0x7b4   : > { %v6214_v24 = vpop.permute.xlu0 %6213  ;;  %v17569_v3 = vpop.permute.xlu1 %6603  ;;  %6857 = vmatprep.subr.mxu0 %v6808_v54 }
 0x7b5   : > { %6858 = vmatpush1.msra.mxu0 %v6807_v2  ;;  %v6222_v57 = vsel %vm4266_vm12, %v6212_v14, %v6214_v24  ;;  %v6613_v31 = vsel %vm4660_vm14, %v17533_v44, %v17569_v3  ;;  %v17683_v44 = vld [vmem:[%s19691_s1 + $0x200] sm:$0xff]  ;;  %v7426_v24 = vsel %vm4463_vm13, %v17455_v41, %v17446_v23 }
 0x7b6   : > { %6342 = vmatprep.subr.mxu1 %v6222_v57  ;;  %14596 = vmatmul.mubr.msk.f32.gmra.mxu0 %vm362_vm2, %v17567_v9 }
 0x7b7   : > { %6343 = vmatpush1.msra.mxu1 %v6221_v33  ;;  %6891 = vmatprep.mubr.f32.mxu0 %v17395_v18 }
 0x7b8   : > { %v7000_v42 = vpop.permute.xlu0 %6999  ;;  %6344 = vmatprep.subr.mxu1 %v6218_v56  ;;  %v17588_v21 = vpop.permute.xlu1 %6995 }
 0x7b9   : > { %6345 = vmatpush1.msra.mxu1 %v6217_v28  ;;  %v7009_v14 = vsel %vm1140_vm5, %v7000_v42, %v17522_v49  ;;  %v7008_v60 = vsel %vm1140_vm5, %v17459_v43, %v7000_v42  ;;  %v7005_v43 = vsel %vm1140_vm5, %v17377_v10, %v17425_v48  ;;  %v17632_v48 = vld [vmem:[%s19691_s1 + $0x1f0] sm:$0xff] }
 0x7ba   : > { %14589 = vmatmul.mubr.msk.f32.vlgmr.msra.gmra.mxu1 %vm362_vm2, %v17484_v47  ;;  %14599 = vmatmul.mubr.msk.f32.vlgmr.msra.gmra.mxu0 %vm362_vm2, %v17586_v7 }
 0x7bb   : > { %7053 = vmatprep.subr.mxu0 %v7009_v14  ;;  %6384 = vmatprep.mubr.f32.mxu1 %v17395_v18 }
 0x7bc   : > { %7054 = vmatpush1.msra.mxu0 %v7008_v60  ;;  %v6410_v12 = vpop.permute.xlu0 %6409  ;;  %v17602_v53 = vpop.permute.xlu1 %7815  ;;  %6897 = vmatprep.mubr.f32.mxu0 %v17395_v18  ;;  %v17777_v60 = vld [vmem:[%s19691_s1 + $0x228] sm:$0xff] }
 0x7bd   : > { %7055 = vmatprep.subr.mxu0 %v7006_v55  ;;  %v6418_v47 = vsel %vm4463_vm13, %v6408_v15, %v6410_v12 }
 0x7be   : > { %7056 = vmatpush1.msra.mxu0 %v7005_v43  ;;  %14590 = vmatmul.mubr.msk.f32.gmra.mxu1 %vm362_vm2, %v17506_v30 }
 0x7bf   : > { %6538 = vmatprep.subr.mxu1 %v6418_v47  ;;  %14600 = vmatmul.mubr.msk.f32.gmra.mxu0 %vm362_vm2, %v17611_v1  ;;  %v14583_v47 = vld [vmem:[%s19691_s1 + $0x230] sm:$0xff] }
 0x7c0   : > { %6539 = vmatpush1.msra.mxu1 %v6417_v45  ;;  %v7198_v39 = vpop.permute.xlu0 %7197  ;;  %v17626_v10 = vpop.permute.xlu1 %7419  ;;  %6574 = vmatprep.mubr.f32.mxu1 %v17395_v18 }
 0x7c1   : > { %6540 = vmatprep.subr.mxu1 %v6414_v38  ;;  %7089 = vmatprep.mubr.f32.mxu0 %v17395_v18  ;;  %v7207_v30 = vsel %vm5258_vm9, %v7198_v39, %v17550_v35  ;;  %v7206_v32 = vsel %vm5258_vm9, %v17461_v13, %v7198_v39  ;;  %v7203_v13 = vsel %vm5258_vm9, %v17385_v59, %v17443_v17 }
 0x7c2   : > { %6541 = vmatpush1.msra.mxu1 %v6413_v8  ;;  %7251 = vmatprep.subr.mxu0 %v7207_v30  ;;  %v6610_v59 = vsel %vm4660_vm14, %v17441_v0, %v17448_v46 }
 0x7c3   : > { %14593 = vmatmul.mubr.msk.f32.vlgmr.msra.gmra.mxu1 %vm362_vm2, %v17518_v63  ;;  %14603 = vmatmul.mubr.msk.f32.vlgmr.msra.gmra.mxu0 %vm362_vm2, %v17632_v48 }
 0x7c4   : > { %7252 = vmatpush1.msra.mxu0 %v7206_v32  ;;  %v6606_v15 = vpop.permute.xlu0 %6605  ;;  %v6806_v36 = vpop.permute.xlu1 %6805  ;;  %6580 = vmatprep.mubr.f32.mxu1 %v17395_v18 }
 0x7c5   : > { %7253 = vmatprep.subr.mxu0 %v7204_v52  ;;  %7095 = vmatprep.mubr.f32.mxu0 %v17395_v18  ;;  %v6614_v63 = vsel %vm4660_vm14, %v17569_v3, %v6606_v15  ;;  %v6812_v46 = vsel %vm4861_vm15, %v17490_v58, %v6806_v36 }
 0x7c6   : > { %7254 = vmatpush1.msra.mxu0 %v7203_v13  ;;  %6734 = vmatprep.subr.mxu1 %v6614_v63 }
 0x7c7   : > { %14594 = vmatmul.mubr.msk.f32.gmra.mxu1 %vm362_vm2, %v17530_v27  ;;  %14604 = vmatmul.mubr.msk.f32.gmra.mxu0 %vm362_vm2, %v17653_v22  ;;  %v6609_v27 = vsel %vm4660_vm14, %v17402_v40, %v17441_v0 }
 0x7c8   : > { %6735 = vmatpush1.msra.mxu1 %v6613_v31  ;;  %v17668_v4 = vpop.permute.xlu0 %7609  ;;  %v17673_v17 = vpop.permute.xlu1 %7623  ;;  %6770 = vmatprep.mubr.f32.mxu1 %v17395_v18 }
 0x7c9   : > { %6736 = vmatprep.subr.mxu1 %v6610_v59  ;;  %7287 = vmatprep.mubr.f32.mxu0 %v17395_v18  ;;  %v7629_v42 = vsel %vm4266_vm12, %v17668_v4, %v17467_v6 }
 0x7ca   : > { %6737 = vmatpush1.msra.mxu1 %v6609_v27 }
 0x7cb   : > { %14597 = vmatmul.mubr.msk.f32.vlgmr.msra.gmra.mxu1 %vm362_vm2, %v17548_v16  ;;  %6932 = vmatprep.subr.mxu1 %v6806_v36  ;;  %v17699_v16 = vld [vmem:[%s19691_s1 + $0x208] sm:$0xff] }
 0x7cc   : > { %14607 = vmatmul.mubr.msk.f32.vlgmr.msra.gmra.mxu0 %vm362_vm2, %v17683_v44  ;;  %6933 = vmatpush1.msra.mxu1 %v6812_v46  ;;  %v7418_v40 = vpop.permute.xlu0 %7417  ;;  %v7004_v0 = vpop.permute.xlu1 %7003 }
 0x7cd   : > { %6934 = vmatprep.subr.mxu1 %v17463_v5  ;;  %6776 = vmatprep.mubr.f32.mxu1 %v17395_v18  ;;  %v7430_v58 = vsel %vm4463_vm13, %v7418_v40, %v17626_v10  ;;  %v7429_v54 = vsel %vm4463_vm13, %v17465_v19, %v7418_v40  ;;  %v17719_v19 = vld [vmem:[%s19691_s1 + $0x210] sm:$0xff]  ;;  %v7010_v3 = vsel %vm1140_vm5, %v17522_v49, %v7004_v0 }
 0x7ce   : > { %6935 = vmatpush1.msra.mxu1 %v6809_v51  ;;  %7293 = vmatprep.mubr.f32.mxu0 %v17395_v18 }
 0x7cf   : > { %14598 = vmatmul.mubr.msk.f32.gmra.mxu1 %vm362_vm2, %v17567_v9  ;;  %7130 = vmatprep.subr.mxu1 %v7004_v0  ;;  %v7425_v9 = vsel %vm4463_vm13, %v17488_v11, %v17455_v41  ;;  %v7007_v41 = vsel %vm1140_vm5, %v17415_v34, %v17588_v21  ;;  %v17739_v11 = vld [vmem:[%s19691_s1 + $0x218] sm:$0xff] }
 0x7d0   : > { %14608 = vmatmul.mubr.msk.f32.gmra.mxu0 %vm362_vm2, %v17699_v16  ;;  %7475 = vmatprep.subr.mxu0 %v7430_v58  ;;  %v7824_v20 = vpop.permute.xlu0 %7823  ;;  %v17710_v5 = vpop.permute.xlu1 %7827 }
 0x7d1   : > { %7476 = vmatpush1.msra.mxu0 %v7429_v54  ;;  %6968 = vmatprep.mubr.f32.mxu1 %v17395_v18 }
 0x7d2   : > { %7477 = vmatprep.subr.mxu0 %v7426_v24  ;;  %7511 = vmatprep.mubr.f32.mxu0 %v17395_v18 }
 0x7d3   : > { %7478 = vmatpush1.msra.mxu0 %v7425_v9  ;;  %14601 = vmatmul.mubr.msk.f32.vlgmr.msra.gmra.mxu1 %vm362_vm2, %v17586_v7  ;;  %v7630_v7 = vsel %vm4266_vm12, %v17467_v6, %v17520_v50 }
 0x7d4   : > { %7131 = vmatpush1.msra.mxu1 %v7010_v3  ;;  %14611 = vmatmul.mubr.msk.f32.vlgmr.msra.gmra.mxu0 %vm362_vm2, %v17719_v19  ;;  %v7622_v2 = vpop.permute.xlu0 %7621  ;;  %v7202_v57 = vpop.permute.xlu1 %7201 }
 0x7d5   : > { %7132 = vmatprep.subr.mxu1 %v17588_v21  ;;  %6974 = vmatprep.mubr.f32.mxu1 %v17395_v18  ;;  %v7634_v49 = vsel %vm4266_vm12, %v7622_v2, %v17673_v17  ;;  %v7633_v33 = vsel %vm4266_vm12, %v17508_v29, %v7622_v2  ;;  %v17759_v29 = vld [vmem:[%s19691_s1 + $0x220] sm:$0xff]  ;;  %v7208_v21 = vsel %vm5258_vm9, %v17550_v35, %v7202_v57 }
 0x7d6   : > { %7133 = vmatpush1.msra.mxu1 %v7007_v41  ;;  %7517 = vmatprep.mubr.f32.mxu0 %v17395_v18 }
 0x7d7   : > { %7328 = vmatprep.subr.mxu1 %v7202_v57  ;;  %14602 = vmatmul.mubr.msk.f32.gmra.mxu1 %vm362_vm2, %v17611_v1 }
 0x7d8   : > { %14612 = vmatmul.mubr.msk.f32.gmra.mxu0 %vm362_vm2, %v17739_v11  ;;  %7679 = vmatprep.subr.mxu0 %v7634_v49  ;;  %v17750_v34 = vpop.permute.xlu0 %7817  ;;  %v7194_v56 = vpop.permute.xlu1 %7193 }
 0x7d9   : > { %7680 = vmatpush1.msra.mxu0 %v7633_v33  ;;  %7166 = vmatprep.mubr.f32.mxu1 %v17395_v18  ;;  %v7205_v6 = vsel %vm5258_vm9, %v17430_v61, %v7194_v56  ;;  %v7834_v43 = vsel %vm4660_vm14, %v17602_v53, %v17750_v34  ;;  %vm8341_vm9 = vcmask 1014784  }
 0x7da   : > { %7681 = vmatprep.subr.mxu0 %v7630_v7  ;;  %7715 = vmatprep.mubr.f32.mxu0 %v17395_v18 }
 0x7db   : > { %7682 = vmatpush1.msra.mxu0 %v7629_v42  ;;  %14605 = vmatmul.mubr.msk.f32.vlgmr.msra.gmra.mxu1 %vm362_vm2, %v17632_v48  ;;  %v14584_v48 = vld [vmem:[%s19691_s1 + $0x238] sm:$0xff] }
 0x7dc   : > { %7329 = vmatpush1.msra.mxu1 %v7208_v21  ;;  %14615 = vmatmul.mubr.msk.f32.vlgmr.msra.gmra.mxu0 %vm362_vm2, %v17759_v29  ;;  %v7826_v28 = vpop.permute.xlu0 %7825  ;;  %v7424_v14 = vpop.permute.xlu1 %7423 }
 0x7dd   : > { %7330 = vmatprep.subr.mxu1 %v7194_v56  ;;  %7172 = vmatprep.mubr.f32.mxu1 %v17395_v18  ;;  %v7838_v35 = vsel %vm4660_vm14, %v7826_v28, %v17710_v5  ;;  %v7837_v12 = vsel %vm4660_vm14, %v7824_v20, %v7826_v28 }
 0x7de   : > { %7331 = vmatpush1.msra.mxu1 %v7205_v6  ;;  %7721 = vmatprep.mubr.f32.mxu0 %v17395_v18 }
 0x7df   : > { %14606 = vmatmul.mubr.msk.f32.gmra.mxu1 %vm362_vm2, %v17653_v22  ;;  %7883 = vmatprep.subr.mxu0 %v7838_v35 }
 0x7e0   : > { %14616 = vmatmul.mubr.msk.f32.gmra.mxu0 %vm362_vm2, %v17777_v60  ;;  %v7814_v61 = vpop.permute.xlu0 %7813  ;;  %7364 = vmatprep.mubr.f32.mxu1 %v17395_v18  ;;  %v7414_v55 = vpop.permute.xlu1 %7413 }
 0x7e1   : > { %7884 = vmatpush1.msra.mxu0 %v7837_v12  ;;  %v7833_v1 = vsel %vm4660_vm14, %v7814_v61, %v17602_v53  ;;  %7919 = vmatprep.mubr.f32.mxu0 %v17395_v18 }
 0x7e2   : > { %7885 = vmatprep.subr.mxu0 %v7834_v43 }
 0x7e3   : > { %14609 = vmatmul.mubr.msk.f32.vlgmr.msra.gmra.mxu1 %vm362_vm2, %v17683_v44  ;;  %7886 = vmatpush1.msra.mxu0 %v7833_v1 }
 0x7e4   : > { %14619 = vmatmul.mubr.msk.f32.vlgmr.msra.gmra.mxu0 %vm362_vm2, %v14583_v47  ;;  %v7422_v45 = vpop.permute.xlu0 %7421  ;;  %7370 = vmatprep.mubr.f32.mxu1 %v17395_v18  ;;  %v7628_v39 = vpop.permute.xlu1 %7627 }
 0x7e5   : > { %v7432_v38 = vsel %vm4463_vm13, %v7422_v45, %v7424_v14  ;;  %7925 = vmatprep.mubr.f32.mxu0 %v17395_v18  ;;  %v7431_v53 = vsel %vm4463_vm13, %v17626_v10, %v7422_v45 }
 0x7e6   : > { %7552 = vmatprep.subr.mxu1 %v7432_v38 }
 0x7e7   : > { %14610 = vmatmul.mubr.msk.f32.gmra.mxu1 %vm362_vm2, %v17699_v16 }
 0x7e8   : > { %7553 = vmatpush1.msra.mxu1 %v7431_v53  ;;  %14620 = vmatmul.mubr.msk.f32.gmra.mxu0 %vm362_vm2, %v14584_v48  ;;  %v7412_v8 = vpop.permute.xlu0 %7411  ;;  %v7618_v10 = vpop.permute.xlu1 %7617 }
 0x7e9   : > { %v7428_v30 = vsel %vm4463_vm13, %v7412_v8, %v7414_v55  ;;  %v7427_v32 = vsel %vm4463_vm13, %v17446_v23, %v7412_v8  ;;  %7588 = vmatprep.mubr.f32.mxu1 %v17395_v18  ;;  %8235 = vmatprep.mubr.f32.mxu0 %v17395_v18  ;;  %vm10419_vm13 = vcmask 916480  }
 0x7ea   : > { %7554 = vmatprep.subr.mxu1 %v7428_v30 }
 0x7eb   : > { %7555 = vmatpush1.msra.mxu1 %v7427_v32 }
 0x7ec   : > { %v7626_v15 = vpop.permute.xlu0 %7625  ;;  %14613 = vmatmul.mubr.msk.f32.vlgmr.msra.gmra.mxu1 %vm362_vm2, %v17719_v19  ;;  %v7832_v22 = vpop.permute.xlu1 %7831 }
 0x7ed   : > { %v7636_v36 = vsel %vm4266_vm12, %v7626_v15, %v7628_v39  ;;  %7594 = vmatprep.mubr.f32.mxu1 %v17395_v18  ;;  %v7635_v52 = vsel %vm4266_vm12, %v17673_v17, %v7626_v15 }
 0x7ee   : > { %7756 = vmatprep.subr.mxu1 %v7636_v36 }
 0x7ef   : > { %7757 = vmatpush1.msra.mxu1 %v7635_v52 }
 0x7f0   : > { %v7616_v23 = vpop.permute.xlu0 %7615  ;;  %14614 = vmatmul.mubr.msk.f32.gmra.mxu1 %vm362_vm2, %v17739_v11  ;;  %v7822_v17 = vpop.permute.xlu1 %7821 }
 0x7f1   : > { %v7632_v13 = vsel %vm4266_vm12, %v7616_v23, %v7618_v10  ;;  %v7631_v63 = vsel %vm4266_vm12, %v17520_v50, %v7616_v23  ;;  %7792 = vmatprep.mubr.f32.mxu1 %v17395_v18  ;;  %vm8532_vm12 = vcmask 949248  }
 0x7f2   : > { %7758 = vmatprep.subr.mxu1 %v7632_v13 }
 0x7f3   : > { %7759 = vmatpush1.msra.mxu1 %v7631_v63 }
 0x7f4   : > { %v7830_v31 = vpop.permute.xlu0 %7829  ;;  %14617 = vmatmul.mubr.msk.f32.vlgmr.msra.gmra.mxu1 %vm362_vm2, %v17759_v29 }
 0x7f5   : > { %v7840_v4 = vsel %vm4660_vm14, %v7830_v31, %v7832_v22  ;;  %7798 = vmatprep.mubr.f32.mxu1 %v17395_v18  ;;  %v7839_v59 = vsel %vm4660_vm14, %v17710_v5, %v7830_v31 }
 0x7f6   : > { %7960 = vmatprep.subr.mxu1 %v7840_v4 }
 0x7f7   : > { %7961 = vmatpush1.msra.mxu1 %v7839_v59 }
 0x7f8   : > { %v7820_v27 = vpop.permute.xlu0 %7819  ;;  %14618 = vmatmul.mubr.msk.f32.gmra.mxu1 %vm362_vm2, %v17777_v60 }
 0x7f9   : > { %v7836_v50 = vsel %vm4660_vm14, %v7820_v27, %v7822_v17  ;;  %v7835_v44 = vsel %vm4660_vm14, %v17750_v34, %v7820_v27  ;;  %7996 = vmatprep.mubr.f32.mxu1 %v17395_v18 }
 0x7fa   : > { %7962 = vmatprep.subr.mxu1 %v7836_v50 }
 0x7fb   : > { %7963 = vmatpush1.msra.mxu1 %v7835_v44 }
 0x7fc   : > { %14621 = vmatmul.mubr.msk.f32.vlgmr.msra.gmra.mxu1 %vm362_vm2, %v14583_v47 }
 0x7fd   : > { %8002 = vmatprep.mubr.f32.mxu1 %v17395_v18 }
 0x800   : > { %14622 = vmatmul.mubr.msk.f32.gmra.mxu1 %vm362_vm2, %v14584_v48 }
 0x801   : > { %8312 = vmatprep.mubr.f32.mxu1 %v17395_v18 }
 0x862   : > { %v6303_v46 = vpop.f32.mrf.mxu0 }
 0x864   : > { %v6305_v40 = vpop.f32.mrf.mxu0 }
 0x866   : > { %v6309_v0 = vpop.f32.mrf.mxu0 }
 0x868   : > { %v6311_v51 = vpop.f32.mrf.mxu0 }
 0x86a   : > { %v6499_v16 = vpop.f32.mrf.mxu0 }
 0x86b   : > { %v6500_v48 = vadd.f32 %v6499_v16, %v6303_v46 }
 0x86c   : > { %v6501_v58 = vpop.f32.mrf.mxu0 }
 0x86d   : > { %v6502_v32 = vadd.f32 %v6501_v58, %v6305_v40 }
 0x86e   : > { %v6505_v54 = vpop.f32.mrf.mxu0 }
 0x86f   : > { %v6506_v52 = vadd.f32 %v6505_v54, %v6309_v0 }
 0x870   : > { %v6507_v20 = vpop.f32.mrf.mxu0 }
 0x871   : > { %v6508_v31 = vadd.f32 %v6507_v20, %v6311_v51 }
 0x872   : > { %v6695_v5 = vpop.f32.mrf.mxu0 }
 0x873   : > { %v6783_v10 = vadd.f32 %v6695_v5, %v6500_v48 }
 0x874   : > { %v6697_v24 = vpop.f32.mrf.mxu0 }
 0x875   : > { %v6784_v23 = vadd.f32 %v6697_v24, %v6502_v32 }
 0x876   : > { %v6701_v19 = vpop.f32.mrf.mxu0 }
 0x877   : > { %v6787_v4 = vadd.f32 %v6701_v19, %v6506_v52 }
 0x878   : > { %v6703_v9 = vpop.f32.mrf.mxu0 }
 0x879   : > { %v6788_v44 = vadd.f32 %v6703_v9, %v6508_v31 }
 0x87a   : > { %v17844_v3 = vpop.f32.mrf.mxu1  ;;  %v6893_v2 = vpop.f32.mrf.mxu0 }
 0x87b   : > { %v6981_v22 = vadd.f32 %v6893_v2, %v6783_v10 }
 0x87c   : > { %v17846_v57 = vpop.f32.mrf.mxu1  ;;  %v6895_v41 = vpop.f32.mrf.mxu0 }
 0x87d   : > { %v6982_v59 = vadd.f32 %v6895_v41, %v6784_v23  ;;  %v17884_v23 = vpop.permute.xlu1 %8019 }
 0x87e   : > { %v17848_v11 = vpop.f32.mrf.mxu1 }
 0x87f   : > { %v6899_v49 = vpop.f32.mrf.mxu0 }
 0x880   : > { %v17850_v33 = vpop.f32.mrf.mxu1  ;;  %v6985_v46 = vadd.f32 %v6899_v49, %v6787_v4 }
 0x881   : > { %v6901_v34 = vpop.f32.mrf.mxu0 }
 0x882   : > { %v6986_v0 = vadd.f32 %v6901_v34, %v6788_v44 }
 0x883   : > { %v17852_v56 = vpop.f32.mrf.mxu1  ;;  %v7091_v7 = vpop.f32.mrf.mxu0 }
 0x884   : > { %v7179_v17 = vadd.f32 %v7091_v7, %v6981_v22 }
 0x885   : > { %v17854_v29 = vpop.f32.mrf.mxu1  ;;  %v7093_v42 = vpop.f32.mrf.mxu0 }
 0x886   : > { %v7180_v40 = vadd.f32 %v7093_v42, %v6982_v59 }
 0x887   : > { %v17856_v21 = vpop.f32.mrf.mxu1  ;;  %v7097_v28 = vpop.f32.mrf.mxu0 }
 0x888   : > { %v7183_v54 = vadd.f32 %v7097_v28, %v6985_v46 }
 0x889   : > { %v17858_v14 = vpop.f32.mrf.mxu1  ;;  %v7099_v6 = vpop.f32.mrf.mxu0 }
 0x88a   : > { %v7184_v20 = vadd.f32 %v7099_v6, %v6986_v0 }
 0x88b   : > { %v17860_v60 = vpop.f32.mrf.mxu1 }
 0x88c   : > { %v7289_v35 = vpop.f32.mrf.mxu0 }
 0x88d   : > { %v17862_v12 = vpop.f32.mrf.mxu1  ;;  %v7377_v16 = vadd.f32 %v7289_v35, %v7179_v17 }
 0x88e   : > { %v7291_v61 = vpop.f32.mrf.mxu0 }
 0x88f   : > { %v17864_v55 = vpop.f32.mrf.mxu1  ;;  %v7378_v24 = vadd.f32 %v7291_v61, %v7180_v40 }
 0x890   : > { %v7295_v1 = vpop.f32.mrf.mxu0 }
 0x891   : > { %v17866_v43 = vpop.f32.mrf.mxu1  ;;  %v7381_v19 = vadd.f32 %v7295_v1, %v7183_v54  ;;  %v17887_v1 = vpop.permute.xlu0 %8024  ;;  %v6577_v54 = vadd.f32 %v17852_v56, %v17844_v3 }
 0x892   : > { %v7297_v47 = vpop.f32.mrf.mxu0 }
 0x893   : > { %v17868_v45 = vpop.f32.mrf.mxu1  ;;  %v7382_v9 = vadd.f32 %v7297_v47, %v7184_v20  ;;  %v6579_v20 = vadd.f32 %v17854_v29, %v17846_v57 }
 0x894   : > { %v7513_v39 = vpop.f32.mrf.mxu0 }
 0x895   : > { %v17870_v38 = vpop.f32.mrf.mxu1  ;;  %v7601_v2 = vadd.f32 %v7513_v39, %v7377_v16  ;;  %v6786_v3 = vadd.f32 %v17862_v12, %v6579_v20 }
 0x896   : > { %v7515_v53 = vpop.f32.mrf.mxu0 }
 0x897   : > { %v17872_v8 = vpop.f32.mrf.mxu1  ;;  %v7602_v41 = vadd.f32 %v7515_v53, %v7378_v24  ;;  %v6984_v57 = vadd.f32 %v17870_v38, %v6786_v3  ;;  %v6585_v38 = vadd.f32 %v17858_v14, %v17850_v33 }
 0x898   : > { %v7519_v30 = vpop.f32.mrf.mxu0 }
 0x899   : > { %v17874_v15 = vpop.f32.mrf.mxu1  ;;  %v7605_v49 = vadd.f32 %v7519_v30, %v7381_v19  ;;  %v6785_v19 = vadd.f32 %v17860_v60, %v6577_v54 }
 0x89a   : > { %v7521_v36 = vpop.f32.mrf.mxu0 }
 0x89b   : > { %v17876_v13 = vpop.f32.mrf.mxu1  ;;  %v7606_v28 = vadd.f32 %v7521_v36, %v7382_v9  ;;  %v6983_v56 = vadd.f32 %v17868_v45, %v6785_v19 }
 0x89c   : > { %v7717_v63 = vpop.f32.mrf.mxu0 }
 0x89d   : > { %v17878_v27 = vpop.f32.mrf.mxu1  ;;  %v7805_v7 = vadd.f32 %v7717_v63, %v7601_v2  ;;  %v7181_v29 = vadd.f32 %v17876_v13, %v6983_v56 }
 0x89e   : > { %v7719_v50 = vpop.f32.mrf.mxu0 }
 0x89f   : > { %v17880_v58 = vpop.f32.mrf.mxu1  ;;  %v7806_v42 = vadd.f32 %v7719_v50, %v7602_v41 }
 0x8a0   : > { %v7723_v5 = vpop.f32.mrf.mxu0 }
 0x8a1   : > { %v17882_v48 = vpop.f32.mrf.mxu1  ;;  %v7809_v61 = vadd.f32 %v7723_v5, %v7605_v49 }
 0x8a2   : > { %v7725_v51 = vpop.f32.mrf.mxu0 }
 0x8a3   : > { %v7366_v32 = vpop.f32.mrf.mxu1  ;;  %v7810_v53 = vadd.f32 %v7725_v51, %v7606_v28 }
 0x8a4   : > { %v7921_v10 = vpop.f32.mrf.mxu0 }
 0x8a5   : > { %v8009_v35 = vadd.f32 %v7921_v10, %v7805_v7  ;;  %v7368_v52 = vpop.f32.mrf.mxu1  ;;  %v6583_v10 = vadd.f32 %v17856_v21, %v17848_v11 }
 0x8a6   : > { %v7923_v34 = vpop.f32.mrf.mxu0 }
 0x8a7   : > { %v8027_v39 = vadd.f32 %v17884_v23, %v8009_v35  ;;  %v8010_v22 = vadd.f32 %v7923_v34, %v7806_v42  ;;  %v7372_v31 = vpop.f32.mrf.mxu1  ;;  %v6789_v49 = vadd.f32 %v17864_v55, %v6583_v10  ;;  %v7182_v35 = vadd.f32 %v17878_v27, %v6984_v57 }
 0x8a8   : > { %v7927_v6 = vpop.f32.mrf.mxu0  ;;  %v7379_v34 = vadd.f32 %v7366_v32, %v7181_v29  ;;  %v6790_v27 = vadd.f32 %v17866_v43, %v6585_v38  ;;  %v18040_v38 = vld [vmem:[#allocation2 + $0x40] sm:$0xff] }
 0x8a9   : > { %v8035_v63 = vmax.f32 %v8027_v39, 0.0  ;;  %v8028_v47 = vadd.f32 %v17884_v23, %v8010_v22  ;;  %v8013_v30 = vadd.f32 %v7927_v6, %v7809_v61  ;;  %v7374_v4 = vpop.f32.mrf.mxu1  ;;  %v6987_v42 = vadd.f32 %v17872_v8, %v6789_v49 }
 0x8aa   : > { %v7929_v59 = vpop.f32.mrf.mxu0  ;;  %v7380_v12 = vadd.f32 %v7368_v52, %v7182_v35 }
 0x8ab   : > { %v8043_v17 = vmul.f32 %v8035_v63, %v15815_v26  ;;  %v8036_v50 = vmax.f32 %v8028_v47, 0.0  ;;  %v8031_v36 = vadd.f32 %v17887_v1, %v8013_v30  ;;  %v8014_v44 = vadd.f32 %v7929_v59, %v7810_v53 }
 0x8ac   : > { %v7590_v46 = vpop.f32.mrf.mxu1  ;;  %v7185_v21 = vadd.f32 %v17880_v58, %v6987_v42  ;;  %v6988_v47 = vadd.f32 %v17874_v15, %v6790_v27 }
 0x8ad   : > { %v8044_v40 = vmul.f32 %v8036_v50, %v15849_v25  ;;  %v8039_v16 = vmax.f32 %v8031_v36, 0.0  ;;  %v8032_v5 = vadd.f32 %v17887_v1, %v8014_v44  ;;  %8059 = vrot.lane.b32.xlu0 %v8043_v17, %s15116_s29  ;;  %v7603_v45 = vadd.f32 %v7590_v46, %v7379_v34 }
 0x8ae   : > { %v7592_v0 = vpop.f32.mrf.mxu1  ;;  %v7383_v61 = vadd.f32 %v7372_v31, %v7185_v21  ;;  %v7186_v17 = vadd.f32 %v17882_v48, %v6988_v47  ;;  %v8119_v48 = vld [vmem:[#allocation2 + $0x8] sm:$0xff] }
 0x8af   : > { %v8047_v24 = vmul.f32 %v8039_v16, %v15815_v26  ;;  %v8040_v2 = vmax.f32 %v8032_v5, 0.0  ;;  %8061 = vrot.lane.b32.xlu1 %v8044_v40, %s15116_s29  ;;  %v7604_v39 = vadd.f32 %v7592_v0, %v7380_v12 }
 0x8b0   : > { %v7596_v51 = vpop.f32.mrf.mxu1  ;;  %v7384_v36 = vadd.f32 %v7374_v4, %v7186_v17 }
 0x8b1   : > { %v8048_v41 = vmul.f32 %v8040_v2, %v15849_v25  ;;  %8067 = vrot.lane.b32.xlu0 %v8047_v24, %s15116_s29  ;;  %v7607_v13 = vadd.f32 %v7596_v51, %v7383_v61  ;;  %v9328_v61 = vld [vmem:[#allocation2 + $0x30] sm:$0xff] }
 0x8b2   : > { %v7598_v7 = vpop.f32.mrf.mxu1 }
 0x8b3   : > { %8069 = vrot.lane.b32.xlu1 %v8048_v41, %s15116_s29  ;;  %v7608_v44 = vadd.f32 %v7598_v7, %v7384_v36 }
 0x8b4   : > { %v7794_v9 = vpop.f32.mrf.mxu1 }
 0x8b5   : > { %v7807_v22 = vadd.f32 %v7794_v9, %v7603_v45 }
 0x8b6   : > { %v7796_v60 = vpop.f32.mrf.mxu1 }
 0x8b7   : > { %v7808_v6 = vadd.f32 %v7796_v60, %v7604_v39 }
 0x8b8   : > { %v7800_v11 = vpop.f32.mrf.mxu1 }
 0x8b9   : > { %v7811_v32 = vadd.f32 %v7800_v11, %v7607_v13 }
 0x8ba   : > { %v7802_v28 = vpop.f32.mrf.mxu1 }
 0x8bb   : > { %v7812_v16 = vadd.f32 %v7802_v28, %v7608_v44 }
 0x8bc   : > { %v7998_v55 = vpop.f32.mrf.mxu1 }
 0x8bd   : > { %v8011_v53 = vadd.f32 %v7998_v55, %v7807_v22 }
 0x8be   : > { %v8000_v8 = vpop.f32.mrf.mxu1 }
 0x8bf   : > { %v8029_v63 = vadd.f32 %v17884_v23, %v8011_v53  ;;  %v8012_v58 = vadd.f32 %v8000_v8, %v7808_v6  ;;  %v14641_v53 = vld [vmem:[%s19692_s2 + $0x40] sm:$0xff] }
 0x8c0   : > { %v8004_v52 = vpop.f32.mrf.mxu1 }
 0x8c1   : > { %v8037_v31 = vmax.f32 %v8029_v63, 0.0  ;;  %v8030_v30 = vadd.f32 %v17884_v23, %v8012_v58  ;;  %v8015_v59 = vadd.f32 %v8004_v52, %v7811_v32  ;;  %v14642_v63 = vld [vmem:[%s19692_s2 + $0x48] sm:$0xff] }
 0x8c2   : > { %v8006_v40 = vpop.f32.mrf.mxu1 }
 0x8c3   : > { %v8045_v33 = vmul.f32 %v8037_v31, %v15843_v37  ;;  %v8038_v14 = vmax.f32 %v8030_v30, 0.0  ;;  %v8033_v50 = vadd.f32 %v17887_v1, %v8015_v59  ;;  %v8016_v23 = vadd.f32 %v8006_v40, %v7812_v16  ;;  %v18096_v16 = vld [vmem:[%s19691_s1 + $0x250] sm:$0xff] }
 0x8c5   : > { %v8041_v43 = vmax.f32 %v8033_v50, 0.0  ;;  %8063 = vrot.lane.b32.xlu1 %v8045_v33, %s15116_s29  ;;  %v8046_v46 = vmul.f32 %v8038_v14, %v15858_v62  ;;  %v8034_v4 = vadd.f32 %v17887_v1, %v8016_v23 }
 0x8c7   : > { %v8049_v15 = vmul.f32 %v8041_v43, %v15843_v37  ;;  %v8042_v5 = vmax.f32 %v8034_v4, 0.0 }
 0x8c9   : > { %8065 = vrot.lane.b32.xlu1 %v8046_v46, %s15116_s29  ;;  %8071 = vrot.lane.b32.xlu0 %v8049_v15, %s15116_s29  ;;  %v8050_v0 = vmul.f32 %v8042_v5, %v15858_v62  ;;  %v18107_v5 = vld [vmem:[%s19691_s1 + $0x258] sm:$0xff] }
 0x8cd   : > { %8143 = vrot.lane.b32.xlu0 %v17395_v18, %s15110_s19  ;;  %8135 = vrot.lane.b32.xlu1 %v8119_v48, %s15110_s19 }
 0x8d1   : > { %8333 = vrot.lane.b32.xlu0 %v17395_v18, %s15122_s30  ;;  %8325 = vrot.lane.b32.xlu1 %v8119_v48, %s15122_s30 }
 0x8d5   : > { %8524 = vrot.lane.b32.xlu0 %v17395_v18, %s15123_s21  ;;  %8516 = vrot.lane.b32.xlu1 %v8119_v48, %s15123_s21 }
 0x8d9   : > { %8073 = vrot.lane.b32.xlu0 %v8050_v0, %s15116_s29 }
 0x91f   : > { %v8060_v54 = vpop.permute.xlu0 %8059 }
 0x920   : > { %8089 = vst.msk [vmem:[#allocation2 + $0x10] sm:$0xff] %vm2251_vm10, %v8060_v54 }
 0x921   : > { %v8062_v1 = vpop.permute.xlu1 %8061 }
 0x922   : > { %v17943_v24 = vsel %vm2236_vm11, %v8060_v54, %v8062_v1 }
 0x923   : > { %v8068_v2 = vpop.permute.xlu0 %8067  ;;  %8139 = vrot.lane.b32.xlu0 %v17943_v24, %s15110_s19 }
 0x924   : > { %8093 = vst.msk [vmem:[#allocation2 + $0x50] sm:$0xff] %vm2251_vm10, %v8068_v2 }
 0x925   : > { %v8070_v51 = vpop.permute.xlu1 %8069 }
 0x926   : > { %v8078_v60 = vsel %vm2236_vm11, %v8068_v2, %v8070_v51 }
 0x927   : > { %v8120_v18 = vld [vmem:[#allocation2 + $0x10] sm:$0xff]  ;;  %8329 = vrot.lane.b32.xlu0 %v17943_v24, %s15122_s30 }
 0x928   : > { %8137 = vrot.lane.b32.xlu1 %v8120_v18, %s15110_s19 }
 0x92b   : > { %8520 = vrot.lane.b32.xlu0 %v17943_v24, %s15123_s21  ;;  %v8719_v49 = vld [vmem:[#allocation2 + $0x50] sm:$0xff] }
 0x92c   : > { %8327 = vrot.lane.b32.xlu1 %v8120_v18, %s15122_s30 }
 0x930   : > { %8518 = vrot.lane.b32.xlu1 %v8120_v18, %s15123_s21 }
 0x934   : > { %8731 = vrot.lane.b32.xlu1 %v8120_v18, %s15122_s30 }
 0x937   : > { %v8064_v20 = vpop.permute.xlu1 %8063 }
 0x938   : > { %v8076_v19 = vsel %vm2236_vm11, %v8062_v1, %v8064_v20  ;;  %8929 = vrot.lane.b32.xlu1 %v8120_v18, %s15110_s19 }
 0x939   : > { %8735 = vrot.lane.b32.xlu0 %v8076_v19, %s15122_s30 }
 0x93b   : > { %v8066_v41 = vpop.permute.xlu1 %8065  ;;  %v8072_v7 = vpop.permute.xlu0 %8071 }
 0x93c   : > { %v8077_v10 = vsel %vm2236_vm11, %v8064_v20, %v8066_v41  ;;  %9127 = vrot.lane.b32.xlu1 %v8120_v18, %s15123_s21  ;;  %v8079_v35 = vsel %vm2236_vm11, %v8070_v51, %v8072_v7  ;;  %v18123_v18 = vld [vmem:[%s19691_s1 + $0x240] sm:$0xff]  ;;  %v18137_v41 = vld [vmem:[%s19691_s1 + $0x248] sm:$0xff] }
 0x93d   : > { %8092 = vst.msk [vmem:[#allocation2 + $0x28] sm:$0xff] %vm1140_vm5, %v8077_v10  ;;  %8141 = vrot.lane.b32.xlu0 %v8076_v19, %s15110_s19 }
 0x93f   : > { %v17963_v3 = vpop.permute.xlu0 %8143  ;;  %v8136_v34 = vpop.permute.xlu1 %8135 }
 0x940   : > { %8733 = vrot.lane.b32.xlu1 %v17943_v24, %s15122_s30 }
 0x941   : > { %8933 = vrot.lane.b32.xlu0 %v8076_v19, %s15110_s19 }
 0x943   : > { %v17968_v56 = vpop.permute.xlu0 %8333  ;;  %v18018_v21 = vpop.permute.xlu1 %8325 }
 0x944   : > { %8931 = vrot.lane.b32.xlu1 %v17943_v24, %s15110_s19  ;;  %v9327_v42 = vld [vmem:[#allocation2 + $0x28] sm:$0xff] }
 0x945   : > { %8331 = vrot.lane.b32.xlu0 %v8076_v19, %s15122_s30 }
 0x947   : > { %v17973_v9 = vpop.permute.xlu0 %8524  ;;  %v18023_v12 = vpop.permute.xlu1 %8516 }
 0x948   : > { %9129 = vrot.lane.b32.xlu1 %v17943_v24, %s15123_s21 }
 0x949   : > { %9131 = vrot.lane.b32.xlu0 %v8076_v19, %s15123_s21 }
 0x94b   : > { %v8074_v57 = vpop.permute.xlu0 %8073 }
 0x94c   : > { %8937 = vrot.lane.b32.xlu1 %v8719_v49, %s15110_s19  ;;  %v8080_v29 = vsel %vm2236_vm11, %v8072_v7, %v8074_v57  ;;  %v18156_v57 = vld [vmem:[%s19691_s1 + $0x260] sm:$0xff] }
 0x94d   : > { %8096 = vst.msk [vmem:[#allocation2 + $0x68] sm:$0xff] %vm1140_vm5, %v8080_v29  ;;  %8522 = vrot.lane.b32.xlu0 %v8076_v19, %s15123_s21 }
 0x950   : > { %9135 = vrot.lane.b32.xlu1 %v8719_v49, %s15123_s21 }
 0x951   : > { %8145 = vrot.lane.b32.xlu0 %v8719_v49, %s15110_s19 }
 0x954   : > { %8147 = vrot.lane.b32.xlu1 %v8078_v60, %s15110_s19  ;;  %v9331_v11 = vld [vmem:[#allocation2 + $0x68] sm:$0xff] }
 0x955   : > { %8335 = vrot.lane.b32.xlu0 %v8719_v49, %s15122_s30 }
 0x958   : > { %9343 = vrot.lane.b32.xlu1 %v8076_v19, %s15122_s30 }
 0x959   : > { %8526 = vrot.lane.b32.xlu0 %v8719_v49, %s15123_s21 }
 0x95c   : > { %8337 = vrot.lane.b32.xlu1 %v8078_v60, %s15122_s30 }
 0x95d   : > { %8739 = vrot.lane.b32.xlu0 %v8719_v49, %s15122_s30 }
 0x960   : > { %9341 = vrot.lane.b32.xlu1 %v17943_v24, %s15122_s30 }
 0x961   : > { %9345 = vrot.lane.b32.xlu0 %v9327_v42, %s15122_s30 }
 0x964   : > { %8528 = vrot.lane.b32.xlu1 %v8078_v60, %s15123_s21 }
 0x965   : > { %8737 = vrot.lane.b32.xlu0 %v9327_v42, %s15122_s30 }
 0x968   : > { %9541 = vrot.lane.b32.xlu1 %v8076_v19, %s15110_s19 }
 0x969   : > { %9543 = vrot.lane.b32.xlu0 %v9327_v42, %s15110_s19 }
 0x96c   : > { %8743 = vrot.lane.b32.xlu1 %v8079_v35, %s15122_s30 }
 0x96d   : > { %8741 = vrot.lane.b32.xlu0 %v8078_v60, %s15122_s30 }
 0x970   : > { %9539 = vrot.lane.b32.xlu1 %v17943_v24, %s15110_s19 }
 0x971   : > { %8935 = vrot.lane.b32.xlu0 %v9327_v42, %s15110_s19 }
 0x974   : > { %8939 = vrot.lane.b32.xlu1 %v8078_v60, %s15110_s19 }
 0x975   : > { %8149 = vrot.lane.b32.xlu0 %v8079_v35, %s15110_s19 }
 0x978   : > { %9739 = vrot.lane.b32.xlu1 %v8076_v19, %s15123_s21 }
 0x979   : > { %8941 = vrot.lane.b32.xlu0 %v8079_v35, %s15110_s19 }
 0x97c   : > { %9137 = vrot.lane.b32.xlu1 %v8078_v60, %s15123_s21 }
 0x97d   : > { %8339 = vrot.lane.b32.xlu0 %v8079_v35, %s15122_s30 }
 0x980   : > { %9351 = vrot.lane.b32.xlu1 %v8079_v35, %s15122_s30 }
 0x981   : > { %9139 = vrot.lane.b32.xlu0 %v8079_v35, %s15123_s21 }
 0x984   : > { %9349 = vrot.lane.b32.xlu1 %v8078_v60, %s15122_s30 }
 0x985   : > { %8530 = vrot.lane.b32.xlu0 %v8079_v35, %s15123_s21 }
 0x988   : > { %9549 = vrot.lane.b32.xlu1 %v8079_v35, %s15110_s19 }
 0x989   : > { %9353 = vrot.lane.b32.xlu0 %v9331_v11, %s15122_s30 }
 0x98c   : > { %9547 = vrot.lane.b32.xlu1 %v8078_v60, %s15110_s19 }
 0x98d   : > { %8745 = vrot.lane.b32.xlu0 %v9331_v11, %s15122_s30 }
 0x990   : > { %9747 = vrot.lane.b32.xlu1 %v8079_v35, %s15123_s21 }
 0x991   : > { %9551 = vrot.lane.b32.xlu0 %v9331_v11, %s15110_s19 }
 0x994   : > { %9745 = vrot.lane.b32.xlu1 %v8078_v60, %s15123_s21 }
 0x995   : > { %8943 = vrot.lane.b32.xlu0 %v9331_v11, %s15110_s19  ;;  %v18029_v28 = vpop.permute.xlu0 %8139 }
 0x998   : > { %9737 = vrot.lane.b32.xlu1 %v17943_v24, %s15123_s21 }
 0x999   : > { %9749 = vrot.lane.b32.xlu0 %v9331_v11, %s15123_s21  ;;  %v18034_v22 = vpop.permute.xlu0 %8329 }
 0x99a   : > { %v8138_v45 = vpop.permute.xlu1 %8137 }
 0x99b   : > { %v8152_v40 = vsel %vm1140_vm5, %v8138_v45, %v18029_v28  ;;  %v8151_v23 = vsel %vm1140_vm5, %v8136_v34, %v8138_v45 }
 0x99c   : > { %9133 = vrot.lane.b32.xlu1 %v9327_v42, %s15123_s21 }
 0x99d   : > { %9741 = vrot.lane.b32.xlu0 %v9327_v42, %s15123_s21  ;;  %v18046_v6 = vpop.permute.xlu0 %8520  ;;  %v18171_v42 = vld [vmem:[%s19691_s1 + $0x268] sm:$0xff] }
 0x99e   : > { %v8328_v39 = vpop.permute.xlu1 %8327 }
 0x99f   : > { %v8343_v2 = vsel %vm8341_vm9, %v8328_v39, %v18034_v22  ;;  %v8342_v20 = vsel %vm8341_vm9, %v18018_v21, %v8328_v39 }
 0x9a0   : > { %9347 = vrot.lane.b32.xlu1 %v9328_v61, %s15122_s30 }
 0x9a1   : > { %9141 = vrot.lane.b32.xlu0 %v9331_v11, %s15123_s21 }
 0x9a2   : > { %v18037_v55 = vpop.permute.xlu1 %8518 }
 0x9a3   : > { %v8534_v49 = vsel %vm8532_vm12, %v18037_v55, %v18046_v6 }
 0x9a4   : > { %9545 = vrot.lane.b32.xlu1 %v9328_v61, %s15110_s19 }
 0x9a5   : > { %9355 = vrot.lane.b32.xlu0 %v18040_v38, %s15122_s30 }
 0x9a6   : > { %v18044_v13 = vpop.permute.xlu1 %8731 }
 0x9a8   : > { %9743 = vrot.lane.b32.xlu1 %v9328_v61, %s15123_s21  ;;  %v18189_v61 = vld [vmem:[%s19691_s1 + $0x270] sm:$0xff] }
 0x9a9   : > { %9553 = vrot.lane.b32.xlu0 %v18040_v38, %s15110_s19 }
 0x9aa   : > { %v18054_v8 = vpop.permute.xlu1 %8929 }
 0x9ab   : > { %v18056_v27 = vpop.permute.xlu0 %8735 }
 0x9ac   : > { %9937 = vperm.xlu1 %14945, %v14641_v53  }
 0x9ad   : > { %9751 = vrot.lane.b32.xlu0 %v18040_v38, %s15123_s21  ;;  %s19747_s21 = smov 89  }
 0x9ae   : > { %v18060_v32 = vpop.permute.xlu1 %9127 }
 0x9af   : > { %v18065_v58 = vpop.permute.xlu0 %8141 }
 0x9b1   : > { %9942 = vperm.xlu0 %14946, %v14642_v63   ;;  %v18202_v63 = vld [vmem:[%s19691_s1 + $0x278] sm:$0xff] }
 0x9b2   : > { %v18067_v52 = vpop.permute.xlu1 %8733 }
 0x9b3   : > { %v18069_v47 = vpop.permute.xlu0 %8933  ;;  %v8748_v45 = vsel %vm8341_vm9, %v18067_v52, %v18056_v27 }
 0x9b6   : > { %v18071_v31 = vpop.permute.xlu1 %8931 }
 0x9b7   : > { %v18073_v30 = vpop.permute.xlu0 %8331 }
 0x9ba   : > { %v18075_v59 = vpop.permute.xlu1 %9129 }
 0x9bb   : > { %v18077_v17 = vpop.permute.xlu0 %9131 }
 0x9be   : > { %v18079_v33 = vpop.permute.xlu1 %8937 }
 0x9bf   : > { %v18081_v14 = vpop.permute.xlu0 %8522 }
 0x9c2   : > { %v18083_v50 = vpop.permute.xlu1 %9135 }
 0x9c3   : > { %v8146_v36 = vpop.permute.xlu0 %8145 }
 0x9c4   : > { %v8154_v15 = vsel %vm1140_vm5, %v17963_v3, %v8146_v36 }
 0x9c6   : > { %v18085_v43 = vpop.permute.xlu1 %8147 }
 0x9c7   : > { %v8155_v44 = vsel %vm1140_vm5, %v8146_v36, %v18085_v43  ;;  %v8336_v46 = vpop.permute.xlu0 %8335 }
 0x9c8   : > { %8199 = vmatprep.subr.mxu0 %v8155_v44  ;;  %v8345_v24 = vsel %vm8341_vm9, %v17968_v56, %v8336_v46 }
 0x9c9   : > { %8200 = vmatpush1.msra.mxu0 %v8154_v15 }
 0x9ca   : > { %v18098_v48 = vpop.permute.xlu1 %9343  ;;  %8201 = vmatprep.subr.mxu0 %v8152_v40 }
 0x9cb   : > { %8202 = vmatpush1.msra.mxu0 %v8151_v23  ;;  %v8527_v4 = vpop.permute.xlu0 %8526 }
 0x9cc   : > { %14643 = vmatmul.mubr.msk.f32.vlgmr.msra.gmra.mxu0 %vm362_vm2, %v18096_v16  ;;  %v8536_v56 = vsel %vm8532_vm12, %v17973_v9, %v8527_v4  ;;  %v8533_v9 = vsel %vm8532_vm12, %v18023_v12, %v18037_v55  ;;  %v8747_v55 = vsel %vm8341_vm9, %v18044_v13, %v18067_v52  ;;  %v8153_v52 = vsel %vm1140_vm5, %v18029_v28, %v18065_v58 }
 0x9cd   : > { %8241 = vmatprep.mubr.f32.mxu0 %v18040_v38  ;;  %v8946_v28 = vsel %vm1140_vm5, %v18071_v31, %v18069_v47 }
 0x9ce   : > { %v18109_v0 = vpop.permute.xlu1 %8337 }
 0x9cf   : > { %v8346_v54 = vsel %vm8341_vm9, %v8336_v46, %v18109_v0  ;;  %v8740_v1 = vpop.permute.xlu0 %8739 }
 0x9d0   : > { %8390 = vmatprep.subr.mxu0 %v8346_v54  ;;  %14644 = vmatmul.mubr.msk.f32.gmra.mxu0 %vm362_vm2, %v18107_v5 }
 0x9d1   : > { %8391 = vmatpush1.msra.mxu0 %v8345_v24  ;;  %8426 = vmatprep.mubr.f32.mxu0 %v18040_v38  ;;  %v18270_v24 = vld [vmem:[%s19691_s1 + $0x290] sm:$0xff] }
 0x9d2   : > { %v18125_v51 = vpop.permute.xlu1 %9341  ;;  %8392 = vmatprep.subr.mxu0 %v8343_v2 }
 0x9d3   : > { %8393 = vmatpush1.msra.mxu0 %v8342_v20  ;;  %v18129_v19 = vpop.permute.xlu0 %9345  ;;  %v8535_v20 = vsel %vm8532_vm12, %v18046_v6, %v18081_v14 }
 0x9d4   : > { %14647 = vmatmul.mubr.msk.f32.vlgmr.msra.gmra.mxu0 %vm362_vm2, %v18123_v18 }
 0x9d5   : > { %8432 = vmatprep.mubr.f32.mxu0 %v18040_v38 }
 0x9d6   : > { %v18139_v7 = vpop.permute.xlu1 %8528 }
 0x9d7   : > { %v8537_v10 = vsel %vm8532_vm12, %v8527_v4, %v18139_v7  ;;  %v18143_v3 = vpop.permute.xlu0 %8737 }
 0x9d8   : > { %8581 = vmatprep.subr.mxu0 %v8537_v10  ;;  %14648 = vmatmul.mubr.msk.f32.gmra.mxu0 %vm362_vm2, %v18137_v41 }
 0x9d9   : > { %8582 = vmatpush1.msra.mxu0 %v8536_v56  ;;  %8617 = vmatprep.mubr.f32.mxu0 %v18040_v38  ;;  %v18309_v56 = vld [vmem:[%s19691_s1 + $0x2a0] sm:$0xff] }
 0x9da   : > { %v18158_v29 = vpop.permute.xlu1 %9541  ;;  %8583 = vmatprep.subr.mxu0 %v8534_v49  ;;  %v9357_v49 = vsel %vm8341_vm9, %v18125_v51, %v18098_v48 }
 0x9db   : > { %8584 = vmatpush1.msra.mxu0 %v8533_v9  ;;  %v18163_v60 = vpop.permute.xlu0 %9543 }
 0x9dc   : > { %14651 = vmatmul.mubr.msk.f32.vlgmr.msra.gmra.mxu0 %vm362_vm2, %v18156_v57 }
 0x9dd   : > { %8623 = vmatprep.mubr.f32.mxu0 %v18040_v38 }
 0x9de   : > { %v18173_v35 = vpop.permute.xlu1 %8743 }
 0x9df   : > { %v8742_v34 = vpop.permute.xlu0 %8741 }
 0x9e0   : > { %14652 = vmatmul.mubr.msk.f32.gmra.mxu0 %vm362_vm2, %v18171_v42  ;;  %v8751_v11 = vsel %vm8341_vm9, %v8742_v34, %v18173_v35  ;;  %v8750_v21 = vsel %vm8341_vm9, %v8740_v1, %v8742_v34  ;;  %v9556_v34 = vsel %vm1140_vm5, %v18158_v29, %v18163_v60 }
 0x9e1   : > { %8795 = vmatprep.subr.mxu0 %v8751_v11  ;;  %8831 = vmatprep.mubr.f32.mxu0 %v18040_v38 }
 0x9e2   : > { %v18181_v12 = vpop.permute.xlu1 %9539  ;;  %8796 = vmatpush1.msra.mxu0 %v8750_v21  ;;  %v18348_v21 = vld [vmem:[%s19691_s1 + $0x2b0] sm:$0xff] }
 0x9e3   : > { %8797 = vmatprep.subr.mxu0 %v8748_v45  ;;  %v18191_v39 = vpop.permute.xlu0 %8935  ;;  %v9555_v45 = vsel %vm1140_vm5, %v18181_v12, %v18158_v29 }
 0x9e4   : > { %8798 = vmatpush1.msra.mxu0 %v8747_v55  ;;  %v8947_v29 = vsel %vm1140_vm5, %v18069_v47, %v18191_v39 }
 0x9e5   : > { %14655 = vmatmul.mubr.msk.f32.vlgmr.msra.gmra.mxu0 %vm362_vm2, %v18189_v61 }
 0x9e6   : > { %v8940_v53 = vpop.permute.xlu1 %8939  ;;  %8837 = vmatprep.mubr.f32.mxu0 %v18040_v38 }
 0x9e7   : > { %v8150_v36 = vpop.permute.xlu0 %8149  ;;  %v8948_v15 = vsel %vm1140_vm5, %v18079_v33, %v8940_v53  ;;  %v8945_v33 = vsel %vm1140_vm5, %v18054_v8, %v18071_v31  ;;  %v18251_v8 = vld [vmem:[%s19691_s1 + $0x288] sm:$0xff] }
 0x9e8   : > { %8276 = vmatprep.subr.mxu1 %v8150_v36  ;;  %v8156_v44 = vsel %vm1140_vm5, %v18085_v43, %v8150_v36 }
 0x9e9   : > { %8277 = vmatpush1.msra.mxu1 %v8156_v44  ;;  %14656 = vmatmul.mubr.msk.f32.gmra.mxu0 %vm362_vm2, %v18202_v63  ;;  %v14639_v44 = vld [vmem:[%s19691_s1 + $0x2c0] sm:$0xff] }
 0x9ea   : > { %v18208_v13 = vpop.permute.xlu1 %9739  ;;  %8278 = vmatprep.subr.mxu1 %v18065_v58  ;;  %9029 = vmatprep.mubr.f32.mxu0 %v18040_v38 }
 0x9eb   : > { %8279 = vmatpush1.msra.mxu1 %v8153_v52  ;;  %v18215_v46 = vpop.permute.xlu0 %8941 }
 0x9ec   : > { %14645 = vmatmul.mubr.msk.f32.vlgmr.msra.gmra.mxu1 %vm362_vm2, %v18096_v16  ;;  %v8949_v43 = vsel %vm1140_vm5, %v8940_v53, %v18215_v46  ;;  %v18230_v16 = vld [vmem:[%s19691_s1 + $0x280] sm:$0xff]  ;;  %v18367_v53 = vld [vmem:[%s19691_s1 + $0x2b8] sm:$0xff] }
 0x9ed   : > { %8993 = vmatprep.subr.mxu0 %v8949_v43  ;;  %8318 = vmatprep.mubr.f32.mxu1 %v18040_v38 }
 0x9ee   : > { %v9138_v40 = vpop.permute.xlu1 %9137  ;;  %8994 = vmatpush1.msra.mxu0 %v8948_v15 }
 0x9ef   : > { %8995 = vmatprep.subr.mxu0 %v8946_v28  ;;  %v8340_v58 = vpop.permute.xlu0 %8339 }
 0x9f0   : > { %14646 = vmatmul.mubr.msk.f32.gmra.mxu1 %vm362_vm2, %v18107_v5  ;;  %8467 = vmatprep.subr.mxu1 %v8340_v58  ;;  %v8347_v23 = vsel %vm8341_vm9, %v18109_v0, %v8340_v58  ;;  %v8344_v5 = vsel %vm8341_vm9, %v18034_v22, %v18073_v30  ;;  %v9144_v0 = vsel %vm8532_vm12, %v18075_v59, %v18077_v17 }
 0x9f1   : > { %8996 = vmatpush1.msra.mxu0 %v8945_v33  ;;  %8468 = vmatpush1.msra.mxu1 %v8347_v23 }
 0x9f2   : > { %v9352_v4 = vpop.permute.xlu1 %9351  ;;  %14659 = vmatmul.mubr.msk.f32.vlgmr.msra.gmra.mxu0 %vm362_vm2, %v18230_v16  ;;  %8469 = vmatprep.subr.mxu1 %v18073_v30  ;;  %v9146_v30 = vsel %vm8532_vm12, %v18083_v50, %v9138_v40  ;;  %v9143_v50 = vsel %vm8532_vm12, %v18060_v32, %v18075_v59  ;;  %v18291_v32 = vld [vmem:[%s19691_s1 + $0x298] sm:$0xff] }
 0x9f3   : > { %8470 = vmatpush1.msra.mxu1 %v8344_v5  ;;  %8503 = vmatprep.mubr.f32.mxu1 %v18040_v38  ;;  %v18246_v54 = vpop.permute.xlu0 %9139 }
 0x9f4   : > { %14649 = vmatmul.mubr.msk.f32.vlgmr.msra.gmra.mxu1 %vm362_vm2, %v18123_v18  ;;  %9035 = vmatprep.mubr.f32.mxu0 %v18040_v38  ;;  %v9147_v31 = vsel %vm8532_vm12, %v9138_v40, %v18246_v54 }
 0x9f5   : > { %9191 = vmatprep.subr.mxu0 %v9147_v31  ;;  %8509 = vmatprep.mubr.f32.mxu1 %v18040_v38 }
 0x9f6   : > { %v9350_v22 = vpop.permute.xlu1 %9349  ;;  %14660 = vmatmul.mubr.msk.f32.gmra.mxu0 %vm362_vm2, %v18251_v8 }
 0x9f7   : > { %9192 = vmatpush1.msra.mxu0 %v9146_v30  ;;  %v8531_v1 = vpop.permute.xlu0 %8530  ;;  %9227 = vmatprep.mubr.f32.mxu0 %v18040_v38  ;;  %v9360_v6 = vsel %vm8341_vm9, %v9350_v22, %v9352_v4 }
 0x9f8   : > { %9193 = vmatprep.subr.mxu0 %v9144_v0  ;;  %14650 = vmatmul.mubr.msk.f32.gmra.mxu1 %vm362_vm2, %v18137_v41  ;;  %v8538_v2 = vsel %vm8532_vm12, %v18139_v7, %v8531_v1  ;;  %v9358_v7 = vsel %vm8341_vm9, %v18098_v48, %v18129_v19  ;;  %v8749_v48 = vsel %vm8341_vm9, %v18056_v27, %v18143_v3 }
 0x9f9   : > { %8658 = vmatprep.subr.mxu1 %v8531_v1  ;;  %9194 = vmatpush1.msra.mxu0 %v9143_v50 }
 0x9fa   : > { %v9550_v18 = vpop.permute.xlu1 %9549  ;;  %8659 = vmatpush1.msra.mxu1 %v8538_v2  ;;  %14663 = vmatmul.mubr.msk.f32.vlgmr.msra.gmra.mxu0 %vm362_vm2, %v18270_v24 }
 0x9fb   : > { %8660 = vmatprep.subr.mxu1 %v18081_v14  ;;  %8694 = vmatprep.mubr.f32.mxu1 %v18040_v38  ;;  %v18286_v41 = vpop.permute.xlu0 %9353 }
 0x9fc   : > { %8661 = vmatpush1.msra.mxu1 %v8535_v20  ;;  %9233 = vmatprep.mubr.f32.mxu0 %v18040_v38  ;;  %v9361_v59 = vsel %vm8341_vm9, %v9352_v4, %v18286_v41 }
 0x9fd   : > { %14653 = vmatmul.mubr.msk.f32.vlgmr.msra.gmra.mxu1 %vm362_vm2, %v18156_v57  ;;  %9405 = vmatprep.subr.mxu0 %v9361_v59 }
 0x9fe   : > { %v9548_v14 = vpop.permute.xlu1 %9547  ;;  %14664 = vmatmul.mubr.msk.f32.gmra.mxu0 %vm362_vm2, %v18291_v32  ;;  %8700 = vmatprep.mubr.f32.mxu1 %v18040_v38 }
 0x9ff   : > { %9406 = vmatpush1.msra.mxu0 %v9360_v6  ;;  %v8746_v10 = vpop.permute.xlu0 %8745  ;;  %9441 = vmatprep.mubr.f32.mxu0 %v18040_v38  ;;  %v9558_v27 = vsel %vm1140_vm5, %v9548_v14, %v9550_v18 }
 0xa00   : > { %9407 = vmatprep.subr.mxu0 %v9358_v7  ;;  %8872 = vmatprep.subr.mxu1 %v8746_v10  ;;  %v8752_v57 = vsel %vm8341_vm9, %v18173_v35, %v8746_v10 }
 0xa01   : > { %14654 = vmatmul.mubr.msk.f32.gmra.mxu1 %vm362_vm2, %v18171_v42  ;;  %9408 = vmatpush1.msra.mxu0 %v9357_v49  ;;  %v18330_v42 = vld [vmem:[%s19691_s1 + $0x2a8] sm:$0xff] }
 0xa02   : > { %v9748_v9 = vpop.permute.xlu1 %9747  ;;  %8873 = vmatpush1.msra.mxu1 %v8752_v57  ;;  %14667 = vmatmul.mubr.msk.f32.vlgmr.msra.gmra.mxu0 %vm362_vm2, %v18309_v56 }
 0xa03   : > { %8874 = vmatprep.subr.mxu1 %v18143_v3  ;;  %8908 = vmatprep.mubr.f32.mxu1 %v18040_v38  ;;  %v18325_v51 = vpop.permute.xlu0 %9551 }
 0xa04   : > { %8875 = vmatpush1.msra.mxu1 %v8749_v48  ;;  %9447 = vmatprep.mubr.f32.mxu0 %v18040_v38  ;;  %v9559_v35 = vsel %vm1140_vm5, %v9550_v18, %v18325_v51 }
 0xa05   : > { %14657 = vmatmul.mubr.msk.f32.vlgmr.msra.gmra.mxu1 %vm362_vm2, %v18189_v61  ;;  %9603 = vmatprep.subr.mxu0 %v9559_v35 }
 0xa06   : > { %v9746_v3 = vpop.permute.xlu1 %9745  ;;  %14668 = vmatmul.mubr.msk.f32.gmra.mxu0 %vm362_vm2, %v18330_v42  ;;  %8914 = vmatprep.mubr.f32.mxu1 %v18040_v38 }
 0xa07   : > { %9604 = vmatpush1.msra.mxu0 %v9558_v27  ;;  %v8944_v11 = vpop.permute.xlu0 %8943  ;;  %9639 = vmatprep.mubr.f32.mxu0 %v18040_v38  ;;  %v9756_v36 = vsel %vm8532_vm12, %v9746_v3, %v9748_v9 }
 0xa08   : > { %9605 = vmatprep.subr.mxu0 %v9556_v34  ;;  %9070 = vmatprep.subr.mxu1 %v8944_v11  ;;  %v8950_v61 = vsel %vm1140_vm5, %v18215_v46, %v8944_v11 }
 0xa09   : > { %14658 = vmatmul.mubr.msk.f32.gmra.mxu1 %vm362_vm2, %v18202_v63  ;;  %9606 = vmatpush1.msra.mxu0 %v9555_v45 }
 0xa0a   : > { %9071 = vmatpush1.msra.mxu1 %v8950_v61  ;;  %14671 = vmatmul.mubr.msk.f32.vlgmr.msra.gmra.mxu0 %vm362_vm2, %v18348_v21  ;;  %v9738_v55 = vpop.permute.xlu1 %9737 }
 0xa0b   : > { %9072 = vmatprep.subr.mxu1 %v18191_v39  ;;  %9106 = vmatprep.mubr.f32.mxu1 %v18040_v38  ;;  %v9750_v12 = vpop.permute.xlu0 %9749  ;;  %v9753_v52 = vsel %vm8532_vm12, %v9738_v55, %v18208_v13 }
 0xa0c   : > { %9073 = vmatpush1.msra.mxu1 %v8947_v29  ;;  %9645 = vmatprep.mubr.f32.mxu0 %v18040_v38  ;;  %v9757_v63 = vsel %vm8532_vm12, %v9748_v9, %v9750_v12 }
 0xa0d   : > { %14661 = vmatmul.mubr.msk.f32.vlgmr.msra.gmra.mxu1 %vm362_vm2, %v18230_v16  ;;  %9801 = vmatprep.subr.mxu0 %v9757_v63 }
 0xa0e   : > { %14672 = vmatmul.mubr.msk.f32.gmra.mxu0 %vm362_vm2, %v18367_v53  ;;  %9112 = vmatprep.mubr.f32.mxu1 %v18040_v38  ;;  %v9134_v46 = vpop.permute.xlu1 %9133 }
 0xa0f   : > { %9802 = vmatpush1.msra.mxu0 %v9756_v36  ;;  %v9742_v47 = vpop.permute.xlu0 %9741  ;;  %9837 = vmatprep.mubr.f32.mxu0 %v18040_v38  ;;  %v9145_v40 = vsel %vm8532_vm12, %v18077_v17, %v9134_v46 }
 0xa10   : > { %v9754_v39 = vsel %vm8532_vm12, %v18208_v13, %v9742_v47  ;;  %v14640_v13 = vld [vmem:[%s19691_s1 + $0x2c8] sm:$0xff] }
 0xa11   : > { %14662 = vmatmul.mubr.msk.f32.gmra.mxu1 %vm362_vm2, %v18251_v8  ;;  %9803 = vmatprep.subr.mxu0 %v9754_v39 }
 0xa12   : > { %9804 = vmatpush1.msra.mxu0 %v9753_v52  ;;  %9304 = vmatprep.mubr.f32.mxu1 %v18040_v38  ;;  %v9348_v28 = vpop.permute.xlu1 %9347 }
 0xa13   : > { %14675 = vmatmul.mubr.msk.f32.vlgmr.msra.gmra.mxu0 %vm362_vm2, %v14639_v44  ;;  %v9142_v43 = vpop.permute.xlu0 %9141  ;;  %v9359_v33 = vsel %vm8341_vm9, %v18129_v19, %v9348_v28 }
 0xa14   : > { %9268 = vmatprep.subr.mxu1 %v9142_v43  ;;  %v9148_v15 = vsel %vm8532_vm12, %v18246_v54, %v9142_v43  ;;  %9843 = vmatprep.mubr.f32.mxu0 %v18040_v38 }
 0xa15   : > { %9269 = vmatpush1.msra.mxu1 %v9148_v15 }
 0xa16   : > { %9270 = vmatprep.subr.mxu1 %v9134_v46  ;;  %v9546_v23 = vpop.permute.xlu1 %9545 }
 0xa17   : > { %9271 = vmatpush1.msra.mxu1 %v9145_v40  ;;  %14676 = vmatmul.mubr.msk.f32.gmra.mxu0 %vm362_vm2, %v14640_v13  ;;  %v9356_v58 = vpop.permute.xlu0 %9355  ;;  %v9557_v19 = vsel %vm1140_vm5, %v18163_v60, %v9546_v23 }
 0xa18   : > { %14665 = vmatmul.mubr.msk.f32.vlgmr.msra.gmra.mxu1 %vm362_vm2, %v18270_v24  ;;  %9482 = vmatprep.subr.mxu1 %v9356_v58  ;;  %v9362_v16 = vsel %vm8341_vm9, %v18286_v41, %v9356_v58 }
 0xa19   : > { %9483 = vmatpush1.msra.mxu1 %v9362_v16  ;;  %9310 = vmatprep.mubr.f32.mxu1 %v18040_v38 }
 0xa1a   : > { %9484 = vmatprep.subr.mxu1 %v9348_v28  ;;  %10153 = vmatprep.mubr.f32.mxu0 %v18040_v38  ;;  %v9744_v54 = vpop.permute.xlu1 %9743 }
 0xa1b   : > { %9485 = vmatpush1.msra.mxu1 %v9359_v33  ;;  %v9554_v17 = vpop.permute.xlu0 %9553  ;;  %v9755_v60 = vsel %vm8532_vm12, %v9742_v47, %v9744_v54 }
 0xa1c   : > { %14666 = vmatmul.mubr.msk.f32.gmra.mxu1 %vm362_vm2, %v18291_v32  ;;  %9680 = vmatprep.subr.mxu1 %v9554_v17  ;;  %v9560_v4 = vsel %vm1140_vm5, %v18325_v51, %v9554_v17 }
 0xa1d   : > { %9518 = vmatprep.mubr.f32.mxu1 %v18040_v38 }
 0xa1f   : > { %v9752_v5 = vpop.permute.xlu0 %9751 }
 0xa20   : > { %14669 = vmatmul.mubr.msk.f32.vlgmr.msra.gmra.mxu1 %vm362_vm2, %v18309_v56  ;;  %v9758_v8 = vsel %vm8532_vm12, %v9750_v12, %v9752_v5 }
 0xa21   : > { %9681 = vmatpush1.msra.mxu1 %v9560_v4  ;;  %9524 = vmatprep.mubr.f32.mxu1 %v18040_v38 }
 0xa22   : > { %9682 = vmatprep.subr.mxu1 %v9546_v23 }
 0xa23   : > { %9683 = vmatpush1.msra.mxu1 %v9557_v19 }
 0xa24   : > { %14670 = vmatmul.mubr.msk.f32.gmra.mxu1 %vm362_vm2, %v18330_v42  ;;  %9878 = vmatprep.subr.mxu1 %v9752_v5 }
 0xa25   : > { %9716 = vmatprep.mubr.f32.mxu1 %v18040_v38 }
 0xa28   : > { %14673 = vmatmul.mubr.msk.f32.vlgmr.msra.gmra.mxu1 %vm362_vm2, %v18348_v21 }
 0xa29   : > { %9879 = vmatpush1.msra.mxu1 %v9758_v8  ;;  %9722 = vmatprep.mubr.f32.mxu1 %v18040_v38 }
 0xa2a   : > { %9880 = vmatprep.subr.mxu1 %v9744_v54 }
 0xa2b   : > { %9881 = vmatpush1.msra.mxu1 %v9755_v60 }
 0xa2c   : > { %14674 = vmatmul.mubr.msk.f32.gmra.mxu1 %vm362_vm2, %v18367_v53 }
 0xa2d   : > { %9914 = vmatprep.mubr.f32.mxu1 %v18040_v38 }
 0xa30   : > { %14677 = vmatmul.mubr.msk.f32.vlgmr.msra.gmra.mxu1 %vm362_vm2, %v14639_v44 }
 0xa31   : > { %9920 = vmatprep.mubr.f32.mxu1 %v18040_v38 }
 0xa34   : > { %14678 = vmatmul.mubr.msk.f32.gmra.mxu1 %vm362_vm2, %v14640_v13 }
 0xa35   : > { %10230 = vmatprep.mubr.f32.mxu1 %v18040_v38 }
 0xa8c   : > { %v8237_v31 = vpop.f32.mrf.mxu0 }
 0xa8e   : > { %v8239_v22 = vpop.f32.mrf.mxu0 }
 0xa90   : > { %v8243_v30 = vpop.f32.mrf.mxu0 }
 0xa92   : > { %v8245_v0 = vpop.f32.mrf.mxu0 }
 0xa94   : > { %v8428_v1 = vpop.f32.mrf.mxu0 }
 0xa95   : > { %v8429_v36 = vadd.f32 %v8428_v1, %v8237_v31 }
 0xa96   : > { %v8430_v24 = vpop.f32.mrf.mxu0 }
 0xa97   : > { %v8431_v44 = vadd.f32 %v8430_v24, %v8239_v22 }
 0xa98   : > { %v8434_v50 = vpop.f32.mrf.mxu0 }
 0xa99   : > { %v8435_v43 = vadd.f32 %v8434_v50, %v8243_v30 }
 0xa9a   : > { %v8436_v2 = vpop.f32.mrf.mxu0 }
 0xa9b   : > { %v8437_v28 = vadd.f32 %v8436_v2, %v8245_v0 }
 0xa9c   : > { %v8619_v18 = vpop.f32.mrf.mxu0 }
 0xa9d   : > { %v8707_v15 = vadd.f32 %v8619_v18, %v8429_v36 }
 0xa9e   : > { %v8621_v20 = vpop.f32.mrf.mxu0 }
 0xa9f   : > { %v8708_v58 = vadd.f32 %v8621_v20, %v8431_v44 }
 0xaa0   : > { %v8625_v41 = vpop.f32.mrf.mxu0 }
 0xaa1   : > { %v8711_v23 = vadd.f32 %v8625_v41, %v8435_v43 }
 0xaa2   : > { %v8627_v32 = vpop.f32.mrf.mxu0 }
 0xaa3   : > { %v8712_v8 = vadd.f32 %v8627_v32, %v8437_v28 }
 0xaa5   : > { %v8833_v59 = vpop.f32.mrf.mxu0 }
 0xaa6   : > { %v8921_v16 = vadd.f32 %v8833_v59, %v8707_v15 }
 0xaa7   : > { %v8835_v6 = vpop.f32.mrf.mxu0 }
 0xaa8   : > { %v8922_v4 = vadd.f32 %v8835_v6, %v8708_v58 }
 0xaa9   : > { %v8839_v14 = vpop.f32.mrf.mxu0 }
 0xaaa   : > { %v8925_v60 = vadd.f32 %v8839_v14, %v8711_v23 }
 0xaab   : > { %v8841_v56 = vpop.f32.mrf.mxu0 }
 0xaac   : > { %v18431_v7 = vpop.f32.mrf.mxu1  ;;  %v8926_v24 = vadd.f32 %v8841_v56, %v8712_v8 }
 0xaae   : > { %v18433_v10 = vpop.f32.mrf.mxu1 }
 0xab0   : > { %v18435_v49 = vpop.f32.mrf.mxu1 }
 0xab2   : > { %v9031_v57 = vpop.f32.mrf.mxu0  ;;  %v18437_v9 = vpop.f32.mrf.mxu1 }
 0xab3   : > { %v9119_v19 = vadd.f32 %v9031_v57, %v8921_v16 }
 0xab4   : > { %v9033_v48 = vpop.f32.mrf.mxu0  ;;  %v18439_v51 = vpop.f32.mrf.mxu1 }
 0xab5   : > { %v9120_v31 = vadd.f32 %v9033_v48, %v8922_v4  ;;  %v18467_v48 = vpop.permute.xlu1 %9937 }
 0xab6   : > { %v9037_v42 = vpop.f32.mrf.mxu0  ;;  %v18441_v35 = vpop.f32.mrf.mxu1 }
 0xab7   : > { %v9123_v0 = vadd.f32 %v9037_v42, %v8925_v60 }
 0xab8   : > { %v9039_v27 = vpop.f32.mrf.mxu0  ;;  %v18443_v3 = vpop.f32.mrf.mxu1 }
 0xab9   : > { %v9124_v20 = vadd.f32 %v9039_v27, %v8926_v24 }
 0xaba   : > { %v9229_v34 = vpop.f32.mrf.mxu0  ;;  %v18445_v11 = vpop.f32.mrf.mxu1 }
 0xabb   : > { %v9317_v22 = vadd.f32 %v9229_v34, %v9119_v19 }
 0xabc   : > { %v9231_v21 = vpop.f32.mrf.mxu0 }
 0xabd   : > { %v18447_v45 = vpop.f32.mrf.mxu1  ;;  %v9318_v50 = vadd.f32 %v9231_v21, %v9120_v31 }
 0xabe   : > { %v9235_v61 = vpop.f32.mrf.mxu0 }
 0xabf   : > { %v18449_v55 = vpop.f32.mrf.mxu1  ;;  %v9321_v59 = vadd.f32 %v9235_v61, %v9123_v0 }
 0xac0   : > { %v9237_v29 = vpop.f32.mrf.mxu0 }
 0xac1   : > { %v18451_v12 = vpop.f32.mrf.mxu1  ;;  %v9322_v44 = vadd.f32 %v9237_v29, %v9124_v20  ;;  %v18471_v29 = vpop.permute.xlu0 %9942 }
 0xac2   : > { %v9443_v53 = vpop.f32.mrf.mxu0 }
 0xac3   : > { %v18453_v63 = vpop.f32.mrf.mxu1  ;;  %v9531_v2 = vadd.f32 %v9443_v53, %v9317_v22 }
 0xac4   : > { %v9445_v47 = vpop.f32.mrf.mxu0 }
 0xac5   : > { %v18455_v39 = vpop.f32.mrf.mxu1  ;;  %v9532_v41 = vadd.f32 %v9445_v47, %v9318_v50 }
 0xac6   : > { %v9449_v52 = vpop.f32.mrf.mxu0 }
 0xac7   : > { %v18457_v46 = vpop.f32.mrf.mxu1  ;;  %v9535_v43 = vadd.f32 %v9449_v52, %v9321_v59  ;;  %v8508_v59 = vadd.f32 %v18441_v35, %v18433_v10 }
 0xac8   : > { %v9451_v13 = vpop.f32.mrf.mxu0 }
 0xac9   : > { %v18459_v40 = vpop.f32.mrf.mxu1  ;;  %v9536_v15 = vadd.f32 %v9451_v13, %v9322_v44  ;;  %v8710_v44 = vadd.f32 %v18449_v55, %v8508_v59 }
 0xaca   : > { %v9641_v33 = vpop.f32.mrf.mxu0 }
 0xacb   : > { %v18461_v17 = vpop.f32.mrf.mxu1  ;;  %v9729_v6 = vadd.f32 %v9641_v33, %v9531_v2 }
 0xacc   : > { %v9643_v5 = vpop.f32.mrf.mxu0 }
 0xacd   : > { %v18463_v54 = vpop.f32.mrf.mxu1  ;;  %v9730_v32 = vadd.f32 %v9643_v5, %v9532_v41 }
 0xace   : > { %v9647_v30 = vpop.f32.mrf.mxu0 }
 0xacf   : > { %v18465_v1 = vpop.f32.mrf.mxu1  ;;  %v9733_v28 = vadd.f32 %v9647_v30, %v9535_v43 }
 0xad0   : > { %v9649_v18 = vpop.f32.mrf.mxu0 }
 0xad1   : > { %v9114_v57 = vpop.f32.mrf.mxu1  ;;  %v9734_v27 = vadd.f32 %v9649_v18, %v9536_v15  ;;  %v8506_v18 = vadd.f32 %v18439_v51, %v18431_v7  ;;  %v8514_v7 = vadd.f32 %v18445_v11, %v18437_v9 }
 0xad3   : > { %v9839_v36 = vpop.f32.mrf.mxu0  ;;  %v9116_v56 = vpop.f32.mrf.mxu1  ;;  %v8709_v41 = vadd.f32 %v18447_v45, %v8506_v18  ;;  %v8714_v45 = vadd.f32 %v18453_v63, %v8514_v7 }
 0xad4   : > { %v9927_v14 = vadd.f32 %v9839_v36, %v9729_v6  ;;  %v8512_v36 = vadd.f32 %v18443_v3, %v18435_v49 }
 0xad5   : > { %v9841_v34 = vpop.f32.mrf.mxu0  ;;  %v8923_v43 = vadd.f32 %v18455_v39, %v8709_v41  ;;  %v8928_v39 = vadd.f32 %v18461_v17, %v8714_v45  ;;  %v14698_v45 = vld [vmem:[%s19692_s2 + $0x58] sm:$0xff] }
 0xad6   : > { %v9945_v42 = vadd.f32 %v18467_v48, %v9927_v14  ;;  %v9928_v21 = vadd.f32 %v9841_v34, %v9730_v32  ;;  %v8713_v51 = vadd.f32 %v18451_v12, %v8512_v36  ;;  %v8924_v14 = vadd.f32 %v18457_v46, %v8710_v44 }
 0xad7   : > { %v9845_v53 = vpop.f32.mrf.mxu0  ;;  %v9121_v10 = vadd.f32 %v18463_v54, %v8923_v43  ;;  %v9126_v12 = vadd.f32 %v9116_v56, %v8928_v39 }
 0xad8   : > { %v9953_v61 = vmax.f32 %v9945_v42, 0.0  ;;  %v9946_v47 = vadd.f32 %v18467_v48, %v9928_v21  ;;  %v9931_v58 = vadd.f32 %v9845_v53, %v9733_v28  ;;  %v9306_v16 = vpop.f32.mrf.mxu1  ;;  %v8927_v34 = vadd.f32 %v18459_v40, %v8713_v51 }
 0xad9   : > { %v9847_v52 = vpop.f32.mrf.mxu0  ;;  %v9122_v49 = vadd.f32 %v18465_v1, %v8924_v14  ;;  %v9319_v3 = vadd.f32 %v9306_v16, %v9121_v10 }
 0xada   : > { %v9961_v33 = vmul.f32 %v9953_v61, %v15815_v26  ;;  %v9954_v23 = vmax.f32 %v9946_v47, 0.0  ;;  %v9949_v13 = vadd.f32 %v18471_v29, %v9931_v58  ;;  %v9932_v4 = vadd.f32 %v9847_v52, %v9734_v27  ;;  %v9308_v19 = vpop.f32.mrf.mxu1 }
 0xadb   : > { %v9125_v15 = vadd.f32 %v9114_v57, %v8927_v34  ;;  %v9320_v28 = vadd.f32 %v9308_v19, %v9122_v49  ;;  %v14697_v34 = vld [vmem:[%s19692_s2 + $0x50] sm:$0xff] }
 0xadc   : > { %v9957_v5 = vmax.f32 %v9949_v13, 0.0  ;;  %v9950_v8 = vadd.f32 %v18471_v29, %v9932_v4  ;;  %9977 = vrot.lane.b32.xlu1 %v9961_v33, %s15116_s29  ;;  %v9312_v60 = vpop.f32.mrf.mxu1  ;;  %v9962_v31 = vmul.f32 %v9954_v23, %v15849_v25 }
 0xadd   : > { %v9323_v42 = vadd.f32 %v9312_v60, %v9125_v15 }
 0xade   : > { %v9965_v22 = vmul.f32 %v9957_v5, %v15815_v26  ;;  %v9958_v30 = vmax.f32 %v9950_v8, 0.0  ;;  %v9314_v24 = vpop.f32.mrf.mxu1 }
 0xadf   : > { %v9324_v53 = vadd.f32 %v9314_v24, %v9126_v12  ;;  %v14977_v24 = vpack.i.bf16 %v18040_v38, %v18040_v38 }
 0xae0   : > { %9979 = vrot.lane.b32.xlu1 %v9962_v31, %s15116_s29  ;;  %v9520_v0 = vpop.f32.mrf.mxu1  ;;  %9985 = vrot.lane.b32.xlu0 %v9965_v22, %s15116_s29  ;;  %v9966_v50 = vmul.f32 %v9958_v30, %v15849_v25 }
 0xae1   : > { %v9533_v9 = vadd.f32 %v9520_v0, %v9319_v3 }
 0xae2   : > { %v9522_v2 = vpop.f32.mrf.mxu1 }
 0xae3   : > { %v9534_v46 = vadd.f32 %v9522_v2, %v9320_v28 }
 0xae4   : > { %v9526_v20 = vpop.f32.mrf.mxu1  ;;  %9987 = vrot.lane.b32.xlu0 %v9966_v50, %s15116_s29 }
 0xae5   : > { %v9537_v27 = vadd.f32 %v9526_v20, %v9323_v42 }
 0xae6   : > { %v9528_v6 = vpop.f32.mrf.mxu1 }
 0xae7   : > { %v9538_v47 = vadd.f32 %v9528_v6, %v9324_v53 }
 0xae8   : > { %v9718_v32 = vpop.f32.mrf.mxu1 }
 0xae9   : > { %v9731_v21 = vadd.f32 %v9718_v32, %v9533_v9 }
 0xaea   : > { %v9720_v35 = vpop.f32.mrf.mxu1 }
 0xaeb   : > { %v9732_v63 = vadd.f32 %v9720_v35, %v9534_v46  ;;  %v18608_v35 = vld [vmem:[#allocation2 + $0x40] sm:$0xff] }
 0xaec   : > { %v9724_v55 = vpop.f32.mrf.mxu1  ;;  %19727 = vst [vmem:[#allocation13_spill] sm:$0xff] %v18608_v35 }
 0xaed   : > { %v9735_v1 = vadd.f32 %v9724_v55, %v9537_v27 }
 0xaee   : > { %v9726_v11 = vpop.f32.mrf.mxu1 }
 0xaef   : > { %v9736_v57 = vadd.f32 %v9726_v11, %v9538_v47 }
 0xaf0   : > { %v9916_v54 = vpop.f32.mrf.mxu1 }
 0xaf1   : > { %v9929_v61 = vadd.f32 %v9916_v54, %v9731_v21 }
 0xaf2   : > { %v9918_v40 = vpop.f32.mrf.mxu1 }
 0xaf3   : > { %v9947_v58 = vadd.f32 %v18467_v48, %v9929_v61  ;;  %v9930_v16 = vadd.f32 %v9918_v40, %v9732_v63  ;;  %v14681_v40 = vld [vmem:[%s19691_s1 + $0x2e0] sm:$0xff] }
 0xaf4   : > { %v9922_v17 = vpop.f32.mrf.mxu1 }
 0xaf5   : > { %v9955_v52 = vmax.f32 %v9947_v58, 0.0  ;;  %v9948_v33 = vadd.f32 %v18467_v48, %v9930_v16  ;;  %v9933_v56 = vadd.f32 %v9922_v17, %v9735_v1  ;;  %v14682_v17 = vld [vmem:[%s19691_s1 + $0x2e8] sm:$0xff] }
 0xaf6   : > { %v9924_v23 = vpop.f32.mrf.mxu1 }
 0xaf7   : > { %v9963_v13 = vmul.f32 %v9955_v52, %v15843_v37  ;;  %v9956_v4 = vmax.f32 %v9948_v33, 0.0  ;;  %v9951_v19 = vadd.f32 %v18471_v29, %v9933_v56  ;;  %v9934_v5 = vadd.f32 %v9924_v23, %v9736_v57 }
 0xaf9   : > { %v9959_v8 = vmax.f32 %v9951_v19, 0.0  ;;  %v9952_v60 = vadd.f32 %v18471_v29, %v9934_v5  ;;  %9981 = vrot.lane.b32.xlu1 %v9963_v13, %s15116_s29  ;;  %v9964_v31 = vmul.f32 %v9956_v4, %v15858_v62  ;;  %v14679_v4 = vld [vmem:[%s19691_s1 + $0x2d0] sm:$0xff] }
 0xafb   : > { %v9967_v22 = vmul.f32 %v9959_v8, %v15843_v37  ;;  %v9960_v30 = vmax.f32 %v9952_v60, 0.0 }
 0xafd   : > { %9983 = vrot.lane.b32.xlu1 %v9964_v31, %s15116_s29  ;;  %9989 = vrot.lane.b32.xlu0 %v9967_v22, %s15116_s29  ;;  %v9968_v48 = vmul.f32 %v9960_v30, %v15858_v62  ;;  %v14680_v22 = vld [vmem:[%s19691_s1 + $0x2d8] sm:$0xff] }
 0xb01   : > { %9991 = vrot.lane.b32.xlu0 %v9968_v48, %s15116_s29 }
 0xb05   : > { %14978 = vrot.lane.b32.xlu0 %v14977_v24, %s15110_s19 }
 0xb09   : > { %14983 = vrot.lane.b32.xlu0 %v14977_v24, %s15110_s19 }
 0xb0d   : > { %14988 = vrot.lane.b32.xlu0 %v14977_v24, %s15124_s12 }
 0xb4e   : > { %v9978_v29 = vpop.permute.xlu1 %9977 }
 0xb4f   : > { %10007 = vst.msk [vmem:[#allocation3 + $0x10] sm:$0xff] %vm2251_vm10, %v9978_v29 }
 0xb52   : > { %v9986_v0 = vpop.permute.xlu0 %9985  ;;  %v9980_v18 = vpop.permute.xlu1 %9979 }
 0xb53   : > { %10011 = vst.msk [vmem:[#allocation3 + $0x50] sm:$0xff] %vm2251_vm10, %v9986_v0  ;;  %v18530_v38 = vsel %vm2236_vm11, %v9978_v29, %v9980_v18 }
 0xb56   : > { %v9988_v50 = vpop.permute.xlu0 %9987  ;;  %v18520_v2 = vld [vmem:[#allocation3 + $0x10] sm:$0xff] }
 0xb57   : > { %v18523_v20 = vsel %vm2236_vm11, %v9986_v0, %v9988_v50  ;;  %10057 = vrot.lane.b32.xlu1 %v18520_v2, %s15110_s19  ;;  %v14684_v0 = vld [vmem:[%s19691_s1 + $0x2f8] sm:$0xff] }
 0xb58   : > { %10067 = vrot.lane.b32.xlu0 %v18523_v20, %s15110_s19 }
 0xb5a   : > { %v18535_v59 = vld [vmem:[#allocation3 + $0x50] sm:$0xff] }
 0xb5b   : > { %10059 = vrot.lane.b32.xlu1 %v18530_v38, %s15110_s19 }
 0xb5c   : > { %14993 = vrot.lane.b32.xlu0 %v14977_v24, %s15124_s12 }
 0xb5f   : > { %10065 = vrot.lane.b32.xlu1 %v18535_v59, %s15110_s19 }
 0xb60   : > { %10794 = vrot.lane.b32.xlu0 %v18535_v59, %s15110_s19 }
 0xb63   : > { %10415 = vrot.lane.b32.xlu1 %v18535_v59, %s15124_s12 }
 0xb67   : > { %10407 = vrot.lane.b32.xlu1 %v18520_v2, %s15124_s12 }
 0xb6b   : > { %v9982_v41 = vpop.permute.xlu1 %9981  ;;  %10409 = vrot.lane.b32.xlu1 %v18530_v38, %s15124_s12 }
 0xb6c   : > { %v18548_v6 = vsel %vm2236_vm11, %v9980_v18, %v9982_v41 }
 0xb6d   : > { %10790 = vrot.lane.b32.xlu0 %v18548_v6, %s15110_s19 }
 0xb6f   : > { %v9984_v36 = vpop.permute.xlu1 %9983  ;;  %v9990_v44 = vpop.permute.xlu0 %9989  ;;  %10788 = vrot.lane.b32.xlu1 %v18530_v38, %s15110_s19 }
 0xb70   : > { %v9995_v43 = vsel %vm2236_vm11, %v9982_v41, %v9984_v36  ;;  %v18573_v10 = vsel %vm2236_vm11, %v9988_v50, %v9990_v44 }
 0xb71   : > { %10010 = vst.msk [vmem:[#allocation3 + $0x28] sm:$0xff] %vm1140_vm5, %v9995_v43  ;;  %10417 = vrot.lane.b32.xlu0 %v18523_v20, %s15124_s12 }
 0xb73   : > { %v9992_v32 = vpop.permute.xlu0 %9991  ;;  %10786 = vrot.lane.b32.xlu1 %v18520_v2, %s15110_s19 }
 0xb74   : > { %v9998_v7 = vsel %vm2236_vm11, %v9990_v44, %v9992_v32 }
 0xb75   : > { %10014 = vst.msk [vmem:[#allocation3 + $0x68] sm:$0xff] %vm1140_vm5, %v9998_v7 }
 0xb77   : > { %v14979_v49 = vpop.permute.xlu0 %14978 }
 0xb78   : > { %v18562_v51 = vld [vmem:[#allocation3 + $0x28] sm:$0xff]  ;;  %v14981_v28 = vunpack.i.h.bf16 %v14979_v49  ;;  %v14980_v9 = vunpack.i.l.bf16 %v14979_v49  ;;  %v14687_v49 = vld [vmem:[%s19691_s1 + $0x310] sm:$0xff] }
 0xb79   : > { %10792 = vrot.lane.b32.xlu1 %v18562_v51, %s15110_s19 }
 0xb7a   : > { %v10072_v21 = vsel %vm1140_vm5, %v14981_v28, %v14980_v9  ;;  %v14688_v28 = vld [vmem:[%s19691_s1 + $0x318] sm:$0xff] }
 0xb7b   : > { %v14984_v3 = vpop.permute.xlu0 %14983 }
 0xb7c   : > { %v18566_v14 = vld [vmem:[#allocation3 + $0x68] sm:$0xff]  ;;  %v14986_v12 = vunpack.i.h.bf16 %v14984_v3  ;;  %v14985_v42 = vunpack.i.l.bf16 %v14984_v3 }
 0xb7d   : > { %10986 = vrot.lane.b32.xlu1 %v18530_v38, %s15124_s12  ;;  %10800 = vrot.lane.b32.xlu0 %v18566_v14, %s15110_s19 }
 0xb7e   : > { %v10069_v27 = vsel %vm1140_vm5, %v14986_v12, %v14985_v42 }
 0xb7f   : > { %v14989_v55 = vpop.permute.xlu0 %14988 }
 0xb80   : > { %v14990_v58 = vunpack.i.l.bf16 %v14989_v55  ;;  %v14991_v33 = vunpack.i.h.bf16 %v14989_v55 }
 0xb81   : > { %10798 = vrot.lane.b32.xlu1 %v18573_v10, %s15110_s19  ;;  %10992 = vrot.lane.b32.xlu0 %v18535_v59, %s15124_s12 }
 0xb82   : > { %v10423_v5 = vsel %vm10419_vm13, %v14991_v33, %v14990_v58 }
 0xb85   : > { %10984 = vrot.lane.b32.xlu1 %v18520_v2, %s15124_s12  ;;  %10796 = vrot.lane.b32.xlu0 %v18523_v20, %s15110_s19 }
 0xb89   : > { %10996 = vrot.lane.b32.xlu1 %v18573_v10, %s15124_s12  ;;  %10988 = vrot.lane.b32.xlu0 %v18548_v6, %s15124_s12 }
 0xb8d   : > { %10990 = vrot.lane.b32.xlu1 %v18562_v51, %s15124_s12  ;;  %10994 = vrot.lane.b32.xlu0 %v18523_v20, %s15124_s12 }
 0xb91   : > { %14998 = vrot.lane.b32.xlu1 %v14977_v24, %s15110_s19  ;;  %10998 = vrot.lane.b32.xlu0 %v18566_v14, %s15124_s12 }
 0xb95   : > { %11368 = vrot.lane.b32.xlu1 %v18562_v51, %s15110_s19  ;;  %11376 = vrot.lane.b32.xlu0 %v18566_v14, %s15110_s19 }
 0xb99   : > { %15003 = vrot.lane.b32.xlu1 %v14977_v24, %s15110_s19  ;;  %11366 = vrot.lane.b32.xlu0 %v18548_v6, %s15110_s19 }
 0xb9d   : > { %15008 = vrot.lane.b32.xlu1 %v14977_v24, %s15124_s12  ;;  %11574 = vrot.lane.b32.xlu0 %v18566_v14, %s15124_s12  ;;  %v14683_v24 = vld [vmem:[%s19691_s1 + $0x2f0] sm:$0xff] }
 0xba1   : > { %11566 = vrot.lane.b32.xlu1 %v18562_v51, %s15124_s12  ;;  %11374 = vrot.lane.b32.xlu0 %v18573_v10, %s15110_s19 }
 0xba5   : > { %11578 = vrot.lane.b32.xlu1 %v18608_v35, %s15124_s12  ;;  %11564 = vrot.lane.b32.xlu0 %v18548_v6, %s15124_s12 }
 0xba9   : > { %11769 = vperm.xlu1 %14945, %v14698_v45   ;;  %11572 = vrot.lane.b32.xlu0 %v18573_v10, %s15124_s12 }
 0xbad   : > { %11570 = vrot.lane.b32.xlu0 %v18608_v35, %s15124_s12 }
 0xbb1   : > { %11764 = vperm.xlu0 %14946, %v14697_v34  }
 0xbc9   : > { %v10058_v39 = vpop.permute.xlu1 %10057 }
 0xbca   : > { %v10068_v15 = vpop.permute.xlu0 %10067  ;;  %v10070_v61 = vsel %vm1140_vm5, %v14985_v42, %v10058_v39 }
 0xbcb   : > { %10194 = vmatprep.subr.mxu1 %v10068_v15 }
 0xbcd   : > { %v10060_v11 = vpop.permute.xlu1 %10059 }
 0xbce   : > { %v10071_v63 = vsel %vm1140_vm5, %v10058_v39, %v10060_v11  ;;  %v14994_v1 = vpop.permute.xlu0 %14993 }
 0xbcf   : > { %v14996_v56 = vunpack.i.h.bf16 %v14994_v1  ;;  %v14995_v23 = vunpack.i.l.bf16 %v14994_v1 }
 0xbd1   : > { %v10066_v46 = vpop.permute.xlu1 %10065  ;;  %v10420_v8 = vsel %vm10419_vm13, %v14996_v56, %v14995_v23  ;;  %v14692_v56 = vld [vmem:[%s19691_s1 + $0x338] sm:$0xff] }
 0xbd2   : > { %v10073_v54 = vsel %vm1140_vm5, %v14980_v9, %v10066_v46  ;;  %v10074_v53 = vsel %vm1140_vm5, %v10066_v46, %v10068_v15  ;;  %v18645_v57 = vpop.permute.xlu0 %10794 }
 0xbd3   : > { %10117 = vmatprep.subr.mxu0 %v10073_v54  ;;  %10195 = vmatpush1.msra.mxu1 %v10074_v53 }
 0xbd4   : > { %10118 = vmatpush1.msra.mxu0 %v10072_v21  ;;  %10196 = vmatprep.subr.mxu1 %v10060_v11  ;;  %v14689_v21 = vld [vmem:[%s19691_s1 + $0x320] sm:$0xff] }
 0xbd5   : > { %v10416_v47 = vpop.permute.xlu1 %10415  ;;  %10197 = vmatpush1.msra.mxu1 %v10071_v63  ;;  %10119 = vmatprep.subr.mxu0 %v10070_v61 }
 0xbd6   : > { %10120 = vmatpush1.msra.mxu0 %v10069_v27  ;;  %10354 = vmatprep.subr.mxu1 %v18523_v20  ;;  %v10424_v52 = vsel %vm10419_vm13, %v14990_v58, %v10416_v47  ;;  %v14690_v58 = vld [vmem:[%s19691_s1 + $0x328] sm:$0xff] }
 0xbd7   : > { %14699 = vmatmul.mubr.msk.f32.vlgmr.msra.gmra.mxu0 %vm362_vm2, %v14681_v40  ;;  %14701 = vmatmul.mubr.msk.f32.vlgmr.msra.gmra.mxu1 %vm362_vm2, %v14681_v40 }
 0xbd8   : > { %10277 = vmatprep.subr.mxu0 %v18608_v35  ;;  %10355 = vmatpush1.msra.mxu1 %v18535_v59 }
 0xbd9   : > { %10278 = vmatpush1.msra.mxu0 %v18608_v35  ;;  %10356 = vmatprep.subr.mxu1 %v18530_v38  ;;  %v10408_v16 = vpop.permute.xlu1 %10407 }
 0xbda   : > { %10357 = vmatpush1.msra.mxu1 %v18520_v2  ;;  %10279 = vmatprep.subr.mxu0 %v18608_v35  ;;  %v10421_v60 = vsel %vm10419_vm13, %v14995_v23, %v10408_v16 }
 0xbdb   : > { %10159 = vmatprep.mubr.f32.mxu0 %v18608_v35  ;;  %10280 = vmatpush1.msra.mxu0 %v18608_v35 }
 0xbdc   : > { %14700 = vmatmul.mubr.msk.f32.gmra.mxu0 %vm362_vm2, %v14682_v17  ;;  %10468 = vmatprep.subr.mxu0 %v10424_v52 }
 0xbdd   : > { %v10410_v13 = vpop.permute.xlu1 %10409  ;;  %10236 = vmatprep.mubr.f32.mxu1 %v18608_v35  ;;  %10313 = vmatprep.mubr.f32.mxu0 %v18608_v35 }
 0xbde   : > { %14702 = vmatmul.mubr.msk.f32.gmra.mxu1 %vm362_vm2, %v14682_v17  ;;  %v10422_v50 = vsel %vm10419_vm13, %v10408_v16, %v10410_v13 }
 0xbdf   : > { %10390 = vmatprep.mubr.f32.mxu1 %v18608_v35  ;;  %v18658_v19 = vpop.permute.xlu0 %10790 }
 0xbe0   : > { %14703 = vmatmul.mubr.msk.f32.vlgmr.msra.gmra.mxu0 %vm362_vm2, %v14679_v4 }
 0xbe1   : > { %10469 = vmatpush1.msra.mxu0 %v10423_v5  ;;  %v18664_v31 = vpop.permute.xlu1 %10788  ;;  %10319 = vmatprep.mubr.f32.mxu0 %v18608_v35 }
 0xbe2   : > { %10470 = vmatprep.subr.mxu0 %v10421_v60  ;;  %14705 = vmatmul.mubr.msk.f32.vlgmr.msra.gmra.mxu1 %vm362_vm2, %v14679_v4  ;;  %v10803_v3 = vsel %vm1140_vm5, %v18664_v31, %v18658_v19 }
 0xbe3   : > { %10471 = vmatpush1.msra.mxu0 %v10420_v8  ;;  %10396 = vmatprep.mubr.f32.mxu1 %v18608_v35  ;;  %v10418_v30 = vpop.permute.xlu0 %10417 }
 0xbe4   : > { %10644 = vmatprep.subr.mxu0 %v18523_v20  ;;  %14704 = vmatmul.mubr.msk.f32.gmra.mxu0 %vm362_vm2, %v14680_v22  ;;  %v10425_v48 = vsel %vm10419_vm13, %v10416_v47, %v10418_v30  ;;  %v14685_v20 = vld [vmem:[%s19691_s1 + $0x300] sm:$0xff] }
 0xbe5   : > { %10504 = vmatprep.mubr.f32.mxu0 %v18608_v35  ;;  %10545 = vmatprep.subr.mxu1 %v10418_v30  ;;  %v10787_v29 = vpop.permute.xlu1 %10786 }
 0xbe6   : > { %14706 = vmatmul.mubr.msk.f32.gmra.mxu1 %vm362_vm2, %v14680_v22  ;;  %v10802_v55 = vsel %vm1140_vm5, %v10787_v29, %v18664_v31  ;;  %v14693_v31 = vld [vmem:[%s19691_s1 + $0x340] sm:$0xff] }
 0xbe7   : > { %10546 = vmatpush1.msra.mxu1 %v10425_v48  ;;  %10581 = vmatprep.mubr.f32.mxu1 %v18608_v35 }
 0xbe8   : > { %14707 = vmatmul.mubr.msk.f32.vlgmr.msra.gmra.mxu0 %vm362_vm2, %v14683_v24  ;;  %10547 = vmatprep.subr.mxu1 %v10410_v13 }
 0xbe9   : > { %10645 = vmatpush1.msra.mxu0 %v18535_v59  ;;  %10510 = vmatprep.mubr.f32.mxu0 %v18608_v35  ;;  %v14686_v59 = vld [vmem:[%s19691_s1 + $0x308] sm:$0xff] }
 0xbea   : > { %10646 = vmatprep.subr.mxu0 %v18530_v38  ;;  %10548 = vmatpush1.msra.mxu1 %v10422_v50  ;;  %v14694_v50 = vld [vmem:[%s19691_s1 + $0x348] sm:$0xff] }
 0xbeb   : > { %10647 = vmatpush1.msra.mxu0 %v18520_v2  ;;  %v10793_v18 = vpop.permute.xlu1 %10792  ;;  %14709 = vmatmul.mubr.msk.f32.vlgmr.msra.gmra.mxu1 %vm362_vm2, %v14683_v24 }
 0xbec   : > { %14708 = vmatmul.mubr.msk.f32.gmra.mxu0 %vm362_vm2, %v14684_v0  ;;  %10721 = vmatprep.subr.mxu1 %v18566_v14  ;;  %v10804_v43 = vsel %vm1140_vm5, %v18658_v19, %v10793_v18 }
 0xbed   : > { %10680 = vmatprep.mubr.f32.mxu0 %v18608_v35  ;;  %10722 = vmatpush1.msra.mxu1 %v18573_v10 }
 0xbee   : > { %10723 = vmatprep.subr.mxu1 %v18562_v51  ;;  %10587 = vmatprep.mubr.f32.mxu1 %v18608_v35 }
 0xbef   : > { %v10987_v2 = vpop.permute.xlu1 %10986  ;;  %v10801_v38 = vpop.permute.xlu0 %10800  ;;  %10724 = vmatpush1.msra.mxu1 %v18548_v6 }
 0xbf0   : > { %14711 = vmatmul.mubr.msk.f32.vlgmr.msra.gmra.mxu0 %vm362_vm2, %v14685_v20  ;;  %14710 = vmatmul.mubr.msk.f32.gmra.mxu1 %vm362_vm2, %v14684_v0 }
 0xbf1   : > { %10686 = vmatprep.mubr.f32.mxu0 %v18608_v35  ;;  %10927 = vmatprep.subr.mxu1 %v10801_v38 }
 0xbf2   : > { %10757 = vmatprep.mubr.f32.mxu1 %v18608_v35 }
 0xbf3   : > { %v10799_v41 = vpop.permute.xlu1 %10798  ;;  %v10993_v36 = vpop.permute.xlu0 %10992 }
 0xbf4   : > { %14712 = vmatmul.mubr.msk.f32.gmra.mxu0 %vm362_vm2, %v14686_v59  ;;  %14713 = vmatmul.mubr.msk.f32.vlgmr.msra.gmra.mxu1 %vm362_vm2, %v14685_v20  ;;  %v10807_v44 = vsel %vm1140_vm5, %v10799_v41, %v10801_v38  ;;  %v14695_v38 = vld [vmem:[%s19691_s1 + $0x350] sm:$0xff] }
 0xbf5   : > { %10928 = vmatpush1.msra.mxu1 %v10807_v44  ;;  %10763 = vmatprep.mubr.f32.mxu1 %v18608_v35  ;;  %v14696_v44 = vld [vmem:[%s19691_s1 + $0x358] sm:$0xff] }
 0xbf6   : > { %10929 = vmatprep.subr.mxu1 %v10793_v18  ;;  %10886 = vmatprep.mubr.f32.mxu0 %v18608_v35 }
 0xbf7   : > { %v10985_v32 = vpop.permute.xlu1 %10984  ;;  %v10797_v7 = vpop.permute.xlu0 %10796  ;;  %10930 = vmatpush1.msra.mxu1 %v10804_v43 }
 0xbf8   : > { %v10806_v45 = vsel %vm1140_vm5, %v10797_v7, %v10799_v41  ;;  %v10805_v34 = vsel %vm1140_vm5, %v18645_v57, %v10797_v7  ;;  %14714 = vmatmul.mubr.msk.f32.gmra.mxu1 %vm362_vm2, %v14686_v59  ;;  %v11000_v54 = vsel %vm10419_vm13, %v10985_v32, %v10987_v2 }
 0xbf9   : > { %10850 = vmatprep.subr.mxu0 %v10806_v45  ;;  %10963 = vmatprep.mubr.f32.mxu1 %v18608_v35 }
 0xbfa   : > { %10851 = vmatpush1.msra.mxu0 %v10805_v34 }
 0xbfb   : > { %v10997_v39 = vpop.permute.xlu1 %10996  ;;  %v10989_v15 = vpop.permute.xlu0 %10988  ;;  %10852 = vmatprep.subr.mxu0 %v10803_v3 }
 0xbfc   : > { %10853 = vmatpush1.msra.mxu0 %v10802_v55  ;;  %14717 = vmatmul.mubr.msk.f32.vlgmr.msra.gmra.mxu1 %vm362_vm2, %v14687_v49  ;;  %v11001_v46 = vsel %vm10419_vm13, %v10987_v2, %v10989_v15 }
 0xbfd   : > { %14715 = vmatmul.mubr.msk.f32.vlgmr.msra.gmra.mxu0 %vm362_vm2, %v14687_v49  ;;  %10969 = vmatprep.mubr.f32.mxu1 %v18608_v35 }
 0xbfe   : > { %10892 = vmatprep.mubr.f32.mxu0 %v18608_v35 }
 0xbff   : > { %v10991_v9 = vpop.permute.xlu1 %10990  ;;  %v10995_v11 = vpop.permute.xlu0 %10994 }
 0xc00   : > { %v11004_v12 = vsel %vm10419_vm13, %v10995_v11, %v10997_v39  ;;  %v11003_v42 = vsel %vm10419_vm13, %v10993_v36, %v10995_v11  ;;  %14718 = vmatmul.mubr.msk.f32.gmra.mxu1 %vm362_vm2, %v14688_v28  ;;  %v11002_v40 = vsel %vm10419_vm13, %v10989_v15, %v10991_v9 }
 0xc01   : > { %14716 = vmatmul.mubr.msk.f32.gmra.mxu0 %vm362_vm2, %v14688_v28  ;;  %11048 = vmatprep.subr.mxu0 %v11004_v12 }
 0xc02   : > { %11049 = vmatpush1.msra.mxu0 %v11003_v42  ;;  %11084 = vmatprep.mubr.f32.mxu0 %v18608_v35 }
 0xc03   : > { %v14999_v53 = vpop.permute.xlu1 %14998  ;;  %v10999_v27 = vpop.permute.xlu0 %10998  ;;  %11050 = vmatprep.subr.mxu0 %v11001_v46  ;;  %11161 = vmatprep.mubr.f32.mxu1 %v18608_v35 }
 0xc04   : > { %v15000_v63 = vunpack.i.l.bf16 %v14999_v53  ;;  %11051 = vmatpush1.msra.mxu0 %v11000_v54  ;;  %11125 = vmatprep.subr.mxu1 %v10999_v27  ;;  %v11005_v61 = vsel %vm10419_vm13, %v10997_v39, %v10999_v27  ;;  %v15001_v23 = vunpack.i.h.bf16 %v14999_v53 }
 0xc05   : > { %14719 = vmatmul.mubr.msk.f32.vlgmr.msra.gmra.mxu0 %vm362_vm2, %v14689_v21  ;;  %11126 = vmatpush1.msra.mxu1 %v11005_v61 }
 0xc06   : > { %11224 = vmatprep.subr.mxu0 %v18566_v14  ;;  %11127 = vmatprep.subr.mxu1 %v10991_v9 }
 0xc07   : > { %11225 = vmatpush1.msra.mxu0 %v18573_v10  ;;  %v11369_v47 = vpop.permute.xlu1 %11368  ;;  %11128 = vmatpush1.msra.mxu1 %v11002_v40  ;;  %v11377_v1 = vpop.permute.xlu0 %11376 }
 0xc08   : > { %11226 = vmatprep.subr.mxu0 %v18562_v51  ;;  %11090 = vmatprep.mubr.f32.mxu0 %v18608_v35  ;;  %v11386_v16 = vsel %vm1140_vm5, %v11377_v1, %v15000_v63  ;;  %v14691_v51 = vld [vmem:[%s19691_s1 + $0x330] sm:$0xff]  ;;  %v11383_v60 = vsel %vm1140_vm5, %v11369_v47, %v15001_v23 }
 0xc09   : > { %14721 = vmatmul.mubr.msk.f32.vlgmr.msra.gmra.mxu1 %vm362_vm2, %v14689_v21  ;;  %11227 = vmatpush1.msra.mxu0 %v18548_v6 }
 0xc0a   : > { %14720 = vmatmul.mubr.msk.f32.gmra.mxu0 %vm362_vm2, %v14690_v58  ;;  %11430 = vmatprep.subr.mxu0 %v11386_v16 }
 0xc0b   : > { %v15004_v14 = vpop.permute.xlu1 %15003  ;;  %11167 = vmatprep.mubr.f32.mxu1 %v18608_v35  ;;  %11301 = vmatprep.subr.mxu1 %v18608_v35  ;;  %v11367_v10 = vpop.permute.xlu0 %11366 }
 0xc0c   : > { %v15005_v17 = vunpack.i.l.bf16 %v15004_v14  ;;  %11260 = vmatprep.mubr.f32.mxu0 %v18608_v35  ;;  %11302 = vmatpush1.msra.mxu1 %v18608_v35  ;;  %v15006_v6 = vunpack.i.h.bf16 %v15004_v14  ;;  %v11382_v22 = vsel %vm1140_vm5, %v11367_v10, %v11369_v47 }
 0xc0d   : > { %14722 = vmatmul.mubr.msk.f32.gmra.mxu1 %vm362_vm2, %v14690_v58  ;;  %11303 = vmatprep.subr.mxu1 %v18608_v35 }
 0xc0e   : > { %14723 = vmatmul.mubr.msk.f32.vlgmr.msra.gmra.mxu0 %vm362_vm2, %v14691_v51  ;;  %11304 = vmatpush1.msra.mxu1 %v18608_v35  ;;  %v11387_v33 = vsel %vm1140_vm5, %v15000_v63, %v15005_v17  ;;  %v11384_v4 = vsel %vm1140_vm5, %v15001_v23, %v15006_v6 }
 0xc0f   : > { %v15009_v57 = vpop.permute.xlu1 %15008  ;;  %11337 = vmatprep.mubr.f32.mxu1 %v18608_v35  ;;  %11507 = vmatprep.subr.mxu1 %v15005_v17  ;;  %v11575_v52 = vpop.permute.xlu0 %11574 }
 0xc10   : > { %11266 = vmatprep.mubr.f32.mxu0 %v18608_v35  ;;  %v15010_v13 = vunpack.i.l.bf16 %v15009_v57  ;;  %v15011_v0 = vunpack.i.h.bf16 %v15009_v57 }
 0xc11   : > { %14725 = vmatmul.mubr.msk.f32.vlgmr.msra.gmra.mxu1 %vm362_vm2, %v14691_v51 }
 0xc12   : > { %11508 = vmatpush1.msra.mxu1 %v11387_v33  ;;  %14724 = vmatmul.mubr.msk.f32.gmra.mxu0 %vm362_vm2, %v14692_v56  ;;  %v11584_v48 = vsel %vm10419_vm13, %v11575_v52, %v15010_v13 }
 0xc13   : > { %11509 = vmatprep.subr.mxu1 %v15006_v6  ;;  %v11567_v19 = vpop.permute.xlu1 %11566  ;;  %11343 = vmatprep.mubr.f32.mxu1 %v18608_v35  ;;  %v11375_v5 = vpop.permute.xlu0 %11374 }
 0xc14   : > { %11510 = vmatpush1.msra.mxu1 %v11384_v4  ;;  %v11385_v8 = vsel %vm1140_vm5, %v11375_v5, %v11377_v1  ;;  %11466 = vmatprep.mubr.f32.mxu0 %v18608_v35  ;;  %v11581_v2 = vsel %vm10419_vm13, %v11567_v19, %v15011_v0 }
 0xc15   : > { %14726 = vmatmul.mubr.msk.f32.gmra.mxu1 %vm362_vm2, %v14692_v56  ;;  %11431 = vmatpush1.msra.mxu0 %v11385_v8 }
 0xc16   : > { %11432 = vmatprep.subr.mxu0 %v11383_v60  ;;  %11543 = vmatprep.mubr.f32.mxu1 %v18608_v35 }
 0xc17   : > { %v11565_v30 = vpop.permute.xlu0 %11564  ;;  %11433 = vmatpush1.msra.mxu0 %v11382_v22  ;;  %v11579_v24 = vpop.permute.xlu1 %11578 }
 0xc18   : > { %14727 = vmatmul.mubr.msk.f32.vlgmr.msra.gmra.mxu0 %vm362_vm2, %v14693_v31  ;;  %11628 = vmatprep.subr.mxu0 %v11584_v48  ;;  %v11585_v29 = vsel %vm10419_vm13, %v15010_v13, %v11579_v24  ;;  %v11580_v59 = vsel %vm10419_vm13, %v11565_v30, %v11567_v19 }
 0xc19   : > { %14729 = vmatmul.mubr.msk.f32.vlgmr.msra.gmra.mxu1 %vm362_vm2, %v14693_v31  ;;  %11705 = vmatprep.subr.mxu1 %v11579_v24 }
 0xc1a   : > { %11549 = vmatprep.mubr.f32.mxu1 %v18608_v35  ;;  %11706 = vmatpush1.msra.mxu1 %v11585_v29 }
 0xc1b   : > { %v11573_v18 = vpop.permute.xlu0 %11572  ;;  %11472 = vmatprep.mubr.f32.mxu0 %v18608_v35 }
 0xc1c   : > { %v11583_v20 = vsel %vm10419_vm13, %v11573_v18, %v11575_v52  ;;  %14728 = vmatmul.mubr.msk.f32.gmra.mxu0 %vm362_vm2, %v14694_v50 }
 0xc1d   : > { %14730 = vmatmul.mubr.msk.f32.gmra.mxu1 %vm362_vm2, %v14694_v50  ;;  %11629 = vmatpush1.msra.mxu0 %v11583_v20 }
 0xc1e   : > { %11630 = vmatprep.subr.mxu0 %v11581_v2  ;;  %11664 = vmatprep.mubr.f32.mxu0 %v18608_v35 }
 0xc1f   : > { %v11571_v41 = vpop.permute.xlu0 %11570  ;;  %11631 = vmatpush1.msra.mxu0 %v11580_v59  ;;  %11741 = vmatprep.mubr.f32.mxu1 %v18608_v35 }
 0xc20   : > { %14731 = vmatmul.mubr.msk.f32.vlgmr.msra.gmra.mxu0 %vm362_vm2, %v14695_v38  ;;  %11707 = vmatprep.subr.mxu1 %v11571_v41  ;;  %v11582_v36 = vsel %vm10419_vm13, %v15011_v0, %v11571_v41 }
 0xc21   : > { %11708 = vmatpush1.msra.mxu1 %v11582_v36  ;;  %11670 = vmatprep.mubr.f32.mxu0 %v18608_v35 }
 0xc22   : > { %14733 = vmatmul.mubr.msk.f32.vlgmr.msra.gmra.mxu1 %vm362_vm2, %v14695_v38 }
 0xc23   : > { %11747 = vmatprep.mubr.f32.mxu1 %v18608_v35 }
 0xc24   : > { %14732 = vmatmul.mubr.msk.f32.gmra.mxu0 %vm362_vm2, %v14696_v44 }
 0xc25   : > { %11974 = vmatprep.mubr.f32.mxu0 %v18608_v35 }
 0xc26   : > { %14734 = vmatmul.mubr.msk.f32.gmra.mxu1 %vm362_vm2, %v14696_v44 }
 0xc27   : > { %12051 = vmatprep.mubr.f32.mxu1 %v18608_v35 }
 0xc97   : > { %v10155_v43 = vpop.f32.mrf.mxu0  ;;  %v10232_v32 = vpop.f32.mrf.mxu1 }
 0xc99   : > { %v10157_v7 = vpop.f32.mrf.mxu0  ;;  %v10234_v45 = vpop.f32.mrf.mxu1 }
 0xc9c   : > { %v10161_v34 = vpop.f32.mrf.mxu0 }
 0xc9e   : > { %v18821_v49 = vpop.f32.mrf.mxu0  ;;  %v10238_v3 = vpop.f32.mrf.mxu1 }
 0xca0   : > { %v10315_v55 = vpop.f32.mrf.mxu0  ;;  %v10240_v39 = vpop.f32.mrf.mxu1 }
 0xca1   : > { %v10316_v20 = vadd.f32 %v10315_v55, %v10155_v43 }
 0xca2   : > { %v10317_v15 = vpop.f32.mrf.mxu0  ;;  %v10392_v28 = vpop.f32.mrf.mxu1 }
 0xca3   : > { %v10393_v2 = vadd.f32 %v10392_v28, %v10232_v32  ;;  %v10318_v59 = vadd.f32 %v10317_v15, %v10157_v7 }
 0xca4   : > { %v10321_v9 = vpop.f32.mrf.mxu0  ;;  %v10394_v11 = vpop.f32.mrf.mxu1 }
 0xca5   : > { %v10395_v44 = vadd.f32 %v10394_v11, %v10234_v45  ;;  %v10322_v62 = vadd.f32 %v10321_v9, %v10161_v34 }
 0xca6   : > { %v10323_v12 = vpop.f32.mrf.mxu0  ;;  %v10398_v42 = vpop.f32.mrf.mxu1 }
 0xca7   : > { %v10324_v7 = vadd.f32 %v10323_v12, %v18821_v49 }
 0xca8   : > { %v10506_v46 = vpop.f32.mrf.mxu0  ;;  %v10400_v21 = vpop.f32.mrf.mxu1 }
 0xca9   : > { %v10594_v41 = vadd.f32 %v10506_v46, %v10316_v20 }
 0xcaa   : > { %v10508_v54 = vpop.f32.mrf.mxu0 }
 0xcab   : > { %v10583_v53 = vpop.f32.mrf.mxu1  ;;  %v10595_v37 = vadd.f32 %v10508_v54, %v10318_v59 }
 0xcac   : > { %v10512_v27 = vpop.f32.mrf.mxu0  ;;  %v10596_v25 = vadd.f32 %v10583_v53, %v10393_v2 }
 0xcad   : > { %v10585_v63 = vpop.f32.mrf.mxu1 }
 0xcae   : > { %v10514_v61 = vpop.f32.mrf.mxu0  ;;  %v10597_v55 = vadd.f32 %v10585_v63, %v10395_v44 }
 0xcaf   : > { %v10599_v46 = vadd.f32 %v10514_v61, %v10324_v7 }
 0xcb0   : > { %v10682_v40 = vpop.f32.mrf.mxu0  ;;  %v10589_v47 = vpop.f32.mrf.mxu1 }
 0xcb1   : > { %v10770_v26 = vadd.f32 %v10682_v40, %v10594_v41 }
 0xcb2   : > { %v10591_v1 = vpop.f32.mrf.mxu1  ;;  %v10684_v58 = vpop.f32.mrf.mxu0 }
 0xcb4   : > { %v10759_v16 = vpop.f32.mrf.mxu1  ;;  %v10688_v10 = vpop.f32.mrf.mxu0 }
 0xcb6   : > { %v10761_v14 = vpop.f32.mrf.mxu1  ;;  %v10690_v6 = vpop.f32.mrf.mxu0 }
 0xcb8   : > { %v18823_v51 = vpop.f32.mrf.mxu1 }
 0xcb9   : > { %19728 = vst [vmem:[#allocation14_spill] sm:$0xff] %v18823_v51  ;;  %v10772_v51 = vadd.f32 %v10759_v16, %v10596_v25 }
 0xcba   : > { %v18825_v17 = vpop.f32.mrf.mxu1 }
 0xcbb   : > { %19729 = vst [vmem:[#allocation15_spill] sm:$0xff] %v18825_v17  ;;  %v10771_v17 = vadd.f32 %v10684_v58, %v10595_v37 }
 0xcbc   : > { %v10965_v57 = vpop.f32.mrf.mxu1 }
 0xcbd   : > { %v10888_v52 = vpop.f32.mrf.mxu0  ;;  %v10978_v11 = vadd.f32 %v10965_v57, %v10772_v51 }
 0xcbe   : > { %v10967_v56 = vpop.f32.mrf.mxu1  ;;  %v10976_v43 = vadd.f32 %v10888_v52, %v10770_v26 }
 0xcbf   : > { %v10890_v33 = vpop.f32.mrf.mxu0 }
 0xcc0   : > { %v18829_v4 = vpop.f32.mrf.mxu1  ;;  %v10977_v45 = vadd.f32 %v10890_v33, %v10771_v17 }
 0xcc1   : > { %v10894_v23 = vpop.f32.mrf.mxu0  ;;  %19731 = vst [vmem:[#allocation17_spill] sm:$0xff] %v18829_v4  ;;  %v10401_v4 = vadd.f32 %v10400_v21, %v10240_v39  ;;  %v10775_v21 = vadd.f32 %v10690_v6, %v10599_v46 }
 0xcc2   : > { %v10973_v5 = vpop.f32.mrf.mxu1  ;;  %v19736_v12 = vld [vmem:[#allocation15_spill] sm:$0xff] }
 0xcc3   : > { %v18827_v13 = vpop.f32.mrf.mxu0  ;;  %v10601_v53 = vadd.f32 %v10591_v1, %v10401_v4 }
 0xcc4   : > { %19730 = vst [vmem:[#allocation16_spill] sm:$0xff] %v18827_v13  ;;  %v10598_v13 = vadd.f32 %v10512_v27, %v10322_v62  ;;  %v19735_v27 = vld [vmem:[#allocation14_spill] sm:$0xff] }
 0xcc5   : > { %v11086_v19 = vpop.f32.mrf.mxu0  ;;  %v10777_v63 = vadd.f32 %v19736_v12, %v10601_v53 }
 0xcc6   : > { %v10774_v28 = vadd.f32 %v10688_v10, %v10598_v13  ;;  %v11174_v34 = vadd.f32 %v11086_v19, %v10976_v43  ;;  %v11765_v13 = vpop.permute.xlu0 %11764 }
 0xcc7   : > { %v11088_v8 = vpop.f32.mrf.mxu0  ;;  %v10983_v57 = vadd.f32 %v10973_v5, %v10777_v63  ;;  %v19744_v63 = vld [vmem:[#allocation10_spill] sm:$0xff] }
 0xcc8   : > { %v11175_v62 = vadd.f32 %v11088_v8, %v10977_v45 }
 0xcc9   : > { %v11163_v60 = vpop.f32.mrf.mxu1 }
 0xcca   : > { %v11092_v31 = vpop.f32.mrf.mxu0  ;;  %v11176_v37 = vadd.f32 %v11163_v60, %v10978_v11 }
 0xccb   : > { %v11165_v22 = vpop.f32.mrf.mxu1 }
 0xccc   : > { %v18831_v30 = vpop.f32.mrf.mxu0 }
 0xccd   : > { %19732 = vst [vmem:[#allocation18_spill] sm:$0xff] %v18831_v30  ;;  %v18833_v48 = vpop.f32.mrf.mxu1  ;;  %v10399_v30 = vadd.f32 %v10398_v42, %v10238_v3  ;;  %v10773_v3 = vadd.f32 %v10761_v14, %v10597_v55  ;;  %v10980_v42 = vadd.f32 %v10894_v23, %v10774_v28  ;;  %v19738_v14 = vld [vmem:[#allocation17_spill] sm:$0xff]  ;;  %v11770_v55 = vpop.permute.xlu1 %11769 }
 0xcce   : > { %19733 = vst [vmem:[#allocation19_spill] sm:$0xff] %v18833_v48  ;;  %v11262_v24 = vpop.f32.mrf.mxu0 }
 0xccf   : > { %v18835_v29 = vpop.f32.mrf.mxu1  ;;  %v10600_v54 = vadd.f32 %v10589_v47, %v10399_v30  ;;  %v11350_v25 = vadd.f32 %v11262_v24, %v11174_v34  ;;  %v10979_v40 = vadd.f32 %v10967_v56, %v10773_v3  ;;  %v11178_v16 = vadd.f32 %v11092_v31, %v10980_v42  ;;  %v19737_v47 = vld [vmem:[#allocation16_spill] sm:$0xff] }
 0xcd0   : > { %19734 = vst [vmem:[#allocation20_spill] sm:$0xff] %v18835_v29  ;;  %v11264_v0 = vpop.f32.mrf.mxu0  ;;  %v10981_v1 = vadd.f32 %v19737_v47, %v10775_v21 }
 0xcd1   : > { %v11339_v50 = vpop.f32.mrf.mxu1  ;;  %v10776_v49 = vadd.f32 %v19735_v27, %v10600_v54  ;;  %v11351_v10 = vadd.f32 %v11264_v0, %v11175_v62  ;;  %v11177_v52 = vadd.f32 %v11165_v22, %v10979_v40 }
 0xcd2   : > { %v11268_v18 = vpop.f32.mrf.mxu0  ;;  %v11352_v51 = vadd.f32 %v11339_v50, %v11176_v37 }
 0xcd3   : > { %v11341_v38 = vpop.f32.mrf.mxu1  ;;  %v10982_v17 = vadd.f32 %v19738_v14, %v10776_v49  ;;  %v11354_v6 = vadd.f32 %v11268_v18, %v11178_v16 }
 0xcd4   : > { %v11270_v35 = vpop.f32.mrf.mxu0  ;;  %v19739_v60 = vld [vmem:[#allocation18_spill] sm:$0xff] }
 0xcd5   : > { %v18837_v36 = vpop.f32.mrf.mxu1  ;;  %v11179_v56 = vadd.f32 %v19739_v60, %v10981_v1  ;;  %v19740_v30 = vld [vmem:[#allocation19_spill] sm:$0xff] }
 0xcd6   : > { %v11180_v31 = vadd.f32 %v19740_v30, %v10982_v17 }
 0xcd7   : > { %v11347_v48 = vpop.f32.mrf.mxu1  ;;  %v19741_v24 = vld [vmem:[#allocation20_spill] sm:$0xff]  ;;  %v11355_v41 = vadd.f32 %v11270_v35, %v11179_v56 }
 0xcd8   : > { %v11468_v29 = vpop.f32.mrf.mxu0  ;;  %v11181_v0 = vadd.f32 %v19741_v24, %v10983_v57  ;;  %v11356_v44 = vadd.f32 %v18837_v36, %v11180_v31  ;;  %v19745_v57 = vld [vmem:[#allocation12_spill] sm:$0xff] }
 0xcd9   : > { %v11545_v32 = vpop.f32.mrf.mxu1  ;;  %v11556_v61 = vadd.f32 %v11468_v29, %v11350_v25  ;;  %v11353_v29 = vadd.f32 %v11341_v38, %v11177_v52  ;;  %v19743_v25 = vld [vmem:[#allocation11_spill] sm:$0xff] }
 0xcda   : > { %v11470_v15 = vpop.f32.mrf.mxu0  ;;  %v11558_v4 = vadd.f32 %v11545_v32, %v11352_v51  ;;  %v11357_v18 = vadd.f32 %v11347_v48, %v11181_v0 }
 0xcdb   : > { %v11547_v9 = vpop.f32.mrf.mxu1  ;;  %v11557_v19 = vadd.f32 %v11470_v15, %v11351_v10 }
 0xcdc   : > { %v11474_v39 = vpop.f32.mrf.mxu0  ;;  %v11559_v43 = vadd.f32 %v11547_v9, %v11353_v29 }
 0xcdd   : > { %v11551_v26 = vpop.f32.mrf.mxu1  ;;  %v11560_v2 = vadd.f32 %v11474_v39, %v11354_v6  ;;  %v19742_v39 = vld [vmem:[#allocation9_spill] sm:$0xff] }
 0xcde   : > { %v11476_v58 = vpop.f32.mrf.mxu0  ;;  %v11562_v34 = vadd.f32 %v11551_v26, %v11356_v44 }
 0xcdf   : > { %v11553_v33 = vpop.f32.mrf.mxu1  ;;  %v11561_v38 = vadd.f32 %v11476_v58, %v11355_v41  ;;  %v19746_v41 = vld [vmem:[#allocation13_spill] sm:$0xff] }
 0xce0   : > { %v11666_v23 = vpop.f32.mrf.mxu0  ;;  %v11563_v46 = vadd.f32 %v11553_v33, %v11357_v18  ;;  %v18886_v44 = vpack.i.bf16 %v19746_v41, %v19746_v41  ;;  %v14737_v18 = vld [vmem:[%s19692_s2 + $0x60] sm:$0xff] }
 0xce1   : > { %v11754_v8 = vadd.f32 %v11666_v23, %v11556_v61 }
 0xce2   : > { %v11668_v50 = vpop.f32.mrf.mxu0  ;;  %v11743_v20 = vpop.f32.mrf.mxu1 }
 0xce3   : > { %v11772_v59 = vadd.f32 %v11765_v13, %v11754_v8  ;;  %v11755_v5 = vadd.f32 %v11668_v50, %v11557_v19  ;;  %v11756_v22 = vadd.f32 %v11743_v20, %v11558_v4 }
 0xce4   : > { %v11672_v32 = vpop.f32.mrf.mxu0  ;;  %v11745_v7 = vpop.f32.mrf.mxu1 }
 0xce5   : > { %v11780_v15 = vmax.f32 %v11772_v59, 0.0  ;;  %v11773_v28 = vadd.f32 %v11765_v13, %v11755_v5  ;;  %v11774_v45 = vadd.f32 %v11765_v13, %v11756_v22  ;;  %v11758_v11 = vadd.f32 %v11672_v32, %v11560_v2  ;;  %v14738_v5 = vld [vmem:[%s19692_s2 + $0x68] sm:$0xff] }
 0xce6   : > { %v11757_v54 = vadd.f32 %v11745_v7, %v11559_v43  ;;  %v11674_v53 = vpop.f32.mrf.mxu0  ;;  %v11749_v3 = vpop.f32.mrf.mxu1 }
 0xce7   : > { %v11788_v42 = vmul.f32 %v11780_v15, %v19742_v39  ;;  %v11781_v35 = vmax.f32 %v11773_v28, 0.0  ;;  %v11782_v62 = vmax.f32 %v11774_v45, 0.0  ;;  %v11776_v36 = vadd.f32 %v11770_v55, %v11758_v11 }
 0xce8   : > { %v11759_v48 = vadd.f32 %v11674_v53, %v11561_v38  ;;  %v11760_v9 = vadd.f32 %v11749_v3, %v11562_v34  ;;  %v11751_v37 = vpop.f32.mrf.mxu1  ;;  %v11775_v58 = vadd.f32 %v11765_v13, %v11757_v54  ;;  %v14735_v38 = vld [vmem:[%s19691_s1 + $0x3a0] sm:$0xff]  ;;  %v14736_v3 = vld [vmem:[%s19691_s1 + $0x3a8] sm:$0xff] }
 0xce9   : > { %v11789_v21 = vmul.f32 %v11781_v35, %v19743_v25  ;;  %v11784_v27 = vmax.f32 %v11776_v36, 0.0  ;;  %v11761_v49 = vadd.f32 %v11751_v37, %v11563_v46  ;;  %11804 = vrot.lane.b32.xlu0 %v11788_v42, %s15116_s29  ;;  %v11790_v40 = vmul.f32 %v11782_v62, %v19744_v63 }
 0xcea   : > { %v11777_v26 = vadd.f32 %v11770_v55, %v11759_v48  ;;  %v11778_v12 = vadd.f32 %v11770_v55, %v11760_v9  ;;  %v11783_v47 = vmax.f32 %v11775_v58, 0.0 }
 0xceb   : > { %11806 = vrot.lane.b32.xlu1 %v11789_v21, %s15116_s29  ;;  %v11792_v10 = vmul.f32 %v11784_v27, %v19742_v39  ;;  %v11779_v61 = vadd.f32 %v11770_v55, %v11761_v49 }
 0xcec   : > { %v11785_v16 = vmax.f32 %v11777_v26, 0.0  ;;  %v11786_v51 = vmax.f32 %v11778_v12, 0.0  ;;  %v11791_v52 = vmul.f32 %v11783_v47, %v19745_v57 }
 0xced   : > { %11808 = vrot.lane.b32.xlu0 %v11790_v40, %s15116_s29  ;;  %v11787_v17 = vmax.f32 %v11779_v61, 0.0 }
 0xcee   : > { %v11793_v1 = vmul.f32 %v11785_v16, %v19743_v25  ;;  %v11794_v14 = vmul.f32 %v11786_v51, %v19744_v63 }
 0xcef   : > { %11812 = vrot.lane.b32.xlu1 %v11792_v10, %s15116_s29  ;;  %v11795_v33 = vmul.f32 %v11787_v17, %v19745_v57 }
 0xcf1   : > { %11814 = vrot.lane.b32.xlu0 %v11793_v1, %s15116_s29 }
 0xcf3   : > { %11816 = vrot.lane.b32.xlu1 %v11794_v14, %s15116_s29 }
 0xcf5   : > { %11810 = vrot.lane.b32.xlu0 %v11791_v52, %s15116_s29 }
 0xcf7   : > { %11818 = vrot.lane.b32.xlu1 %v11795_v33, %s15116_s29 }
 0xd5b   : > { %v11805_v23 = vpop.permute.xlu0 %11804 }
 0xd5c   : > { %11834 = vst.msk [vmem:[#allocation2 + $0x10] sm:$0xff] %vm2251_vm10, %v11805_v23 }
 0xd5d   : > { %v11807_v13 = vpop.permute.xlu1 %11806 }
 0xd5e   : > { %v11820_v6 = vsel %vm2236_vm11, %v11805_v23, %v11807_v13 }
 0xd5f   : > { %v11809_v4 = vpop.permute.xlu0 %11808  ;;  %11876 = vrot.lane.b32.xlu0 %v11820_v6, %s15110_s19 }
 0xd60   : > { %v11821_v19 = vsel %vm2236_vm11, %v11807_v13, %v11809_v4 }
 0xd61   : > { %v11813_v8 = vpop.permute.xlu1 %11812  ;;  %11878 = vrot.lane.b32.xlu1 %v11821_v19, %s15110_s19 }
 0xd62   : > { %11838 = vst.msk [vmem:[#allocation2 + $0x50] sm:$0xff] %vm2251_vm10, %v11813_v8 }
 0xd63   : > { %v11815_v60 = vpop.permute.xlu0 %11814  ;;  %v11848_v2 = vld [vmem:[#allocation2 + $0x10] sm:$0xff] }
 0xd64   : > { %v11823_v20 = vsel %vm2236_vm11, %v11813_v8, %v11815_v60 }
 0xd65   : > { %v11817_v56 = vpop.permute.xlu1 %11816 }
 0xd66   : > { %v11824_v30 = vsel %vm2236_vm11, %v11815_v60, %v11817_v56 }
 0xd67   : > { %v11811_v31 = vpop.permute.xlu0 %11810  ;;  %11886 = vrot.lane.b32.xlu0 %v11824_v30, %s15110_s19 }
 0xd68   : > { %v11822_v24 = vsel %vm2236_vm11, %v11809_v4, %v11811_v31 }
 0xd69   : > { %11837 = vst.msk [vmem:[#allocation2 + $0x28] sm:$0xff] %vm1140_vm5, %v11822_v24  ;;  %v11819_v0 = vpop.permute.xlu1 %11818  ;;  %v11852_v29 = vld [vmem:[#allocation2 + $0x50] sm:$0xff] }
 0xd6a   : > { %v11825_v50 = vsel %vm2236_vm11, %v11817_v56, %v11819_v0  ;;  %11882 = vrot.lane.b32.xlu1 %v11852_v29, %s15110_s19 }
 0xd6b   : > { %11841 = vst.msk [vmem:[#allocation2 + $0x68] sm:$0xff] %vm1140_vm5, %v11825_v50 }
 0xd6e   : > { %11884 = vrot.lane.b32.xlu1 %v11823_v20, %s15110_s19 }
 0xd70   : > { %v11851_v22 = vld [vmem:[#allocation2 + $0x28] sm:$0xff] }
 0xd72   : > { %v11855_v59 = vld [vmem:[#allocation2 + $0x68] sm:$0xff]  ;;  %11874 = vrot.lane.b32.xlu1 %v11848_v2, %s15110_s19 }
 0xd73   : > { %11888 = vrot.lane.b32.xlu0 %v11855_v59, %s15110_s19 }
 0xd76   : > { %11863 = vperm.xlu1 %14945, %v14738_v5  }
 0xd77   : > { %11880 = vrot.lane.b32.xlu0 %v11851_v22, %s15110_s19 }
 0xd7a   : > { %15013 = vrot.lane.b32.xlu1 %v18886_v44, %s15107_s11 }
 0xd7b   : > { %11858 = vperm.xlu0 %14946, %v14737_v18  }
 0xd7e   : > { %15023 = vrot.lane.b32.xlu1 %v18886_v44, %s15108_s17 }
 0xd7f   : > { %15018 = vrot.lane.b32.xlu0 %v18886_v44, %s15106_s10 }
 0xdd1   : > { %v11877_v32 = vpop.permute.xlu0 %11876 }
 0xdd3   : > { %v11879_v43 = vpop.permute.xlu1 %11878 }
 0xdd4   : > { %v11891_v11 = vsel %vm1140_vm5, %v11877_v32, %v11879_v43 }
 0xdd9   : > { %v11887_v55 = vpop.permute.xlu0 %11886 }
 0xddc   : > { %v11883_v7 = vpop.permute.xlu1 %11882 }
 0xde0   : > { %v11885_v15 = vpop.permute.xlu1 %11884 }
 0xde1   : > { %v11894_v28 = vsel %vm1140_vm5, %v11885_v15, %v11887_v55  ;;  %v11893_v45 = vsel %vm1140_vm5, %v11883_v7, %v11885_v15 }
 0xde2   : > { %11938 = vmatprep.subr.mxu0 %v11894_v28 }
 0xde3   : > { %11939 = vmatpush1.msra.mxu0 %v11893_v45 }
 0xde4   : > { %v11875_v34 = vpop.permute.xlu1 %11874  ;;  %11940 = vmatprep.subr.mxu0 %v11891_v11 }
 0xde5   : > { %v11889_v46 = vpop.permute.xlu0 %11888  ;;  %v11890_v54 = vsel %vm1140_vm5, %v11875_v34, %v11877_v32 }
 0xde6   : > { %12015 = vmatprep.subr.mxu1 %v11889_v46  ;;  %v11895_v53 = vsel %vm1140_vm5, %v11887_v55, %v11889_v46  ;;  %11941 = vmatpush1.msra.mxu0 %v11890_v54 }
 0xde7   : > { %12016 = vmatpush1.msra.mxu1 %v11895_v53  ;;  %14739 = vmatmul.mubr.msk.f32.vlgmr.msra.gmra.mxu0 %vm362_vm2, %v14735_v38 }
 0xde8   : > { %11980 = vmatprep.mubr.f32.mxu0 %v19746_v41 }
 0xde9   : > { %v11881_v42 = vpop.permute.xlu0 %11880 }
 0xdea   : > { %12017 = vmatprep.subr.mxu1 %v11881_v42  ;;  %v11892_v35 = vsel %vm1140_vm5, %v11879_v43, %v11881_v42 }
 0xdeb   : > { %12018 = vmatpush1.msra.mxu1 %v11892_v35  ;;  %14740 = vmatmul.mubr.msk.f32.gmra.mxu0 %vm362_vm2, %v14736_v3 }
 0xdec   : > { %14741 = vmatmul.mubr.msk.f32.vlgmr.msra.gmra.mxu1 %vm362_vm2, %v14735_v38  ;;  %12274 = vmatprep.mubr.f32.mxu0 %v19746_v41 }
 0xded   : > { %12057 = vmatprep.mubr.f32.mxu1 %v19746_v41 }
 0xdf0   : > { %14742 = vmatmul.mubr.msk.f32.gmra.mxu1 %vm362_vm2, %v14736_v3 }
 0xdf1   : > { %12351 = vmatprep.mubr.f32.mxu1 %v19746_v41  ;;  %v11864_v49 = vpop.permute.xlu1 %11863 }
 0xdf5   : > { %v18934_v29 = vpop.permute.xlu1 %15013 }
 0xdf6   : > { %v11859_v62 = vpop.permute.xlu0 %11858 }
 0xdf9   : > { %v18936_v50 = vpop.permute.xlu1 %15023 }
 0xdfa   : > { %v18938_v20 = vpop.permute.xlu0 %15018 }
 0xea7   : > { %v11976_v36 = vpop.f32.mrf.mxu0 }
 0xea8   : > { %v11977_v48 = vadd.f32 %v11976_v36, %v11859_v62 }
 0xea9   : > { %v11978_v9 = vpop.f32.mrf.mxu0 }
 0xeaa   : > { %v12064_v37 = vmax.f32 %v11977_v48, 0.0  ;;  %v11979_v21 = vadd.f32 %v11978_v9, %v11859_v62 }
 0xeab   : > { %v11982_v27 = vpop.f32.mrf.mxu0 }
 0xeac   : > { %v12072_v26 = vmul.f32 %v12064_v37, %v19742_v39  ;;  %v12065_v12 = vmax.f32 %v11979_v21, 0.0  ;;  %v12053_v40 = vpop.f32.mrf.mxu1  ;;  %v11983_v16 = vadd.f32 %v11982_v27, %v11864_v49 }
 0xead   : > { %v12054_v58 = vadd.f32 %v12053_v40, %v11859_v62  ;;  %v11984_v10 = vpop.f32.mrf.mxu0 }
 0xeae   : > { %v12073_v51 = vmul.f32 %v12065_v12, %v19743_v25  ;;  %v12055_v61 = vpop.f32.mrf.mxu1  ;;  %12088 = vrot.lane.b32.xlu1 %v12072_v26, %s15116_s29  ;;  %v11985_v14 = vadd.f32 %v11984_v10, %v11864_v49  ;;  %v12068_v33 = vmax.f32 %v11983_v16, 0.0  ;;  %v19124_v12 = vld [vmem:[#allocation2 + $0x40] sm:$0xff] }
 0xeaf   : > { %v12066_v47 = vmax.f32 %v12054_v58, 0.0  ;;  %v12056_v1 = vadd.f32 %v12055_v61, %v11859_v62  ;;  %v14761_v61 = vld [vmem:[%s19692_s2 + $0x70] sm:$0xff] }
 0xeb0   : > { %v12059_v17 = vpop.f32.mrf.mxu1  ;;  %12090 = vrot.lane.b32.xlu0 %v12073_v51, %s15116_s29  ;;  %v12069_v19 = vmax.f32 %v11985_v14, 0.0  ;;  %v12076_v60 = vmul.f32 %v12068_v33, %v19742_v39  ;;  %v14762_v51 = vld [vmem:[%s19692_s2 + $0x78] sm:$0xff] }
 0xeb1   : > { %v12074_v52 = vmul.f32 %v12066_v47, %v19744_v63  ;;  %v12067_v23 = vmax.f32 %v12056_v1, 0.0  ;;  %v12060_v13 = vadd.f32 %v12059_v17, %v11864_v49 }
 0xeb2   : > { %v12061_v6 = vpop.f32.mrf.mxu1  ;;  %v12077_v30 = vmul.f32 %v12069_v19, %v19743_v25 }
 0xeb3   : > { %v12075_v4 = vmul.f32 %v12067_v23, %v19745_v57  ;;  %v12062_v8 = vadd.f32 %v12061_v6, %v11864_v49  ;;  %12092 = vrot.lane.b32.xlu1 %v12074_v52, %s15116_s29  ;;  %v12070_v56 = vmax.f32 %v12060_v13, 0.0 }
 0xeb5   : > { %12094 = vrot.lane.b32.xlu0 %v12075_v4, %s15116_s29  ;;  %v12071_v31 = vmax.f32 %v12062_v8, 0.0  ;;  %v12078_v24 = vmul.f32 %v12070_v56, %v19744_v63  ;;  %v15015_v56 = vunpack.i.l.bf16 %v18934_v29 }
 0xeb7   : > { %12096 = vrot.lane.b32.xlu1 %v12076_v60, %s15116_s29  ;;  %v12079_v0 = vmul.f32 %v12071_v31, %v19745_v57 }
 0xeb9   : > { %12098 = vrot.lane.b32.xlu0 %v12077_v30, %s15116_s29 }
 0xebb   : > { %12100 = vrot.lane.b32.xlu1 %v12078_v24, %s15116_s29 }
 0xebd   : > { %12102 = vrot.lane.b32.xlu0 %v12079_v0, %s15116_s29  ;;  %v15016_v0 = vunpack.i.h.bf16 %v18934_v29 }
 0xf20   : > { %v12089_v2 = vpop.permute.xlu1 %12088 }
 0xf21   : > { %12118 = vst.msk [vmem:[#allocation3 + $0x10] sm:$0xff] %vm2251_vm10, %v12089_v2 }
 0xf22   : > { %v12091_v59 = vpop.permute.xlu0 %12090 }
 0xf23   : > { %v18942_v5 = vsel %vm2236_vm11, %v12089_v2, %v12091_v59 }
 0xf25   : > { %v12093_v22 = vpop.permute.xlu1 %12092 }
 0xf26   : > { %v18945_v41 = vsel %vm2236_vm11, %v12091_v59, %v12093_v22 }
 0xf27   : > { %v12095_v18 = vpop.permute.xlu0 %12094 }
 0xf28   : > { %v12106_v43 = vsel %vm2236_vm11, %v12093_v22, %v12095_v18  ;;  %v18948_v32 = vld [vmem:[#allocation3 + $0x10] sm:$0xff]  ;;  %v15020_v22 = vunpack.i.l.bf16 %v18938_v20 }
 0xf29   : > { %12121 = vst.msk [vmem:[#allocation3 + $0x28] sm:$0xff] %vm1140_vm5, %v12106_v43  ;;  %v12097_v7 = vpop.permute.xlu1 %12096  ;;  %12366 = vrot.lane.b32.xlu1 %v18948_v32, %s15106_s10  ;;  %12170 = vrot.lane.b32.xlu0 %v18948_v32, %s15107_s11 }
 0xf2a   : > { %12122 = vst.msk [vmem:[#allocation3 + $0x50] sm:$0xff] %vm2251_vm10, %v12097_v7 }
 0xf2b   : > { %v12099_v55 = vpop.permute.xlu0 %12098 }
 0xf2c   : > { %v18957_v15 = vsel %vm2236_vm11, %v12097_v7, %v12099_v55 }
 0xf2d   : > { %v12101_v28 = vpop.permute.xlu1 %12100  ;;  %12562 = vrot.lane.b32.xlu0 %v18948_v32, %s15108_s17  ;;  %12172 = vrot.lane.b32.xlu1 %v18942_v5, %s15107_s11 }
 0xf2e   : > { %v18964_v45 = vsel %vm2236_vm11, %v12099_v55, %v12101_v28 }
 0xf2f   : > { %v12103_v11 = vpop.permute.xlu0 %12102 }
 0xf30   : > { %v12109_v34 = vsel %vm2236_vm11, %v12101_v28, %v12103_v11  ;;  %v18994_v46 = vld [vmem:[#allocation3 + $0x28] sm:$0xff] }
 0xf31   : > { %12125 = vst.msk [vmem:[#allocation3 + $0x68] sm:$0xff] %vm1140_vm5, %v12109_v34  ;;  %12764 = vrot.lane.b32.xlu0 %v18948_v32, %s15109_s18  ;;  %12370 = vrot.lane.b32.xlu1 %v18945_v41, %s15106_s10  ;;  %v18988_v38 = vld [vmem:[#allocation3 + $0x50] sm:$0xff] }
 0xf32   : > { %v19216_v34 = vld [vmem:[%s19691_s1 + $0x3f0] sm:$0xff] }
 0xf35   : > { %12962 = vrot.lane.b32.xlu0 %v18948_v32, %s15110_s19  ;;  %12564 = vrot.lane.b32.xlu1 %v18942_v5, %s15108_s17 }
 0xf38   : > { %v12157_v54 = vld [vmem:[#allocation3 + $0x68] sm:$0xff] }
 0xf39   : > { %12174 = vrot.lane.b32.xlu0 %v18945_v41, %s15107_s11  ;;  %12766 = vrot.lane.b32.xlu1 %v18942_v5, %s15109_s18 }
 0xf3d   : > { %12368 = vrot.lane.b32.xlu0 %v18942_v5, %s15106_s10  ;;  %12964 = vrot.lane.b32.xlu1 %v18942_v5, %s15110_s19 }
 0xf41   : > { %12566 = vrot.lane.b32.xlu0 %v18945_v41, %s15108_s17  ;;  %13162 = vrot.lane.b32.xlu1 %v18942_v5, %s15111_s20 }
 0xf45   : > { %12768 = vrot.lane.b32.xlu0 %v18945_v41, %s15109_s18  ;;  %12180 = vrot.lane.b32.xlu1 %v18988_v38, %s15107_s11 }
 0xf49   : > { %12966 = vrot.lane.b32.xlu0 %v18945_v41, %s15110_s19  ;;  %12176 = vrot.lane.b32.xlu1 %v18994_v46, %s15107_s11 }
 0xf4d   : > { %13164 = vrot.lane.b32.xlu0 %v18945_v41, %s15111_s20  ;;  %12572 = vrot.lane.b32.xlu1 %v18988_v38, %s15108_s17 }
 0xf51   : > { %12376 = vrot.lane.b32.xlu0 %v18988_v38, %s15106_s10  ;;  %12568 = vrot.lane.b32.xlu1 %v18994_v46, %s15108_s17 }
 0xf55   : > { %12372 = vrot.lane.b32.xlu0 %v18994_v46, %s15106_s10  ;;  %12770 = vrot.lane.b32.xlu1 %v18994_v46, %s15109_s18 }
 0xf59   : > { %12772 = vrot.lane.b32.xlu0 %v18988_v38, %s15109_s18  ;;  %12968 = vrot.lane.b32.xlu1 %v18994_v46, %s15110_s19 }
 0xf5d   : > { %12970 = vrot.lane.b32.xlu0 %v18988_v38, %s15110_s19  ;;  %12378 = vrot.lane.b32.xlu1 %v18957_v15, %s15106_s10 }
 0xf61   : > { %13168 = vrot.lane.b32.xlu0 %v18988_v38, %s15111_s20  ;;  %12380 = vrot.lane.b32.xlu1 %v18964_v45, %s15106_s10 }
 0xf65   : > { %12776 = vrot.lane.b32.xlu1 %v18964_v45, %s15109_s18  ;;  %12182 = vrot.lane.b32.xlu0 %v18957_v15, %s15107_s11 }
 0xf69   : > { %12974 = vrot.lane.b32.xlu1 %v18964_v45, %s15110_s19  ;;  %12184 = vrot.lane.b32.xlu0 %v18964_v45, %s15107_s11 }
 0xf6d   : > { %13172 = vrot.lane.b32.xlu1 %v18964_v45, %s15111_s20  ;;  %12574 = vrot.lane.b32.xlu0 %v18957_v15, %s15108_s17 }
 0xf71   : > { %12576 = vrot.lane.b32.xlu0 %v18964_v45, %s15108_s17  ;;  %12186 = vrot.lane.b32.xlu1 %v12157_v54, %s15107_s11  ;;  %s19748_s11 = smov 88  }
 0xf75   : > { %12774 = vrot.lane.b32.xlu0 %v18957_v15, %s15109_s18  ;;  %13166 = vrot.lane.b32.xlu1 %v18994_v46, %s15111_s20 }
 0xf79   : > { %12972 = vrot.lane.b32.xlu0 %v18957_v15, %s15110_s19  ;;  %13392 = vrot.lane.b32.xlu1 %v18964_v45, %s19747_s21 }
 0xf7d   : > { %13170 = vrot.lane.b32.xlu0 %v18957_v15, %s15111_s20  ;;  %13380 = vrot.lane.b32.xlu1 %v18942_v5, %s19747_s21 }
 0xf81   : > { %12382 = vrot.lane.b32.xlu0 %v12157_v54, %s15106_s10  ;;  %13378 = vrot.lane.b32.xlu1 %v18948_v32, %s19747_s21  ;;  %s19749_s10 = smov 87  }
 0xf85   : > { %13160 = vrot.lane.b32.xlu0 %v18948_v32, %s15111_s20  ;;  %13594 = vrot.lane.b32.xlu1 %v18957_v15, %s19748_s11 }
 0xf89   : > { %13390 = vrot.lane.b32.xlu0 %v18957_v15, %s19747_s21  ;;  %12578 = vrot.lane.b32.xlu1 %v12157_v54, %s15108_s17 }
 0xf8d   : > { %13388 = vrot.lane.b32.xlu0 %v18988_v38, %s19747_s21  ;;  %13592 = vrot.lane.b32.xlu1 %v18988_v38, %s19748_s11 }
 0xf91   : > { %15028 = vrot.lane.b32.xlu0 %v18886_v44, %s19747_s21  ;;  %12778 = vrot.lane.b32.xlu1 %v12157_v54, %s15109_s18 }
 0xf95   : > { %13382 = vrot.lane.b32.xlu0 %v18945_v41, %s19747_s21  ;;  %15033 = vrot.lane.b32.xlu1 %v18886_v44, %s19748_s11 }
 0xf99   : > { %13384 = vrot.lane.b32.xlu0 %v18994_v46, %s19747_s21  ;;  %12976 = vrot.lane.b32.xlu1 %v12157_v54, %s15110_s19 }
 0xf9b   : > { %v19075_v53 = vpop.permute.xlu1 %12366  ;;  %v19077_v3 = vpop.permute.xlu0 %12170 }
 0xf9c   : > { %v12188_v29 = vsel %vm345_vm0, %v15016_v0, %v19077_v3 }
 0xf9d   : > { %13596 = vrot.lane.b32.xlu0 %v18964_v45, %s19748_s11  ;;  %13586 = vrot.lane.b32.xlu1 %v18945_v41, %s19748_s11 }
 0xf9f   : > { %v19083_v42 = vpop.permute.xlu1 %12172  ;;  %v19085_v35 = vpop.permute.xlu0 %12562 }
 0xfa0   : > { %v12189_v59 = vsel %vm345_vm0, %v19077_v3, %v19083_v42  ;;  %v15026_v3 = vunpack.i.h.bf16 %v18936_v50 }
 0xfa1   : > { %13584 = vrot.lane.b32.xlu0 %v18942_v5, %s19748_s11  ;;  %13174 = vrot.lane.b32.xlu1 %v12157_v54, %s15111_s20  ;;  %s15125_s20 = smov 64  }
 0xfa3   : > { %v19090_v44 = vpop.permute.xlu1 %12370  ;;  %v19092_v62 = vpop.permute.xlu0 %12764 }
 0xfa5   : > { %13582 = vrot.lane.b32.xlu0 %v18948_v32, %s19748_s11  ;;  %13588 = vrot.lane.b32.xlu1 %v18994_v46, %s19748_s11 }
 0xfa7   : > { %v19098_v36 = vpop.permute.xlu1 %12564  ;;  %v19100_v48 = vpop.permute.xlu0 %12962 }
 0xfa9   : > { %13798 = vrot.lane.b32.xlu0 %v18957_v15, %s19749_s10  ;;  %13394 = vrot.lane.b32.xlu1 %v12157_v54, %s19747_s21  ;;  %v14746_v15 = vld [vmem:[%s19691_s1 + $0x408] sm:$0xff]  ;;  %s15128_s21 = smov [#allocation5]  }
 0xfab   : > { %v19105_v9 = vpop.permute.xlu1 %12766  ;;  %v19107_v37 = vpop.permute.xlu0 %12174 }
 0xfad   : > { %13796 = vrot.lane.b32.xlu0 %v18988_v38, %s19749_s10  ;;  %13800 = vrot.lane.b32.xlu1 %v18964_v45, %s19749_s10  ;;  %v15025_v38 = vunpack.i.l.bf16 %v18936_v50 }
 0xfaf   : > { %v19113_v21 = vpop.permute.xlu1 %12964  ;;  %v19115_v27 = vpop.permute.xlu0 %12368 }
 0xfb0   : > { %v12385_v55 = vsel %vm543_vm1, %v19075_v53, %v19115_v27 }
 0xfb1   : > { %13598 = vrot.lane.b32.xlu0 %v12157_v54, %s19748_s11  ;;  %13788 = vrot.lane.b32.xlu1 %v18942_v5, %s19749_s10  ;;  %v14745_v5 = vld [vmem:[%s19691_s1 + $0x400] sm:$0xff]  ;;  %s15047_s11 = sshll.u32 %s15128_s21, 4  ;;  %s15048_s11 = int_to_ptr.vmem [resolvable:$false] %s15047_s11 }
 0xfb3   : > { %v19120_v49 = vpop.permute.xlu1 %13162  ;;  %v19122_v26 = vpop.permute.xlu0 %12566 }
 0xfb5   : > { %13804 = vrot.lane.b32.xlu0 %v19124_v12, %s19749_s10  ;;  %13786 = vrot.lane.b32.xlu1 %v18948_v32, %s19749_s10  ;;  %v15021_v32 = vunpack.i.h.bf16 %v18938_v20 }
 0xfb7   : > { %v12181_v40 = vpop.permute.xlu1 %12180  ;;  %v19130_v58 = vpop.permute.xlu0 %12768  ;;  %v12384_v20 = vsel %vm543_vm1, %v15021_v32, %v19075_v53 }
 0xfb8   : > { %v12192_v2 = vsel %vm345_vm0, %v15015_v56, %v12181_v40  ;;  %v12580_v56 = vsel %vm740_vm3, %v15026_v3, %v19085_v35 }
 0xfb9   : > { %13790 = vrot.lane.b32.xlu0 %v18945_v41, %s19749_s10  ;;  %13802 = vrot.lane.b32.xlu1 %v12157_v54, %s19749_s10 }
 0xfbb   : > { %v19135_v16 = vpop.permute.xlu1 %12176  ;;  %v19137_v10 = vpop.permute.xlu0 %12966 }
 0xfbd   : > { %13792 = vrot.lane.b32.xlu0 %v18994_v46, %s19749_s10  ;;  %13794 = vrot.lane.b32.xlu1 %v19124_v12, %s19749_s10  ;;  %s15049_s10 = scalar_lea.vmem %s15048_s11, 512 }
 0xfbf   : > { %v12573_v47 = vpop.permute.xlu1 %12572  ;;  %v19149_v1 = vpop.permute.xlu0 %13164 }
 0xfc1   : > { %13997 = vperm.xlu0 %14946, %v14762_v51   ;;  %13992 = vperm.xlu1 %14945, %v14761_v61   ;;  %v12581_v61 = vsel %vm740_vm3, %v19085_v35, %v19098_v36 }
 0xfc3   : > { %v19151_v14 = vpop.permute.xlu1 %12568  ;;  %v12377_v17 = vpop.permute.xlu0 %12376 }
 0xfc4   : > { %v12388_v7 = vsel %vm543_vm1, %v15020_v22, %v12377_v17  ;;  %v19274_v22 = vld [vmem:[%s19691_s1 + $0x418] sm:$0xff] }
 0xfc7   : > { %v19153_v52 = vpop.permute.xlu1 %12770  ;;  %v19155_v33 = vpop.permute.xlu0 %12372 }
 0xfc8   : > { %v19160_v23 = vsel %vm941_vm4, %v19130_v58, %v19153_v52 }
 0xfcb   : > { %v19162_v13 = vpop.permute.xlu1 %12968  ;;  %v19164_v6 = vpop.permute.xlu0 %12772 }
 0xfcf   : > { %v19166_v4 = vpop.permute.xlu1 %12378  ;;  %v19168_v19 = vpop.permute.xlu0 %12970 }
 0xfd0   : > { %v12389_v43 = vsel %vm543_vm1, %v12377_v17, %v19166_v4  ;;  %v12191_v17 = vsel %vm345_vm0, %v19107_v37, %v19135_v16 }
 0xfd3   : > { %v19170_v8 = vpop.permute.xlu1 %12380  ;;  %v19172_v60 = vpop.permute.xlu0 %13168 }
 0xfd7   : > { %v19175_v30 = vpop.permute.xlu1 %12776  ;;  %v12183_v31 = vpop.permute.xlu0 %12182 }
 0xfd8   : > { %v12193_v24 = vsel %vm345_vm0, %v12181_v40, %v12183_v31  ;;  %v12584_v40 = vsel %vm740_vm3, %v15025_v38, %v12573_v47 }
 0xfd9   : > { %12238 = vmatprep.subr.mxu0 %v12193_v24  ;;  %v19243_v24 = vld [vmem:[%s19691_s1 + $0x3f8] sm:$0xff] }
 0xfda   : > { %12239 = vmatpush1.msra.mxu0 %v12192_v2  ;;  %v12781_v2 = vsel %vm941_vm4, %v19105_v9, %v19130_v58 }
 0xfdb   : > { %v19187_v41 = vpop.permute.xlu1 %12974  ;;  %12240 = vmatprep.subr.mxu0 %v12189_v59  ;;  %v12185_v18 = vpop.permute.xlu0 %12184 }
 0xfdc   : > { %12241 = vmatpush1.msra.mxu0 %v12188_v29  ;;  %v12194_v51 = vsel %vm345_vm0, %v12183_v31, %v12185_v18  ;;  %v12190_v31 = vsel %vm345_vm0, %v19083_v42, %v19107_v37  ;;  %v19257_v37 = vld [vmem:[%s19691_s1 + $0x410] sm:$0xff] }
 0xfdd   : > { %14763 = vmatmul.mubr.msk.f32.vlgmr.msra.gmra.mxu0 %vm362_vm2, %v14745_v5  ;;  %12434 = vmatprep.subr.mxu0 %v12389_v43  ;;  %v12390_v43 = vsel %vm543_vm1, %v19166_v4, %v19170_v8  ;;  %v12979_v4 = vsel %vm1140_vm5, %v19113_v21, %v19137_v10 }
 0xfde   : > { %12435 = vmatpush1.msra.mxu0 %v12388_v7  ;;  %12280 = vmatprep.mubr.f32.mxu0 %v19124_v12  ;;  %v12387_v7 = vsel %vm543_vm1, %v19090_v44, %v19155_v33  ;;  %v19318_v33 = vld [vmem:[%s19691_s1 + $0x428] sm:$0xff] }
 0xfdf   : > { %v19203_v28 = vpop.permute.xlu1 %13172  ;;  %v19205_v45 = vpop.permute.xlu0 %12574  ;;  %12436 = vmatprep.subr.mxu0 %v12385_v55  ;;  %v12386_v55 = vsel %vm543_vm1, %v19115_v27, %v19090_v44 }
 0xfe0   : > { %12437 = vmatpush1.msra.mxu0 %v12384_v20  ;;  %v12585_v11 = vsel %vm740_vm3, %v12573_v47, %v19205_v45  ;;  %v19334_v20 = vld [vmem:[%s19691_s1 + $0x430] sm:$0xff] }
 0xfe1   : > { %14764 = vmatmul.mubr.msk.f32.gmra.mxu0 %vm362_vm2, %v14746_v15  ;;  %12630 = vmatprep.subr.mxu0 %v12585_v11 }
 0xfe2   : > { %12470 = vmatprep.mubr.f32.mxu0 %v19124_v12 }
 0xfe3   : > { %v12187_v46 = vpop.permute.xlu1 %12186  ;;  %v19219_v54 = vpop.permute.xlu0 %12576 }
 0xfe4   : > { %v12195_v53 = vsel %vm345_vm0, %v12185_v18, %v12187_v46  ;;  %v12586_v11 = vsel %vm740_vm3, %v19205_v45, %v19219_v54  ;;  %v12583_v46 = vsel %vm740_vm3, %v19122_v26, %v19151_v14  ;;  %v12582_v45 = vsel %vm740_vm3, %v19098_v36, %v19122_v26  ;;  %v19361_v14 = vld [vmem:[%s19691_s1 + $0x438] sm:$0xff] }
 0xfe5   : > { %12315 = vmatprep.subr.mxu1 %v12195_v53  ;;  %14767 = vmatmul.mubr.msk.f32.vlgmr.msra.gmra.mxu0 %vm362_vm2, %v19216_v34  ;;  %vm19750_vm0 = vcmask 711680  }
 0xfe6   : > { %12631 = vmatpush1.msra.mxu0 %v12584_v40  ;;  %12316 = vmatpush1.msra.mxu1 %v12194_v51  ;;  %v19379_v40 = vld [vmem:[%s19691_s1 + $0x440] sm:$0xff]  ;;  %vm19757_vm14 = vmmov %vm19750_vm0 }
 0xfe7   : > { %12632 = vmatprep.subr.mxu0 %v12581_v61  ;;  %v19233_v50 = vpop.permute.xlu1 %13166  ;;  %12317 = vmatprep.subr.mxu1 %v12191_v17  ;;  %v12775_v47 = vpop.permute.xlu0 %12774 }
 0xfe8   : > { %12633 = vmatpush1.msra.mxu0 %v12580_v56  ;;  %12318 = vmatpush1.msra.mxu1 %v12190_v31  ;;  %v12784_v16 = vsel %vm941_vm4, %v12775_v47, %v19175_v30  ;;  %v12783_v0 = vsel %vm941_vm4, %v19164_v6, %v12775_v47  ;;  %v12780_v6 = vsel %vm941_vm4, %v19092_v62, %v19105_v9  ;;  %v19290_v62 = vld [vmem:[%s19691_s1 + $0x420] sm:$0xff] }
 0xfe9   : > { %12476 = vmatprep.mubr.f32.mxu0 %v19124_v12  ;;  %12828 = vmatprep.subr.mxu0 %v12784_v16 }
 0xfea   : > { %14768 = vmatmul.mubr.msk.f32.gmra.mxu0 %vm362_vm2, %v19243_v24  ;;  %14765 = vmatmul.mubr.msk.f32.vlgmr.msra.gmra.mxu1 %vm362_vm2, %v14745_v5 }
 0xfeb   : > { %v19251_v35 = vpop.permute.xlu1 %13392  ;;  %v12973_v42 = vpop.permute.xlu0 %12972  ;;  %12666 = vmatprep.mubr.f32.mxu0 %v19124_v12  ;;  %12357 = vmatprep.mubr.f32.mxu1 %v19124_v12 }
 0xfec   : > { %v12982_v58 = vsel %vm1140_vm5, %v12973_v42, %v19187_v41  ;;  %v12981_v32 = vsel %vm1140_vm5, %v19168_v19, %v12973_v42 }
 0xfee   : > { %14771 = vmatmul.mubr.msk.f32.vlgmr.msra.gmra.mxu0 %vm362_vm2, %v19257_v37  ;;  %14766 = vmatmul.mubr.msk.f32.gmra.mxu1 %vm362_vm2, %v14746_v15  ;;  %v12978_v15 = vsel %vm1140_vm5, %v19100_v48, %v19113_v21 }
 0xfef   : > { %12829 = vmatpush1.msra.mxu0 %v12783_v0  ;;  %v19268_v59 = vpop.permute.xlu1 %13380  ;;  %v13171_v5 = vpop.permute.xlu0 %13170  ;;  %12672 = vmatprep.mubr.f32.mxu0 %v19124_v12  ;;  %v19440_v0 = vld [vmem:[%s19691_s1 + $0x458] sm:$0xff] }
 0xff0   : > { %12830 = vmatprep.subr.mxu0 %v12781_v2  ;;  %12547 = vmatprep.mubr.f32.mxu1 %v19124_v12  ;;  %v13180_v44 = vsel %vm1339_vm6, %v13171_v5, %v19203_v28 }
 0xff1   : > { %12831 = vmatpush1.msra.mxu0 %v12780_v6 }
 0xff2   : > { %13026 = vmatprep.subr.mxu0 %v12982_v58  ;;  %14772 = vmatmul.mubr.msk.f32.gmra.mxu0 %vm362_vm2, %v19274_v22  ;;  %v13178_v58 = vsel %vm1339_vm6, %v19149_v1, %v19233_v50 }
 0xff3   : > { %v19284_v18 = vpop.permute.xlu1 %13378  ;;  %v12383_v29 = vpop.permute.xlu0 %12382  ;;  %12864 = vmatprep.mubr.f32.mxu0 %v19124_v12 }
 0xff4   : > { %v12391_v9 = vsel %vm543_vm1, %v19170_v8, %v12383_v29  ;;  %v13398_v31 = vsel %vm1562_vm7, %v19284_v18, %v19268_v59  ;;  %v14757_v18 = vld [vmem:[%s19691_s1 + $0x460] sm:$0xff]  ;;  %vm19751_vm1 = vmmov %vm19750_vm0 }
 0xff5   : > { %12511 = vmatprep.subr.mxu1 %v12391_v9 }
 0xff6   : > { %14775 = vmatmul.mubr.msk.f32.vlgmr.msra.gmra.mxu0 %vm362_vm2, %v19290_v62  ;;  %12512 = vmatpush1.msra.mxu1 %v12390_v43 }
 0xff7   : > { %13027 = vmatpush1.msra.mxu0 %v12981_v32  ;;  %v19310_v8 = vpop.permute.xlu1 %13594  ;;  %12513 = vmatprep.subr.mxu1 %v12387_v7  ;;  %v13161_v19 = vpop.permute.xlu0 %13160  ;;  %v14758_v32 = vld [vmem:[%s19691_s1 + $0x468] sm:$0xff] }
 0xff8   : > { %13028 = vmatprep.subr.mxu0 %v12979_v4  ;;  %12514 = vmatpush1.msra.mxu1 %v12386_v55 }
 0xff9   : > { %13029 = vmatpush1.msra.mxu0 %v12978_v15  ;;  %12870 = vmatprep.mubr.f32.mxu0 %v19124_v12 }
 0xffa   : > { %13224 = vmatprep.subr.mxu0 %v13180_v44  ;;  %14769 = vmatmul.mubr.msk.f32.vlgmr.msra.gmra.mxu1 %vm362_vm2, %v19216_v34  ;;  %v13179_v34 = vsel %vm1339_vm6, %v19172_v60, %v13171_v5  ;;  %v13177_v60 = vsel %vm1339_vm6, %v19120_v49, %v19149_v1 }
 0xffb   : > { %14776 = vmatmul.mubr.msk.f32.gmra.mxu0 %vm362_vm2, %v19318_v33  ;;  %v12579_v48 = vpop.permute.xlu1 %12578  ;;  %v13391_v21 = vpop.permute.xlu0 %13390  ;;  %12553 = vmatprep.mubr.f32.mxu1 %v19124_v12 }
 0xffc   : > { %13062 = vmatprep.mubr.f32.mxu0 %v19124_v12  ;;  %v12587_v27 = vsel %vm740_vm3, %v19219_v54, %v12579_v48  ;;  %v13176_v54 = vsel %vm1339_vm6, %v13161_v19, %v19120_v49  ;;  %v13403_v36 = vsel %vm1562_vm7, %v13391_v21, %v19251_v35  ;;  %vm19752_vm3 = vmmov %vm19750_vm0 }
 0xffd   : > { %12707 = vmatprep.subr.mxu1 %v12587_v27 }
 0xffe   : > { %14770 = vmatmul.mubr.msk.f32.gmra.mxu1 %vm362_vm2, %v19243_v24  ;;  %v19418_v24 = vld [vmem:[%s19691_s1 + $0x450] sm:$0xff] }
 0xfff   : > { %14779 = vmatmul.mubr.msk.f32.vlgmr.msra.gmra.mxu0 %vm362_vm2, %v19334_v20  ;;  %12708 = vmatpush1.msra.mxu1 %v12586_v11  ;;  %v19345_v38 = vpop.permute.xlu1 %13592  ;;  %v13389_v53 = vpop.permute.xlu0 %13388 }
0x1000   : > { %13225 = vmatpush1.msra.mxu0 %v13179_v34  ;;  %12709 = vmatprep.subr.mxu1 %v12583_v46  ;;  %v13402_v17 = vsel %vm1562_vm7, %v13389_v53, %v13391_v21  ;;  %v13606_v5 = vsel %vm1767_vm8, %v19345_v38, %v19310_v8 }
0x1001   : > { %13226 = vmatprep.subr.mxu0 %v13177_v60  ;;  %12710 = vmatpush1.msra.mxu1 %v12582_v45 }
0x1002   : > { %13227 = vmatpush1.msra.mxu0 %v13176_v54  ;;  %12743 = vmatprep.mubr.f32.mxu1 %v19124_v12 }
0x1003   : > { %13068 = vmatprep.mubr.f32.mxu0 %v19124_v12  ;;  %13448 = vmatprep.subr.mxu0 %v13403_v36  ;;  %v12779_v26 = vpop.permute.xlu1 %12778  ;;  %v19367_v3 = vpop.permute.xlu0 %15028 }
0x1004   : > { %14773 = vmatmul.mubr.msk.f32.vlgmr.msra.gmra.mxu1 %vm362_vm2, %v19257_v37  ;;  %14780 = vmatmul.mubr.msk.f32.gmra.mxu0 %vm362_vm2, %v19361_v14  ;;  %v12785_v49 = vsel %vm941_vm4, %v19175_v30, %v12779_v26  ;;  %v12980_v37 = vsel %vm1140_vm5, %v19137_v10, %v19162_v13  ;;  %v15030_v29 = vunpack.i.l.bf16 %v19367_v3  ;;  %v15031_v9 = vunpack.i.h.bf16 %v19367_v3  ;;  %vm19753_vm4 = vmmov %vm19750_vm0 }
0x1005   : > { %12749 = vmatprep.mubr.f32.mxu1 %v19124_v12  ;;  %12905 = vmatprep.subr.mxu1 %v12779_v26 }
0x1006   : > { %13260 = vmatprep.mubr.f32.mxu0 %v19124_v12  ;;  %12906 = vmatpush1.msra.mxu1 %v12785_v49 }
0x1007   : > { %12907 = vmatprep.subr.mxu1 %v19153_v52  ;;  %v19383_v51 = vpop.permute.xlu1 %15033  ;;  %v19385_v61 = vpop.permute.xlu0 %13382  ;;  %v19399_v52 = vld [vmem:[%s19691_s1 + $0x448] sm:$0xff] }
0x1008   : > { %14774 = vmatmul.mubr.msk.f32.gmra.mxu1 %vm362_vm2, %v19274_v22  ;;  %14783 = vmatmul.mubr.msk.f32.vlgmr.msra.gmra.mxu0 %vm362_vm2, %v19379_v40  ;;  %v13399_v30 = vsel %vm1562_vm7, %v19268_v59, %v19385_v61  ;;  %v15035_v15 = vunpack.i.l.bf16 %v19383_v51  ;;  %v15036_v48 = vunpack.i.h.bf16 %v19383_v51  ;;  %v14760_v51 = vld [vmem:[%s19691_s1 + $0x478] sm:$0xff] }
0x1009   : > { %13449 = vmatpush1.msra.mxu0 %v13402_v17  ;;  %12908 = vmatpush1.msra.mxu1 %v19160_v23 }
0x100a   : > { %12941 = vmatprep.mubr.f32.mxu1 %v19124_v12  ;;  %13266 = vmatprep.mubr.f32.mxu0 %v19124_v12 }
0x100b   : > { %13450 = vmatprep.subr.mxu0 %v13399_v30  ;;  %v12977_v47 = vpop.permute.xlu1 %12976  ;;  %v19403_v56 = vpop.permute.xlu0 %13384 }
0x100c   : > { %14777 = vmatmul.mubr.msk.f32.vlgmr.msra.gmra.mxu1 %vm362_vm2, %v19290_v62  ;;  %14784 = vmatmul.mubr.msk.f32.gmra.mxu0 %vm362_vm2, %v19399_v52  ;;  %v12983_v23 = vsel %vm1140_vm5, %v19187_v41, %v12977_v47  ;;  %v13401_v7 = vsel %vm1562_vm7, %v19403_v56, %v15031_v9 }
0x100d   : > { %13451 = vmatpush1.msra.mxu0 %v13398_v31  ;;  %12947 = vmatprep.mubr.f32.mxu1 %v19124_v12 }
0x100e   : > { %13103 = vmatprep.subr.mxu1 %v12977_v47  ;;  %13484 = vmatprep.mubr.f32.mxu0 %v19124_v12 }
0x100f   : > { %13104 = vmatpush1.msra.mxu1 %v12983_v23  ;;  %v19421_v16 = vpop.permute.xlu1 %13586  ;;  %v19423_v42 = vpop.permute.xlu0 %13596 }
0x1010   : > { %14778 = vmatmul.mubr.msk.f32.gmra.mxu1 %vm362_vm2, %v19318_v33  ;;  %14787 = vmatmul.mubr.msk.f32.vlgmr.msra.gmra.mxu0 %vm362_vm2, %v19418_v24  ;;  %v13607_v41 = vsel %vm1767_vm8, %v19310_v8, %v19423_v42 }
0x1011   : > { %13105 = vmatprep.subr.mxu1 %v19162_v13  ;;  %13139 = vmatprep.mubr.f32.mxu1 %v19124_v12 }
0x1012   : > { %13106 = vmatpush1.msra.mxu1 %v12980_v37  ;;  %13490 = vmatprep.mubr.f32.mxu0 %v19124_v12 }
0x1013   : > { %13652 = vmatprep.subr.mxu0 %v13607_v41  ;;  %v13175_v2 = vpop.permute.xlu1 %13174  ;;  %v13585_v59 = vpop.permute.xlu0 %13584 }
0x1014   : > { %14781 = vmatmul.mubr.msk.f32.vlgmr.msra.gmra.mxu1 %vm362_vm2, %v19334_v20  ;;  %14788 = vmatmul.mubr.msk.f32.gmra.mxu0 %vm362_vm2, %v19440_v0  ;;  %v13181_v10 = vsel %vm1339_vm6, %v19203_v28, %v13175_v2  ;;  %v13603_v13 = vsel %vm1767_vm8, %v13585_v59, %v19421_v16  ;;  %vm19754_vm6 = vmmov %vm19750_vm0 }
0x1015   : > { %13653 = vmatpush1.msra.mxu0 %v13606_v5  ;;  %13145 = vmatprep.mubr.f32.mxu1 %v19124_v12 }
0x1016   : > { %13301 = vmatprep.subr.mxu1 %v13175_v2  ;;  %13654 = vmatprep.subr.mxu0 %v13603_v13 }
0x1017   : > { %13302 = vmatpush1.msra.mxu1 %v13181_v10  ;;  %v13589_v22 = vpop.permute.xlu1 %13588  ;;  %v13583_v6 = vpop.permute.xlu0 %13582  ;;  %13688 = vmatprep.mubr.f32.mxu0 %v19124_v12 }
0x1018   : > { %14782 = vmatmul.mubr.msk.f32.gmra.mxu1 %vm362_vm2, %v19361_v14  ;;  %13303 = vmatprep.subr.mxu1 %v19233_v50  ;;  %v13602_v28 = vsel %vm1767_vm8, %v13583_v6, %v13585_v59  ;;  %v13605_v20 = vsel %vm1767_vm8, %v13589_v22, %v15036_v48  ;;  %v13604_v38 = vsel %vm1767_vm8, %v19421_v16, %v13589_v22  ;;  %v14759_v14 = vld [vmem:[%s19691_s1 + $0x470] sm:$0xff] }
0x1019   : > { %13304 = vmatpush1.msra.mxu1 %v13178_v58  ;;  %13337 = vmatprep.mubr.f32.mxu1 %v19124_v12 }
0x101a   : > { %13655 = vmatpush1.msra.mxu0 %v13602_v28 }
0x101b   : > { %14791 = vmatmul.mubr.msk.f32.vlgmr.msra.gmra.mxu0 %vm362_vm2, %v14757_v18  ;;  %v13395_v1 = vpop.permute.xlu1 %13394  ;;  %v13799_v62 = vpop.permute.xlu0 %13798 }
0x101c   : > { %14785 = vmatmul.mubr.msk.f32.vlgmr.msra.gmra.mxu1 %vm362_vm2, %v19379_v40  ;;  %v13404_v50 = vsel %vm1562_vm7, %v19251_v35, %v13395_v1  ;;  %v13405_v43 = vsel %vm1562_vm7, %v13395_v1, %v15030_v29  ;;  %13694 = vmatprep.mubr.f32.mxu0 %v19124_v12  ;;  %v13400_v35 = vsel %vm1562_vm7, %v19385_v61, %v19403_v56  ;;  %vm19755_vm7 = vmmov %vm19750_vm0 }
0x101d   : > { %13343 = vmatprep.mubr.f32.mxu1 %v19124_v12  ;;  %13525 = vmatprep.subr.mxu1 %v13405_v43 }
0x101e   : > { %13526 = vmatpush1.msra.mxu1 %v13404_v50 }
0x101f   : > { %14792 = vmatmul.mubr.msk.f32.gmra.mxu0 %vm362_vm2, %v14758_v32  ;;  %v13801_v55 = vpop.permute.xlu1 %13800  ;;  %v13797_v4 = vpop.permute.xlu0 %13796  ;;  %13527 = vmatprep.subr.mxu1 %v13401_v7 }
0x1020   : > { %14786 = vmatmul.mubr.msk.f32.gmra.mxu1 %vm362_vm2, %v19399_v52  ;;  %v13810_v8 = vsel %vm19750_vm0, %v13797_v4, %v13799_v62  ;;  %v13811_v19 = vsel %vm19751_vm1, %v13799_v62, %v13801_v55  ;;  %13892 = vmatprep.mubr.f32.mxu0 %v19124_v12 }
0x1021   : > { %13528 = vmatpush1.msra.mxu1 %v13400_v35  ;;  %13561 = vmatprep.mubr.f32.mxu1 %v19124_v12 }
0x1022   : > { %13856 = vmatprep.subr.mxu0 %v13811_v19 }
0x1023   : > { %13857 = vmatpush1.msra.mxu0 %v13810_v8  ;;  %v13789_v33 = vpop.permute.xlu1 %13788  ;;  %v13599_v44 = vpop.permute.xlu0 %13598 }
0x1024   : > { %14789 = vmatmul.mubr.msk.f32.vlgmr.msra.gmra.mxu1 %vm362_vm2, %v19418_v24  ;;  %v13608_v21 = vsel %vm1767_vm8, %v19423_v42, %v13599_v44  ;;  %v13609_v27 = vsel %vm1767_vm8, %v13599_v44, %v15035_v15  ;;  %vm19756_vm8 = vmmov %vm19750_vm0 }
0x1025   : > { %13567 = vmatprep.mubr.f32.mxu1 %v19124_v12  ;;  %13729 = vmatprep.subr.mxu1 %v13609_v27 }
0x1026   : > { %13730 = vmatpush1.msra.mxu1 %v13608_v21 }
0x1027   : > { %v13787_v11 = vpop.permute.xlu1 %13786  ;;  %v13805_v34 = vpop.permute.xlu0 %13804  ;;  %13731 = vmatprep.subr.mxu1 %v13605_v20 }
0x1028   : > { %14790 = vmatmul.mubr.msk.f32.gmra.mxu1 %vm362_vm2, %v19440_v0  ;;  %v13806_v36 = vsel %vm19755_vm7, %v13787_v11, %v13789_v33 }
0x1029   : > { %13732 = vmatpush1.msra.mxu1 %v13604_v38  ;;  %13765 = vmatprep.mubr.f32.mxu1 %v19124_v12 }
0x102b   : > { %v13803_v46 = vpop.permute.xlu1 %13802  ;;  %v13791_v53 = vpop.permute.xlu0 %13790 }
0x102c   : > { %14793 = vmatmul.mubr.msk.f32.vlgmr.msra.gmra.mxu1 %vm362_vm2, %v14757_v18  ;;  %v13812_v45 = vsel %vm19752_vm3, %v13801_v55, %v13803_v46  ;;  %v13807_v60 = vsel %vm19753_vm4, %v13789_v33, %v13791_v53  ;;  %v13813_v54 = vsel %vm19754_vm6, %v13803_v46, %v13805_v34 }
0x102d   : > { %13771 = vmatprep.mubr.f32.mxu1 %v19124_v12  ;;  %13858 = vmatprep.subr.mxu0 %v13807_v60 }
0x102e   : > { %13933 = vmatprep.subr.mxu1 %v13813_v54  ;;  %13859 = vmatpush1.msra.mxu0 %v13806_v36 }
0x102f   : > { %13934 = vmatpush1.msra.mxu1 %v13812_v45  ;;  %v13795_v26 = vpop.permute.xlu1 %13794  ;;  %v13793_v3 = vpop.permute.xlu0 %13792  ;;  %14795 = vmatmul.mubr.msk.f32.vlgmr.msra.gmra.mxu0 %vm362_vm2, %v14759_v14 }
0x1030   : > { %14794 = vmatmul.mubr.msk.f32.gmra.mxu1 %vm362_vm2, %v14758_v32  ;;  %v13808_v49 = vsel %vm19756_vm8, %v13791_v53, %v13793_v3  ;;  %v13809_v40 = vsel %vm19757_vm14, %v13793_v3, %v13795_v26  ;;  %13898 = vmatprep.mubr.f32.mxu0 %v19124_v12 }
0x1031   : > { %13935 = vmatprep.subr.mxu1 %v13809_v40  ;;  %13969 = vmatprep.mubr.f32.mxu1 %v19124_v12 }
0x1032   : > { %13936 = vmatpush1.msra.mxu1 %v13808_v49 }
0x1033   : > { %14796 = vmatmul.mubr.msk.f32.gmra.mxu0 %vm362_vm2, %v14760_v51 }
0x1034   : > { %14797 = vmatmul.mubr.msk.f32.vlgmr.msra.gmra.mxu1 %vm362_vm2, %v14759_v14  ;;  %14184 = vmatprep.mubr.f32.mxu0 %v19124_v12 }
0x1035   : > { %13975 = vmatprep.mubr.f32.mxu1 %v19124_v12 }
0x1038   : > { %14798 = vmatmul.mubr.msk.f32.gmra.mxu1 %vm362_vm2, %v14760_v51 }
0x1039   : > { %14255 = vmatprep.mubr.f32.mxu1 %v19124_v12 }
0x109d   : > { %v12276_v61 = vpop.f32.mrf.mxu0 }
0x109f   : > { %v12278_v17 = vpop.f32.mrf.mxu0 }
0x10a1   : > { %v12282_v30 = vpop.f32.mrf.mxu0 }
0x10a3   : > { %v12284_v52 = vpop.f32.mrf.mxu0 }
0x10a5   : > { %v12472_v47 = vpop.f32.mrf.mxu0 }
0x10a6   : > { %v12473_v45 = vadd.f32 %v12472_v47, %v12276_v61 }
0x10a7   : > { %v12474_v56 = vpop.f32.mrf.mxu0 }
0x10a8   : > { %v12475_v14 = vadd.f32 %v12474_v56, %v12278_v17 }
0x10aa   : > { %v12478_v31 = vpop.f32.mrf.mxu0  ;;  %v12353_v23 = vpop.f32.mrf.mxu1 }
0x10ab   : > { %v12479_v26 = vadd.f32 %v12478_v31, %v12282_v30 }
0x10ac   : > { %v12480_v24 = vpop.f32.mrf.mxu0  ;;  %v19530_v42 = vpop.f32.mrf.mxu1 }
0x10ad   : > { %v12481_v51 = vadd.f32 %v12480_v24, %v12284_v52 }
0x10ae   : > { %v12668_v16 = vpop.f32.mrf.mxu0  ;;  %v12359_v0 = vpop.f32.mrf.mxu1 }
0x10af   : > { %v12756_v3 = vadd.f32 %v12668_v16, %v12473_v45 }
0x10b0   : > { %v12670_v41 = vpop.f32.mrf.mxu0  ;;  %v19532_v5 = vpop.f32.mrf.mxu1 }
0x10b1   : > { %19758 = vst [vmem:[#allocation14_spill] sm:$0xff] %v19532_v5  ;;  %v12757_v57 = vadd.f32 %v12670_v41, %v12475_v14 }
0x10b2   : > { %v12674_v37 = vpop.f32.mrf.mxu0 }
0x10b3   : > { %v12760_v39 = vadd.f32 %v12674_v37, %v12479_v26 }
0x10b4   : > { %v12676_v2 = vpop.f32.mrf.mxu0 }
0x10b6   : > { %v12866_v59 = vpop.f32.mrf.mxu0 }
0x10b7   : > { %v12954_v63 = vadd.f32 %v12866_v59, %v12756_v3 }
0x10b8   : > { %v12868_v12 = vpop.f32.mrf.mxu0  ;;  %v19764_v37 = vld [vmem:[#allocation14_spill] sm:$0xff] }
0x10ba   : > { %v12549_v10 = vpop.f32.mrf.mxu1 }
0x10bb   : > { %v12872_v13 = vpop.f32.mrf.mxu0  ;;  %v12550_v61 = vadd.f32 %v12549_v10, %v12353_v23 }
0x10bc   : > { %v12551_v22 = vpop.f32.mrf.mxu1  ;;  %v12958_v5 = vadd.f32 %v12872_v13, %v12760_v39 }
0x10bd   : > { %v12874_v6 = vpop.f32.mrf.mxu0  ;;  %v12552_v30 = vadd.f32 %v12551_v22, %v19530_v42 }
0x10be   : > { %v12555_v58 = vpop.f32.mrf.mxu1 }
0x10bf   : > { %v13064_v28 = vpop.f32.mrf.mxu0  ;;  %v12556_v31 = vadd.f32 %v12555_v58, %v12359_v0 }
0x10c0   : > { %v12557_v18 = vpop.f32.mrf.mxu1 }
0x10c1   : > { %v13066_v29 = vpop.f32.mrf.mxu0 }
0x10c4   : > { %v12745_v1 = vpop.f32.mrf.mxu1  ;;  %v13070_v62 = vpop.f32.mrf.mxu0 }
0x10c5   : > { %v12758_v16 = vadd.f32 %v12745_v1, %v12550_v61  ;;  %v13156_v24 = vadd.f32 %v13070_v62, %v12958_v5 }
0x10c6   : > { %v12747_v9 = vpop.f32.mrf.mxu1  ;;  %v13072_v50 = vpop.f32.mrf.mxu0 }
0x10c8   : > { %v12751_v43 = vpop.f32.mrf.mxu1  ;;  %v13262_v32 = vpop.f32.mrf.mxu0 }
0x10ca   : > { %v12753_v7 = vpop.f32.mrf.mxu1  ;;  %v13264_v55 = vpop.f32.mrf.mxu0 }
0x10cc   : > { %v12943_v4 = vpop.f32.mrf.mxu1  ;;  %v13268_v35 = vpop.f32.mrf.mxu0 }
0x10cd   : > { %v12956_v23 = vadd.f32 %v12943_v4, %v12758_v16  ;;  %v13354_v39 = vadd.f32 %v13268_v35, %v13156_v24 }
0x10ce   : > { %v12945_v8 = vpop.f32.mrf.mxu1  ;;  %v13270_v19 = vpop.f32.mrf.mxu0 }
0x10d0   : > { %v12949_v15 = vpop.f32.mrf.mxu1  ;;  %v13486_v44 = vpop.f32.mrf.mxu0 }
0x10d2   : > { %v19534_v33 = vpop.f32.mrf.mxu1  ;;  %v13488_v27 = vpop.f32.mrf.mxu0 }
0x10d3   : > { %19759 = vst [vmem:[#allocation15_spill] sm:$0xff] %v19534_v33 }
0x10d4   : > { %v13141_v48 = vpop.f32.mrf.mxu1  ;;  %v13492_v34 = vpop.f32.mrf.mxu0 }
0x10d5   : > { %v13154_v22 = vadd.f32 %v13141_v48, %v12956_v23  ;;  %v13578_v58 = vadd.f32 %v13492_v34, %v13354_v39 }
0x10d6   : > { %v13143_v21 = vpop.f32.mrf.mxu1  ;;  %v13494_v53 = vpop.f32.mrf.mxu0 }
0x10d8   : > { %v13147_v20 = vpop.f32.mrf.mxu1 }
0x10da   : > { %v19536_v11 = vpop.f32.mrf.mxu1 }
0x10db   : > { %19760 = vst [vmem:[#allocation16_spill] sm:$0xff] %v19536_v11  ;;  %v13690_v54 = vpop.f32.mrf.mxu0  ;;  %v12955_v11 = vadd.f32 %v12868_v12, %v12757_v57  ;;  %v12558_v57 = vadd.f32 %v12557_v18, %v19764_v37  ;;  %v12762_v12 = vadd.f32 %v12751_v43, %v12556_v31  ;;  %v13993_v18 = vpop.permute.xlu1 %13992  ;;  %v19770_v31 = vld [vmem:[#allocation9_spill] sm:$0xff] }
0x10dc   : > { %v13339_v38 = vpop.f32.mrf.mxu1 }
0x10dd   : > { %v13692_v40 = vpop.f32.mrf.mxu0  ;;  %v13153_v17 = vadd.f32 %v13066_v29, %v12955_v11  ;;  %v12960_v0 = vadd.f32 %v12949_v15, %v12762_v12  ;;  %v19771_v12 = vld [vmem:[#allocation11_spill] sm:$0xff] }
0x10de   : > { %v19538_v46 = vpop.f32.mrf.mxu1 }
0x10df   : > { %19761 = vst [vmem:[#allocation17_spill] sm:$0xff] %v19538_v46  ;;  %v13152_v46 = vadd.f32 %v13064_v28, %v12954_v63  ;;  %v13696_v47 = vpop.f32.mrf.mxu0  ;;  %v13351_v41 = vadd.f32 %v13264_v55, %v13153_v17  ;;  %v12759_v63 = vadd.f32 %v12747_v9, %v12552_v30  ;;  %v19765_v9 = vld [vmem:[#allocation15_spill] sm:$0xff] }
0x10e0   : > { %v19540_v60 = vpop.f32.mrf.mxu1  ;;  %v13782_v11 = vadd.f32 %v13696_v47, %v13578_v58 }
0x10e1   : > { %19762 = vst [vmem:[#allocation18_spill] sm:$0xff] %v19540_v60  ;;  %v12761_v60 = vadd.f32 %v12676_v2, %v12481_v51  ;;  %v13350_v56 = vadd.f32 %v13262_v32, %v13152_v46  ;;  %v13698_v10 = vpop.f32.mrf.mxu0  ;;  %v13575_v13 = vadd.f32 %v13488_v27, %v13351_v41  ;;  %v12763_v32 = vadd.f32 %v12753_v7, %v12558_v57 }
0x10e2   : > { %v19542_v36 = vpop.f32.mrf.mxu1  ;;  %v12957_v42 = vadd.f32 %v12945_v8, %v12759_v63  ;;  %v19766_v15 = vld [vmem:[#allocation16_spill] sm:$0xff] }
0x10e3   : > { %19763 = vst [vmem:[#allocation19_spill] sm:$0xff] %v19542_v36  ;;  %v12959_v52 = vadd.f32 %v12874_v6, %v12761_v60  ;;  %v13574_v59 = vadd.f32 %v13486_v44, %v13350_v56  ;;  %v13779_v1 = vadd.f32 %v13692_v40, %v13575_v13  ;;  %v12961_v43 = vadd.f32 %v19765_v9, %v12763_v32 }
0x10e4   : > { %v13563_v49 = vpop.f32.mrf.mxu1  ;;  %v13155_v4 = vadd.f32 %v13143_v21, %v12957_v42  ;;  %v13158_v44 = vadd.f32 %v13147_v20, %v12960_v0 }
0x10e5   : > { %v13157_v2 = vadd.f32 %v13072_v50, %v12959_v52  ;;  %v13778_v28 = vadd.f32 %v13690_v54, %v13574_v59  ;;  %v13352_v50 = vadd.f32 %v13339_v38, %v13154_v22  ;;  %v13159_v48 = vadd.f32 %v19766_v15, %v12961_v43  ;;  %v13998_v38 = vpop.permute.xlu0 %13997  ;;  %v19773_v43 = vld [vmem:[#allocation12_spill] sm:$0xff] }
0x10e6   : > { %v19544_v25 = vpop.f32.mrf.mxu1  ;;  %v19767_v60 = vld [vmem:[#allocation17_spill] sm:$0xff] }
0x10e7   : > { %v13355_v5 = vadd.f32 %v13270_v19, %v13157_v2  ;;  %v13353_v19 = vadd.f32 %v19767_v60, %v13155_v4  ;;  %v13576_v14 = vadd.f32 %v13563_v49, %v13352_v50 }
0x10e8   : > { %v13569_v33 = vpop.f32.mrf.mxu1  ;;  %v19768_v34 = vld [vmem:[#allocation18_spill] sm:$0xff] }
0x10e9   : > { %v13579_v27 = vadd.f32 %v13494_v53, %v13355_v5  ;;  %v13356_v54 = vadd.f32 %v19768_v34, %v13158_v44  ;;  %v13577_v47 = vadd.f32 %v19544_v25, %v13353_v19 }
0x10ea   : > { %v13571_v36 = vpop.f32.mrf.mxu1  ;;  %v19769_v61 = vld [vmem:[#allocation19_spill] sm:$0xff] }
0x10eb   : > { %v13783_v3 = vadd.f32 %v13698_v10, %v13579_v27  ;;  %v13357_v53 = vadd.f32 %v19769_v61, %v13159_v48  ;;  %v13580_v17 = vadd.f32 %v13569_v33, %v13356_v54 }
0x10ec   : > { %v13767_v45 = vpop.f32.mrf.mxu1 }
0x10ed   : > { %v13780_v56 = vadd.f32 %v13767_v45, %v13576_v14  ;;  %v13581_v59 = vadd.f32 %v13571_v36, %v13357_v53 }
0x10ee   : > { %v13769_v29 = vpop.f32.mrf.mxu1 }
0x10ef   : > { %v13894_v6 = vpop.f32.mrf.mxu0  ;;  %v13781_v37 = vadd.f32 %v13769_v29, %v13577_v47 }
0x10f0   : > { %v13773_v62 = vpop.f32.mrf.mxu1  ;;  %v13982_v55 = vadd.f32 %v13894_v6, %v13778_v28 }
0x10f1   : > { %v13896_v35 = vpop.f32.mrf.mxu0  ;;  %v13784_v57 = vadd.f32 %v13773_v62, %v13580_v17 }
0x10f2   : > { %v13775_v46 = vpop.f32.mrf.mxu1  ;;  %v14000_v7 = vadd.f32 %v13993_v18, %v13982_v55  ;;  %v13983_v8 = vadd.f32 %v13896_v35, %v13779_v1  ;;  %v19772_v1 = vld [vmem:[#allocation10_spill] sm:$0xff] }
0x10f3   : > { %v13900_v26 = vpop.f32.mrf.mxu0  ;;  %v13785_v25 = vadd.f32 %v13775_v46, %v13581_v59 }
0x10f4   : > { %v14008_v40 = vmax.f32 %v14000_v7, 0.0  ;;  %v14001_v51 = vadd.f32 %v13993_v18, %v13983_v8  ;;  %v13986_v21 = vadd.f32 %v13900_v26, %v13782_v11  ;;  %v13971_v20 = vpop.f32.mrf.mxu1 }
0x10f5   : > { %v13902_v30 = vpop.f32.mrf.mxu0  ;;  %v13984_v63 = vadd.f32 %v13971_v20, %v13780_v56 }
0x10f6   : > { %v14016_v16 = vmul.f32 %v14008_v40, %v19770_v31  ;;  %v14009_v52 = vmax.f32 %v14001_v51, 0.0  ;;  %v14004_v24 = vadd.f32 %v13998_v38, %v13986_v21  ;;  %v13987_v41 = vadd.f32 %v13902_v30, %v13783_v3  ;;  %v13973_v49 = vpop.f32.mrf.mxu1  ;;  %v14262_v40 = vld [vmem:[#allocation4] sm:$0x1] }
0x10f7   : > { %v13985_v33 = vadd.f32 %v13973_v49, %v13781_v37  ;;  %v14002_v36 = vadd.f32 %v13993_v18, %v13984_v63 }
0x10f8   : > { %v14017_v23 = vmul.f32 %v14009_v52, %v19771_v12  ;;  %v14012_v10 = vmax.f32 %v14004_v24, 0.0  ;;  %v14005_v2 = vadd.f32 %v13998_v38, %v13987_v41  ;;  %v13977_v39 = vpop.f32.mrf.mxu1  ;;  %14032 = vrot.lane.b32.xlu0 %v14016_v16, %s15116_s29  ;;  %v14078_v52 = vld [vmem:[%s19693_s3] sm:$0xff] }
0x10f9   : > { %v13988_v45 = vadd.f32 %v13977_v39, %v13784_v57  ;;  %v14003_v22 = vadd.f32 %v13993_v18, %v13985_v33  ;;  %v14010_v58 = vmax.f32 %v14002_v36, 0.0  ;;  %v19774_v57 = vld [vmem:[#allocation8_spill] sm:$0xff] }
0x10fa   : > { %v14020_v13 = vmul.f32 %v14012_v10, %v19770_v31  ;;  %v14013_v28 = vmax.f32 %v14005_v2, 0.0  ;;  %v13979_v32 = vpop.f32.mrf.mxu1  ;;  %14034 = vrot.lane.b32.xlu1 %v14017_v23, %s15116_s29  ;;  %v19775_v63 = vsub.s32 0, %v19774_v57 }
0x10fb   : > { %v14006_v29 = vadd.f32 %v13998_v38, %v13988_v45  ;;  %v13989_v42 = vadd.f32 %v13979_v32, %v13785_v25  ;;  %v14011_v9 = vmax.f32 %v14003_v22, 0.0  ;;  %v14018_v44 = vmul.f32 %v14010_v58, %v19772_v1 }
0x10fc   : > { %v14021_v0 = vmul.f32 %v14013_v28, %v19771_v12  ;;  %14040 = vrot.lane.b32.xlu0 %v14020_v13, %s15116_s29 }
0x10fd   : > { %v14014_v6 = vmax.f32 %v14006_v29, 0.0  ;;  %v14007_v5 = vadd.f32 %v13998_v38, %v13989_v42  ;;  %v14019_v50 = vmul.f32 %v14011_v9, %v19773_v43 }
0x10fe   : > { %14042 = vrot.lane.b32.xlu1 %v14021_v0, %s15116_s29 }
0x10ff   : > { %v14022_v62 = vmul.f32 %v14014_v6, %v19772_v1  ;;  %v14015_v55 = vmax.f32 %v14007_v5, 0.0 }
0x1101   : > { %v14023_v4 = vmul.f32 %v14015_v55, %v19773_v43  ;;  %14044 = vrot.lane.b32.xlu0 %v14022_v62, %s15116_s29 }
0x1103   : > { %14046 = vrot.lane.b32.xlu1 %v14023_v4, %s15116_s29 }
0x1105   : > { %14036 = vrot.lane.b32.xlu0 %v14018_v44, %s15116_s29 }
0x1107   : > { %14038 = vrot.lane.b32.xlu1 %v14019_v50, %s15116_s29 }
0x116a   : > { %v14033_v18 = vpop.permute.xlu0 %14032 }
0x116b   : > { %14062 = vst.msk [vmem:[#allocation2 + $0x10] sm:$0xff] %vm2251_vm10, %v14033_v18 }
0x116c   : > { %v14035_v35 = vpop.permute.xlu1 %14034 }
0x116d   : > { %v14048_v27 = vsel %vm2236_vm11, %v14033_v18, %v14035_v35 }
0x116e   : > { %14063 = vst [vmem:[#allocation2 + $0x18] sm:$0xff] %v14048_v27  ;;  %v14041_v11 = vpop.permute.xlu0 %14040  ;;  %14089 = vrot.lane.b32.xlu0 %v14048_v27, %s15110_s19 }
0x116f   : > { %14066 = vst.msk [vmem:[#allocation2 + $0x50] sm:$0xff] %vm2251_vm10, %v14041_v11  ;;  %vm14280_vm10 = vcmask 122880  }
0x1170   : > { %v14043_v46 = vpop.permute.xlu1 %14042 }
0x1171   : > { %v14051_v7 = vsel %vm2236_vm11, %v14041_v11, %v14043_v46 }
0x1172   : > { %v14070_v3 = vld [vmem:[#allocation2 + $0x10] sm:$0xff] }
0x1173   : > { %v14045_v8 = vpop.permute.xlu0 %14044 }
0x1174   : > { %v14052_v15 = vsel %vm2236_vm11, %v14043_v46, %v14045_v8 }
0x1175   : > { %v14047_v48 = vpop.permute.xlu1 %14046 }
0x1176   : > { %v14053_v60 = vsel %vm2236_vm11, %v14045_v8, %v14047_v48  ;;  %v14074_v19 = vld [vmem:[#allocation2 + $0x50] sm:$0xff] }
0x1177   : > { %14069 = vst.msk [vmem:[#allocation2 + $0x68] sm:$0xff] %vm1140_vm5, %v14053_v60  ;;  %v14037_v34 = vpop.permute.xlu0 %14036  ;;  %14095 = vrot.lane.b32.xlu0 %v14074_v19, %s15110_s19 }
0x1178   : > { %v14049_v54 = vsel %vm2236_vm11, %v14035_v35, %v14037_v34 }
0x1179   : > { %14064 = vst [vmem:[#allocation2 + $0x20] sm:$0xff] %v14049_v54  ;;  %v14039_v14 = vpop.permute.xlu1 %14038  ;;  %14091 = vrot.lane.b32.xlu1 %v14049_v54, %s15110_s19 }
0x117a   : > { %v14050_v26 = vsel %vm2236_vm11, %v14037_v34, %v14039_v14 }
0x117b   : > { %14065 = vst.msk [vmem:[#allocation2 + $0x28] sm:$0xff] %vm1140_vm5, %v14050_v26  ;;  %14097 = vrot.lane.b32.xlu0 %v14051_v7, %s15110_s19 }
0x117d   : > { %14099 = vrot.lane.b32.xlu1 %v14052_v15, %s15110_s19 }
0x117e   : > { %v14077_v51 = vld [vmem:[#allocation2 + $0x68] sm:$0xff] }
0x117f   : > { %14087 = vrot.lane.b32.xlu0 %v14070_v3, %s15110_s19 }
0x1181   : > { %14101 = vrot.lane.b32.xlu1 %v14077_v51, %s15110_s19 }
0x1182   : > { %v14073_v21 = vld [vmem:[#allocation2 + $0x28] sm:$0xff] }
0x1183   : > { %14265 = vperm.xlu0 %14946, %v14262_v40  }
0x1185   : > { %14093 = vrot.lane.b32.xlu1 %v14073_v21, %s15110_s19  ;;  %s242_s19 = sand.u32 1, %s15095_s24  }
0x1186   : > { %s14417_s17 = sshll.u32 %s242_s19, 4  ;;  %s19649_s4 = scalar_lea.sflag [#allocation6], %s242_s19 }
0x1187   : > { %s19604_s18 = scalar_lea.vmem [#allocation5], %s14417_s17 }
0x1188   : > { %s14351_s16 = sshll.u32 %s19604_s18, 4  ;;  %s19641_s16 = int_to_ptr.vmem [resolvable:$true] %s14351_s16 }
0x1189   : > { %s15043_s30 = scalar_lea.vmem %s19641_s16, 256  ;;  %p15050_p0 = scmp.lt.s32.totalorder %s19641_s16, %s15048_s11 }
0x118a   : > { %p15044_p11 = scmp.ne.s32.totalorder %s19641_s16, %s15043_s30  ;;  %p15051_p1 = scmp.lt.s32.totalorder %s15049_s10, %s15043_s30 }
0x118c   : > { %p15045_p12 = pnand %p15044_p11, %p15206_p5  ;;  %p15052_p2 = por %p15051_p1, %p15050_p0 }
0x118e   : > { %p15046_p13 = pneg %p15045_p12 }
0x1190   : > { %p15053_p3 = pnand %p15052_p2, %p15046_p13 }
0x11e0   : > { %v14090_v20 = vpop.permute.xlu0 %14089 }
0x11e9   : > { %v14096_v38 = vpop.permute.xlu0 %14095 }
0x11eb   : > { %v14092_v61 = vpop.permute.xlu1 %14091 }
0x11ec   : > { %v14104_v16 = vsel %vm1140_vm5, %v14090_v20, %v14092_v61 }
0x11ed   : > { %v14098_v53 = vpop.permute.xlu0 %14097 }
0x11ee   : > { %v14106_v56 = vsel %vm1140_vm5, %v14096_v38, %v14098_v53 }
0x11ef   : > { %v14100_v47 = vpop.permute.xlu1 %14099 }
0x11f0   : > { %v14107_v17 = vsel %vm1140_vm5, %v14098_v53, %v14100_v47 }
0x11f1   : > { %v14088_v30 = vpop.permute.xlu0 %14087  ;;  %14148 = vmatprep.subr.mxu0 %v14107_v17 }
0x11f2   : > { %v14103_v31 = vsel %vm1140_vm5, %v14088_v30, %v14090_v20  ;;  %14149 = vmatpush1.msra.mxu0 %v14106_v56 }
0x11f3   : > { %v14102_v24 = vpop.permute.xlu1 %14101  ;;  %14150 = vmatprep.subr.mxu0 %v14104_v16 }
0x11f4   : > { %v14108_v41 = vsel %vm1140_vm5, %v14100_v47, %v14102_v24  ;;  %14151 = vmatpush1.msra.mxu0 %v14103_v31  ;;  %14219 = vmatprep.subr.mxu1 %v14102_v24 }
0x11f5   : > { %14799 = vmatmul.mubr.msk.f32.vlgmr.msra.gmra.mxu0 %vm362_vm2, %v14078_v52  ;;  %14220 = vmatpush1.msra.mxu1 %v14108_v41 }
0x11f7   : > { %v14094_v49 = vpop.permute.xlu1 %14093 }
0x11f8   : > { %v14105_v59 = vsel %vm1140_vm5, %v14092_v61, %v14094_v49  ;;  %14221 = vmatprep.subr.mxu1 %v14094_v49 }
0x11f9   : > { %14222 = vmatpush1.msra.mxu1 %v14105_v59 }
0x11fa   : > { %14800 = vmatmul.mubr.msk.f32.vlgmr.msra.gmra.mxu1 %vm362_vm2, %v14078_v52 }
0x11fe   : > { %v14266_v37 = vpop.permute.xlu0 %14265 }
0x11ff   : > { %v14271_v12 = vrot.slane %v14266_v37, %v19775_v63 }
0x12b5   : > { %v14186_v23 = vpop.f32.mrf.mxu0 }
0x12b6   : > { %v14272_v10 = vadd.f32 %v14271_v12, %v14186_v23 }
0x12b7   : > { %v14188_v2 = vpop.f32.mrf.mxu0 }
0x12b8   : > { %v14276_v39 = vmax.f32 %v14272_v10, 0.0  ;;  %v14273_v25 = vadd.f32 %v14271_v12, %v14188_v2 }
0x12ba   : > { %14281 = vst.msk [vmem:[%s19604_s18] sm:$0x1] %vm14280_vm10, %v14276_v39  ;;  %v14277_v33 = vmax.f32 %v14273_v25, 0.0  ;;  %v14257_v45 = vpop.f32.mrf.mxu1  ;;  %14287 = vrot.lane.b32.xlu0 %v14276_v39, %s15125_s20  ;;  %14283 = vrot.lane.b32.xlu1 %v14276_v39, %s15126_s14 }
0x12bb   : > { %v14274_v13 = vadd.f32 %v14271_v12, %v14257_v45 }
0x12bc   : > { %14295 = vst.msk [vmem:[%s19604_s18 + $0x4] sm:$0x1] %vm14280_vm10, %v14277_v33  ;;  %v14259_v28 = vpop.f32.mrf.mxu1 }
0x12bd   : > { %v14278_v32 = vmax.f32 %v14274_v13, 0.0  ;;  %v14275_v36 = vadd.f32 %v14271_v12, %v14259_v28 }
0x12be   : > { %14291 = vrot.lane.b32.xlu1 %v14276_v39, %s15127_s22 }
0x12bf   : > { %14309 = vst.msk [vmem:[%s19604_s18 + $0x8] sm:$0x1] %vm14280_vm10, %v14278_v32  ;;  %v14279_v29 = vmax.f32 %v14275_v36, 0.0  ;;  %14315 = vrot.lane.b32.xlu0 %v14278_v32, %s15125_s20 }
0x12c1   : > { %14323 = vst.msk [vmem:[%s19604_s18 + $0xc] sm:$0x1] %vm14280_vm10, %v14279_v29 }
0x12c2   : > { %14311 = vrot.lane.b32.xlu1 %v14278_v32, %s15126_s14 }
0x12c3   : > { %14297 = vrot.lane.b32.xlu0 %v14277_v33, %s15126_s14 }
0x12c6   : > { %14319 = vrot.lane.b32.xlu1 %v14278_v32, %s15127_s22 }
0x12c7   : > { %14305 = vrot.lane.b32.xlu0 %v14277_v33, %s15127_s22 }
0x12ca   : > { %14301 = vrot.lane.b32.xlu1 %v14277_v33, %s15125_s20 }
0x12cb   : > { %14325 = vrot.lane.b32.xlu0 %v14279_v29, %s15126_s14 }
0x12ce   : > { %14329 = vrot.lane.b32.xlu1 %v14279_v29, %s15125_s20 }
0x12cf   : > { %14333 = vrot.lane.b32.xlu0 %v14279_v29, %s15127_s22 }
0x132c   : > { %v14288_v42 = vpop.permute.xlu0 %14287  ;;  %v14284_v0 = vpop.permute.xlu1 %14283 }
0x132d   : > { %14290 = vst.msk [vmem:[%s19604_s18 + $0x2] sm:$0x1] %vm14280_vm10, %v14288_v42  ;;  %14286 = vst.msk [vmem:[%s19604_s18 + $0x1] sm:$0x1] %vm14280_vm10, %v14284_v0 }
0x1330   : > { %v14292_v22 = vpop.permute.xlu1 %14291 }
0x1331   : > { %14294 = vst.msk [vmem:[%s19604_s18 + $0x3] sm:$0x1] %vm14280_vm10, %v14292_v22  ;;  %v14316_v6 = vpop.permute.xlu0 %14315 }
0x1332   : > { %14318 = vst.msk [vmem:[%s19604_s18 + $0xa] sm:$0x1] %vm14280_vm10, %v14316_v6 }
0x1334   : > { %v14312_v5 = vpop.permute.xlu1 %14311 }
0x1335   : > { %14314 = vst.msk [vmem:[%s19604_s18 + $0x9] sm:$0x1] %vm14280_vm10, %v14312_v5  ;;  %v14298_v58 = vpop.permute.xlu0 %14297 }
0x1336   : > { %14300 = vst.msk [vmem:[%s19604_s18 + $0x5] sm:$0x1] %vm14280_vm10, %v14298_v58 }
0x1338   : > { %v14320_v1 = vpop.permute.xlu1 %14319 }
0x1339   : > { %14322 = vst.msk [vmem:[%s19604_s18 + $0xb] sm:$0x1] %vm14280_vm10, %v14320_v1  ;;  %v14306_v62 = vpop.permute.xlu0 %14305 }
0x133a   : > { %14308 = vst.msk [vmem:[%s19604_s18 + $0x7] sm:$0x1] %vm14280_vm10, %v14306_v62 }
0x133c   : > { %v14302_v55 = vpop.permute.xlu1 %14301 }
0x133d   : > { %14304 = vst.msk [vmem:[%s19604_s18 + $0x6] sm:$0x1] %vm14280_vm10, %v14302_v55  ;;  %v14326_v9 = vpop.permute.xlu0 %14325 }
0x133e   : > { %14328 = vst.msk [vmem:[%s19604_s18 + $0xd] sm:$0x1] %vm14280_vm10, %v14326_v9 }
0x1340   : > { %v14330_v43 = vpop.permute.xlu1 %14329 }
0x1341   : > { %14332 = vst.msk [vmem:[%s19604_s18 + $0xe] sm:$0x1] %vm14280_vm10, %v14330_v43  ;;  %v14334_v4 = vpop.permute.xlu0 %14333 }
0x1342   : > { %14336 = vst.msk [vmem:[%s19604_s18 + $0xf] sm:$0x1] %vm14280_vm10, %v14334_v4 }
0x1343   : > { %15056 = shalt.err (!%p15053_p3)
}
0x1344   : > { %s15057_s19 = scalar_lea.hbm %s19639_s15, 256  ;;  %s15061_s20 = scalar_lea.hbm %s19696_s6, 512 }
0x1345   : > { %p15058_p4 = scmp.ne.s32.totalorder %s19639_s15, %s15057_s19  ;;  %p15062_p9 = scmp.lt.s32.totalorder %s19639_s15, %s19696_s6 }
0x1346   : > { %p15063_p10 = scmp.lt.s32.totalorder %s15061_s20, %s15057_s19 }
0x1347   : > { %p15059_p7 = pnand %p15058_p4, %p15206_p5 }
0x1348   : > { %p15064_p11 = por %p15063_p10, %p15062_p9 }
0x1349   : > { %p15060_p8 = pneg %p15059_p7 }
0x134b   : > { %p15065_p12 = pnand %p15064_p11, %p15060_p8 }
0x134d   : > { %15068 = shalt.err (!%p15065_p12)
}
0x134e   : > { %s15129_s27 = smov 128  }
0x134f   : > { %14807 = dma.vmem_to_hbm [thread:$0]  (%p15206_p5), %s19641_s16, 256, %s19639_s15, %s19649_s4, %s15129_s27, %s15129_s27, %s15116_s29  }
0x1350 PF: > { %p14813_p13 = scmp.ge.s32.totalorder %s15103_s26, 2  ;;  %s14366_s12 = sand.u32 1, %s15091_s23  }
0x1351   : > { %s14367_s13 = scalar_lea.sflag [#allocation6], %s14366_s12 }
0x1352   : > { %p14810_p0 = pnand %p14813_p13, %p15210_p6 }
0x1354   : > { %p14811_p1 = pneg %p14810_p0 }
0x1356   : > { %15086 = dma.done.wait (%p14811_p1), %s14367_s13, 256  }
0x1357   : > { %15088 = vsyncadd (%p14811_p1), %s14367_s13, 4294967040  ;;  %p18_p2 = scmp.ge.s32.totalorder %s15193_s28, 4   ;;  %s19776_s23 = smov %s15095_s24 }
0x1358   : > { %s19777_s24 = smov %s15099_s25  ;;  %s19778_s25 = smov %s15204_s7 }
0x1359   : > { %s19779_s26 = smov %s15193_s28  ;;  %20 = sbr.rel (!%p18_p2) target bundleno = 6 (0x6), region = 93 }
0x135e   :  { %14372 = vsyncpa [#allocation6], 1 }
0x135f   :  { %14374 = vsyncpa [#allocation6 + $0x1], 1 }

</bundles_post_ra>
